<compile_context>
chip_gen: v6e
topology: v6e:2x2x1
jax: 0.10.0
libtpu: 0.0.40
codegen_flags: <defaults>
</compile_context>

<pallas_src>
import functools

import jax
import jax.numpy as jnp
from jax import lax
from jax.experimental import pallas as pl
from jax.experimental.pallas import tpu as pltpu


# ------------------------------ CNN tower kernel ----------------------------

def _cnn_tower_kernel(x_ref, w1_ref, b1_ref, w2_ref, b2_ref, w3_ref, b3_ref, o_ref,
                      *, l1, lp1, l2, lp2, l3):
    # x_ref: (1, L, 20) channels-last block for one batch element
    # wN_ref: (3, Cin, Cout) conv taps; bN_ref: (1, Cout); o_ref: (1, l3, 128)

    def conv3_relu(x, w_ref, b_ref, lout):
        # kernel-size-3 conv as three shifted VMEM views x three MXU matmuls
        y = (jnp.dot(x[0:lout, :], w_ref[0], preferred_element_type=jnp.float32)
             + jnp.dot(x[1:lout + 1, :], w_ref[1], preferred_element_type=jnp.float32)
             + jnp.dot(x[2:lout + 2, :], w_ref[2], preferred_element_type=jnp.float32)
             + b_ref[...])
        return jnp.maximum(y, 0.0)

    def pool3(x, lp):
        # AvgPool1d(3) as P @ x, P[p, t] = 1/3 iff 3p <= t < 3p+3 (no strided slices)
        lin = x.shape[0]
        row = lax.broadcasted_iota(jnp.int32, (lp, lin), 0)
        col = lax.broadcasted_iota(jnp.int32, (lp, lin), 1)
        d = col - 3 * row
        pm = jnp.where((d >= 0) & (d < 3), jnp.float32(1.0 / 3.0), jnp.float32(0.0))
        return jnp.dot(pm, x, preferred_element_type=jnp.float32)

    x = x_ref[0]                                        # (L, 20)
    y = conv3_relu(x, w1_ref, b1_ref, l1)               # (l1, 64)
    y = pool3(y, lp1)                                   # (lp1, 64)
    y = conv3_relu(y, w2_ref, b2_ref, l2)               # (l2, 128)
    y = pool3(y, lp2)                                   # (lp2, 128)
    y = conv3_relu(y, w3_ref, b3_ref, l3)               # (l3, 128)
    o_ref[0] = y


def cnn_tower(pssm, q):
    B, L, Cin = pssm.shape
    l1 = L - 2
    lp1 = l1 // 3
    l2 = lp1 - 2
    lp2 = l2 // 3
    l3 = lp2 - 2
    kern = functools.partial(_cnn_tower_kernel, l1=l1, lp1=lp1, l2=l2, lp2=lp2, l3=l3)
    return pl.pallas_call(
        kern,
        out_shape=jax.ShapeDtypeStruct((B, l3, 128), jnp.float32),
        grid=(B,),
        in_specs=[pl.BlockSpec((1, L, Cin), lambda b: (b, 0, 0)),
                  pl.BlockSpec(q['cnn1_w'].shape, lambda b: (0, 0, 0)),
                  pl.BlockSpec(q['cnn1_b'].shape, lambda b: (0, 0)),
                  pl.BlockSpec(q['cnn2_w'].shape, lambda b: (0, 0, 0)),
                  pl.BlockSpec(q['cnn2_b'].shape, lambda b: (0, 0)),
                  pl.BlockSpec(q['cnn3_w'].shape, lambda b: (0, 0, 0)),
                  pl.BlockSpec(q['cnn3_b'].shape, lambda b: (0, 0))],
        out_specs=pl.BlockSpec((1, l3, 128), lambda b: (b, 0, 0)),
        compiler_params=pltpu.CompilerParams(dimension_semantics=("parallel",)),
    )(pssm, q['cnn1_w'], q['cnn1_b'], q['cnn2_w'], q['cnn2_b'], q['cnn3_w'], q['cnn3_b'])


# --------------- fused bidirectional LSTM (projection + recurrence) ---------

def _bilstm_recur(gx_ref, len_ref, whh_ref, outf_ref, outb_ref, hfin_ref,
                  *, T, H, B, write_out):
    # gx_ref : (T, B, 8H) precomputed x@W_ih + bias, gate columns laid out as
    #          [i_f i_b | f_f f_b | o_f o_b | g_f g_b]
    # len_ref: (B, 1) int32 valid lengths (pack_padded_sequence emulation)
    # whh_ref: (2H, 8H) block-diagonal recurrent weights, input rows = [h_f | h_b]
    lens = len_ref[...]                                         # (B, 1) int32
    whh = whh_ref[...]                                          # (2H, 8H)
    lane_s = lax.broadcasted_iota(jnp.int32, (B, 2 * H), 1)
    state_is_fwd = lane_s < H                                   # state lanes: [fwd | bwd]
    lane_g = lax.broadcasted_iota(jnp.int32, (B, 8 * H), 1)
    gate_is_fwd = jnp.bitwise_and(lane_g, 2 * H - 1) < H        # 2H is a power of two

    def step(s, carry):
        h, c = carry                                            # (B, 2H) each
        r = T - 1 - s                                           # backward time index
        gx = jnp.where(gate_is_fwd, gx_ref[s], gx_ref[r])       # (B, 8H)
        gates = gx + jnp.dot(h, whh, preferred_element_type=jnp.float32)
        sig = jax.nn.sigmoid(gates[:, 0:6 * H])                 # one 384-lane EUP call
        g_t = jnp.tanh(gates[:, 6 * H:8 * H])                   # one 128-lane EUP call
        i_g = sig[:, 0:2 * H]
        f_g = sig[:, 2 * H:4 * H]
        o_g = sig[:, 4 * H:6 * H]
        c_new = f_g * c + i_g * g_t                             # full-vreg (B, 2H) math
        h_new = o_g * jnp.tanh(c_new)
        t_lane = jnp.where(state_is_fwd, s, r)                  # per-lane time index
        upd = t_lane < lens                                     # packed-sequence mask
        h = jnp.where(upd, h_new, h)
        c = jnp.where(upd, c_new, c)
        if write_out:
            ov = jnp.where(upd, h_new, 0.0)
            outf_ref[s] = ov[:, 0:H]                            # forward output at t = s
            outb_ref[r] = ov[:, H:2 * H]                        # backward output at t = r
        return h, c

    h0 = jnp.zeros((B, 2 * H), jnp.float32)
    hT, _ = lax.fori_loop(0, T, step, (h0, h0), unroll=(T <= 8))
    hfin_ref[...] = hT                                          # [h_fwd final | h_bwd final]


def _bilstm1_kernel(x_ref, len_ref, wih_ref, whh_ref, b_ref,
                    outf_ref, outb_ref, hfin_ref, gx_ref, *, T, H, B):
    wih = wih_ref[...]
    bias = b_ref[...]

    @pl.loop(0, T)                                   # input projection into VMEM scratch
    def _(s):
        gx_ref[s] = jnp.dot(x_ref[s], wih, preferred_element_type=jnp.float32) + bias

    _bilstm_recur(gx_ref, len_ref, whh_ref, outf_ref, outb_ref, hfin_ref,
                  T=T, H=H, B=B, write_out=True)


def _bilstm2_kernel(xf_ref, xb_ref, len_ref, wf_ref, wb_ref, whh_ref, b_ref,
                    hfin_ref, gx_ref, *, T, H, B):
    wf = wf_ref[...]
    wb = wb_ref[...]
    bias = b_ref[...]

    @pl.loop(0, T)
    def _(s):
        gx_ref[s] = (jnp.dot(xf_ref[s], wf, preferred_element_type=jnp.float32)
                     + jnp.dot(xb_ref[s], wb, preferred_element_type=jnp.float32)
                     + bias)

    _bilstm_recur(gx_ref, len_ref, whh_ref, None, None, hfin_ref,
                  T=T, H=H, B=B, write_out=False)


def bilstm_layer1(x_tb, lens_b1, wih, whh, bias, *, H):
    T, B, _ = x_tb.shape
    kern = functools.partial(_bilstm1_kernel, T=T, H=H, B=B)
    return pl.pallas_call(
        kern,
        out_shape=(jax.ShapeDtypeStruct((T, B, H), jnp.float32),
                   jax.ShapeDtypeStruct((T, B, H), jnp.float32),
                   jax.ShapeDtypeStruct((B, 2 * H), jnp.float32)),
        scratch_shapes=[pltpu.VMEM((T, B, 8 * H), jnp.float32)],
    )(x_tb, lens_b1, wih, whh, bias)


def bilstm_layer2(xf, xb, lens_b1, wf, wb, whh, bias, *, H):
    T, B, _ = xf.shape
    kern = functools.partial(_bilstm2_kernel, T=T, H=H, B=B)
    return pl.pallas_call(
        kern,
        out_shape=jax.ShapeDtypeStruct((B, 2 * H), jnp.float32),
        scratch_shapes=[pltpu.VMEM((T, B, 8 * H), jnp.float32)],
    )(xf, xb, lens_b1, wf, wb, whh, bias)


# --------------- prot mean-pool + fc1 -> fc2 -> fc3 head kernel -------------

def _head_kernel(prot_ref, dl_ref, h_ref, w1h_ref, w1p_ref, b1_ref,
                 w2_ref, b2_ref, w3_ref, b3_ref, o_ref, acc_ref):
    @pl.when(pl.program_id(0) == 0)
    def _():
        acc_ref[...] = jnp.zeros_like(acc_ref)

    acc_ref[...] += jnp.sum(prot_ref[...], axis=1)              # (B, 1024)

    @pl.when(pl.program_id(0) == pl.num_programs(0) - 1)
    def _():
        # Matches torch.sum(prot, dim=1) / data_length: sum over the full padded
        # length (reference semantics); only the divisor is the true length.
        pmean = acc_ref[...] / dl_ref[...]
        # fc1 split so feat = [h_fwd | h_bwd | prot_mean] needs no in-kernel concat
        y = (jnp.dot(h_ref[...], w1h_ref[...], preferred_element_type=jnp.float32)
             + jnp.dot(pmean, w1p_ref[...], preferred_element_type=jnp.float32)
             + b1_ref[...])
        y = jnp.dot(y, w2_ref[...], preferred_element_type=jnp.float32) + b2_ref[...]
        y = jnp.dot(y, w3_ref[...], preferred_element_type=jnp.float32) + b3_ref[...]
        o_ref[...] = y


def _pick_chunk(L):
    for c in (512, 256, 128, 64, 32, 16, 8):
        if L % c == 0:
            return c
    return L


def head_forward(prot, dl_b1, lstm_feat, w1h, w1p, b1, w2, b2, w3, b3):
    B, L, Dp = prot.shape
    lc = _pick_chunk(L)               # tile prot over L (VMEM-budget friendly on v7x)
    nl = L // lc
    return pl.pallas_call(
        _head_kernel,
        out_shape=jax.ShapeDtypeStruct((B, w3.shape[1]), jnp.float32),
        grid=(nl,),
        in_specs=[pl.BlockSpec((B, lc, Dp), lambda l: (0, l, 0)),
                  pl.BlockSpec((B, 1), lambda l: (0, 0)),
                  pl.BlockSpec(lstm_feat.shape, lambda l: (0, 0)),
                  pl.BlockSpec(w1h.shape, lambda l: (0, 0)),
                  pl.BlockSpec(w1p.shape, lambda l: (0, 0)),
                  pl.BlockSpec(b1.shape, lambda l: (0, 0)),
                  pl.BlockSpec(w2.shape, lambda l: (0, 0)),
                  pl.BlockSpec(b2.shape, lambda l: (0, 0)),
                  pl.BlockSpec(w3.shape, lambda l: (0, 0)),
                  pl.BlockSpec(b3.shape, lambda l: (0, 0))],
        out_specs=pl.BlockSpec((B, w3.shape[1]), lambda l: (0, 0)),
        scratch_shapes=[pltpu.VMEM((B, Dp), jnp.float32)],
        compiler_params=pltpu.CompilerParams(dimension_semantics=("arbitrary",)),
    )(prot, dl_b1, lstm_feat, w1h, w1p, b1, w2, b2, w3, b3)


# ---------------------------- parameter handling ----------------------------

def init_params(key):
    """Random parameters in the native PyTorch layouts."""
    ks = jax.random.split(key, 20)

    def u(k, shape):
        return jax.random.uniform(k, shape, jnp.float32, -0.1, 0.1)

    p = {}
    p['cnn1_w'] = u(ks[0], (64, 20, 3));    p['cnn1_b'] = u(ks[1], (64,))
    p['cnn2_w'] = u(ks[2], (128, 64, 3));   p['cnn2_b'] = u(ks[3], (128,))
    p['cnn3_w'] = u(ks[4], (128, 128, 3));  p['cnn3_b'] = u(ks[5], (128,))
    H = 64
    lstm = {}
    ki = 6
    for layer in range(2):
        for d in range(2):
            din = 128  # layer0: conv out 128, layer1: bidirectional 2*64
            lstm[(layer, d)] = (u(jax.random.fold_in(ks[ki], 0), (4 * H, din)),
                                u(jax.random.fold_in(ks[ki], 1), (4 * H, H)),
                                u(jax.random.fold_in(ks[ki], 2), (4 * H,)),
                                u(jax.random.fold_in(ks[ki], 3), (4 * H,)))
            ki += 1
    p['lstm'] = lstm
    p['fc1_w'] = u(ks[ki], (256, 128 + 1024)); p['fc1_b'] = u(ks[ki + 1], (256,))
    p['fc2_w'] = u(ks[ki + 2], (64, 256));     p['fc2_b'] = u(ks[ki + 3], (64,))
    p['fc3_w'] = u(ks[ki + 4], (2, 64));       p['fc3_b'] = u(ks[ki + 5], (2,))
    return p


def prepare_params(p):
    """One-time re-layout of PyTorch-style params into kernel-ready form."""
    H = 64
    q = {}
    for i in (1, 2, 3):
        q[f'cnn{i}_w'] = jnp.transpose(p[f'cnn{i}_w'], (2, 1, 0))   # (3, Cin, Cout)
        q[f'cnn{i}_b'] = p[f'cnn{i}_b'].reshape(1, -1)

    def gate_blocks(w):            # (4H, X) pytorch [i; f; g; o] rows -> blocks
        return w[0:H], w[H:2 * H], w[2 * H:3 * H], w[3 * H:4 * H]

    def fuse_layer(fwd, bwd):
        wih_f, whh_f, bih_f, bhh_f = fwd
        wih_b, whh_b, bih_b, bhh_b = bwd
        i_f, f_f, g_f, o_f = gate_blocks(wih_f)
        i_b, f_b, g_b, o_b = gate_blocks(wih_b)
        hi_f, hf_f, hg_f, ho_f = gate_blocks(whh_f)
        hi_b, hf_b, hg_b, ho_b = gate_blocks(whh_b)
        bi_f, bf_f, bg_f, bo_f = gate_blocks((bih_f + bhh_f).reshape(4 * H, 1))
        bi_b, bf_b, bg_b, bo_b = gate_blocks((bih_b + bhh_b).reshape(4 * H, 1))
        # global gate-column order: [i_f i_b | f_f f_b | o_f o_b | g_f g_b]
        wih_cat = jnp.concatenate(
            [i_f.T, i_b.T, f_f.T, f_b.T, o_f.T, o_b.T, g_f.T, g_b.T], axis=1)  # (Din, 8H)

        def blkdiag(a, b):          # fwd gates only see h_f rows, bwd only h_b rows
            z = jnp.zeros((H, H), jnp.float32)
            top = jnp.concatenate([a.T, z], axis=1)
            bot = jnp.concatenate([z, b.T], axis=1)
            return jnp.concatenate([top, bot], axis=0)          # (2H, 2H)

        whh_cat = jnp.concatenate([blkdiag(hi_f, hi_b), blkdiag(hf_f, hf_b),
                                   blkdiag(ho_f, ho_b), blkdiag(hg_f, hg_b)],
                                  axis=1)                       # (2H, 8H)
        bias_cat = jnp.concatenate(
            [bi_f, bi_b, bf_f, bf_b, bo_f, bo_b, bg_f, bg_b], axis=0).reshape(1, 8 * H)
        return wih_cat, whh_cat, bias_cat

    q['l1_wih'], q['l1_whh'], q['l1_b'] = fuse_layer(p['lstm'][(0, 0)], p['lstm'][(0, 1)])
    wih2, q['l2_whh'], q['l2_b'] = fuse_layer(p['lstm'][(1, 0)], p['lstm'][(1, 1)])
    q['l2_wih_f'] = wih2[0:H]        # rows fed by layer-1 forward outputs
    q['l2_wih_b'] = wih2[H:2 * H]    # rows fed by layer-1 backward outputs

    # fc weights pre-transposed; fc1 rows permuted and split so kernel-side ordering
    # [h_fwd | h_bwd] + prot_mean matches torch.cat((h_n[-1], h_n[-2], prot)).
    w1t = p['fc1_w'].T               # (1152, 256); rows 0:64 <- h_n[-1]=bwd, 64:128 <- fwd
    q['fc1_w_h'] = jnp.concatenate([w1t[H:2 * H], w1t[0:H]], axis=0)   # (128, 256)
    q['fc1_w_p'] = w1t[2 * H:]                                          # (1024, 256)
    q['fc1_b'] = p['fc1_b'].reshape(1, -1)
    q['fc2_w'] = p['fc2_w'].T
    q['fc2_b'] = p['fc2_b'].reshape(1, -1)
    q['fc3_w'] = p['fc3_w'].T
    q['fc3_b'] = p['fc3_b'].reshape(1, -1)
    return q


# --------------------------------- forward ----------------------------------

def tl_deep_forward(prot, pssm, data_length, q):
    B, L, _ = pssm.shape
    H = 64

    # CNN tower (conv1+relu -> pool1 -> conv2+relu -> pool2 -> conv3+relu), one kernel
    c3 = cnn_tower(pssm, q)                                # (B, T, 128)
    T = c3.shape[1]

    # packed-sequence valid lengths (same arithmetic as the PyTorch forward)
    ddl = data_length - 2.0
    ddl = jnp.floor((ddl - 3.0) / 3.0) + 1.0
    ddl = ddl - 2.0
    ddl = jnp.floor((ddl - 3.0) / 3.0) + 1.0
    ddl = ddl - 2.0
    lens = (ddl + 0.5).astype(jnp.int32).reshape(B, 1)     # rounding guard; values integral

    # 2-layer bidirectional LSTM (inter-layer dropout is identity in eval mode)
    x_tb = jnp.transpose(c3, (1, 0, 2))                    # (T, B, 128) time-major
    out_f, out_b, _ = bilstm_layer1(x_tb, lens, q['l1_wih'], q['l1_whh'], q['l1_b'], H=H)
    hfin = bilstm_layer2(out_f, out_b, lens, q['l2_wih_f'], q['l2_wih_b'],
                         q['l2_whh'], q['l2_b'], H=H)      # (B, 2H) = [fwd final | bwd final]

    # prot mean-pool + fc head, all in one fused kernel
    dl = data_length.reshape(B, 1).astype(jnp.float32)
    return head_forward(prot, dl, hfin, q['fc1_w_h'], q['fc1_w_p'], q['fc1_b'],
                        q['fc2_w'], q['fc2_b'], q['fc3_w'], q['fc3_b'])


if __name__ == "__main__":
    key = jax.random.PRNGKey(0)
    kp, k1, k2 = jax.random.split(key, 3)
    params = prepare_params(init_params(kp))      # one-time weight re-layout

    B, L = 2, 64
    pssm = jax.random.normal(k1, (B, L, 20), jnp.float32)      # padded PSSM (channels-last)
    prot = jax.random.normal(k2, (B, L, 1024), jnp.float32)    # per-residue embeddings
    data_length = jnp.array([64.0, 52.0], jnp.float32)         # sorted descending

    out = jax.jit(tl_deep_forward)(prot, pssm, data_length, params)
    out = jax.block_until_ready(out)
    assert out.shape == (B, 2) and out.dtype == jnp.float32
    print("KERNEL_OK")
</pallas_src>

<mosaic_0001>
module attributes {stable_mosaic.version = 11 : i64} {
  func.func @_bilstm2_kernel(%arg0: memref<4x2x64xf32, #tpu.memory_space<vmem>>, %arg1: memref<4x2x64xf32, #tpu.memory_space<vmem>>, %arg2: memref<2x1xi32, #tpu.memory_space<vmem>>, %arg3: memref<64x512xf32, #tpu.memory_space<vmem>>, %arg4: memref<64x512xf32, #tpu.memory_space<vmem>>, %arg5: memref<128x512xf32, #tpu.memory_space<vmem>>, %arg6: memref<1x512xf32, #tpu.memory_space<vmem>>, %arg7: memref<2x128xf32, #tpu.memory_space<vmem>>, %arg8: memref<4x2x512xf32, #tpu.memory_space<vmem>>) attributes {dimension_semantics = [], scalar_prefetch = 0 : i64, scratch_operands = 1 : i64, tpu.core_type = #tpu.core_type<tc>} {
    %c0 = arith.constant 0 : index
    %c0_0 = arith.constant 0 : index
    %0 = vector.load %arg3[%c0, %c0_0] : memref<64x512xf32, #tpu.memory_space<vmem>>, vector<64x512xf32>
    %c0_1 = arith.constant 0 : index
    %c0_2 = arith.constant 0 : index
    %1 = vector.load %arg4[%c0_1, %c0_2] : memref<64x512xf32, #tpu.memory_space<vmem>>, vector<64x512xf32>
    %c0_3 = arith.constant 0 : index
    %c0_4 = arith.constant 0 : index
    %2 = vector.load %arg6[%c0_3, %c0_4] : memref<1x512xf32, #tpu.memory_space<vmem>>, vector<1x512xf32>
    %c0_i32 = arith.constant 0 : i32
    %c4_i32 = arith.constant 4 : i32
    %3 = arith.addi %c0_i32, %c4_i32 : i32
    %c1_i32 = arith.constant 1 : i32
    scf.for %arg9 = %c0_i32 to %3 step %c1_i32  : i32 {
      %c1_i32_44 = arith.constant 1 : i32
      %148 = arith.muli %arg9, %c1_i32_44 : i32
      %c0_i32_45 = arith.constant 0 : i32
      %149 = arith.addi %c0_i32_45, %148 : i32
      %150 = arith.index_cast %149 : i32 to index
      %c0_46 = arith.constant 0 : index
      %c0_47 = arith.constant 0 : index
      %151 = vector.load %arg0[%150, %c0_46, %c0_47] : memref<4x2x64xf32, #tpu.memory_space<vmem>>, vector<1x2x64xf32>
      %152 = vector.shape_cast %151 : vector<1x2x64xf32> to vector<2x64xf32>
      %cst_48 = arith.constant dense<0.000000e+00> : vector<2x512xf32>
      %153 = tpu.matmul %152, %0, %cst_48 {dimension_numbers = #tpu.dot_dimension_numbers<[1], [0], [0], [1], [0, 0, 1, 1], [], []>} : vector<2x64xf32>, vector<64x512xf32>, vector<2x512xf32> -> vector<2x512xf32>
      %154 = arith.index_cast %149 : i32 to index
      %c0_49 = arith.constant 0 : index
      %c0_50 = arith.constant 0 : index
      %155 = vector.load %arg1[%154, %c0_49, %c0_50] : memref<4x2x64xf32, #tpu.memory_space<vmem>>, vector<1x2x64xf32>
      %156 = vector.shape_cast %155 : vector<1x2x64xf32> to vector<2x64xf32>
      %cst_51 = arith.constant dense<0.000000e+00> : vector<2x512xf32>
      %157 = tpu.matmul %156, %1, %cst_51 {dimension_numbers = #tpu.dot_dimension_numbers<[1], [0], [0], [1], [0, 0, 1, 1], [], []>} : vector<2x64xf32>, vector<64x512xf32>, vector<2x512xf32> -> vector<2x512xf32>
      %158 = arith.addf %153, %157 : vector<2x512xf32>
      %159 = vector.broadcast %2 : vector<1x512xf32> to vector<2x512xf32>
      %160 = arith.addf %158, %159 : vector<2x512xf32>
      %161 = arith.index_cast %149 : i32 to index
      %c0_52 = arith.constant 0 : index
      %c0_53 = arith.constant 0 : index
      %162 = vector.load %arg8[%161, %c0_52, %c0_53] : memref<4x2x512xf32, #tpu.memory_space<vmem>>, vector<1x2x512xf32>
      %163 = vector.shape_cast %162 : vector<1x2x512xf32> to vector<2x512xf32>
      %164 = vector.shape_cast %160 : vector<2x512xf32> to vector<1x2x512xf32>
      tpu.vector_store %arg8[%161, %c0_52, %c0_53], %164 {strides = array<i32>} : memref<4x2x512xf32, #tpu.memory_space<vmem>>, vector<1x2x512xf32>,
    }
    %c4_i32_5 = arith.constant 4 : i32
    %c0_6 = arith.constant 0 : index
    %c0_7 = arith.constant 0 : index
    %4 = vector.load %arg2[%c0_6, %c0_7] : memref<2x1xi32, #tpu.memory_space<vmem>>, vector<2x1xi32>
    %c0_8 = arith.constant 0 : index
    %c0_9 = arith.constant 0 : index
    %5 = vector.load %arg5[%c0_8, %c0_9] : memref<128x512xf32, #tpu.memory_space<vmem>>, vector<128x512xf32>
    %6 = tpu.iota {dimensions = array<i32: 1>} : vector<2x128xi32>
    %c64_i32 = arith.constant 64 : i32
    %7 = vector.broadcast %c64_i32 : i32 to vector<2x128xi32>
    %8 = arith.cmpi slt, %6, %7 : vector<2x128xi32>
    %9 = tpu.iota {dimensions = array<i32: 1>} : vector<2x512xi32>
    %c127_i32 = arith.constant 127 : i32
    %10 = vector.broadcast %c127_i32 : i32 to vector<2x512xi32>
    %11 = arith.andi %9, %10 : vector<2x512xi32>
    %c64_i32_10 = arith.constant 64 : i32
    %12 = vector.broadcast %c64_i32_10 : i32 to vector<2x512xi32>
    %13 = arith.cmpi slt, %11, %12 : vector<2x512xi32>
    %cst = arith.constant 0.000000e+00 : f32
    %14 = vector.broadcast %cst : f32 to vector<2x128xf32>
    %c0_i32_11 = arith.constant 0 : i32
    %c3_i32 = arith.constant 3 : i32
    %15 = arith.subi %c3_i32, %c0_i32_11 : i32
    %16 = arith.index_cast %c0_i32_11 : i32 to index
    %c0_12 = arith.constant 0 : index
    %c0_13 = arith.constant 0 : index
    %17 = vector.load %arg8[%16, %c0_12, %c0_13] : memref<4x2x512xf32, #tpu.memory_space<vmem>>, vector<1x2x512xf32>
    %18 = vector.shape_cast %17 : vector<1x2x512xf32> to vector<2x512xf32>
    %19 = arith.index_cast %15 : i32 to index
    %c0_14 = arith.constant 0 : index
    %c0_15 = arith.constant 0 : index
    %20 = vector.load %arg8[%19, %c0_14, %c0_15] : memref<4x2x512xf32, #tpu.memory_space<vmem>>, vector<1x2x512xf32>
    %21 = vector.shape_cast %20 : vector<1x2x512xf32> to vector<2x512xf32>
    %22 = arith.select %13, %18, %21 : vector<2x512xi1>, vector<2x512xf32>
    %cst_16 = arith.constant dense<0.000000e+00> : vector<2x512xf32>
    %23 = tpu.matmul %14, %5, %cst_16 {dimension_numbers = #tpu.dot_dimension_numbers<[1], [0], [0], [1], [0, 0, 1, 1], [], []>} : vector<2x128xf32>, vector<128x512xf32>, vector<2x512xf32> -> vector<2x512xf32>
    %24 = arith.addf %22, %23 : vector<2x512xf32>
    %25 = vector.extract_strided_slice %24 {offsets = [0, 0], sizes = [2, 384], strides = [1, 1]} : vector<2x512xf32> to vector<2x384xf32>
    %26 = arith.negf %25 : vector<2x384xf32>
    %27 = math.exp %26 : vector<2x384xf32>
    %cst_17 = arith.constant 1.000000e+00 : f32
    %28 = vector.broadcast %cst_17 : f32 to vector<2x384xf32>
    %29 = arith.addf %28, %27 : vector<2x384xf32>
    %30 = arith.divf %28, %29 : vector<2x384xf32>
    %31 = vector.extract_strided_slice %24 {offsets = [0, 384], sizes = [2, 128], strides = [1, 1]} : vector<2x512xf32> to vector<2x128xf32>
    %32 = math.tanh %31 : vector<2x128xf32>
    %33 = vector.extract_strided_slice %30 {offsets = [0, 0], sizes = [2, 128], strides = [1, 1]} : vector<2x384xf32> to vector<2x128xf32>
    %34 = vector.extract_strided_slice %30 {offsets = [0, 128], sizes = [2, 128], strides = [1, 1]} : vector<2x384xf32> to vector<2x128xf32>
    %35 = vector.extract_strided_slice %30 {offsets = [0, 256], sizes = [2, 128], strides = [1, 1]} : vector<2x384xf32> to vector<2x128xf32>
    %36 = arith.mulf %34, %14 : vector<2x128xf32>
    %37 = arith.mulf %33, %32 : vector<2x128xf32>
    %38 = arith.addf %36, %37 : vector<2x128xf32>
    %39 = math.tanh %38 : vector<2x128xf32>
    %40 = arith.mulf %35, %39 : vector<2x128xf32>
    %41 = vector.broadcast %c0_i32_11 : i32 to vector<2x128xi32>
    %42 = vector.broadcast %15 : i32 to vector<2x128xi32>
    %43 = arith.select %8, %41, %42 : vector<2x128xi1>, vector<2x128xi32>
    %44 = vector.broadcast %4 : vector<2x1xi32> to vector<2x128xi32>
    %45 = arith.cmpi slt, %43, %44 : vector<2x128xi32>
    %46 = arith.select %45, %40, %14 : vector<2x128xi1>, vector<2x128xf32>
    %47 = arith.select %45, %38, %14 : vector<2x128xi1>, vector<2x128xf32>
    %c1_i32_18 = arith.constant 1 : i32
    %c3_i32_19 = arith.constant 3 : i32
    %48 = arith.subi %c3_i32_19, %c1_i32_18 : i32
    %49 = arith.index_cast %c1_i32_18 : i32 to index
    %c0_20 = arith.constant 0 : index
    %c0_21 = arith.constant 0 : index
    %50 = vector.load %arg8[%49, %c0_20, %c0_21] : memref<4x2x512xf32, #tpu.memory_space<vmem>>, vector<1x2x512xf32>
    %51 = vector.shape_cast %50 : vector<1x2x512xf32> to vector<2x512xf32>
    %52 = arith.index_cast %48 : i32 to index
    %c0_22 = arith.constant 0 : index
    %c0_23 = arith.constant 0 : index
    %53 = vector.load %arg8[%52, %c0_22, %c0_23] : memref<4x2x512xf32, #tpu.memory_space<vmem>>, vector<1x2x512xf32>
    %54 = vector.shape_cast %53 : vector<1x2x512xf32> to vector<2x512xf32>
    %55 = arith.select %13, %51, %54 : vector<2x512xi1>, vector<2x512xf32>
    %cst_24 = arith.constant dense<0.000000e+00> : vector<2x512xf32>
    %56 = tpu.matmul %46, %5, %cst_24 {dimension_numbers = #tpu.dot_dimension_numbers<[1], [0], [0], [1], [0, 0, 1, 1], [], []>} : vector<2x128xf32>, vector<128x512xf32>, vector<2x512xf32> -> vector<2x512xf32>
    %57 = arith.addf %55, %56 : vector<2x512xf32>
    %58 = vector.extract_strided_slice %57 {offsets = [0, 0], sizes = [2, 384], strides = [1, 1]} : vector<2x512xf32> to vector<2x384xf32>
    %59 = arith.negf %58 : vector<2x384xf32>
    %60 = math.exp %59 : vector<2x384xf32>
    %cst_25 = arith.constant 1.000000e+00 : f32
    %61 = vector.broadcast %cst_25 : f32 to vector<2x384xf32>
    %62 = arith.addf %61, %60 : vector<2x384xf32>
    %63 = arith.divf %61, %62 : vector<2x384xf32>
    %64 = vector.extract_strided_slice %57 {offsets = [0, 384], sizes = [2, 128], strides = [1, 1]} : vector<2x512xf32> to vector<2x128xf32>
    %65 = math.tanh %64 : vector<2x128xf32>
    %66 = vector.extract_strided_slice %63 {offsets = [0, 0], sizes = [2, 128], strides = [1, 1]} : vector<2x384xf32> to vector<2x128xf32>
    %67 = vector.extract_strided_slice %63 {offsets = [0, 128], sizes = [2, 128], strides = [1, 1]} : vector<2x384xf32> to vector<2x128xf32>
    %68 = vector.extract_strided_slice %63 {offsets = [0, 256], sizes = [2, 128], strides = [1, 1]} : vector<2x384xf32> to vector<2x128xf32>
    %69 = arith.mulf %67, %47 : vector<2x128xf32>
    %70 = arith.mulf %66, %65 : vector<2x128xf32>
    %71 = arith.addf %69, %70 : vector<2x128xf32>
    %72 = math.tanh %71 : vector<2x128xf32>
    %73 = arith.mulf %68, %72 : vector<2x128xf32>
    %74 = vector.broadcast %c1_i32_18 : i32 to vector<2x128xi32>
    %75 = vector.broadcast %48 : i32 to vector<2x128xi32>
    %76 = arith.select %8, %74, %75 : vector<2x128xi1>, vector<2x128xi32>
    %77 = vector.broadcast %4 : vector<2x1xi32> to vector<2x128xi32>
    %78 = arith.cmpi slt, %76, %77 : vector<2x128xi32>
    %79 = arith.select %78, %73, %46 : vector<2x128xi1>, vector<2x128xf32>
    %80 = arith.select %78, %71, %47 : vector<2x128xi1>, vector<2x128xf32>
    %c2_i32 = arith.constant 2 : i32
    %c3_i32_26 = arith.constant 3 : i32
    %81 = arith.subi %c3_i32_26, %c2_i32 : i32
    %82 = arith.index_cast %c2_i32 : i32 to index
    %c0_27 = arith.constant 0 : index
    %c0_28 = arith.constant 0 : index
    %83 = vector.load %arg8[%82, %c0_27, %c0_28] : memref<4x2x512xf32, #tpu.memory_space<vmem>>, vector<1x2x512xf32>
    %84 = vector.shape_cast %83 : vector<1x2x512xf32> to vector<2x512xf32>
    %85 = arith.index_cast %81 : i32 to index
    %c0_29 = arith.constant 0 : index
    %c0_30 = arith.constant 0 : index
    %86 = vector.load %arg8[%85, %c0_29, %c0_30] : memref<4x2x512xf32, #tpu.memory_space<vmem>>, vector<1x2x512xf32>
    %87 = vector.shape_cast %86 : vector<1x2x512xf32> to vector<2x512xf32>
    %88 = arith.select %13, %84, %87 : vector<2x512xi1>, vector<2x512xf32>
    %cst_31 = arith.constant dense<0.000000e+00> : vector<2x512xf32>
    %89 = tpu.matmul %79, %5, %cst_31 {dimension_numbers = #tpu.dot_dimension_numbers<[1], [0], [0], [1], [0, 0, 1, 1], [], []>} : vector<2x128xf32>, vector<128x512xf32>, vector<2x512xf32> -> vector<2x512xf32>
    %90 = arith.addf %88, %89 : vector<2x512xf32>
    %91 = vector.extract_strided_slice %90 {offsets = [0, 0], sizes = [2, 384], strides = [1, 1]} : vector<2x512xf32> to vector<2x384xf32>
    %92 = arith.negf %91 : vector<2x384xf32>
    %93 = math.exp %92 : vector<2x384xf32>
    %cst_32 = arith.constant 1.000000e+00 : f32
    %94 = vector.broadcast %cst_32 : f32 to vector<2x384xf32>
    %95 = arith.addf %94, %93 : vector<2x384xf32>
    %96 = arith.divf %94, %95 : vector<2x384xf32>
    %97 = vector.extract_strided_slice %90 {offsets = [0, 384], sizes = [2, 128], strides = [1, 1]} : vector<2x512xf32> to vector<2x128xf32>
    %98 = math.tanh %97 : vector<2x128xf32>
    %99 = vector.extract_strided_slice %96 {offsets = [0, 0], sizes = [2, 128], strides = [1, 1]} : vector<2x384xf32> to vector<2x128xf32>
    %100 = vector.extract_strided_slice %96 {offsets = [0, 128], sizes = [2, 128], strides = [1, 1]} : vector<2x384xf32> to vector<2x128xf32>
    %101 = vector.extract_strided_slice %96 {offsets = [0, 256], sizes = [2, 128], strides = [1, 1]} : vector<2x384xf32> to vector<2x128xf32>
    %102 = arith.mulf %100, %80 : vector<2x128xf32>
    %103 = arith.mulf %99, %98 : vector<2x128xf32>
    %104 = arith.addf %102, %103 : vector<2x128xf32>
    %105 = math.tanh %104 : vector<2x128xf32>
    %106 = arith.mulf %101, %105 : vector<2x128xf32>
    %107 = vector.broadcast %c2_i32 : i32 to vector<2x128xi32>
    %108 = vector.broadcast %81 : i32 to vector<2x128xi32>
    %109 = arith.select %8, %107, %108 : vector<2x128xi1>, vector<2x128xi32>
    %110 = vector.broadcast %4 : vector<2x1xi32> to vector<2x128xi32>
    %111 = arith.cmpi slt, %109, %110 : vector<2x128xi32>
    %112 = arith.select %111, %106, %79 : vector<2x128xi1>, vector<2x128xf32>
    %113 = arith.select %111, %104, %80 : vector<2x128xi1>, vector<2x128xf32>
    %c3_i32_33 = arith.constant 3 : i32
    %c3_i32_34 = arith.constant 3 : i32
    %114 = arith.subi %c3_i32_34, %c3_i32_33 : i32
    %115 = arith.index_cast %c3_i32_33 : i32 to index
    %c0_35 = arith.constant 0 : index
    %c0_36 = arith.constant 0 : index
    %116 = vector.load %arg8[%115, %c0_35, %c0_36] : memref<4x2x512xf32, #tpu.memory_space<vmem>>, vector<1x2x512xf32>
    %117 = vector.shape_cast %116 : vector<1x2x512xf32> to vector<2x512xf32>
    %118 = arith.index_cast %114 : i32 to index
    %c0_37 = arith.constant 0 : index
    %c0_38 = arith.constant 0 : index
    %119 = vector.load %arg8[%118, %c0_37, %c0_38] : memref<4x2x512xf32, #tpu.memory_space<vmem>>, vector<1x2x512xf32>
    %120 = vector.shape_cast %119 : vector<1x2x512xf32> to vector<2x512xf32>
    %121 = arith.select %13, %117, %120 : vector<2x512xi1>, vector<2x512xf32>
    %cst_39 = arith.constant dense<0.000000e+00> : vector<2x512xf32>
    %122 = tpu.matmul %112, %5, %cst_39 {dimension_numbers = #tpu.dot_dimension_numbers<[1], [0], [0], [1], [0, 0, 1, 1], [], []>} : vector<2x128xf32>, vector<128x512xf32>, vector<2x512xf32> -> vector<2x512xf32>
    %123 = arith.addf %121, %122 : vector<2x512xf32>
    %124 = vector.extract_strided_slice %123 {offsets = [0, 0], sizes = [2, 384], strides = [1, 1]} : vector<2x512xf32> to vector<2x384xf32>
    %125 = arith.negf %124 : vector<2x384xf32>
    %126 = math.exp %125 : vector<2x384xf32>
    %cst_40 = arith.constant 1.000000e+00 : f32
    %127 = vector.broadcast %cst_40 : f32 to vector<2x384xf32>
    %128 = arith.addf %127, %126 : vector<2x384xf32>
    %129 = arith.divf %127, %128 : vector<2x384xf32>
    %130 = vector.extract_strided_slice %123 {offsets = [0, 384], sizes = [2, 128], strides = [1, 1]} : vector<2x512xf32> to vector<2x128xf32>
    %131 = math.tanh %130 : vector<2x128xf32>
    %132 = vector.extract_strided_slice %129 {offsets = [0, 0], sizes = [2, 128], strides = [1, 1]} : vector<2x384xf32> to vector<2x128xf32>
    %133 = vector.extract_strided_slice %129 {offsets = [0, 128], sizes = [2, 128], strides = [1, 1]} : vector<2x384xf32> to vector<2x128xf32>
    %134 = vector.extract_strided_slice %129 {offsets = [0, 256], sizes = [2, 128], strides = [1, 1]} : vector<2x384xf32> to vector<2x128xf32>
    %135 = arith.mulf %133, %113 : vector<2x128xf32>
    %136 = arith.mulf %132, %131 : vector<2x128xf32>
    %137 = arith.addf %135, %136 : vector<2x128xf32>
    %138 = math.tanh %137 : vector<2x128xf32>
    %139 = arith.mulf %134, %138 : vector<2x128xf32>
    %140 = vector.broadcast %c3_i32_33 : i32 to vector<2x128xi32>
    %141 = vector.broadcast %114 : i32 to vector<2x128xi32>
    %142 = arith.select %8, %140, %141 : vector<2x128xi1>, vector<2x128xi32>
    %143 = vector.broadcast %4 : vector<2x1xi32> to vector<2x128xi32>
    %144 = arith.cmpi slt, %142, %143 : vector<2x128xi32>
    %145 = arith.select %144, %139, %112 : vector<2x128xi1>, vector<2x128xf32>
    %146 = arith.select %144, %137, %113 : vector<2x128xi1>, vector<2x128xf32>
    %c4_i32_41 = arith.constant 4 : i32
    %c0_42 = arith.constant 0 : index
    %c0_43 = arith.constant 0 : index
    %147 = vector.load %arg7[%c0_42, %c0_43] : memref<2x128xf32, #tpu.memory_space<vmem>>, vector<2x128xf32>
    tpu.vector_store %arg7[%c0_42, %c0_43], %145 {strides = array<i32>} : memref<2x128xf32, #tpu.memory_space<vmem>>, vector<2x128xf32>,
    return
  }
}

module attributes {stable_mosaic.version = 11 : i64} {
  func.func @_cnn_tower_kernel(%arg0: i32, %arg1: memref<1x64x20xf32, #tpu.memory_space<vmem>>, %arg2: memref<3x20x64xf32, #tpu.memory_space<vmem>>, %arg3: memref<1x64xf32, #tpu.memory_space<vmem>>, %arg4: memref<3x64x128xf32, #tpu.memory_space<vmem>>, %arg5: memref<1x128xf32, #tpu.memory_space<vmem>>, %arg6: memref<3x128x128xf32, #tpu.memory_space<vmem>>, %arg7: memref<1x128xf32, #tpu.memory_space<vmem>>, %arg8: memref<1x4x128xf32, #tpu.memory_space<vmem>>) attributes {dimension_semantics = [#tpu.dimension_semantics<parallel>], iteration_bounds = array<i64: 2>, scalar_prefetch = 0 : i64, scratch_operands = 0 : i64, tpu.core_type = #tpu.core_type<tc>, window_params = [{transform_indices = @transform_0, window_bounds = array<i64: 1, 64, 20>}, {pipeline_mode = #tpu.pipeline_mode<synchronous>, transform_indices = @transform_1, window_bounds = array<i64: 3, 20, 64>}, {pipeline_mode = #tpu.pipeline_mode<synchronous>, transform_indices = @transform_2, window_bounds = array<i64: 1, 64>}, {pipeline_mode = #tpu.pipeline_mode<synchronous>, transform_indices = @transform_3, window_bounds = array<i64: 3, 64, 128>}, {pipeline_mode = #tpu.pipeline_mode<synchronous>, transform_indices = @transform_4, window_bounds = array<i64: 1, 128>}, {pipeline_mode = #tpu.pipeline_mode<synchronous>, transform_indices = @transform_5, window_bounds = array<i64: 3, 128, 128>}, {pipeline_mode = #tpu.pipeline_mode<synchronous>, transform_indices = @transform_6, window_bounds = array<i64: 1, 128>}, {transform_indices = @transform_7, window_bounds = array<i64: 1, 4, 128>}]} {
    %c0 = arith.constant 0 : index
    %c0_0 = arith.constant 0 : index
    %c0_1 = arith.constant 0 : index
    %0 = vector.load %arg1[%c0, %c0_0, %c0_1] : memref<1x64x20xf32, #tpu.memory_space<vmem>>, vector<1x64x20xf32>
    %1 = vector.shape_cast %0 : vector<1x64x20xf32> to vector<64x20xf32>
    %2 = vector.extract_strided_slice %1 {offsets = [0, 0], sizes = [62, 20], strides = [1, 1]} : vector<64x20xf32> to vector<62x20xf32>
    %c0_2 = arith.constant 0 : index
    %c0_3 = arith.constant 0 : index
    %c0_4 = arith.constant 0 : index
    %3 = vector.load %arg2[%c0_2, %c0_3, %c0_4] : memref<3x20x64xf32, #tpu.memory_space<vmem>>, vector<1x20x64xf32>
    %4 = vector.shape_cast %3 : vector<1x20x64xf32> to vector<20x64xf32>
    %cst = arith.constant dense<0.000000e+00> : vector<62x64xf32>
    %5 = tpu.matmul %2, %4, %cst {dimension_numbers = #tpu.dot_dimension_numbers<[1], [0], [0], [1], [0, 0, 1, 1], [], []>} : vector<62x20xf32>, vector<20x64xf32>, vector<62x64xf32> -> vector<62x64xf32>
    %6 = vector.extract_strided_slice %1 {offsets = [1, 0], sizes = [62, 20], strides = [1, 1]} : vector<64x20xf32> to vector<62x20xf32>
    %c1 = arith.constant 1 : index
    %c0_5 = arith.constant 0 : index
    %c0_6 = arith.constant 0 : index
    %7 = vector.load %arg2[%c1, %c0_5, %c0_6] : memref<3x20x64xf32, #tpu.memory_space<vmem>>, vector<1x20x64xf32>
    %8 = vector.shape_cast %7 : vector<1x20x64xf32> to vector<20x64xf32>
    %cst_7 = arith.constant dense<0.000000e+00> : vector<62x64xf32>
    %9 = tpu.matmul %6, %8, %cst_7 {dimension_numbers = #tpu.dot_dimension_numbers<[1], [0], [0], [1], [0, 0, 1, 1], [], []>} : vector<62x20xf32>, vector<20x64xf32>, vector<62x64xf32> -> vector<62x64xf32>
    %10 = arith.addf %5, %9 : vector<62x64xf32>
    %11 = vector.extract_strided_slice %1 {offsets = [2, 0], sizes = [62, 20], strides = [1, 1]} : vector<64x20xf32> to vector<62x20xf32>
    %c2 = arith.constant 2 : index
    %c0_8 = arith.constant 0 : index
    %c0_9 = arith.constant 0 : index
    %12 = vector.load %arg2[%c2, %c0_8, %c0_9] : memref<3x20x64xf32, #tpu.memory_space<vmem>>, vector<1x20x64xf32>
    %13 = vector.shape_cast %12 : vector<1x20x64xf32> to vector<20x64xf32>
    %cst_10 = arith.constant dense<0.000000e+00> : vector<62x64xf32>
    %14 = tpu.matmul %11, %13, %cst_10 {dimension_numbers = #tpu.dot_dimension_numbers<[1], [0], [0], [1], [0, 0, 1, 1], [], []>} : vector<62x20xf32>, vector<20x64xf32>, vector<62x64xf32> -> vector<62x64xf32>
    %15 = arith.addf %10, %14 : vector<62x64xf32>
    %c0_11 = arith.constant 0 : index
    %c0_12 = arith.constant 0 : index
    %16 = vector.load %arg3[%c0_11, %c0_12] : memref<1x64xf32, #tpu.memory_space<vmem>>, vector<1x64xf32>
    %17 = vector.broadcast %16 : vector<1x64xf32> to vector<62x64xf32>
    %18 = arith.addf %15, %17 : vector<62x64xf32>
    %cst_13 = arith.constant 0.000000e+00 : f32
    %19 = vector.broadcast %cst_13 : f32 to vector<62x64xf32>
    %20 = arith.maximumf %18, %19 : vector<62x64xf32>
    %21 = tpu.iota {dimensions = array<i32: 0>} : vector<20x62xi32>
    %22 = tpu.iota {dimensions = array<i32: 1>} : vector<20x62xi32>
    %c3_i32 = arith.constant 3 : i32
    %23 = vector.broadcast %c3_i32 : i32 to vector<20x62xi32>
    %24 = arith.muli %23, %21 : vector<20x62xi32>
    %25 = arith.subi %22, %24 : vector<20x62xi32>
    %c0_i32 = arith.constant 0 : i32
    %26 = vector.broadcast %c0_i32 : i32 to vector<20x62xi32>
    %27 = arith.cmpi sge, %25, %26 : vector<20x62xi32>
    %c3_i32_14 = arith.constant 3 : i32
    %28 = vector.broadcast %c3_i32_14 : i32 to vector<20x62xi32>
    %29 = arith.cmpi slt, %25, %28 : vector<20x62xi32>
    %30 = arith.andi %27, %29 : vector<20x62xi1>
    %cst_15 = arith.constant 0.333333343 : f32
    %cst_16 = arith.constant 0.000000e+00 : f32
    %31 = vector.broadcast %cst_15 : f32 to vector<20x62xf32>
    %32 = vector.broadcast %cst_16 : f32 to vector<20x62xf32>
    %33 = arith.select %30, %31, %32 : vector<20x62xi1>, vector<20x62xf32>
    %cst_17 = arith.constant dense<0.000000e+00> : vector<20x64xf32>
    %34 = tpu.matmul %33, %20, %cst_17 {dimension_numbers = #tpu.dot_dimension_numbers<[1], [0], [0], [1], [0, 0, 1, 1], [], []>} : vector<20x62xf32>, vector<62x64xf32>, vector<20x64xf32> -> vector<20x64xf32>
    %35 = vector.extract_strided_slice %34 {offsets = [0, 0], sizes = [18, 64], strides = [1, 1]} : vector<20x64xf32> to vector<18x64xf32>
    %c0_18 = arith.constant 0 : index
    %c0_19 = arith.constant 0 : index
    %c0_20 = arith.constant 0 : index
    %36 = vector.load %arg4[%c0_18, %c0_19, %c0_20] : memref<3x64x128xf32, #tpu.memory_space<vmem>>, vector<1x64x128xf32>
    %37 = vector.shape_cast %36 : vector<1x64x128xf32> to vector<64x128xf32>
    %cst_21 = arith.constant dense<0.000000e+00> : vector<18x128xf32>
    %38 = tpu.matmul %35, %37, %cst_21 {dimension_numbers = #tpu.dot_dimension_numbers<[1], [0], [0], [1], [0, 0, 1, 1], [], []>} : vector<18x64xf32>, vector<64x128xf32>, vector<18x128xf32> -> vector<18x128xf32>
    %39 = vector.extract_strided_slice %34 {offsets = [1, 0], sizes = [18, 64], strides = [1, 1]} : vector<20x64xf32> to vector<18x64xf32>
    %c1_22 = arith.constant 1 : index
    %c0_23 = arith.constant 0 : index
    %c0_24 = arith.constant 0 : index
    %40 = vector.load %arg4[%c1_22, %c0_23, %c0_24] : memref<3x64x128xf32, #tpu.memory_space<vmem>>, vector<1x64x128xf32>
    %41 = vector.shape_cast %40 : vector<1x64x128xf32> to vector<64x128xf32>
    %cst_25 = arith.constant dense<0.000000e+00> : vector<18x128xf32>
    %42 = tpu.matmul %39, %41, %cst_25 {dimension_numbers = #tpu.dot_dimension_numbers<[1], [0], [0], [1], [0, 0, 1, 1], [], []>} : vector<18x64xf32>, vector<64x128xf32>, vector<18x128xf32> -> vector<18x128xf32>
    %43 = arith.addf %38, %42 : vector<18x128xf32>
    %44 = vector.extract_strided_slice %34 {offsets = [2, 0], sizes = [18, 64], strides = [1, 1]} : vector<20x64xf32> to vector<18x64xf32>
    %c2_26 = arith.constant 2 : index
    %c0_27 = arith.constant 0 : index
    %c0_28 = arith.constant 0 : index
    %45 = vector.load %arg4[%c2_26, %c0_27, %c0_28] : memref<3x64x128xf32, #tpu.memory_space<vmem>>, vector<1x64x128xf32>
    %46 = vector.shape_cast %45 : vector<1x64x128xf32> to vector<64x128xf32>
    %cst_29 = arith.constant dense<0.000000e+00> : vector<18x128xf32>
    %47 = tpu.matmul %44, %46, %cst_29 {dimension_numbers = #tpu.dot_dimension_numbers<[1], [0], [0], [1], [0, 0, 1, 1], [], []>} : vector<18x64xf32>, vector<64x128xf32>, vector<18x128xf32> -> vector<18x128xf32>
    %48 = arith.addf %43, %47 : vector<18x128xf32>
    %c0_30 = arith.constant 0 : index
    %c0_31 = arith.constant 0 : index
    %49 = vector.load %arg5[%c0_30, %c0_31] : memref<1x128xf32, #tpu.memory_space<vmem>>, vector<1x128xf32>
    %50 = vector.broadcast %49 : vector<1x128xf32> to vector<18x128xf32>
    %51 = arith.addf %48, %50 : vector<18x128xf32>
    %cst_32 = arith.constant 0.000000e+00 : f32
    %52 = vector.broadcast %cst_32 : f32 to vector<18x128xf32>
    %53 = arith.maximumf %51, %52 : vector<18x128xf32>
    %54 = tpu.iota {dimensions = array<i32: 0>} : vector<6x18xi32>
    %55 = tpu.iota {dimensions = array<i32: 1>} : vector<6x18xi32>
    %c3_i32_33 = arith.constant 3 : i32
    %56 = vector.broadcast %c3_i32_33 : i32 to vector<6x18xi32>
    %57 = arith.muli %56, %54 : vector<6x18xi32>
    %58 = arith.subi %55, %57 : vector<6x18xi32>
    %c0_i32_34 = arith.constant 0 : i32
    %59 = vector.broadcast %c0_i32_34 : i32 to vector<6x18xi32>
    %60 = arith.cmpi sge, %58, %59 : vector<6x18xi32>
    %c3_i32_35 = arith.constant 3 : i32
    %61 = vector.broadcast %c3_i32_35 : i32 to vector<6x18xi32>
    %62 = arith.cmpi slt, %58, %61 : vector<6x18xi32>
    %63 = arith.andi %60, %62 : vector<6x18xi1>
    %cst_36 = arith.constant 0.333333343 : f32
    %cst_37 = arith.constant 0.000000e+00 : f32
    %64 = vector.broadcast %cst_36 : f32 to vector<6x18xf32>
    %65 = vector.broadcast %cst_37 : f32 to vector<6x18xf32>
    %66 = arith.select %63, %64, %65 : vector<6x18xi1>, vector<6x18xf32>
    %cst_38 = arith.constant dense<0.000000e+00> : vector<6x128xf32>
    %67 = tpu.matmul %66, %53, %cst_38 {dimension_numbers = #tpu.dot_dimension_numbers<[1], [0], [0], [1], [0, 0, 1, 1], [], []>} : vector<6x18xf32>, vector<18x128xf32>, vector<6x128xf32> -> vector<6x128xf32>
    %68 = vector.extract_strided_slice %67 {offsets = [0, 0], sizes = [4, 128], strides = [1, 1]} : vector<6x128xf32> to vector<4x128xf32>
    %c0_39 = arith.constant 0 : index
    %c0_40 = arith.constant 0 : index
    %c0_41 = arith.constant 0 : index
    %69 = vector.load %arg6[%c0_39, %c0_40, %c0_41] : memref<3x128x128xf32, #tpu.memory_space<vmem>>, vector<1x128x128xf32>
    %70 = vector.shape_cast %69 : vector<1x128x128xf32> to vector<128x128xf32>
    %cst_42 = arith.constant dense<0.000000e+00> : vector<4x128xf32>
    %71 = tpu.matmul %68, %70, %cst_42 {dimension_numbers = #tpu.dot_dimension_numbers<[1], [0], [0], [1], [0, 0, 1, 1], [], []>} : vector<4x128xf32>, vector<128x128xf32>, vector<4x128xf32> -> vector<4x128xf32>
    %72 = vector.extract_strided_slice %67 {offsets = [1, 0], sizes = [4, 128], strides = [1, 1]} : vector<6x128xf32> to vector<4x128xf32>
    %c1_43 = arith.constant 1 : index
    %c0_44 = arith.constant 0 : index
    %c0_45 = arith.constant 0 : index
    %73 = vector.load %arg6[%c1_43, %c0_44, %c0_45] : memref<3x128x128xf32, #tpu.memory_space<vmem>>, vector<1x128x128xf32>
    %74 = vector.shape_cast %73 : vector<1x128x128xf32> to vector<128x128xf32>
    %cst_46 = arith.constant dense<0.000000e+00> : vector<4x128xf32>
    %75 = tpu.matmul %72, %74, %cst_46 {dimension_numbers = #tpu.dot_dimension_numbers<[1], [0], [0], [1], [0, 0, 1, 1], [], []>} : vector<4x128xf32>, vector<128x128xf32>, vector<4x128xf32> -> vector<4x128xf32>
    %76 = arith.addf %71, %75 : vector<4x128xf32>
    %77 = vector.extract_strided_slice %67 {offsets = [2, 0], sizes = [4, 128], strides = [1, 1]} : vector<6x128xf32> to vector<4x128xf32>
    %c2_47 = arith.constant 2 : index
    %c0_48 = arith.constant 0 : index
    %c0_49 = arith.constant 0 : index
    %78 = vector.load %arg6[%c2_47, %c0_48, %c0_49] : memref<3x128x128xf32, #tpu.memory_space<vmem>>, vector<1x128x128xf32>
    %79 = vector.shape_cast %78 : vector<1x128x128xf32> to vector<128x128xf32>
    %cst_50 = arith.constant dense<0.000000e+00> : vector<4x128xf32>
    %80 = tpu.matmul %77, %79, %cst_50 {dimension_numbers = #tpu.dot_dimension_numbers<[1], [0], [0], [1], [0, 0, 1, 1], [], []>} : vector<4x128xf32>, vector<128x128xf32>, vector<4x128xf32> -> vector<4x128xf32>
    %81 = arith.addf %76, %80 : vector<4x128xf32>
    %c0_51 = arith.constant 0 : index
    %c0_52 = arith.constant 0 : index
    %82 = vector.load %arg7[%c0_51, %c0_52] : memref<1x128xf32, #tpu.memory_space<vmem>>, vector<1x128xf32>
    %83 = vector.broadcast %82 : vector<1x128xf32> to vector<4x128xf32>
    %84 = arith.addf %81, %83 : vector<4x128xf32>
    %cst_53 = arith.constant 0.000000e+00 : f32
    %85 = vector.broadcast %cst_53 : f32 to vector<4x128xf32>
    %86 = arith.maximumf %84, %85 : vector<4x128xf32>
    %c0_54 = arith.constant 0 : index
    %c0_55 = arith.constant 0 : index
    %c0_56 = arith.constant 0 : index
    %87 = vector.load %arg8[%c0_54, %c0_55, %c0_56] : memref<1x4x128xf32, #tpu.memory_space<vmem>>, vector<1x4x128xf32>
    %88 = vector.shape_cast %87 : vector<1x4x128xf32> to vector<4x128xf32>
    %89 = vector.shape_cast %86 : vector<4x128xf32> to vector<1x4x128xf32>
    tpu.vector_store %arg8[%c0_54, %c0_55, %c0_56], %89 {strides = array<i32>} : memref<1x4x128xf32, #tpu.memory_space<vmem>>, vector<1x4x128xf32>,
    return
  }
  func.func @transform_0(%arg0: i32) -> (i32, i32, i32) {
    %c0_i32 = arith.constant 0 : i32
    %c0_i32_0 = arith.constant 0 : i32
    %c0_i32_1 = arith.constant 0 : i32
    return %arg0, %c0_i32, %c0_i32_0 : i32, i32, i32
  }
  func.func @transform_1(%arg0: i32) -> (i32, i32, i32) {
    %c0_i32 = arith.constant 0 : i32
    %c0_i32_0 = arith.constant 0 : i32
    %c0_i32_1 = arith.constant 0 : i32
    %c0_i32_2 = arith.constant 0 : i32
    return %c0_i32, %c0_i32_0, %c0_i32_1 : i32, i32, i32
  }
  func.func @transform_2(%arg0: i32) -> (i32, i32) {
    %c0_i32 = arith.constant 0 : i32
    %c0_i32_0 = arith.constant 0 : i32
    %c0_i32_1 = arith.constant 0 : i32
    return %c0_i32, %c0_i32_0 : i32, i32
  }
  func.func @transform_3(%arg0: i32) -> (i32, i32, i32) {
    %c0_i32 = arith.constant 0 : i32
    %c0_i32_0 = arith.constant 0 : i32
    %c0_i32_1 = arith.constant 0 : i32
    %c0_i32_2 = arith.constant 0 : i32
    return %c0_i32, %c0_i32_0, %c0_i32_1 : i32, i32, i32
  }
  func.func @transform_4(%arg0: i32) -> (i32, i32) {
    %c0_i32 = arith.constant 0 : i32
    %c0_i32_0 = arith.constant 0 : i32
    %c0_i32_1 = arith.constant 0 : i32
    return %c0_i32, %c0_i32_0 : i32, i32
  }
  func.func @transform_5(%arg0: i32) -> (i32, i32, i32) {
    %c0_i32 = arith.constant 0 : i32
    %c0_i32_0 = arith.constant 0 : i32
    %c0_i32_1 = arith.constant 0 : i32
    %c0_i32_2 = arith.constant 0 : i32
    return %c0_i32, %c0_i32_0, %c0_i32_1 : i32, i32, i32
  }
  func.func @transform_6(%arg0: i32) -> (i32, i32) {
    %c0_i32 = arith.constant 0 : i32
    %c0_i32_0 = arith.constant 0 : i32
    %c0_i32_1 = arith.constant 0 : i32
    return %c0_i32, %c0_i32_0 : i32, i32
  }
  func.func @transform_7(%arg0: i32) -> (i32, i32, i32) {
    %c0_i32 = arith.constant 0 : i32
    %c0_i32_0 = arith.constant 0 : i32
    %c0_i32_1 = arith.constant 0 : i32
    return %arg0, %c0_i32, %c0_i32_0 : i32, i32, i32
  }
}

module attributes {stable_mosaic.version = 11 : i64} {
  func.func @_bilstm1_kernel(%arg0: memref<4x2x128xf32, #tpu.memory_space<vmem>>, %arg1: memref<2x1xi32, #tpu.memory_space<vmem>>, %arg2: memref<128x512xf32, #tpu.memory_space<vmem>>, %arg3: memref<128x512xf32, #tpu.memory_space<vmem>>, %arg4: memref<1x512xf32, #tpu.memory_space<vmem>>, %arg5: memref<4x2x64xf32, #tpu.memory_space<vmem>>, %arg6: memref<4x2x64xf32, #tpu.memory_space<vmem>>, %arg7: memref<2x128xf32, #tpu.memory_space<vmem>>, %arg8: memref<4x2x512xf32, #tpu.memory_space<vmem>>) attributes {dimension_semantics = [], scalar_prefetch = 0 : i64, scratch_operands = 1 : i64, tpu.core_type = #tpu.core_type<tc>} {
    %c0 = arith.constant 0 : index
    %c0_0 = arith.constant 0 : index
    %0 = vector.load %arg2[%c0, %c0_0] : memref<128x512xf32, #tpu.memory_space<vmem>>, vector<128x512xf32>
    %c0_1 = arith.constant 0 : index
    %c0_2 = arith.constant 0 : index
    %1 = vector.load %arg4[%c0_1, %c0_2] : memref<1x512xf32, #tpu.memory_space<vmem>>, vector<1x512xf32>
    %c0_i32 = arith.constant 0 : i32
    %c4_i32 = arith.constant 4 : i32
    %2 = arith.addi %c0_i32, %c4_i32 : i32
    %c1_i32 = arith.constant 1 : i32
    scf.for %arg9 = %c0_i32 to %2 step %c1_i32  : i32 {
      %c1_i32_62 = arith.constant 1 : i32
      %195 = arith.muli %arg9, %c1_i32_62 : i32
      %c0_i32_63 = arith.constant 0 : i32
      %196 = arith.addi %c0_i32_63, %195 : i32
      %197 = arith.index_cast %196 : i32 to index
      %c0_64 = arith.constant 0 : index
      %c0_65 = arith.constant 0 : index
      %198 = vector.load %arg0[%197, %c0_64, %c0_65] : memref<4x2x128xf32, #tpu.memory_space<vmem>>, vector<1x2x128xf32>
      %199 = vector.shape_cast %198 : vector<1x2x128xf32> to vector<2x128xf32>
      %cst_66 = arith.constant dense<0.000000e+00> : vector<2x512xf32>
      %200 = tpu.matmul %199, %0, %cst_66 {dimension_numbers = #tpu.dot_dimension_numbers<[1], [0], [0], [1], [0, 0, 1, 1], [], []>} : vector<2x128xf32>, vector<128x512xf32>, vector<2x512xf32> -> vector<2x512xf32>
      %201 = vector.broadcast %1 : vector<1x512xf32> to vector<2x512xf32>
      %202 = arith.addf %200, %201 : vector<2x512xf32>
      %203 = arith.index_cast %196 : i32 to index
      %c0_67 = arith.constant 0 : index
      %c0_68 = arith.constant 0 : index
      %204 = vector.load %arg8[%203, %c0_67, %c0_68] : memref<4x2x512xf32, #tpu.memory_space<vmem>>, vector<1x2x512xf32>
      %205 = vector.shape_cast %204 : vector<1x2x512xf32> to vector<2x512xf32>
      %206 = vector.shape_cast %202 : vector<2x512xf32> to vector<1x2x512xf32>
      tpu.vector_store %arg8[%203, %c0_67, %c0_68], %206 {strides = array<i32>} : memref<4x2x512xf32, #tpu.memory_space<vmem>>, vector<1x2x512xf32>,
    }
    %c4_i32_3 = arith.constant 4 : i32
    %c0_4 = arith.constant 0 : index
    %c0_5 = arith.constant 0 : index
    %3 = vector.load %arg1[%c0_4, %c0_5] : memref<2x1xi32, #tpu.memory_space<vmem>>, vector<2x1xi32>
    %c0_6 = arith.constant 0 : index
    %c0_7 = arith.constant 0 : index
    %4 = vector.load %arg3[%c0_6, %c0_7] : memref<128x512xf32, #tpu.memory_space<vmem>>, vector<128x512xf32>
    %5 = tpu.iota {dimensions = array<i32: 1>} : vector<2x128xi32>
    %c64_i32 = arith.constant 64 : i32
    %6 = vector.broadcast %c64_i32 : i32 to vector<2x128xi32>
    %7 = arith.cmpi slt, %5, %6 : vector<2x128xi32>
    %8 = tpu.iota {dimensions = array<i32: 1>} : vector<2x512xi32>
    %c127_i32 = arith.constant 127 : i32
    %9 = vector.broadcast %c127_i32 : i32 to vector<2x512xi32>
    %10 = arith.andi %8, %9 : vector<2x512xi32>
    %c64_i32_8 = arith.constant 64 : i32
    %11 = vector.broadcast %c64_i32_8 : i32 to vector<2x512xi32>
    %12 = arith.cmpi slt, %10, %11 : vector<2x512xi32>
    %cst = arith.constant 0.000000e+00 : f32
    %13 = vector.broadcast %cst : f32 to vector<2x128xf32>
    %c0_i32_9 = arith.constant 0 : i32
    %c3_i32 = arith.constant 3 : i32
    %14 = arith.subi %c3_i32, %c0_i32_9 : i32
    %15 = arith.index_cast %c0_i32_9 : i32 to index
    %c0_10 = arith.constant 0 : index
    %c0_11 = arith.constant 0 : index
    %16 = vector.load %arg8[%15, %c0_10, %c0_11] : memref<4x2x512xf32, #tpu.memory_space<vmem>>, vector<1x2x512xf32>
    %17 = vector.shape_cast %16 : vector<1x2x512xf32> to vector<2x512xf32>
    %18 = arith.index_cast %14 : i32 to index
    %c0_12 = arith.constant 0 : index
    %c0_13 = arith.constant 0 : index
    %19 = vector.load %arg8[%18, %c0_12, %c0_13] : memref<4x2x512xf32, #tpu.memory_space<vmem>>, vector<1x2x512xf32>
    %20 = vector.shape_cast %19 : vector<1x2x512xf32> to vector<2x512xf32>
    %21 = arith.select %12, %17, %20 : vector<2x512xi1>, vector<2x512xf32>
    %cst_14 = arith.constant dense<0.000000e+00> : vector<2x512xf32>
    %22 = tpu.matmul %13, %4, %cst_14 {dimension_numbers = #tpu.dot_dimension_numbers<[1], [0], [0], [1], [0, 0, 1, 1], [], []>} : vector<2x128xf32>, vector<128x512xf32>, vector<2x512xf32> -> vector<2x512xf32>
    %23 = arith.addf %21, %22 : vector<2x512xf32>
    %24 = vector.extract_strided_slice %23 {offsets = [0, 0], sizes = [2, 384], strides = [1, 1]} : vector<2x512xf32> to vector<2x384xf32>
    %25 = arith.negf %24 : vector<2x384xf32>
    %26 = math.exp %25 : vector<2x384xf32>
    %cst_15 = arith.constant 1.000000e+00 : f32
    %27 = vector.broadcast %cst_15 : f32 to vector<2x384xf32>
    %28 = arith.addf %27, %26 : vector<2x384xf32>
    %29 = arith.divf %27, %28 : vector<2x384xf32>
    %30 = vector.extract_strided_slice %23 {offsets = [0, 384], sizes = [2, 128], strides = [1, 1]} : vector<2x512xf32> to vector<2x128xf32>
    %31 = math.tanh %30 : vector<2x128xf32>
    %32 = vector.extract_strided_slice %29 {offsets = [0, 0], sizes = [2, 128], strides = [1, 1]} : vector<2x384xf32> to vector<2x128xf32>
    %33 = vector.extract_strided_slice %29 {offsets = [0, 128], sizes = [2, 128], strides = [1, 1]} : vector<2x384xf32> to vector<2x128xf32>
    %34 = vector.extract_strided_slice %29 {offsets = [0, 256], sizes = [2, 128], strides = [1, 1]} : vector<2x384xf32> to vector<2x128xf32>
    %35 = arith.mulf %33, %13 : vector<2x128xf32>
    %36 = arith.mulf %32, %31 : vector<2x128xf32>
    %37 = arith.addf %35, %36 : vector<2x128xf32>
    %38 = math.tanh %37 : vector<2x128xf32>
    %39 = arith.mulf %34, %38 : vector<2x128xf32>
    %40 = vector.broadcast %c0_i32_9 : i32 to vector<2x128xi32>
    %41 = vector.broadcast %14 : i32 to vector<2x128xi32>
    %42 = arith.select %7, %40, %41 : vector<2x128xi1>, vector<2x128xi32>
    %43 = vector.broadcast %3 : vector<2x1xi32> to vector<2x128xi32>
    %44 = arith.cmpi slt, %42, %43 : vector<2x128xi32>
    %45 = arith.select %44, %39, %13 : vector<2x128xi1>, vector<2x128xf32>
    %46 = arith.select %44, %37, %13 : vector<2x128xi1>, vector<2x128xf32>
    %cst_16 = arith.constant 0.000000e+00 : f32
    %47 = vector.broadcast %cst_16 : f32 to vector<2x128xf32>
    %48 = arith.select %44, %39, %47 : vector<2x128xi1>, vector<2x128xf32>
    %49 = vector.extract_strided_slice %48 {offsets = [0, 0], sizes = [2, 64], strides = [1, 1]} : vector<2x128xf32> to vector<2x64xf32>
    %50 = arith.index_cast %c0_i32_9 : i32 to index
    %c0_17 = arith.constant 0 : index
    %c0_18 = arith.constant 0 : index
    %51 = vector.load %arg5[%50, %c0_17, %c0_18] : memref<4x2x64xf32, #tpu.memory_space<vmem>>, vector<1x2x64xf32>
    %52 = vector.shape_cast %51 : vector<1x2x64xf32> to vector<2x64xf32>
    %53 = vector.shape_cast %49 : vector<2x64xf32> to vector<1x2x64xf32>
    tpu.vector_store %arg5[%50, %c0_17, %c0_18], %53 {strides = array<i32>} : memref<4x2x64xf32, #tpu.memory_space<vmem>>, vector<1x2x64xf32>,
    %54 = vector.extract_strided_slice %48 {offsets = [0, 64], sizes = [2, 64], strides = [1, 1]} : vector<2x128xf32> to vector<2x64xf32>
    %55 = arith.index_cast %14 : i32 to index
    %c0_19 = arith.constant 0 : index
    %c0_20 = arith.constant 0 : index
    %56 = vector.load %arg6[%55, %c0_19, %c0_20] : memref<4x2x64xf32, #tpu.memory_space<vmem>>, vector<1x2x64xf32>
    %57 = vector.shape_cast %56 : vector<1x2x64xf32> to vector<2x64xf32>
    %58 = vector.shape_cast %54 : vector<2x64xf32> to vector<1x2x64xf32>
    tpu.vector_store %arg6[%55, %c0_19, %c0_20], %58 {strides = array<i32>} : memref<4x2x64xf32, #tpu.memory_space<vmem>>, vector<1x2x64xf32>,
    %c1_i32_21 = arith.constant 1 : i32
    %c3_i32_22 = arith.constant 3 : i32
    %59 = arith.subi %c3_i32_22, %c1_i32_21 : i32
    %60 = arith.index_cast %c1_i32_21 : i32 to index
    %c0_23 = arith.constant 0 : index
    %c0_24 = arith.constant 0 : index
    %61 = vector.load %arg8[%60, %c0_23, %c0_24] : memref<4x2x512xf32, #tpu.memory_space<vmem>>, vector<1x2x512xf32>
    %62 = vector.shape_cast %61 : vector<1x2x512xf32> to vector<2x512xf32>
    %63 = arith.index_cast %59 : i32 to index
    %c0_25 = arith.constant 0 : index
    %c0_26 = arith.constant 0 : index
    %64 = vector.load %arg8[%63, %c0_25, %c0_26] : memref<4x2x512xf32, #tpu.memory_space<vmem>>, vector<1x2x512xf32>
    %65 = vector.shape_cast %64 : vector<1x2x512xf32> to vector<2x512xf32>
    %66 = arith.select %12, %62, %65 : vector<2x512xi1>, vector<2x512xf32>
    %cst_27 = arith.constant dense<0.000000e+00> : vector<2x512xf32>
    %67 = tpu.matmul %45, %4, %cst_27 {dimension_numbers = #tpu.dot_dimension_numbers<[1], [0], [0], [1], [0, 0, 1, 1], [], []>} : vector<2x128xf32>, vector<128x512xf32>, vector<2x512xf32> -> vector<2x512xf32>
    %68 = arith.addf %66, %67 : vector<2x512xf32>
    %69 = vector.extract_strided_slice %68 {offsets = [0, 0], sizes = [2, 384], strides = [1, 1]} : vector<2x512xf32> to vector<2x384xf32>
    %70 = arith.negf %69 : vector<2x384xf32>
    %71 = math.exp %70 : vector<2x384xf32>
    %cst_28 = arith.constant 1.000000e+00 : f32
    %72 = vector.broadcast %cst_28 : f32 to vector<2x384xf32>
    %73 = arith.addf %72, %71 : vector<2x384xf32>
    %74 = arith.divf %72, %73 : vector<2x384xf32>
    %75 = vector.extract_strided_slice %68 {offsets = [0, 384], sizes = [2, 128], strides = [1, 1]} : vector<2x512xf32> to vector<2x128xf32>
    %76 = math.tanh %75 : vector<2x128xf32>
    %77 = vector.extract_strided_slice %74 {offsets = [0, 0], sizes = [2, 128], strides = [1, 1]} : vector<2x384xf32> to vector<2x128xf32>
    %78 = vector.extract_strided_slice %74 {offsets = [0, 128], sizes = [2, 128], strides = [1, 1]} : vector<2x384xf32> to vector<2x128xf32>
    %79 = vector.extract_strided_slice %74 {offsets = [0, 256], sizes = [2, 128], strides = [1, 1]} : vector<2x384xf32> to vector<2x128xf32>
    %80 = arith.mulf %78, %46 : vector<2x128xf32>
    %81 = arith.mulf %77, %76 : vector<2x128xf32>
    %82 = arith.addf %80, %81 : vector<2x128xf32>
    %83 = math.tanh %82 : vector<2x128xf32>
    %84 = arith.mulf %79, %83 : vector<2x128xf32>
    %85 = vector.broadcast %c1_i32_21 : i32 to vector<2x128xi32>
    %86 = vector.broadcast %59 : i32 to vector<2x128xi32>
    %87 = arith.select %7, %85, %86 : vector<2x128xi1>, vector<2x128xi32>
    %88 = vector.broadcast %3 : vector<2x1xi32> to vector<2x128xi32>
    %89 = arith.cmpi slt, %87, %88 : vector<2x128xi32>
    %90 = arith.select %89, %84, %45 : vector<2x128xi1>, vector<2x128xf32>
    %91 = arith.select %89, %82, %46 : vector<2x128xi1>, vector<2x128xf32>
    %cst_29 = arith.constant 0.000000e+00 : f32
    %92 = vector.broadcast %cst_29 : f32 to vector<2x128xf32>
    %93 = arith.select %89, %84, %92 : vector<2x128xi1>, vector<2x128xf32>
    %94 = vector.extract_strided_slice %93 {offsets = [0, 0], sizes = [2, 64], strides = [1, 1]} : vector<2x128xf32> to vector<2x64xf32>
    %95 = arith.index_cast %c1_i32_21 : i32 to index
    %c0_30 = arith.constant 0 : index
    %c0_31 = arith.constant 0 : index
    %96 = vector.load %arg5[%95, %c0_30, %c0_31] : memref<4x2x64xf32, #tpu.memory_space<vmem>>, vector<1x2x64xf32>
    %97 = vector.shape_cast %96 : vector<1x2x64xf32> to vector<2x64xf32>
    %98 = vector.shape_cast %94 : vector<2x64xf32> to vector<1x2x64xf32>
    tpu.vector_store %arg5[%95, %c0_30, %c0_31], %98 {strides = array<i32>} : memref<4x2x64xf32, #tpu.memory_space<vmem>>, vector<1x2x64xf32>,
    %99 = vector.extract_strided_slice %93 {offsets = [0, 64], sizes = [2, 64], strides = [1, 1]} : vector<2x128xf32> to vector<2x64xf32>
    %100 = arith.index_cast %59 : i32 to index
    %c0_32 = arith.constant 0 : index
    %c0_33 = arith.constant 0 : index
    %101 = vector.load %arg6[%100, %c0_32, %c0_33] : memref<4x2x64xf32, #tpu.memory_space<vmem>>, vector<1x2x64xf32>
    %102 = vector.shape_cast %101 : vector<1x2x64xf32> to vector<2x64xf32>
    %103 = vector.shape_cast %99 : vector<2x64xf32> to vector<1x2x64xf32>
    tpu.vector_store %arg6[%100, %c0_32, %c0_33], %103 {strides = array<i32>} : memref<4x2x64xf32, #tpu.memory_space<vmem>>, vector<1x2x64xf32>,
    %c2_i32 = arith.constant 2 : i32
    %c3_i32_34 = arith.constant 3 : i32
    %104 = arith.subi %c3_i32_34, %c2_i32 : i32
    %105 = arith.index_cast %c2_i32 : i32 to index
    %c0_35 = arith.constant 0 : index
    %c0_36 = arith.constant 0 : index
    %106 = vector.load %arg8[%105, %c0_35, %c0_36] : memref<4x2x512xf32, #tpu.memory_space<vmem>>, vector<1x2x512xf32>
    %107 = vector.shape_cast %106 : vector<1x2x512xf32> to vector<2x512xf32>
    %108 = arith.index_cast %104 : i32 to index
    %c0_37 = arith.constant 0 : index
    %c0_38 = arith.constant 0 : index
    %109 = vector.load %arg8[%108, %c0_37, %c0_38] : memref<4x2x512xf32, #tpu.memory_space<vmem>>, vector<1x2x512xf32>
    %110 = vector.shape_cast %109 : vector<1x2x512xf32> to vector<2x512xf32>
    %111 = arith.select %12, %107, %110 : vector<2x512xi1>, vector<2x512xf32>
    %cst_39 = arith.constant dense<0.000000e+00> : vector<2x512xf32>
    %112 = tpu.matmul %90, %4, %cst_39 {dimension_numbers = #tpu.dot_dimension_numbers<[1], [0], [0], [1], [0, 0, 1, 1], [], []>} : vector<2x128xf32>, vector<128x512xf32>, vector<2x512xf32> -> vector<2x512xf32>
    %113 = arith.addf %111, %112 : vector<2x512xf32>
    %114 = vector.extract_strided_slice %113 {offsets = [0, 0], sizes = [2, 384], strides = [1, 1]} : vector<2x512xf32> to vector<2x384xf32>
    %115 = arith.negf %114 : vector<2x384xf32>
    %116 = math.exp %115 : vector<2x384xf32>
    %cst_40 = arith.constant 1.000000e+00 : f32
    %117 = vector.broadcast %cst_40 : f32 to vector<2x384xf32>
    %118 = arith.addf %117, %116 : vector<2x384xf32>
    %119 = arith.divf %117, %118 : vector<2x384xf32>
    %120 = vector.extract_strided_slice %113 {offsets = [0, 384], sizes = [2, 128], strides = [1, 1]} : vector<2x512xf32> to vector<2x128xf32>
    %121 = math.tanh %120 : vector<2x128xf32>
    %122 = vector.extract_strided_slice %119 {offsets = [0, 0], sizes = [2, 128], strides = [1, 1]} : vector<2x384xf32> to vector<2x128xf32>
    %123 = vector.extract_strided_slice %119 {offsets = [0, 128], sizes = [2, 128], strides = [1, 1]} : vector<2x384xf32> to vector<2x128xf32>
    %124 = vector.extract_strided_slice %119 {offsets = [0, 256], sizes = [2, 128], strides = [1, 1]} : vector<2x384xf32> to vector<2x128xf32>
    %125 = arith.mulf %123, %91 : vector<2x128xf32>
    %126 = arith.mulf %122, %121 : vector<2x128xf32>
    %127 = arith.addf %125, %126 : vector<2x128xf32>
    %128 = math.tanh %127 : vector<2x128xf32>
    %129 = arith.mulf %124, %128 : vector<2x128xf32>
    %130 = vector.broadcast %c2_i32 : i32 to vector<2x128xi32>
    %131 = vector.broadcast %104 : i32 to vector<2x128xi32>
    %132 = arith.select %7, %130, %131 : vector<2x128xi1>, vector<2x128xi32>
    %133 = vector.broadcast %3 : vector<2x1xi32> to vector<2x128xi32>
    %134 = arith.cmpi slt, %132, %133 : vector<2x128xi32>
    %135 = arith.select %134, %129, %90 : vector<2x128xi1>, vector<2x128xf32>
    %136 = arith.select %134, %127, %91 : vector<2x128xi1>, vector<2x128xf32>
    %cst_41 = arith.constant 0.000000e+00 : f32
    %137 = vector.broadcast %cst_41 : f32 to vector<2x128xf32>
    %138 = arith.select %134, %129, %137 : vector<2x128xi1>, vector<2x128xf32>
    %139 = vector.extract_strided_slice %138 {offsets = [0, 0], sizes = [2, 64], strides = [1, 1]} : vector<2x128xf32> to vector<2x64xf32>
    %140 = arith.index_cast %c2_i32 : i32 to index
    %c0_42 = arith.constant 0 : index
    %c0_43 = arith.constant 0 : index
    %141 = vector.load %arg5[%140, %c0_42, %c0_43] : memref<4x2x64xf32, #tpu.memory_space<vmem>>, vector<1x2x64xf32>
    %142 = vector.shape_cast %141 : vector<1x2x64xf32> to vector<2x64xf32>
    %143 = vector.shape_cast %139 : vector<2x64xf32> to vector<1x2x64xf32>
    tpu.vector_store %arg5[%140, %c0_42, %c0_43], %143 {strides = array<i32>} : memref<4x2x64xf32, #tpu.memory_space<vmem>>, vector<1x2x64xf32>,
    %144 = vector.extract_strided_slice %138 {offsets = [0, 64], sizes = [2, 64], strides = [1, 1]} : vector<2x128xf32> to vector<2x64xf32>
    %145 = arith.index_cast %104 : i32 to index
    %c0_44 = arith.constant 0 : index
    %c0_45 = arith.constant 0 : index
    %146 = vector.load %arg6[%145, %c0_44, %c0_45] : memref<4x2x64xf32, #tpu.memory_space<vmem>>, vector<1x2x64xf32>
    %147 = vector.shape_cast %146 : vector<1x2x64xf32> to vector<2x64xf32>
    %148 = vector.shape_cast %144 : vector<2x64xf32> to vector<1x2x64xf32>
    tpu.vector_store %arg6[%145, %c0_44, %c0_45], %148 {strides = array<i32>} : memref<4x2x64xf32, #tpu.memory_space<vmem>>, vector<1x2x64xf32>,
    %c3_i32_46 = arith.constant 3 : i32
    %c3_i32_47 = arith.constant 3 : i32
    %149 = arith.subi %c3_i32_47, %c3_i32_46 : i32
    %150 = arith.index_cast %c3_i32_46 : i32 to index
    %c0_48 = arith.constant 0 : index
    %c0_49 = arith.constant 0 : index
    %151 = vector.load %arg8[%150, %c0_48, %c0_49] : memref<4x2x512xf32, #tpu.memory_space<vmem>>, vector<1x2x512xf32>
    %152 = vector.shape_cast %151 : vector<1x2x512xf32> to vector<2x512xf32>
    %153 = arith.index_cast %149 : i32 to index
    %c0_50 = arith.constant 0 : index
    %c0_51 = arith.constant 0 : index
    %154 = vector.load %arg8[%153, %c0_50, %c0_51] : memref<4x2x512xf32, #tpu.memory_space<vmem>>, vector<1x2x512xf32>
    %155 = vector.shape_cast %154 : vector<1x2x512xf32> to vector<2x512xf32>
    %156 = arith.select %12, %152, %155 : vector<2x512xi1>, vector<2x512xf32>
    %cst_52 = arith.constant dense<0.000000e+00> : vector<2x512xf32>
    %157 = tpu.matmul %135, %4, %cst_52 {dimension_numbers = #tpu.dot_dimension_numbers<[1], [0], [0], [1], [0, 0, 1, 1], [], []>} : vector<2x128xf32>, vector<128x512xf32>, vector<2x512xf32> -> vector<2x512xf32>
    %158 = arith.addf %156, %157 : vector<2x512xf32>
    %159 = vector.extract_strided_slice %158 {offsets = [0, 0], sizes = [2, 384], strides = [1, 1]} : vector<2x512xf32> to vector<2x384xf32>
    %160 = arith.negf %159 : vector<2x384xf32>
    %161 = math.exp %160 : vector<2x384xf32>
    %cst_53 = arith.constant 1.000000e+00 : f32
    %162 = vector.broadcast %cst_53 : f32 to vector<2x384xf32>
    %163 = arith.addf %162, %161 : vector<2x384xf32>
    %164 = arith.divf %162, %163 : vector<2x384xf32>
    %165 = vector.extract_strided_slice %158 {offsets = [0, 384], sizes = [2, 128], strides = [1, 1]} : vector<2x512xf32> to vector<2x128xf32>
    %166 = math.tanh %165 : vector<2x128xf32>
    %167 = vector.extract_strided_slice %164 {offsets = [0, 0], sizes = [2, 128], strides = [1, 1]} : vector<2x384xf32> to vector<2x128xf32>
    %168 = vector.extract_strided_slice %164 {offsets = [0, 128], sizes = [2, 128], strides = [1, 1]} : vector<2x384xf32> to vector<2x128xf32>
    %169 = vector.extract_strided_slice %164 {offsets = [0, 256], sizes = [2, 128], strides = [1, 1]} : vector<2x384xf32> to vector<2x128xf32>
    %170 = arith.mulf %168, %136 : vector<2x128xf32>
    %171 = arith.mulf %167, %166 : vector<2x128xf32>
    %172 = arith.addf %170, %171 : vector<2x128xf32>
    %173 = math.tanh %172 : vector<2x128xf32>
    %174 = arith.mulf %169, %173 : vector<2x128xf32>
    %175 = vector.broadcast %c3_i32_46 : i32 to vector<2x128xi32>
    %176 = vector.broadcast %149 : i32 to vector<2x128xi32>
    %177 = arith.select %7, %175, %176 : vector<2x128xi1>, vector<2x128xi32>
    %178 = vector.broadcast %3 : vector<2x1xi32> to vector<2x128xi32>
    %179 = arith.cmpi slt, %177, %178 : vector<2x128xi32>
    %180 = arith.select %179, %174, %135 : vector<2x128xi1>, vector<2x128xf32>
    %181 = arith.select %179, %172, %136 : vector<2x128xi1>, vector<2x128xf32>
    %cst_54 = arith.constant 0.000000e+00 : f32
    %182 = vector.broadcast %cst_54 : f32 to vector<2x128xf32>
    %183 = arith.select %179, %174, %182 : vector<2x128xi1>, vector<2x128xf32>
    %184 = vector.extract_strided_slice %183 {offsets = [0, 0], sizes = [2, 64], strides = [1, 1]} : vector<2x128xf32> to vector<2x64xf32>
    %185 = arith.index_cast %c3_i32_46 : i32 to index
    %c0_55 = arith.constant 0 : index
    %c0_56 = arith.constant 0 : index
    %186 = vector.load %arg5[%185, %c0_55, %c0_56] : memref<4x2x64xf32, #tpu.memory_space<vmem>>, vector<1x2x64xf32>
    %187 = vector.shape_cast %186 : vector<1x2x64xf32> to vector<2x64xf32>
    %188 = vector.shape_cast %184 : vector<2x64xf32> to vector<1x2x64xf32>
    tpu.vector_store %arg5[%185, %c0_55, %c0_56], %188 {strides = array<i32>} : memref<4x2x64xf32, #tpu.memory_space<vmem>>, vector<1x2x64xf32>,
    %189 = vector.extract_strided_slice %183 {offsets = [0, 64], sizes = [2, 64], strides = [1, 1]} : vector<2x128xf32> to vector<2x64xf32>
    %190 = arith.index_cast %149 : i32 to index
    %c0_57 = arith.constant 0 : index
    %c0_58 = arith.constant 0 : index
    %191 = vector.load %arg6[%190, %c0_57, %c0_58] : memref<4x2x64xf32, #tpu.memory_space<vmem>>, vector<1x2x64xf32>
    %192 = vector.shape_cast %191 : vector<1x2x64xf32> to vector<2x64xf32>
    %193 = vector.shape_cast %189 : vector<2x64xf32> to vector<1x2x64xf32>
    tpu.vector_store %arg6[%190, %c0_57, %c0_58], %193 {strides = array<i32>} : memref<4x2x64xf32, #tpu.memory_space<vmem>>, vector<1x2x64xf32>,
    %c4_i32_59 = arith.constant 4 : i32
    %c0_60 = arith.constant 0 : index
    %c0_61 = arith.constant 0 : index
    %194 = vector.load %arg7[%c0_60, %c0_61] : memref<2x128xf32, #tpu.memory_space<vmem>>, vector<2x128xf32>
    tpu.vector_store %arg7[%c0_60, %c0_61], %180 {strides = array<i32>} : memref<2x128xf32, #tpu.memory_space<vmem>>, vector<2x128xf32>,
    return
  }
}

module attributes {stable_mosaic.version = 11 : i64} {
  func.func @_head_kernel(%arg0: i32, %arg1: memref<2x64x1024xf32, #tpu.memory_space<vmem>>, %arg2: memref<2x1xf32, #tpu.memory_space<vmem>>, %arg3: memref<2x128xf32, #tpu.memory_space<vmem>>, %arg4: memref<128x256xf32, #tpu.memory_space<vmem>>, %arg5: memref<1024x256xf32, #tpu.memory_space<vmem>>, %arg6: memref<1x256xf32, #tpu.memory_space<vmem>>, %arg7: memref<256x64xf32, #tpu.memory_space<vmem>>, %arg8: memref<1x64xf32, #tpu.memory_space<vmem>>, %arg9: memref<64x2xf32, #tpu.memory_space<vmem>>, %arg10: memref<1x2xf32, #tpu.memory_space<vmem>>, %arg11: memref<2x2xf32, #tpu.memory_space<vmem>>, %arg12: memref<2x1024xf32, #tpu.memory_space<vmem>>) attributes {dimension_semantics = [#tpu.dimension_semantics<arbitrary>], iteration_bounds = array<i64: 1>, scalar_prefetch = 0 : i64, scratch_operands = 1 : i64, tpu.core_type = #tpu.core_type<tc>, window_params = [{transform_indices = @transform_0, window_bounds = array<i64: 2, 64, 1024>}, {pipeline_mode = #tpu.pipeline_mode<synchronous>, transform_indices = @transform_1, window_bounds = array<i64: 2, 1>}, {pipeline_mode = #tpu.pipeline_mode<synchronous>, transform_indices = @transform_2, window_bounds = array<i64: 2, 128>}, {pipeline_mode = #tpu.pipeline_mode<synchronous>, transform_indices = @transform_3, window_bounds = array<i64: 128, 256>}, {pipeline_mode = #tpu.pipeline_mode<synchronous>, transform_indices = @transform_4, window_bounds = array<i64: 1024, 256>}, {pipeline_mode = #tpu.pipeline_mode<synchronous>, transform_indices = @transform_5, window_bounds = array<i64: 1, 256>}, {pipeline_mode = #tpu.pipeline_mode<synchronous>, transform_indices = @transform_6, window_bounds = array<i64: 256, 64>}, {pipeline_mode = #tpu.pipeline_mode<synchronous>, transform_indices = @transform_7, window_bounds = array<i64: 1, 64>}, {pipeline_mode = #tpu.pipeline_mode<synchronous>, transform_indices = @transform_8, window_bounds = array<i64: 64, 2>}, {pipeline_mode = #tpu.pipeline_mode<synchronous>, transform_indices = @transform_9, window_bounds = array<i64: 1, 2>}, {pipeline_mode = #tpu.pipeline_mode<synchronous>, transform_indices = @transform_10, window_bounds = array<i64: 2, 2>}]} {
    %c0_i32 = arith.constant 0 : i32
    %0 = arith.cmpi eq, %arg0, %c0_i32 : i32
    %1 = arith.extui %0 : i1 to i32
    %c0_i32_0 = arith.constant 0 : i32
    %2 = arith.cmpi ne, %1, %c0_i32_0 : i32
    scf.if %2 {
      %cst_9 = arith.constant 0.000000e+00 : f32
      %11 = vector.broadcast %cst_9 : f32 to vector<2x1024xf32>
      %c0_10 = arith.constant 0 : index
      %c0_11 = arith.constant 0 : index
      %12 = vector.load %arg12[%c0_10, %c0_11] : memref<2x1024xf32, #tpu.memory_space<vmem>>, vector<2x1024xf32>
      tpu.vector_store %arg12[%c0_10, %c0_11], %11 {strides = array<i32>} : memref<2x1024xf32, #tpu.memory_space<vmem>>, vector<2x1024xf32>,
    } else {
    }
    %c0 = arith.constant 0 : index
    %c0_1 = arith.constant 0 : index
    %3 = vector.load %arg12[%c0, %c0_1] : memref<2x1024xf32, #tpu.memory_space<vmem>>, vector<2x1024xf32>
    %c0_2 = arith.constant 0 : index
    %c0_3 = arith.constant 0 : index
    %c0_4 = arith.constant 0 : index
    %4 = vector.load %arg1[%c0_2, %c0_3, %c0_4] : memref<2x64x1024xf32, #tpu.memory_space<vmem>>, vector<2x64x1024xf32>
    %cst = arith.constant dense<0.000000e+00> : vector<2x1024xf32>
    %5 = vector.multi_reduction <add>, %4, %cst [1] : vector<2x64x1024xf32> to vector<2x1024xf32>
    %6 = arith.addf %3, %5 : vector<2x1024xf32>
    %c0_5 = arith.constant 0 : index
    %c0_6 = arith.constant 0 : index
    %7 = vector.load %arg12[%c0_5, %c0_6] : memref<2x1024xf32, #tpu.memory_space<vmem>>, vector<2x1024xf32>
    tpu.vector_store %arg12[%c0_5, %c0_6], %6 {strides = array<i32>} : memref<2x1024xf32, #tpu.memory_space<vmem>>, vector<2x1024xf32>,
    %c0_i32_7 = arith.constant 0 : i32
    %8 = arith.cmpi eq, %arg0, %c0_i32_7 : i32
    %9 = arith.extui %8 : i1 to i32
    %c0_i32_8 = arith.constant 0 : i32
    %10 = arith.cmpi ne, %9, %c0_i32_8 : i32
    scf.if %10 {
      %c0_9 = arith.constant 0 : index
      %c0_10 = arith.constant 0 : index
      %11 = vector.load %arg12[%c0_9, %c0_10] : memref<2x1024xf32, #tpu.memory_space<vmem>>, vector<2x1024xf32>
      %c0_11 = arith.constant 0 : index
      %c0_12 = arith.constant 0 : index
      %12 = vector.load %arg2[%c0_11, %c0_12] : memref<2x1xf32, #tpu.memory_space<vmem>>, vector<2x1xf32>
      %13 = vector.broadcast %12 : vector<2x1xf32> to vector<2x1024xf32>
      %14 = arith.divf %11, %13 : vector<2x1024xf32>
      %c0_13 = arith.constant 0 : index
      %c0_14 = arith.constant 0 : index
      %15 = vector.load %arg3[%c0_13, %c0_14] : memref<2x128xf32, #tpu.memory_space<vmem>>, vector<2x128xf32>
      %c0_15 = arith.constant 0 : index
      %c0_16 = arith.constant 0 : index
      %16 = vector.load %arg4[%c0_15, %c0_16] : memref<128x256xf32, #tpu.memory_space<vmem>>, vector<128x256xf32>
      %cst_17 = arith.constant dense<0.000000e+00> : vector<2x256xf32>
      %17 = tpu.matmul %15, %16, %cst_17 {dimension_numbers = #tpu.dot_dimension_numbers<[1], [0], [0], [1], [0, 0, 1, 1], [], []>} : vector<2x128xf32>, vector<128x256xf32>, vector<2x256xf32> -> vector<2x256xf32>
      %c0_18 = arith.constant 0 : index
      %c0_19 = arith.constant 0 : index
      %18 = vector.load %arg5[%c0_18, %c0_19] : memref<1024x256xf32, #tpu.memory_space<vmem>>, vector<1024x256xf32>
      %cst_20 = arith.constant dense<0.000000e+00> : vector<2x256xf32>
      %19 = tpu.matmul %14, %18, %cst_20 {dimension_numbers = #tpu.dot_dimension_numbers<[1], [0], [0], [1], [0, 0, 1, 1], [], []>} : vector<2x1024xf32>, vector<1024x256xf32>, vector<2x256xf32> -> vector<2x256xf32>
      %20 = arith.addf %17, %19 : vector<2x256xf32>
      %c0_21 = arith.constant 0 : index
      %c0_22 = arith.constant 0 : index
      %21 = vector.load %arg6[%c0_21, %c0_22] : memref<1x256xf32, #tpu.memory_space<vmem>>, vector<1x256xf32>
      %22 = vector.broadcast %21 : vector<1x256xf32> to vector<2x256xf32>
      %23 = arith.addf %20, %22 : vector<2x256xf32>
      %c0_23 = arith.constant 0 : index
      %c0_24 = arith.constant 0 : index
      %24 = vector.load %arg7[%c0_23, %c0_24] : memref<256x64xf32, #tpu.memory_space<vmem>>, vector<256x64xf32>
      %cst_25 = arith.constant dense<0.000000e+00> : vector<2x64xf32>
      %25 = tpu.matmul %23, %24, %cst_25 {dimension_numbers = #tpu.dot_dimension_numbers<[1], [0], [0], [1], [0, 0, 1, 1], [], []>} : vector<2x256xf32>, vector<256x64xf32>, vector<2x64xf32> -> vector<2x64xf32>
      %c0_26 = arith.constant 0 : index
      %c0_27 = arith.constant 0 : index
      %26 = vector.load %arg8[%c0_26, %c0_27] : memref<1x64xf32, #tpu.memory_space<vmem>>, vector<1x64xf32>
      %27 = vector.broadcast %26 : vector<1x64xf32> to vector<2x64xf32>
      %28 = arith.addf %25, %27 : vector<2x64xf32>
      %c0_28 = arith.constant 0 : index
      %c0_29 = arith.constant 0 : index
      %29 = vector.load %arg9[%c0_28, %c0_29] : memref<64x2xf32, #tpu.memory_space<vmem>>, vector<64x2xf32>
      %cst_30 = arith.constant dense<0.000000e+00> : vector<2x2xf32>
      %30 = tpu.matmul %28, %29, %cst_30 {dimension_numbers = #tpu.dot_dimension_numbers<[1], [0], [0], [1], [0, 0, 1, 1], [], []>} : vector<2x64xf32>, vector<64x2xf32>, vector<2x2xf32> -> vector<2x2xf32>
      %c0_31 = arith.constant 0 : index
      %c0_32 = arith.constant 0 : index
      %31 = vector.load %arg10[%c0_31, %c0_32] : memref<1x2xf32, #tpu.memory_space<vmem>>, vector<1x2xf32>
      %32 = vector.broadcast %31 : vector<1x2xf32> to vector<2x2xf32>
      %33 = arith.addf %30, %32 : vector<2x2xf32>
      %c0_33 = arith.constant 0 : index
      %c0_34 = arith.constant 0 : index
      %34 = vector.load %arg11[%c0_33, %c0_34] : memref<2x2xf32, #tpu.memory_space<vmem>>, vector<2x2xf32>
      tpu.vector_store %arg11[%c0_33, %c0_34], %33 {strides = array<i32>} : memref<2x2xf32, #tpu.memory_space<vmem>>, vector<2x2xf32>,
    } else {
    }
    return
  }
  func.func @transform_0(%arg0: i32) -> (i32, i32, i32) {
    %c0_i32 = arith.constant 0 : i32
    %c0_i32_0 = arith.constant 0 : i32
    %c0_i32_1 = arith.constant 0 : i32
    return %c0_i32, %arg0, %c0_i32_0 : i32, i32, i32
  }
  func.func @transform_1(%arg0: i32) -> (i32, i32) {
    %c0_i32 = arith.constant 0 : i32
    %c0_i32_0 = arith.constant 0 : i32
    %c0_i32_1 = arith.constant 0 : i32
    return %c0_i32, %c0_i32_0 : i32, i32
  }
  func.func @transform_2(%arg0: i32) -> (i32, i32) {
    %c0_i32 = arith.constant 0 : i32
    %c0_i32_0 = arith.constant 0 : i32
    %c0_i32_1 = arith.constant 0 : i32
    return %c0_i32, %c0_i32_0 : i32, i32
  }
  func.func @transform_3(%arg0: i32) -> (i32, i32) {
    %c0_i32 = arith.constant 0 : i32
    %c0_i32_0 = arith.constant 0 : i32
    %c0_i32_1 = arith.constant 0 : i32
    return %c0_i32, %c0_i32_0 : i32, i32
  }
  func.func @transform_4(%arg0: i32) -> (i32, i32) {
    %c0_i32 = arith.constant 0 : i32
    %c0_i32_0 = arith.constant 0 : i32
    %c0_i32_1 = arith.constant 0 : i32
    return %c0_i32, %c0_i32_0 : i32, i32
  }
  func.func @transform_5(%arg0: i32) -> (i32, i32) {
    %c0_i32 = arith.constant 0 : i32
    %c0_i32_0 = arith.constant 0 : i32
    %c0_i32_1 = arith.constant 0 : i32
    return %c0_i32, %c0_i32_0 : i32, i32
  }
  func.func @transform_6(%arg0: i32) -> (i32, i32) {
    %c0_i32 = arith.constant 0 : i32
    %c0_i32_0 = arith.constant 0 : i32
    %c0_i32_1 = arith.constant 0 : i32
    return %c0_i32, %c0_i32_0 : i32, i32
  }
  func.func @transform_7(%arg0: i32) -> (i32, i32) {
    %c0_i32 = arith.constant 0 : i32
    %c0_i32_0 = arith.constant 0 : i32
    %c0_i32_1 = arith.constant 0 : i32
    return %c0_i32, %c0_i32_0 : i32, i32
  }
  func.func @transform_8(%arg0: i32) -> (i32, i32) {
    %c0_i32 = arith.constant 0 : i32
    %c0_i32_0 = arith.constant 0 : i32
    %c0_i32_1 = arith.constant 0 : i32
    return %c0_i32, %c0_i32_0 : i32, i32
  }
  func.func @transform_9(%arg0: i32) -> (i32, i32) {
    %c0_i32 = arith.constant 0 : i32
    %c0_i32_0 = arith.constant 0 : i32
    %c0_i32_1 = arith.constant 0 : i32
    return %c0_i32, %c0_i32_0 : i32, i32
  }
  func.func @transform_10(%arg0: i32) -> (i32, i32) {
    %c0_i32 = arith.constant 0 : i32
    %c0_i32_0 = arith.constant 0 : i32
    %c0_i32_1 = arith.constant 0 : i32
    return %c0_i32, %c0_i32_0 : i32, i32
  }
}

</mosaic_0001>

<bundles_post_ra>
// kernel: tl_deep_forward.4
= control target key start
LH: loop header
LB: loop body
LE: loop exit
PB: predicated region body
PF: predicated region fallthrough
CT: control target
= control target key end

     0   :  { %12 = vsyncpa [#allocation3], 0  ;;  %s2840_s0 = inlined_call_operand.vmem [shape: f32[2,64,20], index: 0, kind: input, shape index: {}]   ;;  %s2841_s1 = inlined_call_operand.hbm [shape: f32[3,20,64], index: 1, kind: input, shape index: {}]   ;;  %s2842_s2 = inlined_call_operand.hbm [shape: f32[1,64], index: 2, kind: input, shape index: {}]   ;;  %s2843_s3 = inlined_call_operand.hbm [shape: f32[3,64,128], index: 3, kind: input, shape index: {}]   ;;  %s2844_s4 = inlined_call_operand.hbm [shape: f32[1,128], index: 4, kind: input, shape index: {}]   ;;  %s2845_s5 = inlined_call_operand.hbm [shape: f32[3,128,128], index: 5, kind: input, shape index: {}]   ;;  %s2846_s6 = inlined_call_operand.hbm [shape: f32[1,128], index: 6, kind: input, shape index: {}]   ;;  %s2847_s7 = inlined_call_operand.vmem [shape: f32[2,4,128], index: 7, kind: output, shape index: {}]  }
   0x1   :  { %13 = vsyncpa [#allocation5], 0 }
   0x2   :  { %14 = vsyncpa [#allocation8], 0 }
   0x3   :  { %15 = vsyncpa [#allocation11], 0  ;;  %s2491_s24 = smov 0  }
   0x4 LB: > { %s2441_s25 = smov [#allocation4]   ;;  %s2497_s27 = sadd.s32 4294967295, %s2439_s24   ;;  %s2439_s24 = sphi %s2491_s24, %s21_s24  }
   0x5   : > { %s230_s26 = sshll.u32 %s2441_s25, 4  ;;  %p1722_p0 = scmp.ge.s32.totalorder %s2439_s24, 1  ;;  %s231_s26 = int_to_ptr.vmem [resolvable:$true] %s230_s26 }
   0x6   : > { %p204_p1 = scmp.lt.s32.totalorder %s2439_s24, 3  ;;  %p2231_p2 = scmp.eq.s32.totalorder %s2497_s27, 0 }
   0x7   : > { %s2442_s29 = smov [#allocation7]   ;;  %s2443_s8 = smov [#allocation2]  }
   0x8   : > { %p2502_p3 = pnand %p1722_p0, %p204_p1  ;;  %s254_s30 = sshll.u32 %s2442_s29, 4  ;;  %s2508_s30 = int_to_ptr.vmem [resolvable:$true] %s254_s30 }
   0x9   : > { %s216_s9 = sshll.u32 %s2443_s8, 4  ;;  %s2444_s11 = smov [#allocation6]   ;;  %s2516_s9 = int_to_ptr.vmem [resolvable:$true] %s216_s9 }
   0xa   : > { %p2212_p4 = pneg %p2502_p3  ;;  %s2518_s12 = sshll.u32 %s2444_s11, 4  ;;  %s241_s12 = int_to_ptr.vmem [resolvable:$true] %s2518_s12 }
   0xb   : > { %s2272_s14 = scalar_lea.vmem %s231_s26, 16  ;;  %s2279_s15 = scalar_lea.vmem %s231_s26, 32 }
   0xc   : > { %p2512_p5 = pnand %p2231_p2, %p2212_p4  ;;  %p2273_p7 = scmp.ne.s32.totalorder %s231_s26, %s2272_s14 }
   0xd   : > { %p2280_p10 = scmp.lt.s32.totalorder %s231_s26, %s231_s26  ;;  %p2281_p11 = scmp.lt.s32.totalorder %s2279_s15, %s2272_s14 }
   0xe   : > { %p2522_p6 = pneg %p2512_p5 }
   0xf   : > { %p2282_p12 = por %p2281_p11, %p2280_p10 }
  0x10   : > { %p2275_p8 = pnand %p2273_p7, %p2522_p6 }
  0x12   : > { %p2276_p9 = pneg %p2275_p8 }
  0x14   : > { %p2283_p13 = pnand %p2282_p12, %p2276_p9 }
  0x16   : > { %2286 = shalt.err (!%p2283_p13)
}
  0x17   : > { %2218 = dma.hbm_to_vmem [thread:$0]  (!%p2512_p5), %s2842_s2, 16, %s231_s26, [#allocation5]  }
  0x18   : > { %s2298_s18 = scalar_lea.vmem %s2508_s30, 16  ;;  %s2305_s19 = scalar_lea.vmem %s2508_s30, 32 }
  0x19   : > { %p2299_p0 = scmp.ne.s32.totalorder %s2508_s30, %s2298_s18  ;;  %p2306_p7 = scmp.lt.s32.totalorder %s2508_s30, %s2508_s30 }
  0x1a   : > { %p2307_p8 = scmp.lt.s32.totalorder %s2305_s19, %s2298_s18 }
  0x1b   : > { %p2301_p1 = pnand %p2299_p0, %p2522_p6 }
  0x1c   : > { %p2308_p9 = por %p2307_p8, %p2306_p7 }
  0x1d   : > { %p2302_p4 = pneg %p2301_p1 }
  0x1f   : > { %p2309_p10 = pnand %p2308_p9, %p2302_p4 }
  0x21   : > { %2312 = shalt.err (!%p2309_p10)
}
  0x22   : > { %2224 = dma.hbm_to_vmem [thread:$0]  (!%p2512_p5), %s2844_s4, 16, %s2508_s30, [#allocation8]  }
  0x23   : > { %s2324_s22 = scalar_lea.vmem %s2516_s9, 1152  ;;  %p2332_p0 = scmp.lt.s32.totalorder %s2516_s9, %s2516_s9 }
  0x24   : > { %p2325_p11 = scmp.ne.s32.totalorder %s2516_s9, %s2324_s22  ;;  %p2333_p1 = scmp.lt.s32.totalorder %s2324_s22, %s2324_s22 }
  0x26   : > { %p2327_p12 = pnand %p2325_p11, %p2522_p6  ;;  %p2334_p4 = por %p2333_p1, %p2332_p0 }
  0x28   : > { %p2328_p13 = pneg %p2327_p12 }
  0x2a   : > { %p2335_p7 = pnand %p2334_p4, %p2328_p13 }
  0x2c   : > { %2338 = shalt.err (!%p2335_p7)
}
  0x2d   : > { %s2445_s23 = smov 128   ;;  %s2446_s25 = smov 8  }
  0x2e   : > { %2215 = dma.hbm_to_vmem [thread:$0]  (!%p2512_p5), %s2841_s1, 1152, %s2516_s9, [#allocation3], %s2445_s23, %s2445_s23, %s2446_s25  }
  0x2f   : > { %s2350_s30 = scalar_lea.vmem %s241_s12, 3072  ;;  %p2358_p11 = scmp.lt.s32.totalorder %s241_s12, %s241_s12 }
  0x30   : > { %p2351_p8 = scmp.ne.s32.totalorder %s241_s12, %s2350_s30  ;;  %p2359_p12 = scmp.lt.s32.totalorder %s2350_s30, %s2350_s30 }
  0x32   : > { %p2353_p9 = pnand %p2351_p8, %p2522_p6  ;;  %p2360_p13 = por %p2359_p12, %p2358_p11 }
  0x34   : > { %p2354_p10 = pneg %p2353_p9 }
  0x36   : > { %p2361_p0 = pnand %p2360_p13, %p2354_p10 }
  0x38   : > { %2364 = shalt.err (!%p2361_p0)
}
  0x39   : > { %2221 = dma.hbm_to_vmem [thread:$0]  (!%p2512_p5), %s2843_s3, 3072, %s241_s12, [#allocation5], %s2445_s23, %s2445_s23, %s2446_s25  }
  0x3a   : > { %s2447_s9 = smov [#allocation9]   ;;  %s2448_s15 = smov [#allocation10]  }
  0x3b   : > { %s264_s14 = sshll.u32 %s2447_s9, 4  ;;  %s278_s16 = sshll.u32 %s2448_s15, 4  ;;  %s265_s14 = int_to_ptr.vmem [resolvable:$true] %s264_s14  ;;  %s279_s16 = int_to_ptr.vmem [resolvable:$true] %s278_s16 }
  0x3c   : > { %s2376_s17 = scalar_lea.vmem %s265_s14, 6144  ;;  %p2384_p8 = scmp.lt.s32.totalorder %s265_s14, %s265_s14 }
  0x3d   : > { %p2377_p1 = scmp.ne.s32.totalorder %s265_s14, %s2376_s17  ;;  %p2385_p9 = scmp.lt.s32.totalorder %s2376_s17, %s2376_s17 }
  0x3f   : > { %p2379_p4 = pnand %p2377_p1, %p2522_p6  ;;  %p2386_p10 = por %p2385_p9, %p2384_p8 }
  0x41   : > { %p2380_p7 = pneg %p2379_p4 }
  0x43   : > { %p2387_p11 = pnand %p2386_p10, %p2380_p7 }
  0x45   : > { %2390 = shalt.err (!%p2387_p11)
}
  0x46   : > { %2227 = dma.hbm_to_vmem [thread:$0]  (!%p2512_p5), %s2845_s5, 6144, %s265_s14, [#allocation8], %s2445_s23, %s2445_s23, %s2446_s25  }
  0x47   : > { %s2402_s19 = scalar_lea.vmem %s279_s16, 16  ;;  %s2409_s20 = scalar_lea.vmem %s279_s16, 32 }
  0x48   : > { %p2403_p12 = scmp.ne.s32.totalorder %s279_s16, %s2402_s19  ;;  %p2410_p1 = scmp.lt.s32.totalorder %s279_s16, %s279_s16 }
  0x49   : > { %p2411_p4 = scmp.lt.s32.totalorder %s2409_s20, %s2402_s19 }
  0x4a   : > { %p2405_p13 = pnand %p2403_p12, %p2522_p6 }
  0x4b   : > { %p2412_p7 = por %p2411_p4, %p2410_p1 }
  0x4c   : > { %p2406_p0 = pneg %p2405_p13 }
  0x4e   : > { %p2413_p8 = pnand %p2412_p7, %p2406_p0 }
  0x50   : > { %2416 = shalt.err (!%p2413_p8)
}
  0x51   : > { %2230 = dma.hbm_to_vmem [thread:$0]  (!%p2512_p5), %s2846_s6, 16, %s279_s16, [#allocation11]  }
  0x52   : > { %299 = sbr.rel (%p2502_p3) target bundleno = 1201 (0x4b1), region = 48 }
  0x57   : > { %2422 = dma.done.wait (%p2231_p2), [#allocation3], 1152  }
  0x58   : > { %2424 = vsyncadd (%p2231_p2), [#allocation3], 4294966144 }
  0x59   : > { %2426 = dma.done.wait (%p2231_p2), [#allocation5], 3088  }
  0x5a   : > { %2428 = vsyncadd (%p2231_p2), [#allocation5], 4294964208 }
  0x5b   : > { %2430 = dma.done.wait (%p2231_p2), [#allocation8], 6160  }
  0x5c   : > { %2432 = vsyncadd (%p2231_p2), [#allocation8], 4294961136 }
  0x5d   : > { %2434 = dma.done.wait (%p2231_p2), [#allocation11], 16  }
  0x5e   : > { %2436 = vsyncadd (%p2231_p2), [#allocation11], 4294967280  ;;  %p350_p3 = scmp.lt.s32.totalorder %s2497_s27, 1  ;;  %vm415_vm0 = vcmask 1043456   ;;  %v373_v0 = vld [vmem:[#allocation2 + $0x28] sm:$0xf] }
  0x5f   : > { %v369_v1 = vld [vmem:[#allocation2 + $0x10] sm:$0xf]  ;;  %v372_v2 = vld [vmem:[#allocation2 + $0x20] sm:$0xff]  ;;  %1920 = vmatprep.subr.msk.mxu0 %vm415_vm0, %v373_v0  ;;  %v368_v3 = vld [vmem:[#allocation2 + $0x8] sm:$0xff]  ;;  %vm382_vm1 = vcmask 1046528   ;;  %vm398_vm2 = vcmask 162816  }
  0x60   : > { %s2852_s27 = smov (!%p350_p3, %s2497_s27), 1  ;;  %1938 = vmatprep.subr.msk.mxu1 %vm415_vm0, %v369_v1  ;;  %v371_v4 = vld [vmem:[#allocation2 + $0x18] sm:$0xff]  ;;  %v367_v5 = vld [vmem:[#allocation2] sm:$0xff]  ;;  %1921 = vmatpush3.msk.msra.mxu0 %vm415_vm0, %v373_v0  ;;  %v649_v33 = vld [vmem:[#allocation2 + $0x30] sm:$0xff]  ;;  %vm652_vm3 = vcmask 1045504   ;;  %v2449_v47 = vmov 0.0  }
  0x61   : > { %s1787_s28 = sshll.u32 %s2852_s27, 6  ;;  %1939 = vmatpush3.msk.msra.mxu1 %vm415_vm0, %v369_v1  ;;  %1922 = vmatprep.subr.mxu0 %v372_v2  ;;  %v651_v22 = vld [vmem:[#allocation2 + $0x40] sm:$0xf]  ;;  %v650_v28 = vld [vmem:[#allocation2 + $0x38] sm:$0xff]  ;;  %vm2450_vm4 = vmmov 0   ;;  %v944_v51 = vld [vmem:[#allocation6 + $0x20] sm:$0xff] }
  0x62   : > { %s2615_s23 = scalar_lea.vmem %s2840_s0, %s1787_s28  ;;  %1940 = vmatprep.subr.mxu1 %v368_v3  ;;  %1923 = vmatpush3.msra.mxu0 %v372_v2  ;;  %v947_v48 = vld [vmem:[#allocation6 + $0x38] sm:$0xff]  ;;  %v946_v49 = vld [vmem:[#allocation6 + $0x30] sm:$0xff]  ;;  %v945_v50 = vld [vmem:[#allocation6 + $0x28] sm:$0xff]  ;;  %vm847_vm10 = vcmask 506880   ;;  %vm965_vm15 = vcmask 523264   ;;  %s1739_s25 = sshll.u32 %s2852_s27, 2 }
  0x63   : > { %v359_v6 = vld [vmem:[%s2615_s23] sm:$0xff]  ;;  %v2623_v7 = vld [vmem:[%s2615_s23 + $0x8] sm:$0xff]  ;;  %v2626_v8 = vld [vmem:[%s2615_s23 + $0x10] sm:$0xff]  ;;  %1941 = vmatpush3.msra.mxu1 %v368_v3  ;;  %1924 = vmatprep.subr.mxu0 %v371_v4  ;;  %s358_s30 = scalar_lea.vmem %s2847_s7, %s1739_s25 }
  0x64   : > { %v383_v9 = vrot.slane %v359_v6, 1  ;;  %v384_v10 = vrot.slane %v2623_v7, 1  ;;  %v386_v11 = vrot.slane %v2626_v8, 1  ;;  %v2631_v12 = vld [vmem:[%s2615_s23 + $0x18] sm:$0xff]  ;;  %v2634_v13 = vld [vmem:[%s2615_s23 + $0x20] sm:$0xff]  ;;  %v2638_v15 = vld [vmem:[%s2615_s23 + $0x28] sm:$0xff]  ;;  %1942 = vmatprep.subr.mxu1 %v367_v5  ;;  %1925 = vmatpush3.msra.mxu0 %v371_v4 }
  0x65   : > { %v388_v14 = vrot.slane %v2631_v12, 1  ;;  %v390_v18 = vrot.slane %v2634_v13, 1  ;;  %v392_v20 = vrot.slane %v2638_v15, 1  ;;  %v365_v21 = vld [vmem:[%s2615_s23 + $0x30] sm:$0xff]  ;;  %1943 = vmatpush3.msra.mxu1 %v367_v5  ;;  %1944 = vmatprep.mubr.msk.f32.mxu1 %vm398_vm2, %v359_v6  ;;  %v366_v23 = vld [vmem:[%s2615_s23 + $0x38] sm:$0xff]  ;;  %v653_v31 = vrot.slane %v359_v6, 2 }
  0x66   : > { %v385_v16 = vsel %vm382_vm1, %v383_v9, %v384_v10  ;;  %v387_v17 = vsel %vm382_vm1, %v384_v10, %v386_v11  ;;  %1945 = vmatmul.mubr.msk.f32.vlgmr.msra.gmra.mxu1 %vm398_vm2, %v2623_v7  ;;  %v394_v25 = vrot.slane %v365_v21, 1  ;;  %1956 = vmatprep.subr.msk.mxu0 %vm415_vm0, %v651_v22  ;;  %v396_v27 = vrot.slane %v366_v23, 1  ;;  %v943_v52 = vld [vmem:[#allocation6 + $0x18] sm:$0xff]  ;;  %v942_v53 = vld [vmem:[#allocation6 + $0x10] sm:$0xff]  ;;  %v941_v54 = vld [vmem:[#allocation6 + $0x8] sm:$0xff] }
  0x67   : > { %1926 = vmatprep.mubr.msk.f32.mxu0 %vm398_vm2, %v385_v16  ;;  %v389_v19 = vsel %vm382_vm1, %v386_v11, %v388_v14  ;;  %1947 = vmatprep.mubr.msk.f32.mxu1 %vm398_vm2, %v2626_v8  ;;  %v391_v24 = vsel %vm382_vm1, %v388_v14, %v390_v18  ;;  %v393_v26 = vsel %vm382_vm1, %v390_v18, %v392_v20  ;;  %v654_v32 = vrot.slane %v2623_v7, 2 }
  0x68   : > { %1927 = vmatmul.mubr.msk.f32.vlgmr.msra.gmra.mxu0 %vm398_vm2, %v387_v17  ;;  %v395_v29 = vsel %vm382_vm1, %v392_v20, %v394_v25  ;;  %v397_v30 = vsel %vm382_vm1, %v394_v25, %v396_v27  ;;  %v656_v34 = vrot.slane %v2626_v8, 2  ;;  %v658_v36 = vrot.slane %v2631_v12, 2  ;;  %2024 = vmatprep.subr.mxu1 %v2449_v47 }
  0x69   : > { %1929 = vmatprep.mubr.msk.f32.mxu0 %vm398_vm2, %v389_v19  ;;  %1957 = vmatpush3.msk.msra.mxu0 %vm415_vm0, %v651_v22  ;;  %v655_v35 = vsel %vm652_vm3, %v653_v31, %v654_v32  ;;  %v660_v38 = vrot.slane %v2634_v13, 2  ;;  %v662_v40 = vrot.slane %v2638_v15, 2  ;;  %v664_v42 = vrot.slane %v365_v21, 2  ;;  %v1767_v22 = vld [vmem:[#allocation4] ss:$0 sm:$0xff] }
  0x6a   : > { %1948 = vmatmul.mubr.msk.f32.gmra.mxu1 %vm398_vm2, %v2631_v12  ;;  %1958 = vmatprep.subr.mxu0 %v650_v28  ;;  %v657_v37 = vsel %vm652_vm3, %v654_v32, %v656_v34  ;;  %v659_v39 = vsel %vm652_vm3, %v656_v34, %v658_v36  ;;  %v666_v44 = vrot.slane %v366_v23, 2  ;;  %v823_v11 = vlaneseq }
  0x6b   : > { %1950 = vmatprep.mubr.msk.f32.mxu1 %vm398_vm2, %v2634_v13  ;;  %1959 = vmatpush3.msra.mxu0 %v650_v28  ;;  %v661_v41 = vsel %vm652_vm3, %v658_v36, %v660_v38  ;;  %v663_v43 = vsel %vm652_vm3, %v660_v38, %v662_v40  ;;  %v665_v45 = vsel %vm652_vm3, %v662_v40, %v664_v42  ;;  %vm1257_vm0 = vcmask 1041408  }
  0x6c   : > { %1930 = vmatmul.mubr.msk.f32.gmra.mxu0 %vm398_vm2, %v391_v24  ;;  %1960 = vmatprep.subr.mxu0 %v649_v33  ;;  %v667_v46 = vsel %vm652_vm3, %v664_v42, %v666_v44  ;;  %v824_v17 = vshrl.u32 %v823_v11, 7 }
  0x6d   : > { %1932 = vmatprep.mubr.msk.f32.mxu0 %vm398_vm2, %v393_v26  ;;  %1961 = vmatpush3.msra.mxu0 %v649_v33 }
  0x6e   : > { %1951 = vmatmul.mubr.msk.f32.gmra.mxu1 %vm398_vm2, %v2638_v15  ;;  %1974 = vmatprep.subr.mxu0 %v2449_v47  ;;  %v825_v31 = vadd.s32 8, %v824_v17  ;;  %v826_v42 = vadd.s32 16, %v824_v17 }
  0x6f   : > { %1953 = vmatprep.mubr.msk.f32.mxu1 %vm398_vm2, %v365_v21  ;;  %2025 = vmatpush3.msra.mxu1 %v947_v48 }
  0x70   : > { %1933 = vmatmul.mubr.msk.f32.gmra.mxu0 %vm398_vm2, %v395_v29  ;;  %2026 = vmatprep.subr.mxu1 %v2449_v47  ;;  %v828_v29 = vand.u32 127, %v823_v11 }
  0x71   : > { %1935 = vmatprep.mubr.msk.f32.mxu0 %vm398_vm2, %v397_v30  ;;  %2027 = vmatpush3.msra.mxu1 %v946_v49  ;;  %v829_v30 = vmul.u32 3, %v824_v17  ;;  %v1145_v17 = vld [vmem:[#allocation6 + $0xb0] sm:$0xff] }
  0x72   : > { %1954 = vmatmul.mubr.msk.f32.gmra.mxu1 %vm398_vm2, %v366_v23  ;;  %2028 = vmatprep.subr.mxu1 %v2449_v47 }
  0x73   : > { %2040 = vmatprep.mubr.msk.f32.mxu1 %vm2450_vm4, %v2449_v47  ;;  %2029 = vmatpush3.msra.mxu1 %v945_v50  ;;  %v832_v40 = vsub.s32 %v828_v29, %v829_v30 }
  0x74   : > { %1936 = vmatmul.mubr.msk.f32.gmra.mxu0 %vm398_vm2, %v396_v27  ;;  %2030 = vmatprep.subr.mxu1 %v2449_v47 }
  0x75   : > { %1962 = vmatprep.mubr.msk.f32.mxu0 %vm398_vm2, %v655_v35  ;;  %2031 = vmatpush3.msra.mxu1 %v944_v51  ;;  %vm835_vm5 = vcmp.ge.s32.totalorder %v832_v40, 0  ;;  %vm838_vm6 = vcmp.lt.s32.totalorder %v832_v40, 3  ;;  %v1338_v40 = vld [vmem:[#allocation9 + $0x38] sm:$0xff] }
  0x76   : > { %2032 = vmatprep.subr.mxu1 %v2449_v47  ;;  %vm841_vm7 = vmand %vm835_vm5, %vm838_vm6 }
  0x77   : > { %2033 = vmatpush3.msra.mxu1 %v943_v52 }
  0x78   : > { %1963 = vmatmul.mubr.msk.f32.vlgmr.msra.gmra.mxu0 %vm398_vm2, %v657_v37  ;;  %2034 = vmatprep.subr.mxu1 %v2449_v47 }
  0x79   : > { %1965 = vmatprep.mubr.msk.f32.mxu0 %vm398_vm2, %v659_v39  ;;  %2035 = vmatpush3.msra.mxu1 %v942_v53 }
  0x7a   : > { %2036 = vmatprep.subr.mxu1 %v2449_v47 }
  0x7b   : > { %2037 = vmatpush3.msra.mxu1 %v941_v54  ;;  %v831_v54 = vmul.u32 3, %v826_v42  ;;  %v1336_v42 = vld [vmem:[#allocation9 + $0x28] sm:$0xff] }
  0x7c   : > { %1966 = vmatmul.mubr.msk.f32.gmra.mxu0 %vm398_vm2, %v661_v41  ;;  %2038 = vmatprep.subr.mxu1 %v2449_v47  ;;  %v830_v41 = vmul.u32 3, %v825_v31 }
  0x7d   : > { %1968 = vmatprep.mubr.msk.f32.mxu0 %vm398_vm2, %v663_v43 }
  0x7e   : > { %v833_v53 = vsub.s32 %v828_v29, %v830_v41  ;;  %v1337_v41 = vld [vmem:[#allocation9 + $0x30] sm:$0xff] }
  0x80   : > { %1969 = vmatmul.mubr.msk.f32.gmra.mxu0 %vm398_vm2, %v665_v45  ;;  %vm836_vm8 = vcmp.ge.s32.totalorder %v833_v53, 0  ;;  %vm839_vm9 = vcmp.lt.s32.totalorder %v833_v53, 3 }
  0x81   : > { %1971 = vmatprep.mubr.msk.f32.mxu0 %vm398_vm2, %v667_v46  ;;  %vm842_vm11 = vmand %vm836_vm8, %vm839_vm9 }
  0x84   : > { %1972 = vmatmul.mubr.msk.f32.gmra.mxu0 %vm398_vm2, %v666_v44 }
  0x85   : > { %1990 = vmatprep.mubr.msk.f32.mxu0 %vm2450_vm4, %v2449_v47 }
 0x126   : > { %v1946_v56 = vpop.f32.mrf.mxu1 }
 0x128   : > { %v1928_v55 = vpop.f32.mrf.mxu0  ;;  %v609_v58 = vpop.f32.mrf.mxu1 }
 0x129   : > { %v615_v36 = vadd.f32 %v1946_v56, %v1928_v55 }
 0x12a   : > { %v485_v57 = vpop.f32.mrf.mxu0  ;;  %v1949_v60 = vpop.f32.mrf.mxu1 }
 0x12b   : > { %v610_v43 = vadd.f32 %v609_v58, %v485_v57  ;;  %v834_v58 = vsub.s32 %v828_v29, %v831_v54 }
 0x12c   : > { %v1931_v59 = vpop.f32.mrf.mxu0  ;;  %v619_v63 = vpop.f32.mrf.mxu1 }
 0x12d   : > { %v625_v24 = vadd.f32 %v1949_v60, %v1931_v59  ;;  %v2715_v60 = vsel %vm841_vm7, 0.33333334, %v2449_v47  ;;  %vm837_vm12 = vcmp.ge.s32.totalorder %v834_v58, 0  ;;  %vm840_vm13 = vcmp.lt.s32.totalorder %v834_v58, 3 }
 0x12e   : > { %v495_v61 = vpop.f32.mrf.mxu0  ;;  %v1952_v2 = vpop.f32.mrf.mxu1  ;;  %vm843_vm14 = vmand %vm837_vm12, %vm840_vm13 }
 0x12f   : > { %v620_v28 = vadd.f32 %v619_v63, %v495_v61  ;;  %v956_v61 = vld [vmem:[#allocation6 + $0x78] sm:$0xff]  ;;  %v845_v63 = vsel %vm842_vm11, 0.33333334, %v2449_v47 }
 0x130   : > { %v1934_v62 = vpop.f32.mrf.mxu0  ;;  %v629_v5 = vpop.f32.mrf.mxu1 }
 0x131   : > { %v635_v14 = vadd.f32 %v1952_v2, %v1934_v62  ;;  %v955_v62 = vld [vmem:[#allocation6 + $0x70] sm:$0xff]  ;;  %v846_v2 = vsel %vm843_vm14, 0.33333334, %v2449_v47 }
 0x132   : > { %v505_v0 = vpop.f32.mrf.mxu0  ;;  %v1955_v8 = vpop.f32.mrf.mxu1 }
 0x133   : > { %v630_v18 = vadd.f32 %v629_v5, %v505_v0  ;;  %v954_v0 = vld [vmem:[#allocation6 + $0x68] sm:$0xff]  ;;  %v951_v5 = vld [vmem:[#allocation6 + $0x50] sm:$0xff] }
 0x134   : > { %v1937_v1 = vpop.f32.mrf.mxu0  ;;  %v639_v12 = vpop.f32.mrf.mxu1 }
 0x135   : > { %v645_v15 = vadd.f32 %v1955_v8, %v1937_v1  ;;  %v953_v1 = vld [vmem:[#allocation6 + $0x60] sm:$0xff] }
 0x136   : > { %v515_v3 = vpop.f32.mrf.mxu0 }
 0x137   : > { %v640_v19 = vadd.f32 %v639_v12, %v515_v3  ;;  %v952_v3 = vld [vmem:[#allocation6 + $0x58] sm:$0xff] }
 0x138   : > { %v1964_v4 = vpop.f32.mrf.mxu0 }
 0x139   : > { %v793_v44 = vadd.f32 %v1964_v4, %v615_v36  ;;  %v940_v4 = vld [vmem:[#allocation6] sm:$0xff] }
 0x13a   : > { %v753_v6 = vpop.f32.mrf.mxu0  ;;  %2039 = vmatpush3.msra.mxu1 %v940_v4  ;;  %v1342_v36 = vld [vmem:[#allocation9 + $0x58] sm:$0xff] }
 0x13b   : > { %v792_v48 = vadd.f32 %v753_v6, %v610_v43  ;;  %v808_v51 = vadd.f32 %v1767_v22, %v793_v44  ;;  %2074 = vmatprep.subr.mxu1 %v2449_v47  ;;  %v950_v6 = vld [vmem:[#allocation6 + $0x48] sm:$0xff]  ;;  %v1334_v44 = vld [vmem:[#allocation9 + $0x18] sm:$0xff] }
 0x13c   : > { %v1967_v7 = vpop.f32.mrf.mxu0  ;;  %v1335_v43 = vld [vmem:[#allocation9 + $0x20] sm:$0xff] }
 0x13d   : > { %v795_v32 = vadd.f32 %v1967_v7, %v625_v24  ;;  %v807_v55 = vadd.f32 %v1767_v22, %v792_v48  ;;  %v816_v57 = vmax.f32 %v808_v51, 0.0  ;;  %v949_v7 = vld [vmem:[#allocation6 + $0x40] sm:$0xff]  ;;  %v1141_v24 = vld [vmem:[#allocation6 + $0x90] sm:$0xff] }
 0x13e   : > { %v763_v9 = vpop.f32.mrf.mxu0 }
 0x13f   : > { %v794_v37 = vadd.f32 %v763_v9, %v620_v28  ;;  %v810_v45 = vadd.f32 %v1767_v22, %v795_v32  ;;  %v815_v59 = vmax.f32 %v807_v55, 0.0  ;;  %v1346_v32 = vld [vmem:[#allocation9 + $0x78] sm:$0xff] }
 0x140   : > { %v1970_v10 = vpop.f32.mrf.mxu0 }
 0x141   : > { %v797_v20 = vadd.f32 %v1970_v10, %v635_v14  ;;  %v809_v49 = vadd.f32 %v1767_v22, %v794_v37  ;;  %v818_v52 = vmax.f32 %v810_v45, 0.0  ;;  %v1146_v14 = vld [vmem:[#allocation6 + $0xb8] sm:$0xff] }
 0x142   : > { %v773_v13 = vpop.f32.mrf.mxu0  ;;  %v1341_v37 = vld [vmem:[#allocation9 + $0x50] sm:$0xff] }
 0x143   : > { %v796_v25 = vadd.f32 %v773_v13, %v630_v18  ;;  %v812_v33 = vadd.f32 %v1767_v22, %v797_v20  ;;  %v817_v56 = vmax.f32 %v809_v49, 0.0  ;;  %v1144_v20 = vld [vmem:[#allocation6 + $0xa8] sm:$0xff] }
 0x144   : > { %v1973_v16 = vpop.f32.mrf.mxu0 }
 0x145   : > { %v799_v21 = vadd.f32 %v1973_v16, %v645_v15  ;;  %v811_v38 = vadd.f32 %v1767_v22, %v796_v25  ;;  %v820_v46 = vmax.f32 %v812_v33, 0.0  ;;  %v1140_v25 = vld [vmem:[#allocation6 + $0x88] sm:$0xff]  ;;  %v1345_v33 = vld [vmem:[#allocation9 + $0x70] sm:$0xff] }
 0x146   : > { %v783_v23 = vpop.f32.mrf.mxu0 }
 0x147   : > { %v814_v26 = vadd.f32 %v1767_v22, %v799_v21  ;;  %v798_v27 = vadd.f32 %v783_v23, %v640_v19  ;;  %v819_v50 = vmax.f32 %v811_v38, 0.0  ;;  %v1142_v23 = vld [vmem:[#allocation6 + $0x98] sm:$0xff]  ;;  %v1340_v38 = vld [vmem:[#allocation9 + $0x48] sm:$0xff] }
 0x149   : > { %v822_v34 = vmax.f32 %v814_v26, 0.0  ;;  %v813_v35 = vadd.f32 %v1767_v22, %v798_v27  ;;  %v1143_v22 = vld [vmem:[#allocation6 + $0xa0] sm:$0xff] }
 0x14a   : > { %v1139_v27 = vld [vmem:[#allocation6 + $0x80] sm:$0xff] }
 0x14b   : > { %v821_v39 = vmax.f32 %v813_v35, 0.0  ;;  %1975 = vmatpush3.msk.msra.mxu0 %vm652_vm3, %v822_v34  ;;  %v1344_v34 = vld [vmem:[#allocation9 + $0x68] sm:$0xff]  ;;  %v1343_v35 = vld [vmem:[#allocation9 + $0x60] sm:$0xff] }
 0x14c   : > { %1976 = vmatprep.subr.mxu0 %v2449_v47 }
 0x14d   : > { %1977 = vmatpush3.msra.mxu0 %v821_v39  ;;  %v1339_v39 = vld [vmem:[#allocation9 + $0x40] sm:$0xff] }
 0x14e   : > { %1978 = vmatprep.subr.mxu0 %v2449_v47 }
 0x14f   : > { %1979 = vmatpush3.msra.mxu0 %v820_v46 }
 0x150   : > { %1980 = vmatprep.subr.mxu0 %v2449_v47 }
 0x151   : > { %1981 = vmatpush3.msra.mxu0 %v819_v50 }
 0x152   : > { %1982 = vmatprep.subr.mxu0 %v2449_v47 }
 0x153   : > { %1983 = vmatpush3.msra.mxu0 %v818_v52 }
 0x154   : > { %1984 = vmatprep.subr.mxu0 %v2449_v47 }
 0x155   : > { %1985 = vmatpush3.msra.mxu0 %v817_v56 }
 0x156   : > { %1986 = vmatprep.subr.mxu0 %v2449_v47 }
 0x157   : > { %1987 = vmatpush3.msra.mxu0 %v816_v57 }
 0x158   : > { %1988 = vmatprep.subr.mxu0 %v2449_v47 }
 0x159   : > { %1989 = vmatpush3.msra.mxu0 %v815_v59 }
 0x15a   : > { %1991 = vmatmul.mubr.msk.f32.vlgmr.msra.gmra.mxu0 %vm847_vm10, %v2715_v60  ;;  %1999 = vmatprep.subr.mxu0 %v2449_v47 }
 0x15b   : > { %1993 = vmatprep.mubr.msk.f32.mxu0 %vm2450_vm4, %v2449_v47  ;;  %2000 = vmatpush3.msra.mxu0 %v956_v61 }
 0x15c   : > { %2001 = vmatprep.subr.mxu0 %v2449_v47 }
 0x15d   : > { %2002 = vmatpush3.msra.mxu0 %v955_v62 }
 0x15e   : > { %1994 = vmatmul.mubr.msk.f32.gmra.mxu0 %vm847_vm10, %v845_v63  ;;  %2003 = vmatprep.subr.mxu0 %v2449_v47 }
 0x15f   : > { %1996 = vmatprep.mubr.msk.f32.mxu0 %vm2450_vm4, %v2449_v47  ;;  %2004 = vmatpush3.msra.mxu0 %v954_v0 }
 0x160   : > { %2005 = vmatprep.subr.mxu0 %v2449_v47 }
 0x161   : > { %2006 = vmatpush3.msra.mxu0 %v953_v1 }
 0x162   : > { %1997 = vmatmul.mubr.msk.f32.gmra.mxu0 %vm847_vm10, %v846_v2  ;;  %2007 = vmatprep.subr.mxu0 %v2449_v47 }
 0x163   : > { %2015 = vmatprep.mubr.msk.f32.mxu0 %vm2450_vm4, %v2449_v47  ;;  %2008 = vmatpush3.msra.mxu0 %v952_v3 }
 0x164   : > { %2009 = vmatprep.subr.mxu0 %v2449_v47 }
 0x165   : > { %2010 = vmatpush3.msra.mxu0 %v951_v5 }
 0x166   : > { %2011 = vmatprep.subr.mxu0 %v2449_v47 }
 0x167   : > { %2012 = vmatpush3.msra.mxu0 %v950_v6  ;;  %v1781_v6 = vld [vmem:[#allocation7] ss:$0 sm:$0xff] }
 0x168   : > { %2013 = vmatprep.subr.mxu0 %v2449_v47 }
 0x169   : > { %2014 = vmatpush3.msra.mxu0 %v949_v7 }
 0x16a   : > { %2049 = vmatprep.subr.mxu0 %v2449_v47 }
 0x21a   : > { %v926_v8 = vpop.f32.mrf.mxu0 }
 0x21b   : > { %2041 = vmatmul.mubr.msk.f32.vlgmr.msra.gmra.mxu1 %vm965_vm15, %v926_v8  ;;  %v960_v11 = vrot.slane %v926_v8, 1  ;;  %v1147_v28 = vrot.slane %v926_v8, 2 }
 0x21c   : > { %v1992_v9 = vpop.f32.mrf.mxu0  ;;  %2043 = vmatprep.mubr.msk.f32.mxu1 %vm2450_vm4, %v2449_v47 }
 0x21e   : > { %v931_v10 = vpop.f32.mrf.mxu0 }
 0x21f   : > { %v961_v12 = vrot.slane %v931_v10, 1  ;;  %2044 = vmatmul.mubr.msk.f32.gmra.mxu1 %vm965_vm15, %v931_v10  ;;  %v1148_v26 = vrot.slane %v931_v10, 2 }
 0x220   : > { %v1995_v13 = vpop.f32.mrf.mxu0  ;;  %2046 = vmatprep.mubr.msk.f32.mxu1 %vm2450_vm4, %v2449_v47 }
 0x221   : > { %v962_v15 = vsel %vm382_vm1, %v960_v11, %v961_v12  ;;  %v1149_v29 = vsel %vm652_vm3, %v1147_v28, %v1148_v26  ;;  %v1333_v28 = vld [vmem:[#allocation9 + $0x10] sm:$0xff] }
 0x222   : > { %v936_v16 = vpop.f32.mrf.mxu0  ;;  %2016 = vmatmul.mubr.msk.f32.vlgmr.msra.gmra.mxu0 %vm965_vm15, %v962_v15  ;;  %v1362_v15 = vld [vmem:[#allocation9 + $0xf0] sm:$0xff] }
 0x223   : > { %v963_v18 = vrot.slane %v936_v16, 1  ;;  %2050 = vmatpush3.msra.mxu0 %v1146_v14  ;;  %2047 = vmatmul.mubr.msk.f32.gmra.mxu1 %vm965_vm15, %v936_v16  ;;  %v1150_v30 = vrot.slane %v936_v16, 2  ;;  %v1363_v14 = vld [vmem:[#allocation9 + $0xf8] sm:$0xff]  ;;  %v1361_v16 = vld [vmem:[#allocation9 + $0xe8] sm:$0xff] }
 0x224   : > { %2051 = vmatprep.subr.mxu0 %v2449_v47  ;;  %v1998_v19 = vpop.f32.mrf.mxu0  ;;  %2018 = vmatprep.mubr.msk.f32.mxu0 %vm2450_vm4, %v2449_v47 }
 0x225   : > { %2052 = vmatpush3.msra.mxu0 %v1145_v17  ;;  %v964_v21 = vsel %vm382_vm1, %v961_v12, %v963_v18  ;;  %2080 = vmatprep.mubr.msk.f32.mxu1 %vm2450_vm4, %v2449_v47  ;;  %v1151_v31 = vsel %vm652_vm3, %v1148_v26, %v1150_v30  ;;  %vm1254_vm1 = vcmask 146432   ;;  %v1360_v17 = vld [vmem:[#allocation9 + $0xe0] sm:$0xff]  ;;  %v1357_v19 = vld [vmem:[#allocation9 + $0xc8] sm:$0xff]  ;;  %v1350_v26 = vld [vmem:[#allocation9 + $0x90] sm:$0xff] }
 0x226   : > { %2053 = vmatprep.subr.mxu0 %v2449_v47  ;;  %2019 = vmatmul.mubr.msk.f32.gmra.mxu0 %vm965_vm15, %v964_v21  ;;  %v1355_v21 = vld [vmem:[#allocation9 + $0xb8] sm:$0xff] }
 0x227   : > { %2054 = vmatpush3.msra.mxu0 %v1144_v20  ;;  %2021 = vmatprep.mubr.msk.f32.mxu0 %vm2450_vm4, %v2449_v47  ;;  %v1356_v20 = vld [vmem:[#allocation9 + $0xc0] sm:$0xff] }
 0x228   : > { %2055 = vmatprep.subr.mxu0 %v2449_v47 }
 0x229   : > { %2056 = vmatpush3.msra.mxu0 %v1143_v22  ;;  %v1354_v22 = vld [vmem:[#allocation9 + $0xb0] sm:$0xff] }
 0x22a   : > { %2057 = vmatprep.subr.mxu0 %v2449_v47  ;;  %2022 = vmatmul.mubr.msk.f32.gmra.mxu0 %vm965_vm15, %v963_v18  ;;  %v1359_v18 = vld [vmem:[#allocation9 + $0xd8] sm:$0xff] }
 0x22b   : > { %2058 = vmatpush3.msra.mxu0 %v1142_v23  ;;  %2065 = vmatprep.mubr.msk.f32.mxu0 %vm2450_vm4, %v2449_v47  ;;  %v1353_v23 = vld [vmem:[#allocation9 + $0xa8] sm:$0xff] }
 0x22c   : > { %2059 = vmatprep.subr.mxu0 %v2449_v47 }
 0x22d   : > { %2060 = vmatpush3.msra.mxu0 %v1141_v24  ;;  %v1352_v24 = vld [vmem:[#allocation9 + $0xa0] sm:$0xff] }
 0x22e   : > { %2061 = vmatprep.subr.mxu0 %v2449_v47 }
 0x22f   : > { %2062 = vmatpush3.msra.mxu0 %v1140_v25  ;;  %v1351_v25 = vld [vmem:[#allocation9 + $0x98] sm:$0xff] }
 0x230   : > { %2063 = vmatprep.subr.mxu0 %v2449_v47 }
 0x231   : > { %2064 = vmatpush3.msra.mxu0 %v1139_v27  ;;  %v1349_v27 = vld [vmem:[#allocation9 + $0x88] sm:$0xff] }
 0x232   : > { %2066 = vmatmul.mubr.msk.f32.vlgmr.msra.gmra.mxu0 %vm965_vm15, %v1149_v29  ;;  %2118 = vmatprep.subr.mxu0 %v2449_v47  ;;  %v1332_v29 = vld [vmem:[#allocation9 + $0x8] sm:$0xff] }
 0x233   : > { %2068 = vmatprep.mubr.msk.f32.mxu0 %vm2450_vm4, %v2449_v47  ;;  %2119 = vmatpush3.msra.mxu0 %v1346_v32 }
 0x234   : > { %2120 = vmatprep.subr.mxu0 %v2449_v47 }
 0x235   : > { %2121 = vmatpush3.msra.mxu0 %v1345_v33 }
 0x236   : > { %2069 = vmatmul.mubr.msk.f32.gmra.mxu0 %vm965_vm15, %v1151_v31  ;;  %2122 = vmatprep.subr.mxu0 %v2449_v47  ;;  %v1331_v31 = vld [vmem:[#allocation9] sm:$0xff] }
 0x237   : > { %2071 = vmatprep.mubr.msk.f32.mxu0 %vm2450_vm4, %v2449_v47  ;;  %2123 = vmatpush3.msra.mxu0 %v1344_v34  ;;  %v1523_v34 = vld [vmem:[#allocation9 + $0x178] sm:$0xff] }
 0x238   : > { %2124 = vmatprep.subr.mxu0 %v2449_v47 }
 0x239   : > { %2125 = vmatpush3.msra.mxu0 %v1343_v35 }
 0x23a   : > { %2072 = vmatmul.mubr.msk.f32.gmra.mxu0 %vm965_vm15, %v1150_v30  ;;  %2126 = vmatprep.subr.mxu0 %v2449_v47  ;;  %v1348_v30 = vld [vmem:[#allocation9 + $0x80] sm:$0xff] }
 0x23b   : > { %2150 = vmatprep.mubr.msk.f32.mxu0 %vm2450_vm4, %v2449_v47  ;;  %2127 = vmatpush3.msra.mxu0 %v1342_v36  ;;  %v1522_v36 = vld [vmem:[#allocation9 + $0x170] sm:$0xff] }
 0x23c   : > { %2128 = vmatprep.subr.mxu0 %v2449_v47 }
 0x23d   : > { %2129 = vmatpush3.msra.mxu0 %v1341_v37  ;;  %v1521_v37 = vld [vmem:[#allocation9 + $0x168] sm:$0xff] }
 0x23e   : > { %2130 = vmatprep.subr.mxu0 %v2449_v47 }
 0x23f   : > { %2131 = vmatpush3.msra.mxu0 %v1340_v38  ;;  %v1520_v38 = vld [vmem:[#allocation9 + $0x160] sm:$0xff] }
 0x240   : > { %2132 = vmatprep.subr.mxu0 %v2449_v47 }
 0x241   : > { %2133 = vmatpush3.msra.mxu0 %v1339_v39  ;;  %v1519_v39 = vld [vmem:[#allocation9 + $0x158] sm:$0xff] }
 0x242   : > { %2134 = vmatprep.subr.mxu0 %v2449_v47 }
 0x243   : > { %2135 = vmatpush3.msra.mxu0 %v1338_v40  ;;  %v1518_v40 = vld [vmem:[#allocation9 + $0x150] sm:$0xff] }
 0x244   : > { %2136 = vmatprep.subr.mxu0 %v2449_v47 }
 0x245   : > { %2137 = vmatpush3.msra.mxu0 %v1337_v41  ;;  %v1517_v41 = vld [vmem:[#allocation9 + $0x148] sm:$0xff] }
 0x246   : > { %2138 = vmatprep.subr.mxu0 %v2449_v47 }
 0x247   : > { %2139 = vmatpush3.msra.mxu0 %v1336_v42  ;;  %v1516_v42 = vld [vmem:[#allocation9 + $0x140] sm:$0xff] }
 0x248   : > { %2140 = vmatprep.subr.mxu0 %v2449_v47 }
 0x249   : > { %2141 = vmatpush3.msra.mxu0 %v1335_v43  ;;  %v1515_v43 = vld [vmem:[#allocation9 + $0x138] sm:$0xff] }
 0x24a   : > { %2142 = vmatprep.subr.mxu0 %v2449_v47 }
 0x24b   : > { %2143 = vmatpush3.msra.mxu0 %v1334_v44  ;;  %v1514_v44 = vld [vmem:[#allocation9 + $0x130] sm:$0xff] }
 0x24c   : > { %2144 = vmatprep.subr.mxu0 %v2449_v47 }
 0x24d   : > { %2145 = vmatpush3.msra.mxu0 %v1333_v28 }
 0x24e   : > { %2146 = vmatprep.subr.mxu0 %v2449_v47 }
 0x24f   : > { %2147 = vmatpush3.msra.mxu0 %v1332_v29 }
 0x250   : > { %2148 = vmatprep.subr.mxu0 %v2449_v47 }
 0x251   : > { %2149 = vmatpush3.msra.mxu0 %v1331_v31 }
 0x2db   : > { %v1124_v45 = vpop.f32.mrf.mxu1 }
 0x2dd   : > { %v2042_v46 = vpop.f32.mrf.mxu1 }
 0x2de   : > { %v1512_v46 = vld [vmem:[#allocation9 + $0x120] sm:$0xff] }
 0x2df   : > { %v1129_v48 = vpop.f32.mrf.mxu1 }
 0x2e1   : > { %v2045_v49 = vpop.f32.mrf.mxu1 }
 0x2e2   : > { %v1038_v50 = vpop.f32.mrf.mxu0  ;;  %v1510_v49 = vld [vmem:[#allocation9 + $0x110] sm:$0xff] }
 0x2e3   : > { %v1134_v51 = vpop.f32.mrf.mxu1  ;;  %v1125_v0 = vadd.f32 %v1124_v45, %v1038_v50  ;;  %v1513_v45 = vld [vmem:[#allocation9 + $0x128] sm:$0xff] }
 0x2e4   : > { %v2017_v52 = vpop.f32.mrf.mxu0  ;;  %v1509_v50 = vld [vmem:[#allocation9 + $0x108] sm:$0xff] }
 0x2e5   : > { %v2048_v53 = vpop.f32.mrf.mxu1 }
 0x2e6   : > { %v1043_v54 = vpop.f32.mrf.mxu0 }
 0x2e7   : > { %v1130_v62 = vadd.f32 %v1129_v48, %v1043_v54  ;;  %v1511_v48 = vld [vmem:[#allocation9 + $0x118] sm:$0xff] }
 0x2e8   : > { %v2020_v55 = vpop.f32.mrf.mxu0 }
 0x2ea   : > { %v1048_v56 = vpop.f32.mrf.mxu0 }
 0x2eb   : > { %v1135_v1 = vadd.f32 %v1134_v51, %v1048_v56  ;;  %v1508_v51 = vld [vmem:[#allocation9 + $0x100] sm:$0xff] }
 0x2ec   : > { %v2023_v57 = vpop.f32.mrf.mxu0 }
 0x2f2   : > { %v1224_v58 = vpop.f32.mrf.mxu0 }
 0x2f3   : > { %v1238_v4 = vadd.f32 %v1224_v58, %v1125_v0 }
 0x2f4   : > { %v2067_v59 = vpop.f32.mrf.mxu0 }
 0x2f5   : > { %v1248_v10 = vadd.f32 %v1781_v6, %v1238_v4  ;;  %v1784_v59 = vld [vmem:[#allocation10] ss:$0 sm:$0xff] }
 0x2f6   : > { %v1229_v61 = vpop.f32.mrf.mxu0 }
 0x2f7   : > { %v1239_v2 = vadd.f32 %v1229_v61, %v1130_v62  ;;  %v1251_v13 = vmax.f32 %v1248_v10, 0.0 }
 0x2f8   : > { %v2070_v63 = vpop.f32.mrf.mxu0 }
 0x2f9   : > { %v1249_v8 = vadd.f32 %v1781_v6, %v1239_v2 }
 0x2fa   : > { %v1234_v3 = vpop.f32.mrf.mxu0 }
 0x2fb   : > { %v1240_v5 = vadd.f32 %v1234_v3, %v1135_v1  ;;  %v1252_v12 = vmax.f32 %v1249_v8, 0.0 }
 0x2fc   : > { %v2073_v7 = vpop.f32.mrf.mxu0 }
 0x2fd   : > { %v1250_v9 = vadd.f32 %v1781_v6, %v1240_v5 }
 0x2ff   : > { %v1253_v11 = vmax.f32 %v1250_v9, 0.0 }
 0x301   : > { %2075 = vmatpush3.msk.msra.mxu1 %vm1257_vm0, %v1253_v11 }
 0x302   : > { %2076 = vmatprep.subr.mxu1 %v2449_v47 }
 0x303   : > { %2077 = vmatpush3.msra.mxu1 %v1252_v12 }
 0x304   : > { %2078 = vmatprep.subr.mxu1 %v2449_v47 }
 0x305   : > { %2079 = vmatpush3.msra.mxu1 %v1251_v13 }
 0x306   : > { %2081 = vmatmul.mubr.msk.f32.vlgmr.msra.gmra.mxu1 %vm1254_vm1, %v2715_v60  ;;  %2083 = vmatprep.subr.mxu1 %v2449_v47  ;;  %v1358_v60 = vld [vmem:[#allocation9 + $0xd0] sm:$0xff] }
 0x307   : > { %2084 = vmatpush3.msra.mxu1 %v1363_v14  ;;  %2115 = vmatprep.mubr.msk.f32.mxu1 %vm2450_vm4, %v2449_v47 }
 0x308   : > { %2085 = vmatprep.subr.mxu1 %v2449_v47 }
 0x309   : > { %2086 = vmatpush3.msra.mxu1 %v1362_v15 }
 0x30a   : > { %2087 = vmatprep.subr.mxu1 %v2449_v47 }
 0x30b   : > { %2088 = vmatpush3.msra.mxu1 %v1361_v16 }
 0x30c   : > { %2089 = vmatprep.subr.mxu1 %v2449_v47 }
 0x30d   : > { %2090 = vmatpush3.msra.mxu1 %v1360_v17 }
 0x30e   : > { %2091 = vmatprep.subr.mxu1 %v2449_v47 }
 0x30f   : > { %2092 = vmatpush3.msra.mxu1 %v1359_v18 }
 0x310   : > { %2093 = vmatprep.subr.mxu1 %v2449_v47 }
 0x311   : > { %2094 = vmatpush3.msra.mxu1 %v1358_v60 }
 0x312   : > { %2095 = vmatprep.subr.mxu1 %v2449_v47 }
 0x313   : > { %2096 = vmatpush3.msra.mxu1 %v1357_v19 }
 0x314   : > { %2097 = vmatprep.subr.mxu1 %v2449_v47 }
 0x315   : > { %2098 = vmatpush3.msra.mxu1 %v1356_v20 }
 0x316   : > { %2099 = vmatprep.subr.mxu1 %v2449_v47 }
 0x317   : > { %2100 = vmatpush3.msra.mxu1 %v1355_v21 }
 0x318   : > { %2101 = vmatprep.subr.mxu1 %v2449_v47 }
 0x319   : > { %2102 = vmatpush3.msra.mxu1 %v1354_v22 }
 0x31a   : > { %2103 = vmatprep.subr.mxu1 %v2449_v47 }
 0x31b   : > { %2104 = vmatpush3.msra.mxu1 %v1353_v23 }
 0x31c   : > { %2105 = vmatprep.subr.mxu1 %v2449_v47 }
 0x31d   : > { %2106 = vmatpush3.msra.mxu1 %v1352_v24 }
 0x31e   : > { %2107 = vmatprep.subr.mxu1 %v2449_v47 }
 0x31f   : > { %2108 = vmatpush3.msra.mxu1 %v1351_v25 }
 0x320   : > { %2109 = vmatprep.subr.mxu1 %v2449_v47 }
 0x321   : > { %2110 = vmatpush3.msra.mxu1 %v1350_v26 }
 0x322   : > { %2111 = vmatprep.subr.mxu1 %v2449_v47 }
 0x323   : > { %2112 = vmatpush3.msra.mxu1 %v1349_v27 }
 0x324   : > { %2113 = vmatprep.subr.mxu1 %v2449_v47 }
 0x325   : > { %2114 = vmatpush3.msra.mxu1 %v1348_v30 }
 0x326   : > { %2153 = vmatprep.subr.mxu1 %v2449_v47 }
 0x3c6   : > { %v1327_v32 = vpop.f32.mrf.mxu1 }
 0x3c7   : > { %v1365_v33 = vrot.slane %v1327_v32, 1  ;;  %2151 = vmatmul.mubr.f32.vlgmr.msra.gmra.mxu0 %v1327_v32  ;;  %v1524_v52 = vrot.slane %v1327_v32, 2 }
 0x3c8   : > { %v2082_v35 = vpop.f32.mrf.mxu1 }
 0x3c9   : > { %2116 = vmatmul.mubr.f32.vlgmr.msra.gmra.mxu1 %v1365_v33 }
 0x3ca   : > { %2154 = vmatpush3.msra.mxu1 %v1523_v34  ;;  %2185 = vmatprep.mubr.msk.f32.mxu1 %vm2450_vm4, %v2449_v47 }
 0x3cb   : > { %2155 = vmatprep.subr.mxu1 %v2449_v47 }
 0x3cc   : > { %2156 = vmatpush3.msra.mxu1 %v1522_v36 }
 0x3cd   : > { %2157 = vmatprep.subr.mxu1 %v2449_v47 }
 0x3ce   : > { %2158 = vmatpush3.msra.mxu1 %v1521_v37 }
 0x3cf   : > { %2159 = vmatprep.subr.mxu1 %v2449_v47 }
 0x3d0   : > { %2160 = vmatpush3.msra.mxu1 %v1520_v38 }
 0x3d1   : > { %2161 = vmatprep.subr.mxu1 %v2449_v47 }
 0x3d2   : > { %2162 = vmatpush3.msra.mxu1 %v1519_v39 }
 0x3d3   : > { %2163 = vmatprep.subr.mxu1 %v2449_v47 }
 0x3d4   : > { %2164 = vmatpush3.msra.mxu1 %v1518_v40 }
 0x3d5   : > { %2165 = vmatprep.subr.mxu1 %v2449_v47 }
 0x3d6   : > { %2166 = vmatpush3.msra.mxu1 %v1517_v41 }
 0x3d7   : > { %2167 = vmatprep.subr.mxu1 %v2449_v47 }
 0x3d8   : > { %2168 = vmatpush3.msra.mxu1 %v1516_v42 }
 0x3d9   : > { %2169 = vmatprep.subr.mxu1 %v2449_v47 }
 0x3da   : > { %2170 = vmatpush3.msra.mxu1 %v1515_v43 }
 0x3db   : > { %2171 = vmatprep.subr.mxu1 %v2449_v47 }
 0x3dc   : > { %2172 = vmatpush3.msra.mxu1 %v1514_v44 }
 0x3dd   : > { %2173 = vmatprep.subr.mxu1 %v2449_v47 }
 0x3de   : > { %2174 = vmatpush3.msra.mxu1 %v1513_v45 }
 0x3df   : > { %2175 = vmatprep.subr.mxu1 %v2449_v47 }
 0x3e0   : > { %2176 = vmatpush3.msra.mxu1 %v1512_v46 }
 0x3e1   : > { %2177 = vmatprep.subr.mxu1 %v2449_v47 }
 0x3e2   : > { %2178 = vmatpush3.msra.mxu1 %v1511_v48 }
 0x3e3   : > { %2179 = vmatprep.subr.mxu1 %v2449_v47 }
 0x3e4   : > { %2180 = vmatpush3.msra.mxu1 %v1510_v49 }
 0x3e5   : > { %2181 = vmatprep.subr.mxu1 %v2449_v47 }
 0x3e6   : > { %2182 = vmatpush3.msra.mxu1 %v1509_v50 }
 0x3e7   : > { %2183 = vmatprep.subr.mxu1 %v2449_v47 }
 0x3e8   : > { %2184 = vmatpush3.msra.mxu1 %v1508_v51 }
 0x3e9   : > { %2186 = vmatmul.mubr.f32.vlgmr.msra.gmra.mxu1 %v1524_v52 }
 0x487   : > { %v1503_v53 = vpop.f32.mrf.mxu0 }
 0x489   : > { %v1433_v54 = vpop.f32.mrf.mxu1  ;;  %v2152_v55 = vpop.f32.mrf.mxu0 }
 0x48a   : > { %v1504_v57 = vadd.f32 %v1503_v53, %v1433_v54 }
 0x48b   : > { %v2117_v56 = vpop.f32.mrf.mxu1 }
 0x4a9   : > { %v1592_v58 = vpop.f32.mrf.mxu1 }
 0x4aa   : > { %v1596_v61 = vadd.f32 %v1592_v58, %v1504_v57 }
 0x4ab   : > { %v2187_v62 = vpop.f32.mrf.mxu1 }
 0x4ac   : > { %v1604_v63 = vadd.f32 %v1784_v59, %v1596_v61 }
 0x4ae   : > { %v1605_v0 = vmax.f32 %v1604_v63, 0.0 }
 0x4b0   : > { %1606 = vst [vmem:[%s358_s30] sm:$0xf] %v1605_v0 }
 0x4b1 PF: > { %s21_s24 = sadd.s32 1, %s2439_s24  }
 0x4b2   : > { %p18_p2 = scmp.ge.s32.totalorder %s21_s24, 4  }
 0x4b4   :  { %20 = sbr.rel (!%p18_p2) target bundleno = 4 (0x4), region = 109 }
 0x4b9   :  { %1626 = vsyncpa [#allocation3], 1 }
 0x4ba   :  { %1628 = vsyncpa [#allocation3 + $0x1], 1 }
 0x4bb   :  { %1629 = vsyncpa [#allocation5], 1 }
 0x4bc   :  { %1630 = vsyncpa [#allocation8], 1 }
 0x4bd   :  { %1631 = vsyncpa [#allocation11], 1 }

// kernel: tl_deep_forward.5
= control target key start
LH: loop header
LB: loop body
LE: loop exit
PB: predicated region body
PF: predicated region fallthrough
CT: control target
= control target key end

     0   :  { %13 = vsyncpa [#allocation4], 0  ;;  %s2438_s0 = inlined_call_operand.vmem [shape: f32[4,2,128], index: 0, kind: input, shape index: {}]   ;;  %s2439_s1 = inlined_call_operand.vmem [shape: s32[2,1], index: 1, kind: input, shape index: {}]   ;;  %s2440_s2 = inlined_call_operand.hbm [shape: f32[128,512], index: 2, kind: input, shape index: {}]   ;;  %s2441_s3 = inlined_call_operand.hbm [shape: f32[128,512], index: 3, kind: input, shape index: {}]   ;;  %s2442_s4 = inlined_call_operand.vmem [shape: f32[1,512], index: 4, kind: input, shape index: {}]   ;;  %s2443_s5 = inlined_call_operand.vmem [shape: f32[4,2,64], index: 5, kind: output, shape index: {0}]   ;;  %s2444_s6 = inlined_call_operand.vmem [shape: f32[4,2,64], index: 6, kind: output, shape index: {1}]   ;;  %s2445_s7 = inlined_call_operand.hbm [shape: f32[2,128], index: 7, kind: output, shape index: {2}]  }
   0x1   :  { %14 = vsyncpa [#allocation7], 0 }
   0x2   :  { %15 = vsyncpa [#allocation5], 0  ;;  %s1551_s24 = smov [#allocation3]  }
   0x3   :  { %s25_s25 = sshll.u32 %s1551_s24, 4  ;;  %s26_s25 = int_to_ptr.vmem [resolvable:$true] %s25_s25 }
   0x4   :  { %s1485_s26 = scalar_lea.vmem %s26_s25, 8192  ;;  %p1490_p1 = scmp.lt.s32.totalorder %s26_s25, %s26_s25 }
   0x5   :  { %p1486_p0 = scmp.ne.s32.totalorder %s26_s25, %s1485_s26  ;;  %p1491_p2 = scmp.lt.s32.totalorder %s1485_s26, %s1485_s26 }
   0x7   :  { %p1492_p3 = por %p1491_p2, %p1490_p1 }
   0x9   :  { %p1493_p4 = pnand %p1492_p3, %p1486_p0 }
   0xb   :  { %1496 = shalt.err (!%p1493_p4)
}
   0xc   :  { %s1552_s27 = smov 512   ;;  %s1553_s28 = smov 32  }
   0xd   :  { %31 = dma.hbm_to_vmem [thread:$0]  %s2440_s2, 8192, %s26_s25, [#allocation4], %s1552_s27, %s1552_s27, %s1553_s28  }
   0xe   :  { %s1554_s8 = smov [#allocation6]  }
   0xf   :  { %s37_s9 = sshll.u32 %s1554_s8, 4  ;;  %s38_s9 = int_to_ptr.vmem [resolvable:$true] %s37_s9 }
  0x10   :  { %s1505_s10 = scalar_lea.vmem %s38_s9, 8192  ;;  %p1510_p6 = scmp.lt.s32.totalorder %s38_s9, %s38_s9 }
  0x11   :  { %p1506_p5 = scmp.ne.s32.totalorder %s38_s9, %s1505_s10  ;;  %p1511_p7 = scmp.lt.s32.totalorder %s1505_s10, %s1505_s10 }
  0x13   :  { %p1512_p8 = por %p1511_p7, %p1510_p6 }
  0x15   :  { %p1513_p9 = pnand %p1512_p8, %p1506_p5 }
  0x17   :  { %1516 = shalt.err (!%p1513_p9)
}
  0x18   :  { %43 = dma.hbm_to_vmem [thread:$0]  %s2441_s3, 8192, %s38_s9, [#allocation7], %s1552_s27, %s1552_s27, %s1553_s28  }
  0x19   :  { %1541 = dma.done.wait [#allocation4], 8192  }
  0x1a   :  { %1542 = vsyncadd [#allocation4], 4294959104 }
  0x1b   :  { %1543 = dma.done.wait [#allocation7], 8192  }
  0x1c   :  { %1544 = vsyncadd [#allocation7], 4294959104  ;;  %v1610_v0 = vld [vmem:[#allocation3] sm:$0xff]  ;;  %v1612_v1 = vld [vmem:[#allocation3 + $0x8] sm:$0xff]  ;;  %s1743_s13 = smov 0  }
  0x1d   :  { %2517 = vst [vmem:[#allocation12_spill] sm:$0xff] %v1610_v0  ;;  %2518 = vst [vmem:[#allocation13_spill] sm:$0xff] %v1612_v1  ;;  %v1614_v2 = vld [vmem:[#allocation3 + $0x10] sm:$0xff]  ;;  %v1616_v3 = vld [vmem:[#allocation3 + $0x18] sm:$0xff] }
  0x1e   :  { %2519 = vst [vmem:[#allocation14_spill] sm:$0xff] %v1614_v2  ;;  %2520 = vst [vmem:[#allocation15_spill] sm:$0xff] %v1616_v3  ;;  %v1618_v4 = vld [vmem:[#allocation3 + $0x20] sm:$0xff]  ;;  %v1620_v5 = vld [vmem:[#allocation3 + $0x28] sm:$0xff] }
  0x1f   :  { %2521 = vst [vmem:[#allocation16_spill] sm:$0xff] %v1618_v4  ;;  %2522 = vst [vmem:[#allocation17_spill] sm:$0xff] %v1620_v5  ;;  %v1622_v6 = vld [vmem:[#allocation3 + $0x30] sm:$0xff]  ;;  %v1624_v7 = vld [vmem:[#allocation3 + $0x38] sm:$0xff] }
  0x20   :  { %2523 = vst [vmem:[#allocation18_spill] sm:$0xff] %v1622_v6  ;;  %2524 = vst [vmem:[#allocation19_spill] sm:$0xff] %v1624_v7  ;;  %v1626_v8 = vld [vmem:[#allocation3 + $0x40] sm:$0xff]  ;;  %v1628_v9 = vld [vmem:[#allocation3 + $0x48] sm:$0xff] }
  0x21   :  { %2525 = vst [vmem:[#allocation20_spill] sm:$0xff] %v1626_v8  ;;  %2526 = vst [vmem:[#allocation21_spill] sm:$0xff] %v1628_v9  ;;  %v1630_v10 = vld [vmem:[#allocation3 + $0x50] sm:$0xff]  ;;  %v1632_v11 = vld [vmem:[#allocation3 + $0x58] sm:$0xff] }
  0x22   :  { %2527 = vst [vmem:[#allocation22_spill] sm:$0xff] %v1630_v10  ;;  %2528 = vst [vmem:[#allocation23_spill] sm:$0xff] %v1632_v11  ;;  %v1634_v12 = vld [vmem:[#allocation3 + $0x60] sm:$0xff]  ;;  %v1636_v13 = vld [vmem:[#allocation3 + $0x68] sm:$0xff] }
  0x23   :  { %2529 = vst [vmem:[#allocation24_spill] sm:$0xff] %v1634_v12  ;;  %2530 = vst [vmem:[#allocation25_spill] sm:$0xff] %v1636_v13  ;;  %v1638_v14 = vld [vmem:[#allocation3 + $0x70] sm:$0xff]  ;;  %v1640_v15 = vld [vmem:[#allocation3 + $0x78] sm:$0xff] }
  0x24   :  { %2531 = vst [vmem:[#allocation26_spill] sm:$0xff] %v1638_v14  ;;  %2532 = vst [vmem:[#allocation27_spill] sm:$0xff] %v1640_v15  ;;  %v1642_v16 = vld [vmem:[#allocation3 + $0x80] sm:$0xff]  ;;  %v1644_v17 = vld [vmem:[#allocation3 + $0x88] sm:$0xff] }
  0x25   :  { %2533 = vst [vmem:[#allocation28_spill] sm:$0xff] %v1642_v16  ;;  %2534 = vst [vmem:[#allocation29_spill] sm:$0xff] %v1644_v17  ;;  %v1646_v18 = vld [vmem:[#allocation3 + $0x90] sm:$0xff]  ;;  %v1648_v19 = vld [vmem:[#allocation3 + $0x98] sm:$0xff] }
  0x26   :  { %2535 = vst [vmem:[#allocation30_spill] sm:$0xff] %v1646_v18  ;;  %2536 = vst [vmem:[#allocation31_spill] sm:$0xff] %v1648_v19  ;;  %v1650_v20 = vld [vmem:[#allocation3 + $0xa0] sm:$0xff]  ;;  %v1652_v21 = vld [vmem:[#allocation3 + $0xa8] sm:$0xff] }
  0x27   :  { %2537 = vst [vmem:[#allocation32_spill] sm:$0xff] %v1650_v20  ;;  %2538 = vst [vmem:[#allocation33_spill] sm:$0xff] %v1652_v21  ;;  %v1654_v22 = vld [vmem:[#allocation3 + $0xb0] sm:$0xff]  ;;  %v1656_v23 = vld [vmem:[#allocation3 + $0xb8] sm:$0xff] }
  0x28   :  { %v1658_v24 = vld [vmem:[#allocation3 + $0xc0] sm:$0xff]  ;;  %v1660_v25 = vld [vmem:[#allocation3 + $0xc8] sm:$0xff]  ;;  %v1662_v26 = vld [vmem:[#allocation3 + $0xd0] sm:$0xff] }
  0x29   :  { %v1664_v27 = vld [vmem:[#allocation3 + $0xd8] sm:$0xff]  ;;  %v1666_v28 = vld [vmem:[#allocation3 + $0xe0] sm:$0xff]  ;;  %v1668_v29 = vld [vmem:[#allocation3 + $0xe8] sm:$0xff] }
  0x2a   :  { %v1670_v30 = vld [vmem:[#allocation3 + $0xf0] sm:$0xff]  ;;  %v1672_v31 = vld [vmem:[#allocation3 + $0xf8] sm:$0xff]  ;;  %v1674_v32 = vld [vmem:[#allocation3 + $0x100] sm:$0xff] }
  0x2b   :  { %v1676_v33 = vld [vmem:[#allocation3 + $0x108] sm:$0xff]  ;;  %v1678_v34 = vld [vmem:[#allocation3 + $0x110] sm:$0xff]  ;;  %v1680_v35 = vld [vmem:[#allocation3 + $0x118] sm:$0xff] }
  0x2c   :  { %v1682_v36 = vld [vmem:[#allocation3 + $0x120] sm:$0xff]  ;;  %v1684_v37 = vld [vmem:[#allocation3 + $0x128] sm:$0xff]  ;;  %v1686_v38 = vld [vmem:[#allocation3 + $0x130] sm:$0xff] }
  0x2d   :  { %v1688_v39 = vld [vmem:[#allocation3 + $0x138] sm:$0xff]  ;;  %v1690_v40 = vld [vmem:[#allocation3 + $0x140] sm:$0xff]  ;;  %v1692_v41 = vld [vmem:[#allocation3 + $0x148] sm:$0xff] }
  0x2e   :  { %v1694_v42 = vld [vmem:[#allocation3 + $0x150] sm:$0xff]  ;;  %v1696_v43 = vld [vmem:[#allocation3 + $0x158] sm:$0xff]  ;;  %v1698_v44 = vld [vmem:[#allocation3 + $0x160] sm:$0xff] }
  0x2f   :  { %v1700_v45 = vld [vmem:[#allocation3 + $0x168] sm:$0xff]  ;;  %v1702_v46 = vld [vmem:[#allocation3 + $0x170] sm:$0xff]  ;;  %v1704_v47 = vld [vmem:[#allocation3 + $0x178] sm:$0xff] }
  0x30   :  { %v1706_v48 = vld [vmem:[#allocation3 + $0x180] sm:$0xff]  ;;  %v1708_v49 = vld [vmem:[#allocation3 + $0x188] sm:$0xff]  ;;  %v1710_v50 = vld [vmem:[#allocation3 + $0x190] sm:$0xff] }
  0x31   :  { %v1712_v51 = vld [vmem:[#allocation3 + $0x198] sm:$0xff]  ;;  %v1714_v52 = vld [vmem:[#allocation3 + $0x1a0] sm:$0xff]  ;;  %v1716_v53 = vld [vmem:[#allocation3 + $0x1a8] sm:$0xff] }
  0x32   :  { %v1718_v54 = vld [vmem:[#allocation3 + $0x1b0] sm:$0xff]  ;;  %v1720_v55 = vld [vmem:[#allocation3 + $0x1b8] sm:$0xff]  ;;  %v1722_v56 = vld [vmem:[#allocation3 + $0x1c0] sm:$0xff] }
  0x33   :  { %v1724_v57 = vld [vmem:[#allocation3 + $0x1c8] sm:$0xff]  ;;  %v1726_v58 = vld [vmem:[#allocation3 + $0x1d0] sm:$0xff]  ;;  %v1728_v59 = vld [vmem:[#allocation3 + $0x1d8] sm:$0xff] }
  0x34   :  { %v1730_v60 = vld [vmem:[#allocation3 + $0x1e0] sm:$0xff]  ;;  %v1732_v61 = vld [vmem:[#allocation3 + $0x1e8] sm:$0xff]  ;;  %v1734_v62 = vld [vmem:[#allocation3 + $0x1f0] sm:$0xff] }
  0x35   :  { %v1736_v63 = vld [vmem:[#allocation3 + $0x1f8] sm:$0xff]  ;;  %v1741_v2 = vld [vmem:[%s2442_s4] sm:$0xf] }
  0x36 LB: > { %147 = vmatprep.subr.mxu0 %v1732_v61  ;;  %218 = vmatprep.subr.mxu1 %v1736_v63  ;;  %v2539_v21 = vld [vmem:[#allocation33_spill] sm:$0xff]  ;;  %v2540_v20 = vld [vmem:[#allocation32_spill] sm:$0xff]  ;;  %v2542_v19 = vld [vmem:[#allocation31_spill] sm:$0xff]  ;;  %s1363_s4 = sshll.u32 %s1549_s13, 1  ;;  %s1386_s17 = sshll.u32 %s1549_s13, 3  ;;  %s1549_s13 = sphi %s1743_s13, %s122_s13  }
  0x37   : > { %148 = vmatpush1.msra.mxu0 %v1730_v60  ;;  %219 = vmatpush1.msra.mxu1 %v1734_v62  ;;  %v2541_v17 = vld [vmem:[#allocation29_spill] sm:$0xff]  ;;  %v2543_v16 = vld [vmem:[#allocation28_spill] sm:$0xff]  ;;  %v2544_v18 = vld [vmem:[#allocation30_spill] sm:$0xff]  ;;  %s124_s16 = scalar_lea.vmem %s2438_s0, %s1363_s4  ;;  %s313_s18 = scalar_lea.vmem [#allocation2], %s1386_s17 }
  0x38   : > { %149 = vmatprep.subr.mxu0 %v1724_v57  ;;  %220 = vmatprep.subr.mxu1 %v1728_v59  ;;  %v2545_v13 = vld [vmem:[#allocation25_spill] sm:$0xff]  ;;  %v2546_v15 = vld [vmem:[#allocation27_spill] sm:$0xff]  ;;  %v2547_v12 = vld [vmem:[#allocation24_spill] sm:$0xff]  ;;  %s122_s13 = sadd.s32 1, %s1549_s13  }
  0x39   : > { %150 = vmatpush1.msra.mxu0 %v1722_v56  ;;  %221 = vmatpush1.msra.mxu1 %v1726_v58  ;;  %v2548_v14 = vld [vmem:[#allocation26_spill] sm:$0xff]  ;;  %v2549_v9 = vld [vmem:[#allocation21_spill] sm:$0xff]  ;;  %v2550_v11 = vld [vmem:[#allocation23_spill] sm:$0xff]  ;;  %p119_p10 = scmp.ge.s32.totalorder %s122_s13, 4  }
  0x3a   : > { %151 = vmatprep.subr.mxu0 %v1716_v53  ;;  %222 = vmatprep.subr.mxu1 %v1720_v55  ;;  %v2551_v8 = vld [vmem:[#allocation20_spill] sm:$0xff]  ;;  %v2552_v10 = vld [vmem:[#allocation22_spill] sm:$0xff]  ;;  %v2553_v5 = vld [vmem:[#allocation17_spill] sm:$0xff]  ;;  %vm622_vm5 = vcmask (%p119_p10), 517120   ;;  %s1563_s9 = smov (%p119_p10), [#allocation8]  }
  0x3b   : > { %152 = vmatpush1.msra.mxu0 %v1714_v52  ;;  %223 = vmatpush1.msra.mxu1 %v1718_v54  ;;  %v2554_v7 = vld [vmem:[#allocation19_spill] sm:$0xff]  ;;  %v2555_v4 = vld [vmem:[#allocation16_spill] sm:$0xff]  ;;  %v2556_v6 = vld [vmem:[#allocation18_spill] sm:$0xff]  ;;  %s1340_s10 = sshll.u32 (%p119_p10), %s1563_s9, 4  ;;  %s1341_s10 = int_to_ptr.vmem [resolvable:$true] %s1340_s10 }
  0x3c   : > { %153 = vmatprep.subr.mxu0 %v1708_v49  ;;  %224 = vmatprep.subr.mxu1 %v1712_v51  ;;  %v2557_v1 = vld [vmem:[#allocation13_spill] sm:$0xff]  ;;  %v2558_v3 = vld [vmem:[#allocation15_spill] sm:$0xff]  ;;  %v2559_v0 = vld [vmem:[#allocation12_spill] sm:$0xff]  ;;  %s1517_s2 = scalar_lea.vmem (%p119_p10), %s1341_s10, 32  ;;  %p1522_p12 = scmp.lt.s32.totalorder (%p119_p10), %s1341_s10, %s1341_s10 }
  0x3d   : > { %154 = vmatpush1.msra.mxu0 %v1706_v48  ;;  %225 = vmatpush1.msra.mxu1 %v1710_v50  ;;  %v1938_v48 = vld [vmem:[#allocation6 + $0xa0] sm:$0xff] (%p119_p10)  ;;  %v1941_v49 = vld [vmem:[#allocation6 + $0xf8] sm:$0xff] (%p119_p10)  ;;  %v1944_v50 = vld [vmem:[#allocation6 + $0x88] sm:$0xff] (%p119_p10)  ;;  %p1518_p11 = scmp.ne.s32.totalorder (%p119_p10), %s1341_s10, %s1517_s2  ;;  %p1523_p13 = scmp.lt.s32.totalorder (%p119_p10), %s1517_s2, %s1517_s2 }
  0x3e   : > { %155 = vmatprep.subr.mxu0 %v1700_v45  ;;  %226 = vmatprep.subr.mxu1 %v1704_v47  ;;  %v1929_v45 = vld [vmem:[#allocation6 + $0x118] sm:$0xff] (%p119_p10)  ;;  %v1935_v47 = vld [vmem:[#allocation6 + $0x110] sm:$0xff] (%p119_p10)  ;;  %2565 = vst [vmem:[#allocation15_spill] sm:$0xff] (%p119_p10), %v1944_v50  ;;  %v1950_v52 = vld [vmem:[#allocation6 + $0x80] sm:$0xff] (%p119_p10) }
  0x3f   : > { %156 = vmatpush1.msra.mxu0 %v1698_v44  ;;  %227 = vmatpush1.msra.mxu1 %v1702_v46  ;;  %v1926_v44 = vld [vmem:[#allocation6 + $0xc0] sm:$0xff] (%p119_p10)  ;;  %v1932_v46 = vld [vmem:[#allocation6 + $0xa8] sm:$0xff] (%p119_p10)  ;;  %v1947_v51 = vld [vmem:[#allocation6 + $0xf0] sm:$0xff] (%p119_p10)  ;;  %2566 = vst [vmem:[#allocation16_spill] sm:$0xff] (%p119_p10), %v1950_v52  ;;  %p1524_p0 = por (%p119_p10), %p1523_p13, %p1522_p12 }
  0x40   : > { %157 = vmatprep.subr.mxu0 %v1692_v41  ;;  %228 = vmatprep.subr.mxu1 %v1696_v43  ;;  %v1917_v41 = vld [vmem:[#allocation6 + $0x138] sm:$0xff] (%p119_p10)  ;;  %v1923_v43 = vld [vmem:[#allocation6 + $0x130] sm:$0xff] (%p119_p10)  ;;  %v1956_v54 = vld [vmem:[#allocation6 + $0x68] sm:$0xff] (%p119_p10) }
  0x41   : > { %158 = vmatpush1.msra.mxu0 %v1690_v40  ;;  %229 = vmatpush1.msra.mxu1 %v1694_v42  ;;  %v1914_v40 = vld [vmem:[#allocation6 + $0xe0] sm:$0xff] (%p119_p10)  ;;  %v1920_v42 = vld [vmem:[#allocation6 + $0xc8] sm:$0xff] (%p119_p10)  ;;  %v1953_v53 = vld [vmem:[#allocation6 + $0xd8] sm:$0xff] (%p119_p10)  ;;  %2567 = vst [vmem:[#allocation17_spill] sm:$0xff] (%p119_p10), %v1956_v54  ;;  %p1525_p1 = pnand (%p119_p10), %p1524_p0, %p1518_p11 }
  0x42   : > { %159 = vmatprep.subr.mxu0 %v1684_v37  ;;  %230 = vmatprep.subr.mxu1 %v1688_v39  ;;  %v1905_v37 = vld [vmem:[#allocation6 + $0x158] sm:$0xff] (%p119_p10)  ;;  %v1911_v39 = vld [vmem:[#allocation6 + $0x150] sm:$0xff] (%p119_p10)  ;;  %v1962_v56 = vld [vmem:[#allocation6 + $0x60] sm:$0xff] (%p119_p10) }
  0x43   : > { %160 = vmatpush1.msra.mxu0 %v1682_v36  ;;  %231 = vmatpush1.msra.mxu1 %v1686_v38  ;;  %v1902_v36 = vld [vmem:[#allocation6 + $0x100] sm:$0xff] (%p119_p10)  ;;  %v1908_v38 = vld [vmem:[#allocation6 + $0xe8] sm:$0xff] (%p119_p10)  ;;  %v1959_v55 = vld [vmem:[#allocation6 + $0xd0] sm:$0xff] (%p119_p10)  ;;  %2568 = vst [vmem:[#allocation18_spill] sm:$0xff] (%p119_p10), %v1962_v56 }
  0x44   : > { %161 = vmatprep.subr.mxu0 %v1676_v33  ;;  %232 = vmatprep.subr.mxu1 %v1680_v35  ;;  %v1893_v33 = vld [vmem:[#allocation6 + $0x178] sm:$0xff] (%p119_p10)  ;;  %v1899_v35 = vld [vmem:[#allocation6 + $0x170] sm:$0xff] (%p119_p10)  ;;  %v1968_v58 = vld [vmem:[#allocation6 + $0x48] sm:$0xff] (%p119_p10) }
  0x45   : > { %162 = vmatpush1.msra.mxu0 %v1674_v32  ;;  %233 = vmatpush1.msra.mxu1 %v1678_v34  ;;  %v1890_v32 = vld [vmem:[#allocation6 + $0x120] sm:$0xff] (%p119_p10)  ;;  %v1896_v34 = vld [vmem:[#allocation6 + $0x108] sm:$0xff] (%p119_p10)  ;;  %v1965_v57 = vld [vmem:[#allocation6 + $0xb8] sm:$0xff] (%p119_p10)  ;;  %2570 = vst [vmem:[#allocation20_spill] sm:$0xff] (%p119_p10), %v1968_v58 }
  0x46   : > { %163 = vmatprep.subr.mxu0 %v1668_v29  ;;  %234 = vmatprep.subr.mxu1 %v1672_v31  ;;  %v1881_v29 = vld [vmem:[#allocation6 + $0x198] sm:$0xff] (%p119_p10)  ;;  %v1887_v31 = vld [vmem:[#allocation6 + $0x190] sm:$0xff] (%p119_p10)  ;;  %2569 = vst [vmem:[#allocation19_spill] sm:$0xff] (%p119_p10), %v1965_v57  ;;  %v1974_v60 = vld [vmem:[#allocation6 + $0x40] sm:$0xff] (%p119_p10) }
  0x47   : > { %164 = vmatpush1.msra.mxu0 %v1666_v28  ;;  %235 = vmatpush1.msra.mxu1 %v1670_v30  ;;  %v1879_v28 = vld [vmem:[#allocation6 + $0x1b0] sm:$0xff] (%p119_p10)  ;;  %v1884_v30 = vld [vmem:[#allocation6 + $0x128] sm:$0xff] (%p119_p10)  ;;  %2572 = vst [vmem:[#allocation22_spill] sm:$0xff] (%p119_p10), %v1974_v60  ;;  %v1977_v61 = vld [vmem:[#allocation6 + $0x98] sm:$0xff] (%p119_p10) }
  0x48   : > { %165 = vmatprep.subr.mxu0 %v1660_v25  ;;  %236 = vmatprep.subr.mxu1 %v1664_v27  ;;  %v1870_v25 = vld [vmem:[#allocation6 + $0x148] sm:$0xff] (%p119_p10)  ;;  %v1876_v27 = vld [vmem:[#allocation6 + $0x140] sm:$0xff] (%p119_p10)  ;;  %v1971_v59 = vld [vmem:[#allocation6 + $0xb0] sm:$0xff] (%p119_p10)  ;;  %2573 = vst [vmem:[#allocation23_spill] sm:$0xff] (%p119_p10), %v1977_v61 }
  0x49   : > { %166 = vmatpush1.msra.mxu0 %v1658_v24  ;;  %237 = vmatpush1.msra.mxu1 %v1662_v26  ;;  %v1867_v24 = vld [vmem:[#allocation6 + $0x1d0] sm:$0xff] (%p119_p10)  ;;  %v1873_v26 = vld [vmem:[#allocation6 + $0x1b8] sm:$0xff] (%p119_p10)  ;;  %2571 = vst [vmem:[#allocation21_spill] sm:$0xff] (%p119_p10), %v1971_v59  ;;  %v1980_v62 = vld [vmem:[#allocation6 + $0x28] sm:$0xff] (%p119_p10) }
  0x4a   : > { %167 = vmatprep.subr.mxu0 %v2539_v21  ;;  %238 = vmatprep.subr.mxu1 %v1656_v23  ;;  %v1865_v23 = vld [vmem:[#allocation6 + $0x1d8] sm:$0xff] (%p119_p10)  ;;  %2574 = vst [vmem:[#allocation24_spill] sm:$0xff] (%p119_p10), %v1980_v62  ;;  %v1983_v63 = vld [vmem:[#allocation6 + $0x90] sm:$0xff] (%p119_p10) }
  0x4b   : > { %168 = vmatpush1.msra.mxu0 %v2540_v20  ;;  %239 = vmatpush1.msra.mxu1 %v1654_v22  ;;  %v1862_v22 = vld [vmem:[#allocation6 + $0x160] sm:$0xff] (%p119_p10)  ;;  %2575 = vst [vmem:[#allocation25_spill] sm:$0xff] (%p119_p10), %v1983_v63 }
  0x4c   : > { %169 = vmatprep.subr.mxu0 %v2541_v17  ;;  %240 = vmatprep.subr.mxu1 %v2542_v19 }
  0x4d   : > { %170 = vmatpush1.msra.mxu0 %v2543_v16  ;;  %241 = vmatpush1.msra.mxu1 %v2544_v18 }
  0x4e   : > { %171 = vmatprep.subr.mxu0 %v2545_v13  ;;  %242 = vmatprep.subr.mxu1 %v2546_v15 }
  0x4f   : > { %172 = vmatpush1.msra.mxu0 %v2547_v12  ;;  %243 = vmatpush1.msra.mxu1 %v2548_v14 }
  0x50   : > { %173 = vmatprep.subr.mxu0 %v2549_v9  ;;  %244 = vmatprep.subr.mxu1 %v2550_v11  ;;  %v125_v9 = vld [vmem:[%s124_s16] sm:$0x3] }
  0x51   : > { %174 = vmatpush1.msra.mxu0 %v2551_v8  ;;  %245 = vmatpush1.msra.mxu1 %v2552_v10  ;;  %v1555_v8 = vmov 0.0   ;;  %v2560_v10 = vld [vmem:[#allocation14_spill] sm:$0xff] }
  0x52   : > { %175 = vmatprep.subr.mxu0 %v2553_v5  ;;  %246 = vmatprep.subr.mxu1 %v2554_v7  ;;  %v2446_v5 = vlaneseq  ;;  %2564 = vst [vmem:[#allocation14_spill] sm:$0xff] (%p119_p10), %v1938_v48 }
  0x53   : > { %176 = vmatpush1.msra.mxu0 %v2555_v4  ;;  %247 = vmatpush1.msra.mxu1 %v2556_v6  ;;  %v1556_v4 = vmov 1983009808  }
  0x54   : > { %177 = vmatprep.subr.mxu0 %v2557_v1  ;;  %248 = vmatprep.subr.mxu1 %v2558_v3  ;;  %v128_v7 = vshrl.u32 %v2446_v5, 7  ;;  %v296_v11 = vunpack.c.l.s4 %v1556_v4 }
  0x55   : > { %178 = vmatpush1.msra.mxu0 %v2559_v0  ;;  %211 = vmatprep.mubr.f32.mxu0 %v1555_v8 }
  0x56   : > { %249 = vmatpush1.msra.mxu1 %v2560_v10  ;;  %282 = vmatprep.mubr.f32.mxu1 %v1555_v8  ;;  %v129_v6 = vsub.s32 0, %v128_v7  ;;  %v137_v12 = vsub.s32 2, %v128_v7  ;;  %v133_v1 = vsub.s32 1, %v128_v7  ;;  %v141_v3 = vsub.s32 3, %v128_v7 }
  0x57   : > { %212 = vmatmul.mubr.f32.vlgmr.msra.gmra.mxu0 %v125_v9  ;;  %283 = vmatmul.mubr.f32.vlgmr.msra.gmra.mxu1 %v125_v9  ;;  %v297_v13 = vunpack.c.0.s8 %v296_v11 }
  0x58   : > { %v130_v0 = vrot.slane %v1741_v2, %v129_v6  ;;  %v138_v14 = vrot.slane %v1741_v2, %v137_v12  ;;  %v134_v10 = vrot.slane %v1741_v2, %v133_v1  ;;  %v142_v8 = vrot.slane %v1741_v2, %v141_v3  ;;  %v1831_v3 = vld [vmem:[#allocation6 + $0x1e0] sm:$0xff] (%p119_p10) }
  0x59   : > { %v1821_v5 = vsub.s32 %v297_v13, %v128_v7  ;;  %v1833_v7 = vld [vmem:[#allocation6 + $0x1c8] sm:$0xff] (%p119_p10)  ;;  %v1836_v13 = vld [vmem:[#allocation6 + $0x1c0] sm:$0xff] (%p119_p10) }
  0x5a   :  { %v1844_v2 = vld [vmem:[#allocation6 + $0x1a0] sm:$0xff] (%p119_p10) }
  0x5b   : > { %2561 = vst [vmem:[#allocation34_spill] sm:$0xff] %v1821_v5 }
 0x117   : > { %v213_v9 = vpop.f32.mrf.mxu0  ;;  %v284_v15 = vpop.f32.mrf.mxu1 }
 0x118   : > { %v214_v17 = vadd.f32 %v213_v9, %v130_v0  ;;  %v285_v18 = vadd.f32 %v284_v15, %v138_v14  ;;  %v1829_v0 = vld [vmem:[#allocation6 + $0x1e8] sm:$0xff] (%p119_p10)  ;;  %v2448_v14 = vmov (%p119_p10), 0.0  }
 0x119   : > { %v215_v16 = vpop.f32.mrf.mxu0  ;;  %v286_v4 = vpop.f32.mrf.mxu1  ;;  %2562 = vst [vmem:[#allocation12_spill] sm:$0xff] (%p119_p10), %v1829_v0  ;;  %445 = vmatprep.subr.mxu0 (%p119_p10), %v1829_v0  ;;  %509 = vmatprep.mubr.f32.mxu0 (%p119_p10), %v2448_v14  ;;  %v1840_v15 = vld [vmem:[#allocation6 + $0x1a8] sm:$0xff] (%p119_p10) }
 0x11a   : > { %v216_v19 = vadd.f32 %v215_v16, %v134_v10  ;;  %v287_v20 = vadd.f32 %v286_v4, %v142_v8  ;;  %446 = vmatpush1.msra.mxu0 (%p119_p10), %v1831_v3  ;;  %580 = vmatprep.mubr.f32.mxu1 (%p119_p10), %v2448_v14  ;;  %v2447_v16 = vmov (%p119_p10), 0   ;;  %v1986_v10 = vld [vmem:[#allocation6 + $0x20] sm:$0xff] (%p119_p10)  ;;  %v1989_v8 = vld [vmem:[#allocation6 + $0x78] sm:$0xff] (%p119_p10)  ;;  %v1992_v9 = vld [vmem:[#allocation6 + $0x8] sm:$0xff] (%p119_p10) }
 0x11b   :  { %447 = vmatprep.subr.mxu0 (%p119_p10), %v1833_v7  ;;  %1408 = vset.pattern.permute.xlu0 (%p119_p10), %v2447_v16  ;;  %2576 = vst [vmem:[#allocation26_spill] sm:$0xff] (%p119_p10), %v1986_v10  ;;  %2577 = vst [vmem:[#allocation27_spill] sm:$0xff] (%p119_p10), %v1989_v8  ;;  %v1995_v4 = vld [vmem:[#allocation6 + $0x70] sm:$0xff] (%p119_p10)  ;;  %v315_v16 = vld [vmem:[%s2439_s1] sm:$0x3] (%p119_p10)  ;;  %s1560_s1 = smov (%p119_p10), 64  }
 0x11c   : > { %v293_v11 = vcombine.low %v214_v17, %v216_v19  ;;  %v294_v21 = vcombine.low %v285_v18, %v287_v20  ;;  %448 = vmatpush1.msra.mxu0 (%p119_p10), %v1836_v13  ;;  %v1848_v17 = vld [vmem:[#allocation6 + $0x188] sm:$0xff] (%p119_p10)  ;;  %v1851_v18 = vld [vmem:[#allocation6 + $0x180] sm:$0xff] (%p119_p10)  ;;  %v1853_v19 = vld [vmem:[#allocation6 + $0x1f8] sm:$0xff] (%p119_p10)  ;;  %2578 = vst [vmem:[#allocation28_spill] sm:$0xff] (%p119_p10), %v1992_v9  ;;  %617 = vperm.xlu0 (%p119_p10), %1408, %v315_v16  }
 0x11d   :  { %449 = vmatprep.subr.mxu0 (%p119_p10), %v1840_v15  ;;  %2563 = vst [vmem:[#allocation13_spill] sm:$0xff] (%p119_p10), %v1853_v19  ;;  %v1856_v20 = vld [vmem:[#allocation6 + $0x168] sm:$0xff] (%p119_p10)  ;;  %516 = vmatprep.subr.mxu1 (%p119_p10), %v1853_v19  ;;  %2579 = vst [vmem:[#allocation29_spill] sm:$0xff] (%p119_p10), %v1995_v4  ;;  %v2016_v14 = vld [vmem:[#allocation6 + $0x30] sm:$0xff] (%p119_p10) }
 0x11e   : > { %v301_v6 = vrot.slane %v293_v11, %v1821_v5  ;;  %v308_v12 = vrot.slane %v294_v21, %v1821_v5  ;;  %121 = sbr.rel (!%p119_p10) target bundleno = 54 (0x36), region = 82  ;;  %450 = vmatpush1.msra.mxu0 (%p119_p10), %v1844_v2  ;;  %v1859_v21 = vld [vmem:[#allocation6 + $0x1f0] sm:$0xff] (%p119_p10)  ;;  %v1998_v11 = vld [vmem:[#allocation6] sm:$0xff] (%p119_p10)  ;;  %2584 = vst [vmem:[#allocation35_spill] sm:$0xff] (%p119_p10), %v2016_v14  ;;  %v2585_v5 = vmov (%p119_p10), 0.0  }
 0x11f   :  { %451 = vmatprep.subr.mxu0 (%p119_p10), %v1848_v17  ;;  %517 = vmatpush1.msra.mxu1 (%p119_p10), %v1859_v21  ;;  %2580 = vst [vmem:[#allocation30_spill] sm:$0xff] (%p119_p10), %v1998_v11 }
 0x120   : > { %v309_v1 = vcombine.low %v301_v6, %v308_v12  ;;  %452 = vmatpush1.msra.mxu0 (%p119_p10), %v1851_v18  ;;  %518 = vmatprep.subr.mxu1 (%p119_p10), %v1865_v23  ;;  %v2001_v6 = vld [vmem:[#allocation6 + $0x58] sm:$0xff] (%p119_p10)  ;;  %v2005_v12 = vld [vmem:[#allocation6 + $0x50] sm:$0xff] (%p119_p10) }
 0x121   :  { %453 = vmatprep.subr.mxu0 (%p119_p10), %v1856_v20  ;;  %519 = vmatpush1.msra.mxu1 (%p119_p10), %v1867_v24  ;;  %2581 = vst [vmem:[#allocation31_spill] sm:$0xff] (%p119_p10), %v2001_v6  ;;  %2582 = vst [vmem:[#allocation32_spill] sm:$0xff] (%p119_p10), %v2005_v12 }
 0x122   : > { %314 = vst [vmem:[%s313_s18] sm:$0xff] %v309_v1  ;;  %454 = vmatpush1.msra.mxu0 (%p119_p10), %v1862_v22  ;;  %520 = vmatprep.subr.mxu1 (%p119_p10), %v1873_v26  ;;  %v2009_v1 = vld [vmem:[#allocation6 + $0x38] sm:$0xff] (%p119_p10) }
 0x123   :  { %455 = vmatprep.subr.mxu0 %v1870_v25  ;;  %521 = vmatpush1.msra.mxu1 %v1879_v28  ;;  %2583 = vst [vmem:[#allocation33_spill] sm:$0xff] %v2009_v1  ;;  %v2588_v16 = vld [vmem:[#allocation26_spill] sm:$0xff] }
 0x124   :  { %456 = vmatpush1.msra.mxu0 %v1876_v27  ;;  %522 = vmatprep.subr.mxu1 %v1881_v29 }
 0x125   :  { %457 = vmatprep.subr.mxu0 %v1884_v30  ;;  %523 = vmatpush1.msra.mxu1 %v1887_v31 }
 0x126   :  { %458 = vmatpush1.msra.mxu0 %v1890_v32  ;;  %524 = vmatprep.subr.mxu1 %v1893_v33 }
 0x127   :  { %459 = vmatprep.subr.mxu0 %v1896_v34  ;;  %525 = vmatpush1.msra.mxu1 %v1899_v35 }
 0x128   :  { %460 = vmatpush1.msra.mxu0 %v1902_v36  ;;  %526 = vmatprep.subr.mxu1 %v1905_v37 }
 0x129   :  { %461 = vmatprep.subr.mxu0 %v1908_v38  ;;  %527 = vmatpush1.msra.mxu1 %v1911_v39 }
 0x12a   :  { %462 = vmatpush1.msra.mxu0 %v1914_v40  ;;  %528 = vmatprep.subr.mxu1 %v1917_v41 }
 0x12b   :  { %463 = vmatprep.subr.mxu0 %v1920_v42  ;;  %529 = vmatpush1.msra.mxu1 %v1923_v43 }
 0x12c   :  { %464 = vmatpush1.msra.mxu0 %v1926_v44  ;;  %530 = vmatprep.subr.mxu1 %v1929_v45 }
 0x12d   :  { %465 = vmatprep.subr.mxu0 %v1932_v46  ;;  %531 = vmatpush1.msra.mxu1 %v1935_v47 }
 0x12e   :  { %466 = vmatpush1.msra.mxu0 %v1938_v48  ;;  %532 = vmatprep.subr.mxu1 %v1941_v49 }
 0x12f   :  { %467 = vmatprep.subr.mxu0 %v1944_v50  ;;  %533 = vmatpush1.msra.mxu1 %v1947_v51 }
 0x130   :  { %468 = vmatpush1.msra.mxu0 %v1950_v52  ;;  %534 = vmatprep.subr.mxu1 %v1953_v53 }
 0x131   :  { %469 = vmatprep.subr.mxu0 %v1956_v54  ;;  %535 = vmatpush1.msra.mxu1 %v1959_v55 }
 0x132   :  { %470 = vmatpush1.msra.mxu0 %v1962_v56  ;;  %536 = vmatprep.subr.mxu1 %v1965_v57 }
 0x133   :  { %471 = vmatprep.subr.mxu0 %v1968_v58  ;;  %537 = vmatpush1.msra.mxu1 %v1971_v59 }
 0x134   :  { %472 = vmatpush1.msra.mxu0 %v1974_v60  ;;  %538 = vmatprep.subr.mxu1 %v1977_v61 }
 0x135   :  { %473 = vmatprep.subr.mxu0 %v1980_v62  ;;  %539 = vmatpush1.msra.mxu1 %v1983_v63 }
 0x136   :  { %474 = vmatpush1.msra.mxu0 %v1986_v10  ;;  %540 = vmatprep.subr.mxu1 %v1989_v8  ;;  %v2020_v10 = vld [vmem:[#allocation6 + $0x18] sm:$0xff] }
 0x137   :  { %475 = vmatprep.subr.mxu0 %v1992_v9  ;;  %541 = vmatpush1.msra.mxu1 %v1995_v4  ;;  %2586 = vst [vmem:[#allocation36_spill] sm:$0xff] %v2020_v10  ;;  %v2023_v9 = vld [vmem:[#allocation6 + $0x10] sm:$0xff] }
 0x138   :  { %476 = vmatpush1.msra.mxu0 %v1998_v11  ;;  %542 = vmatprep.subr.mxu1 %v2001_v6  ;;  %2587 = vst [vmem:[#allocation37_spill] sm:$0xff] %v2023_v9 }
 0x139   :  { %510 = vmatmul.mubr.f32.vlgmr.msra.gmra.mxu0 %v2585_v5  ;;  %543 = vmatpush1.msra.mxu1 %v2005_v12 }
 0x13a   :  { %544 = vmatprep.subr.mxu1 %v2009_v1  ;;  %682 = vmatprep.subr.mxu0 %v1829_v0 }
 0x13b   :  { %545 = vmatpush1.msra.mxu1 %v2016_v14  ;;  %683 = vmatpush1.msra.mxu0 %v1831_v3 }
 0x13c   :  { %546 = vmatprep.subr.mxu1 %v2020_v10  ;;  %684 = vmatprep.subr.mxu0 %v1833_v7 }
 0x13d   :  { %547 = vmatpush1.msra.mxu1 %v2023_v9  ;;  %685 = vmatpush1.msra.mxu0 %v1836_v13 }
 0x13e   :  { %581 = vmatmul.mubr.f32.vlgmr.msra.gmra.mxu1 %v2585_v5  ;;  %753 = vmatprep.subr.mxu1 %v1853_v19 }
 0x13f   :  { %754 = vmatpush1.msra.mxu1 %v1859_v21  ;;  %686 = vmatprep.subr.mxu0 %v1840_v15 }
 0x140   :  { %755 = vmatprep.subr.mxu1 %v1865_v23  ;;  %687 = vmatpush1.msra.mxu0 %v1844_v2 }
 0x141   :  { %756 = vmatpush1.msra.mxu1 %v1867_v24  ;;  %688 = vmatprep.subr.mxu0 %v1848_v17 }
 0x142   :  { %757 = vmatprep.subr.mxu1 %v1873_v26  ;;  %689 = vmatpush1.msra.mxu0 %v1851_v18 }
 0x143   :  { %758 = vmatpush1.msra.mxu1 %v1879_v28  ;;  %690 = vmatprep.subr.mxu0 %v1856_v20 }
 0x144   :  { %759 = vmatprep.subr.mxu1 %v1881_v29  ;;  %691 = vmatpush1.msra.mxu0 %v1862_v22 }
 0x145   :  { %760 = vmatpush1.msra.mxu1 %v1887_v31  ;;  %692 = vmatprep.subr.mxu0 %v1870_v25 }
 0x146   :  { %761 = vmatprep.subr.mxu1 %v1893_v33  ;;  %693 = vmatpush1.msra.mxu0 %v1876_v27 }
 0x147   :  { %762 = vmatpush1.msra.mxu1 %v1899_v35  ;;  %694 = vmatprep.subr.mxu0 %v1884_v30 }
 0x148   :  { %763 = vmatprep.subr.mxu1 %v1905_v37  ;;  %695 = vmatpush1.msra.mxu0 %v1890_v32 }
 0x149   :  { %764 = vmatpush1.msra.mxu1 %v1911_v39  ;;  %696 = vmatprep.subr.mxu0 %v1896_v34 }
 0x14a   :  { %765 = vmatprep.subr.mxu1 %v1917_v41  ;;  %697 = vmatpush1.msra.mxu0 %v1902_v36 }
 0x14b   :  { %766 = vmatpush1.msra.mxu1 %v1923_v43  ;;  %698 = vmatprep.subr.mxu0 %v1908_v38 }
 0x14c   :  { %767 = vmatprep.subr.mxu1 %v1929_v45  ;;  %699 = vmatpush1.msra.mxu0 %v1914_v40 }
 0x14d   :  { %768 = vmatpush1.msra.mxu1 %v1935_v47  ;;  %700 = vmatprep.subr.mxu0 %v1920_v42 }
 0x14e   :  { %769 = vmatprep.subr.mxu1 %v1941_v49  ;;  %701 = vmatpush1.msra.mxu0 %v1926_v44 }
 0x14f   :  { %770 = vmatpush1.msra.mxu1 %v1947_v51  ;;  %702 = vmatprep.subr.mxu0 %v1932_v46 }
 0x150   :  { %771 = vmatprep.subr.mxu1 %v1953_v53  ;;  %703 = vmatpush1.msra.mxu0 %v1938_v48 }
 0x151   :  { %772 = vmatpush1.msra.mxu1 %v1959_v55  ;;  %704 = vmatprep.subr.mxu0 %v1944_v50 }
 0x152   :  { %773 = vmatprep.subr.mxu1 %v1965_v57  ;;  %705 = vmatpush1.msra.mxu0 %v1950_v52 }
 0x153   :  { %774 = vmatpush1.msra.mxu1 %v1971_v59  ;;  %706 = vmatprep.subr.mxu0 %v1956_v54  ;;  %v2589_v54 = vld [vmem:[#allocation28_spill] sm:$0xff] }
 0x154   :  { %775 = vmatprep.subr.mxu1 %v1977_v61  ;;  %707 = vmatpush1.msra.mxu0 %v1962_v56 }
 0x155   :  { %776 = vmatpush1.msra.mxu1 %v1983_v63  ;;  %708 = vmatprep.subr.mxu0 %v1968_v58 }
 0x156   :  { %777 = vmatprep.subr.mxu1 %v1989_v8  ;;  %709 = vmatpush1.msra.mxu0 %v1974_v60 }
 0x157   :  { %778 = vmatpush1.msra.mxu1 %v1995_v4  ;;  %710 = vmatprep.subr.mxu0 %v1980_v62  ;;  %v396_v62 = vld [vmem:[#allocation2 + $0x18] sm:$0xff] }
 0x158   :  { %779 = vmatprep.subr.mxu1 %v2001_v6  ;;  %711 = vmatpush1.msra.mxu0 %v2588_v16  ;;  %v2590_v16 = vlaneseq }
 0x159   :  { %780 = vmatpush1.msra.mxu1 %v2005_v12  ;;  %712 = vmatprep.subr.mxu0 %v2589_v54  ;;  %v394_v54 = vld [vmem:[#allocation2] sm:$0xff] }
 0x15a   :  { %781 = vmatprep.subr.mxu1 %v2009_v1  ;;  %713 = vmatpush1.msra.mxu0 %v1998_v11  ;;  %v2098_v1 = vand.u32 127, %v2590_v16  ;;  %v2591_v11 = vld [vmem:[#allocation34_spill] sm:$0xff]  ;;  %v398_v58 = vcombine.high %v394_v54, %v394_v54 }
 0x15b   :  { %782 = vmatpush1.msra.mxu1 %v2016_v14  ;;  %746 = vmatprep.mubr.f32.mxu0 %v2585_v5  ;;  %v2102_v12 = vrot.slane %v394_v54, %v2591_v11 }
 0x15c   :  { %783 = vmatprep.subr.mxu1 %v2020_v10  ;;  %817 = vmatprep.mubr.f32.mxu1 %v2585_v5  ;;  %v383_v14 = vadd.s32 128, %v2098_v1  ;;  %v2105_v10 = vrot.slane %v396_v62, %v2591_v11  ;;  %vm382_vm0 = vcmp.lt.s32.totalorder %v2098_v1, 64  ;;  %v384_v5 = vadd.s32 256, %v2098_v1 }
 0x15d   :  { %784 = vmatpush1.msra.mxu1 %v2023_v9  ;;  %915 = vmatprep.subr.mxu0 %v1829_v0  ;;  %2592 = vst [vmem:[#allocation34_spill] sm:$0xff] %v2102_v12  ;;  %v2110_v0 = vcombine.high %v2102_v12, %v2102_v12  ;;  %v385_v63 = vadd.s32 384, %v2098_v1  ;;  %v2131_v50 = vrot.slane %v398_v58, %v2591_v11 }
 0x15e   :  { %986 = vmatprep.subr.mxu1 %v1853_v19  ;;  %2593 = vst [vmem:[#allocation38_spill] sm:$0xff] %v2105_v10  ;;  %v387_v9 = vand.u32 127, %v383_v14  ;;  %v2114_v16 = vcombine.high %v2105_v10, %v2105_v10  ;;  %v2596_v19 = vmov 0  ;;  %v441_v14 = vsel %vm382_vm0, %v2102_v12, %v2105_v10 }
 0x15f   :  { %2594 = vst [vmem:[#allocation39_spill] sm:$0xff] %v2110_v0  ;;  %v388_v56 = vand.u32 127, %v384_v5  ;;  %2599 = vst [vmem:[#allocation42_spill] sm:$0xff] %v2131_v50  ;;  %v2600_v12 = vmov 0  ;;  %v389_v54 = vand.u32 127, %v385_v63  ;;  %v2146_v58 = vcombine.high %v2131_v50, %v2131_v50 }
 0x160   :  { %2595 = vst [vmem:[#allocation40_spill] sm:$0xff] %v2114_v16  ;;  %vm2116_vm1 = vcmp.lt.s32.totalorder %v387_v9, 64  ;;  %v420_v9 = vcombine.high %v396_v62, %v396_v62 }
 0x161   :  { %v2597_v19 = vsel %vm2116_vm1, 4294967295, %v2596_v19  ;;  %v442_v6 = vsel %vm2116_vm1, %v2110_v0, %v2114_v16  ;;  %vm2133_vm2 = vcmp.lt.s32.totalorder %v388_v56, 64  ;;  %2604 = vst [vmem:[#allocation45_spill] sm:$0xff] %v2146_v58  ;;  %vm2152_vm3 = vcmp.lt.s32.totalorder %v389_v54, 64  ;;  %v2622_v0 = vld [vmem:[#allocation33_spill] sm:$0xff] }
 0x162   :  { %2598 = vst [vmem:[#allocation41_spill] sm:$0xff] %v2597_v19  ;;  %v2601_v12 = vsel %vm2133_vm2, 4294967295, %v2600_v12  ;;  %v2138_v16 = vrot.slane %v420_v9, %v2591_v11  ;;  %v2606_v56 = vmov 0 }
 0x163   :  { %2602 = vst [vmem:[#allocation43_spill] sm:$0xff] %v2601_v12  ;;  %v2607_v56 = vsel %vm2152_vm3, 4294967295, %v2606_v56 }
 0x164   :  { %2603 = vst [vmem:[#allocation44_spill] sm:$0xff] %v2138_v16  ;;  %v443_v5 = vsel %vm2133_vm2, %v2131_v50, %v2138_v16  ;;  %2608 = vst [vmem:[#allocation47_spill] sm:$0xff] %v2607_v56 }
 0x1f9   :  { %v511_v60 = vpop.f32.mrf.mxu0 }
 0x1fa   :  { %v587_v4 = vadd.f32 %v511_v60, %v441_v14 }
 0x1fb   :  { %v513_v8 = vpop.f32.mrf.mxu0 }
 0x1fc   :  { %v1366_v52 = vmul.f32 -1.442695, %v587_v4  ;;  %v588_v61 = vadd.f32 %v513_v8, %v442_v6 }
 0x1fe   :  { %1413 = vpow2.f32 %v1366_v52  ;;  %v1367_v10 = vmul.f32 -1.442695, %v588_v61  ;;  %v582_v60 = vpop.f32.mrf.mxu1  ;;  %v2150_v52 = vcombine.high %v2138_v16, %v2138_v16 }
 0x1ff   :  { %v589_v61 = vadd.f32 %v582_v60, %v443_v5  ;;  %v2160_v5 = vpop.permute.xlu0 %617  ;;  %v1559_v60 = vmov 3  }
 0x200   :  { %1415 = vpow2.f32 %v1367_v10  ;;  %2605 = vst [vmem:[#allocation46_spill] sm:$0xff] %v2150_v52  ;;  %v444_v62 = vsel %vm2152_vm3, %v2146_v58, %v2150_v52  ;;  %v584_v63 = vpop.f32.mrf.mxu1  ;;  %v615_v52 = vsel %vm382_vm0, 0, %v1559_v60  ;;  %v2614_v60 = vld [vmem:[#allocation27_spill] sm:$0xff] }
 0x201   :  { %v1368_v10 = vmul.f32 -1.442695, %v589_v61  ;;  %v590_v8 = vadd.f32 %v584_v63, %v444_v62  ;;  %vm619_vm4 = vcmp.lt.s32.totalorder %v615_v52, %v2160_v5  ;;  %v2612_v52 = vld [vmem:[#allocation25_spill] sm:$0xff] }
 0x203   :  { %1417 = vpow2.f32 %v1368_v10 }
 0x204   :  { %1419 = vtanh.f32 %v590_v8 }
 0x20b   :  { %v1414_v4 = vpop.eup %1413 }
 0x20c   :  { %v600_v6 = vadd.f32 1.0, %v1414_v4 }
 0x20d   :  { %v1416_v14 = vpop.eup %1415 }
 0x20e   :  { %1421 = vrcp.f32 %v600_v6  ;;  %v601_v9 = vadd.f32 1.0, %v1416_v14 }
 0x210   :  { %1423 = vrcp.f32 %v601_v9  ;;  %v1418_v54 = vpop.eup %1417 }
 0x211   :  { %v1420_v16 = vpop.eup %1419  ;;  %v602_v61 = vadd.f32 1.0, %v1418_v54  ;;  %v2613_v54 = vld [vmem:[#allocation17_spill] sm:$0xff] }
 0x213   :  { %1425 = vrcp.f32 %v602_v61  ;;  %v2615_v61 = vld [vmem:[#allocation18_spill] sm:$0xff] }
 0x21b   :  { %v1422_v50 = vpop.eup %1421 }
 0x21c   :  { %v611_v63 = vmul.f32 %v1422_v50, %v1420_v16  ;;  %v2609_v50 = vld [vmem:[#allocation15_spill] sm:$0xff] }
 0x21d   :  { %v1424_v58 = vpop.eup %1423  ;;  %v2610_v16 = vld [vmem:[#allocation23_spill] sm:$0xff] }
 0x21e   :  { %v610_v62 = vmul.f32 0.0, %v1424_v58  ;;  %v2611_v58 = vld [vmem:[#allocation16_spill] sm:$0xff] }
 0x220   :  { %v612_v10 = vadd.f32 %v611_v63, %v610_v62  ;;  %v1426_v4 = vpop.eup %1425  ;;  %v2616_v62 = vld [vmem:[#allocation29_spill] sm:$0xff]  ;;  %v2617_v63 = vld [vmem:[#allocation20_spill] sm:$0xff] }
 0x222   :  { %1427 = vtanh.f32 %v612_v10  ;;  %v2165_v8 = vsel %vm619_vm4, %v612_v10, 0.0  ;;  %v2618_v10 = vld [vmem:[#allocation31_spill] sm:$0xff] }
 0x22f   :  { %v1428_v6 = vpop.eup %1427 }
 0x230   :  { %v614_v14 = vmul.f32 %v1428_v6, %v1426_v4  ;;  %v2619_v4 = vld [vmem:[#allocation22_spill] sm:$0xff]  ;;  %v2620_v6 = vld [vmem:[#allocation32_spill] sm:$0xff] }
 0x232   :  { %1370 = vmatmul.mubr.msk.f32.vlgmr.msra.gmra.mxu0 %vm619_vm4, %v614_v14  ;;  %1371 = vmatmul.mubr.msk.f32.vlgmr.msra.gmra.mxu1 %vm619_vm4, %v614_v14  ;;  %v2167_v9 = vsel %vm619_vm4, %v614_v14, 0.0  ;;  %v2621_v14 = vld [vmem:[#allocation24_spill] sm:$0xff] }
 0x233   :  { %625 = vrot.lane.b32.xlu0 %v2167_v9, %s1560_s1  ;;  %623 = vst.msk [vmem:[%s2443_s5] sm:$0x3] %vm622_vm5, %v2167_v9  ;;  %916 = vmatpush1.msra.mxu0 %v1831_v3 }
 0x234   :  { %987 = vmatpush1.msra.mxu1 %v1859_v21  ;;  %917 = vmatprep.subr.mxu0 %v1833_v7 }
 0x235   :  { %988 = vmatprep.subr.mxu1 %v1865_v23  ;;  %918 = vmatpush1.msra.mxu0 %v1836_v13 }
 0x236   :  { %989 = vmatpush1.msra.mxu1 %v1867_v24  ;;  %919 = vmatprep.subr.mxu0 %v1840_v15 }
 0x237   :  { %990 = vmatprep.subr.mxu1 %v1873_v26  ;;  %920 = vmatpush1.msra.mxu0 %v1844_v2 }
 0x238   :  { %991 = vmatpush1.msra.mxu1 %v1879_v28  ;;  %921 = vmatprep.subr.mxu0 %v1848_v17 }
 0x239   :  { %992 = vmatprep.subr.mxu1 %v1881_v29  ;;  %922 = vmatpush1.msra.mxu0 %v1851_v18 }
 0x23a   :  { %993 = vmatpush1.msra.mxu1 %v1887_v31  ;;  %923 = vmatprep.subr.mxu0 %v1856_v20 }
 0x23b   :  { %994 = vmatprep.subr.mxu1 %v1893_v33  ;;  %924 = vmatpush1.msra.mxu0 %v1862_v22 }
 0x23c   :  { %995 = vmatpush1.msra.mxu1 %v1899_v35  ;;  %925 = vmatprep.subr.mxu0 %v1870_v25 }
 0x23d   :  { %996 = vmatprep.subr.mxu1 %v1905_v37  ;;  %926 = vmatpush1.msra.mxu0 %v1876_v27 }
 0x23e   :  { %997 = vmatpush1.msra.mxu1 %v1911_v39  ;;  %927 = vmatprep.subr.mxu0 %v1884_v30 }
 0x23f   :  { %998 = vmatprep.subr.mxu1 %v1917_v41  ;;  %928 = vmatpush1.msra.mxu0 %v1890_v32 }
 0x240   :  { %999 = vmatpush1.msra.mxu1 %v1923_v43  ;;  %929 = vmatprep.subr.mxu0 %v1896_v34 }
 0x241   :  { %1000 = vmatprep.subr.mxu1 %v1929_v45  ;;  %930 = vmatpush1.msra.mxu0 %v1902_v36 }
 0x242   :  { %1001 = vmatpush1.msra.mxu1 %v1935_v47  ;;  %931 = vmatprep.subr.mxu0 %v1908_v38 }
 0x243   :  { %1002 = vmatprep.subr.mxu1 %v1941_v49  ;;  %932 = vmatpush1.msra.mxu0 %v1914_v40 }
 0x244   :  { %1003 = vmatpush1.msra.mxu1 %v1947_v51  ;;  %933 = vmatprep.subr.mxu0 %v1920_v42 }
 0x245   :  { %1004 = vmatprep.subr.mxu1 %v1953_v53  ;;  %934 = vmatpush1.msra.mxu0 %v1926_v44 }
 0x246   :  { %1005 = vmatpush1.msra.mxu1 %v1959_v55  ;;  %935 = vmatprep.subr.mxu0 %v1932_v46 }
 0x247   :  { %1006 = vmatprep.subr.mxu1 %v1965_v57  ;;  %936 = vmatpush1.msra.mxu0 %v1938_v48 }
 0x248   :  { %1007 = vmatpush1.msra.mxu1 %v1971_v59  ;;  %937 = vmatprep.subr.mxu0 %v2609_v50 }
 0x249   :  { %1008 = vmatprep.subr.mxu1 %v2610_v16  ;;  %938 = vmatpush1.msra.mxu0 %v2611_v58 }
 0x24a   :  { %1009 = vmatpush1.msra.mxu1 %v2612_v52  ;;  %939 = vmatprep.subr.mxu0 %v2613_v54  ;;  %v2623_v52 = vld [vmem:[#allocation26_spill] sm:$0xff]  ;;  %v2624_v54 = vld [vmem:[#allocation35_spill] sm:$0xff] }
 0x24b   :  { %1010 = vmatprep.subr.mxu1 %v2614_v60  ;;  %940 = vmatpush1.msra.mxu0 %v2615_v61  ;;  %v2625_v60 = vld [vmem:[#allocation28_spill] sm:$0xff] }
 0x24c   :  { %1011 = vmatpush1.msra.mxu1 %v2616_v62  ;;  %941 = vmatprep.subr.mxu0 %v2617_v63  ;;  %v2626_v61 = vld [vmem:[#allocation36_spill] sm:$0xff]  ;;  %v2627_v62 = vld [vmem:[#allocation30_spill] sm:$0xff]  ;;  %v2628_v63 = vmov 0.0  }
 0x24d   :  { %1012 = vmatprep.subr.mxu1 %v2618_v10  ;;  %942 = vmatpush1.msra.mxu0 %v2619_v4  ;;  %v2629_v10 = vld [vmem:[#allocation37_spill] sm:$0xff] }
 0x24e   :  { %1013 = vmatpush1.msra.mxu1 %v2620_v6  ;;  %943 = vmatprep.subr.mxu0 %v2621_v14  ;;  %v2630_v6 = vld [vmem:[#allocation12_spill] sm:$0xff]  ;;  %v2631_v14 = vld [vmem:[#allocation13_spill] sm:$0xff] }
 0x24f   :  { %1014 = vmatprep.subr.mxu1 %v2622_v0  ;;  %944 = vmatpush1.msra.mxu0 %v2623_v52 }
 0x250   :  { %1015 = vmatpush1.msra.mxu1 %v2624_v54  ;;  %945 = vmatprep.subr.mxu0 %v2625_v60  ;;  %v631_v60 = vld [vmem:[#allocation2 + $0x8] sm:$0xff] }
 0x251   :  { %1016 = vmatprep.subr.mxu1 %v2626_v61  ;;  %946 = vmatpush1.msra.mxu0 %v2627_v62  ;;  %v633_v61 = vld [vmem:[#allocation2 + $0x10] sm:$0xff]  ;;  %v2247_v62 = vrot.slane %v631_v60, %v2591_v11  ;;  %v635_v4 = vcombine.high %v631_v60, %v631_v60 }
 0x252   :  { %979 = vmatprep.mubr.f32.mxu0 %v2628_v63  ;;  %1017 = vmatpush1.msra.mxu1 %v2629_v10  ;;  %v2250_v54 = vrot.slane %v633_v61, %v2591_v11  ;;  %v657_v58 = vcombine.high %v633_v61, %v633_v61 }
 0x253   :  { %1050 = vmatprep.mubr.f32.mxu1 %v2628_v63  ;;  %1148 = vmatprep.subr.mxu0 %v2630_v6  ;;  %v2254_v10 = vcombine.high %v2247_v62, %v2247_v62  ;;  %v2269_v48 = vrot.slane %v635_v4, %v2591_v11 }
 0x254   :  { %1219 = vmatprep.subr.mxu1 %v2631_v14  ;;  %2632 = vst [vmem:[#allocation12_spill] sm:$0xff] %v2250_v54  ;;  %v2258_v6 = vcombine.high %v2250_v54, %v2250_v54  ;;  %v2272_v57 = vrot.slane %v657_v58, %v2591_v11 }
 0x255   :  { %2633 = vst [vmem:[#allocation13_spill] sm:$0xff] %v2269_v48  ;;  %v2280_v60 = vcombine.high %v2269_v48, %v2269_v48 }
 0x256   :  { %v679_v63 = vsel %vm2116_vm1, %v2254_v10, %v2258_v6  ;;  %2634 = vst [vmem:[#allocation48_spill] sm:$0xff] %v2272_v57  ;;  %v680_v19 = vsel %vm2133_vm2, %v2269_v48, %v2272_v57 }
 0x2a5   :  { %v626_v0 = vpop.permute.xlu0 %625 }
 0x2a6   :  { %1369 = vst.msk [vmem:[%s2444_s6 + $0x6] sm:$0x3] %vm622_vm5, %v626_v0  ;;  %v678_v0 = vsel %vm382_vm0, %v2247_v62, %v2250_v54 }
 0x2f2   :  { %v748_v14 = vpop.f32.mrf.mxu0 }
 0x2f3   :  { %v824_v52 = vadd.f32 %v748_v14, %v678_v0  ;;  %v819_v0 = vpop.f32.mrf.mxu1 }
 0x2f4   :  { %v750_v16 = vpop.f32.mrf.mxu0 }
 0x2f5   :  { %v1372_v50 = vmul.f32 -1.442695, %v824_v52  ;;  %v825_v59 = vadd.f32 %v750_v16, %v679_v63  ;;  %v826_v16 = vadd.f32 %v819_v0, %v680_v19  ;;  %v821_v11 = vpop.f32.mrf.mxu1 }
 0x2f7   :  { %1429 = vpow2.f32 %v1372_v50  ;;  %v1373_v54 = vmul.f32 -1.442695, %v825_v59  ;;  %v2284_v50 = vcombine.high %v2272_v57, %v2272_v57  ;;  %v1374_v58 = vmul.f32 -1.442695, %v826_v16 }
 0x2f9   :  { %1431 = vpow2.f32 %v1373_v54  ;;  %2635 = vst [vmem:[#allocation49_spill] sm:$0xff] %v2284_v50  ;;  %v681_v59 = vsel %vm2152_vm3, %v2280_v60, %v2284_v50  ;;  %v1561_v50 = vmov 2  }
 0x2fa   :  { %v827_v54 = vadd.f32 %v821_v11, %v681_v59  ;;  %1433 = vpow2.f32 %v1374_v58  ;;  %v852_v16 = vsel %vm382_vm0, 1, %v1561_v50 }
 0x2fb   :  { %vm853_vm6 = vcmp.lt.s32.totalorder %v852_v16, %v2160_v5 }
 0x304   :  { %v1430_v52 = vpop.eup %1429 }
 0x305   :  { %v837_v61 = vadd.f32 1.0, %v1430_v52 }
 0x306   :  { %v1432_v63 = vpop.eup %1431 }
 0x307   :  { %1435 = vrcp.f32 %v837_v61  ;;  %v838_v4 = vadd.f32 1.0, %v1432_v63  ;;  %v1434_v14 = vpop.eup %1433 }
 0x308   :  { %1437 = vtanh.f32 %v827_v54  ;;  %v839_v0 = vadd.f32 1.0, %v1434_v14 }
 0x309   :  { %1439 = vrcp.f32 %v838_v4 }
 0x30a   :  { %1441 = vrcp.f32 %v839_v0 }
 0x314   :  { %v1436_v12 = vpop.eup %1435 }
 0x315   :  { %v1438_v57 = vpop.eup %1437 }
 0x316   :  { %v1440_v19 = vpop.eup %1439  ;;  %v848_v56 = vmul.f32 %v1438_v57, %v1436_v12  ;;  %v2665_v12 = vld [vmem:[#allocation49_spill] sm:$0xff] }
 0x317   :  { %v847_v48 = vmul.f32 %v1440_v19, %v2165_v8  ;;  %v1442_v58 = vpop.eup %1441 }
 0x319   :  { %v849_v59 = vadd.f32 %v848_v56, %v847_v48  ;;  %v2662_v48 = vld [vmem:[#allocation13_spill] sm:$0xff]  ;;  %v2675_v56 = vmov 0  }
 0x31b   :  { %1443 = vtanh.f32 %v849_v59  ;;  %v2295_v11 = vsel %vm853_vm6, %v849_v59, %v2165_v8  ;;  %v914_v8 = vsel %vm2152_vm3, %v2665_v12, %v2280_v60  ;;  %v1562_v60 = vmov 1  }
 0x328   :  { %v1444_v52 = vpop.eup %1443 }
 0x329   :  { %v851_v54 = vmul.f32 %v1444_v52, %v1442_v58 }
 0x32b   :  { %v856_v61 = vsel %vm853_vm6, %v851_v54, 0.0  ;;  %v2298_v63 = vsel %vm853_vm6, %v851_v54, %v2167_v9 }
 0x32c   :  { %860 = vrot.lane.b32.xlu1 %v856_v61, %s1560_s1  ;;  %1375 = vst.msk [vmem:[%s2443_s5 + $0x2] sm:$0x3] %vm622_vm5, %v856_v61  ;;  %980 = vmatmul.mubr.f32.vlgmr.msra.gmra.mxu0 %v2298_v63  ;;  %v1085_v61 = vsel %vm382_vm0, 2, %v1562_v60 }
 0x32d   :  { %1051 = vmatmul.mubr.f32.vlgmr.msra.gmra.mxu1 %v2298_v63  ;;  %1149 = vmatpush1.msra.mxu0 %v1831_v3  ;;  %v2636_v3 = vld [vmem:[#allocation19_spill] sm:$0xff]  ;;  %vm1086_vm7 = vcmp.lt.s32.totalorder %v1085_v61, %v2160_v5 }
 0x32e   :  { %1220 = vmatpush1.msra.mxu1 %v1859_v21  ;;  %1150 = vmatprep.subr.mxu0 %v1833_v7  ;;  %v2637_v7 = vld [vmem:[#allocation14_spill] sm:$0xff]  ;;  %v2644_v21 = vld [vmem:[#allocation27_spill] sm:$0xff] }
 0x32f   :  { %1221 = vmatprep.subr.mxu1 %v1865_v23  ;;  %1151 = vmatpush1.msra.mxu0 %v1836_v13  ;;  %v2638_v13 = vld [vmem:[#allocation21_spill] sm:$0xff] }
 0x330   :  { %1222 = vmatpush1.msra.mxu1 %v1867_v24  ;;  %1152 = vmatprep.subr.mxu0 %v1840_v15  ;;  %v2639_v15 = vld [vmem:[#allocation15_spill] sm:$0xff]  ;;  %v2646_v23 = vld [vmem:[#allocation29_spill] sm:$0xff]  ;;  %v2647_v24 = vld [vmem:[#allocation20_spill] sm:$0xff] }
 0x331   :  { %1223 = vmatprep.subr.mxu1 %v1873_v26  ;;  %1153 = vmatpush1.msra.mxu0 %v1844_v2  ;;  %v2640_v2 = vld [vmem:[#allocation23_spill] sm:$0xff]  ;;  %v2649_v26 = vld [vmem:[#allocation22_spill] sm:$0xff] }
 0x332   :  { %1224 = vmatpush1.msra.mxu1 %v1879_v28  ;;  %1154 = vmatprep.subr.mxu0 %v1848_v17  ;;  %v2641_v17 = vld [vmem:[#allocation16_spill] sm:$0xff] }
 0x333   :  { %1225 = vmatprep.subr.mxu1 %v1881_v29  ;;  %1155 = vmatpush1.msra.mxu0 %v1851_v18  ;;  %v2642_v18 = vld [vmem:[#allocation25_spill] sm:$0xff]  ;;  %v2651_v28 = vld [vmem:[#allocation24_spill] sm:$0xff] }
 0x334   :  { %1226 = vmatpush1.msra.mxu1 %v1887_v31  ;;  %1156 = vmatprep.subr.mxu0 %v1856_v20  ;;  %v2643_v20 = vld [vmem:[#allocation17_spill] sm:$0xff]  ;;  %v2654_v31 = vld [vmem:[#allocation35_spill] sm:$0xff] }
 0x335   :  { %1227 = vmatprep.subr.mxu1 %v1893_v33  ;;  %1157 = vmatpush1.msra.mxu0 %v1862_v22  ;;  %v2645_v22 = vld [vmem:[#allocation18_spill] sm:$0xff]  ;;  %v2652_v29 = vld [vmem:[#allocation33_spill] sm:$0xff]  ;;  %v2656_v33 = vld [vmem:[#allocation36_spill] sm:$0xff] }
 0x336   :  { %1228 = vmatpush1.msra.mxu1 %v1899_v35  ;;  %1158 = vmatprep.subr.mxu0 %v1870_v25  ;;  %v2648_v25 = vld [vmem:[#allocation31_spill] sm:$0xff]  ;;  %v2658_v35 = vmov 0.0  }
 0x337   :  { %1229 = vmatprep.subr.mxu1 %v1905_v37  ;;  %1159 = vmatpush1.msra.mxu0 %v1876_v27  ;;  %v2650_v27 = vld [vmem:[#allocation32_spill] sm:$0xff] }
 0x338   :  { %1230 = vmatpush1.msra.mxu1 %v1911_v39  ;;  %1160 = vmatprep.subr.mxu0 %v1884_v30  ;;  %v2653_v30 = vld [vmem:[#allocation26_spill] sm:$0xff] }
 0x339   :  { %1231 = vmatprep.subr.mxu1 %v1917_v41  ;;  %1161 = vmatpush1.msra.mxu0 %v1890_v32  ;;  %v2655_v32 = vld [vmem:[#allocation28_spill] sm:$0xff] }
 0x33a   :  { %1232 = vmatpush1.msra.mxu1 %v1923_v43  ;;  %1162 = vmatprep.subr.mxu0 %v1896_v34  ;;  %v2657_v34 = vld [vmem:[#allocation30_spill] sm:$0xff] }
 0x33b   :  { %1233 = vmatprep.subr.mxu1 %v1929_v45  ;;  %1163 = vmatpush1.msra.mxu0 %v1902_v36  ;;  %v2659_v36 = vld [vmem:[#allocation37_spill] sm:$0xff] }
 0x33c   :  { %1234 = vmatpush1.msra.mxu1 %v1935_v47  ;;  %1164 = vmatprep.subr.mxu0 %v1908_v38  ;;  %v2660_v38 = vld [vmem:[#allocation12_spill] sm:$0xff] }
 0x33d   :  { %1235 = vmatprep.subr.mxu1 %v1941_v49  ;;  %1165 = vmatpush1.msra.mxu0 %v1914_v40  ;;  %v911_v39 = vsel %vm382_vm0, %v2660_v38, %v2247_v62  ;;  %v2663_v49 = vld [vmem:[#allocation48_spill] sm:$0xff] }
 0x33e   :  { %1236 = vmatpush1.msra.mxu1 %v1947_v51  ;;  %1166 = vmatprep.subr.mxu0 %v1920_v42  ;;  %v912_v42 = vsel %vm2116_vm1, %v2258_v6, %v2254_v10 }
 0x33f   :  { %1237 = vmatprep.subr.mxu1 %v1953_v53  ;;  %1167 = vmatpush1.msra.mxu0 %v1926_v44  ;;  %v913_v53 = vsel %vm2133_vm2, %v2663_v49, %v2662_v48 }
 0x340   :  { %1238 = vmatpush1.msra.mxu1 %v1959_v55  ;;  %1168 = vmatprep.subr.mxu0 %v1932_v46 }
 0x341   :  { %1239 = vmatprep.subr.mxu1 %v2636_v3  ;;  %1169 = vmatpush1.msra.mxu0 %v2637_v7 }
 0x342   :  { %1240 = vmatpush1.msra.mxu1 %v2638_v13  ;;  %1170 = vmatprep.subr.mxu0 %v2639_v15 }
 0x343   :  { %1241 = vmatprep.subr.mxu1 %v2640_v2  ;;  %1171 = vmatpush1.msra.mxu0 %v2641_v17 }
 0x344   :  { %1242 = vmatpush1.msra.mxu1 %v2642_v18  ;;  %1172 = vmatprep.subr.mxu0 %v2643_v20 }
 0x345   :  { %1243 = vmatprep.subr.mxu1 %v2644_v21  ;;  %1173 = vmatpush1.msra.mxu0 %v2645_v22  ;;  %v2668_v21 = vld [vmem:[#allocation38_spill] sm:$0xff] }
 0x346   :  { %1244 = vmatpush1.msra.mxu1 %v2646_v23  ;;  %1174 = vmatprep.subr.mxu0 %v2647_v24  ;;  %v2669_v23 = vld [vmem:[#allocation39_spill] sm:$0xff]  ;;  %v2670_v24 = vld [vmem:[#allocation40_spill] sm:$0xff] }
 0x347   :  { %1245 = vmatprep.subr.mxu1 %v2648_v25  ;;  %1175 = vmatpush1.msra.mxu0 %v2649_v26  ;;  %v1145_v25 = vsel %vm2116_vm1, %v2670_v24, %v2669_v23 }
 0x348   :  { %1246 = vmatpush1.msra.mxu1 %v2650_v27  ;;  %1176 = vmatprep.subr.mxu0 %v2651_v28 }
 0x349   :  { %1247 = vmatprep.subr.mxu1 %v2652_v29  ;;  %1177 = vmatpush1.msra.mxu0 %v2653_v30 }
 0x34a   :  { %1248 = vmatpush1.msra.mxu1 %v2654_v31  ;;  %1178 = vmatprep.subr.mxu0 %v2655_v32  ;;  %v2671_v31 = vld [vmem:[#allocation42_spill] sm:$0xff]  ;;  %v2672_v32 = vld [vmem:[#allocation44_spill] sm:$0xff] }
 0x34b   :  { %1249 = vmatprep.subr.mxu1 %v2656_v33  ;;  %1179 = vmatpush1.msra.mxu0 %v2657_v34  ;;  %v1146_v33 = vsel %vm2133_vm2, %v2672_v32, %v2671_v31 }
 0x34c   :  { %1212 = vmatprep.mubr.f32.mxu0 %v2658_v35  ;;  %1250 = vmatpush1.msra.mxu1 %v2659_v36  ;;  %v2673_v36 = vld [vmem:[#allocation45_spill] sm:$0xff] }
 0x34d   :  { %1283 = vmatprep.mubr.f32.mxu1 %v2658_v35 }
 0x39e   :  { %v861_v37 = vpop.permute.xlu1 %860 }
 0x39f   :  { %1376 = vst.msk [vmem:[%s2444_s6 + $0x4] sm:$0x3] %vm622_vm5, %v861_v37  ;;  %v2674_v37 = vld [vmem:[#allocation46_spill] sm:$0xff] }
 0x3a0   :  { %v1147_v38 = vsel %vm2152_vm3, %v2674_v37, %v2673_v36 }
 0x3ec   :  { %v981_v40 = vpop.f32.mrf.mxu0 }
 0x3ed   :  { %v1057_v43 = vadd.f32 %v981_v40, %v911_v39  ;;  %v1052_v55 = vpop.f32.mrf.mxu1 }
 0x3ee   :  { %v983_v44 = vpop.f32.mrf.mxu0  ;;  %v1059_v57 = vadd.f32 %v1052_v55, %v913_v53 }
 0x3ef   :  { %v1377_v45 = vmul.f32 -1.442695, %v1057_v43  ;;  %v1058_v46 = vadd.f32 %v983_v44, %v912_v42  ;;  %v1054_v9 = vpop.f32.mrf.mxu1 }
 0x3f0   :  { %v1379_v62 = vmul.f32 -1.442695, %v1059_v57  ;;  %v1060_v6 = vadd.f32 %v1054_v9, %v914_v8  ;;  %v1318_v8 = vsel %vm382_vm0, 3, %v2675_v56 }
 0x3f1   :  { %1445 = vpow2.f32 %v1377_v45  ;;  %v1378_v47 = vmul.f32 -1.442695, %v1058_v46  ;;  %vm1319_vm8 = vcmp.lt.s32.totalorder %v1318_v8, %v2160_v5 }
 0x3f3   :  { %1447 = vpow2.f32 %v1378_v47 }
 0x3f4   :  { %1449 = vpow2.f32 %v1379_v62 }
 0x3fe   :  { %v1446_v10 = vpop.eup %1445 }
 0x3ff   :  { %v1070_v50 = vadd.f32 1.0, %v1446_v10 }
 0x400   :  { %v1448_v4 = vpop.eup %1447 }
 0x401   :  { %1451 = vrcp.f32 %v1070_v50  ;;  %v1071_v14 = vadd.f32 1.0, %v1448_v4  ;;  %v1450_v19 = vpop.eup %1449 }
 0x402   :  { %1453 = vtanh.f32 %v1060_v6  ;;  %v1072_v58 = vadd.f32 1.0, %v1450_v19 }
 0x403   :  { %1455 = vrcp.f32 %v1071_v14 }
 0x404   :  { %1457 = vrcp.f32 %v1072_v58 }
 0x40e   :  { %v1452_v0 = vpop.eup %1451 }
 0x40f   :  { %v1454_v16 = vpop.eup %1453 }
 0x410   :  { %v1456_v59 = vpop.eup %1455  ;;  %v1081_v54 = vmul.f32 %v1454_v16, %v1452_v0 }
 0x411   :  { %v1080_v52 = vmul.f32 %v1456_v59, %v2295_v11  ;;  %v1458_v13 = vpop.eup %1457 }
 0x413   :  { %v1082_v3 = vadd.f32 %v1081_v54, %v1080_v52 }
 0x415   :  { %1459 = vtanh.f32 %v1082_v3  ;;  %v1088_v7 = vsel %vm1086_vm7, %v1082_v3, %v2295_v11  ;;  %v2667_v11 = vld [vmem:[#allocation34_spill] sm:$0xff] }
 0x422   :  { %v1460_v15 = vpop.eup %1459 }
 0x423   :  { %v1084_v2 = vmul.f32 %v1460_v15, %v1458_v13 }
 0x425   :  { %v1089_v17 = vsel %vm1086_vm7, %v1084_v2, 0.0  ;;  %v1087_v18 = vsel %vm1086_vm7, %v1084_v2, %v2298_v63  ;;  %v1144_v63 = vsel %vm382_vm0, %v2668_v21, %v2667_v11 }
 0x426   :  { %1093 = vrot.lane.b32.xlu1 %v1089_v17, %s1560_s1  ;;  %1380 = vst.msk [vmem:[%s2443_s5 + $0x4] sm:$0x3] %vm622_vm5, %v1089_v17  ;;  %1213 = vmatmul.mubr.f32.vlgmr.msra.gmra.mxu0 %v1087_v18 }
 0x427   :  { %1284 = vmatmul.mubr.f32.vlgmr.msra.gmra.mxu1 %v1087_v18 }
 0x498   :  { %v1094_v20 = vpop.permute.xlu1 %1093 }
 0x499   :  { %1381 = vst.msk [vmem:[%s2444_s6 + $0x2] sm:$0x3] %vm622_vm5, %v1094_v20 }
 0x4e6   :  { %v1214_v22 = vpop.f32.mrf.mxu0 }
 0x4e7   :  { %v1290_v26 = vadd.f32 %v1214_v22, %v1144_v63  ;;  %v1285_v34 = vpop.f32.mrf.mxu1 }
 0x4e8   :  { %v1216_v27 = vpop.f32.mrf.mxu0  ;;  %v1292_v35 = vadd.f32 %v1285_v34, %v1146_v33 }
 0x4e9   :  { %v1382_v28 = vmul.f32 -1.442695, %v1290_v26  ;;  %v1291_v29 = vadd.f32 %v1216_v27, %v1145_v25  ;;  %v1287_v39 = vpop.f32.mrf.mxu1 }
 0x4ea   :  { %v1384_v40 = vmul.f32 -1.442695, %v1292_v35  ;;  %v1293_v42 = vadd.f32 %v1287_v39, %v1147_v38 }
 0x4eb   :  { %1461 = vpow2.f32 %v1382_v28  ;;  %v1383_v30 = vmul.f32 -1.442695, %v1291_v29 }
 0x4ed   :  { %1463 = vpow2.f32 %v1383_v30 }
 0x4ee   :  { %1465 = vpow2.f32 %v1384_v40 }
 0x4f8   :  { %v1462_v41 = vpop.eup %1461 }
 0x4f9   :  { %v1303_v43 = vadd.f32 1.0, %v1462_v41 }
 0x4fa   :  { %v1464_v44 = vpop.eup %1463 }
 0x4fb   :  { %1467 = vrcp.f32 %v1303_v43  ;;  %v1304_v45 = vadd.f32 1.0, %v1464_v44  ;;  %v1466_v46 = vpop.eup %1465 }
 0x4fc   :  { %1469 = vtanh.f32 %v1293_v42  ;;  %v1305_v51 = vadd.f32 1.0, %v1466_v46 }
 0x4fd   :  { %1471 = vrcp.f32 %v1304_v45 }
 0x4fe   :  { %1473 = vrcp.f32 %v1305_v51 }
 0x508   :  { %v1468_v47 = vpop.eup %1467 }
 0x509   :  { %v1470_v48 = vpop.eup %1469 }
 0x50a   :  { %v1472_v49 = vpop.eup %1471  ;;  %v1314_v55 = vmul.f32 %v1470_v48, %v1468_v47 }
 0x50b   :  { %v1313_v53 = vmul.f32 %v1472_v49, %v1088_v7  ;;  %v1474_v12 = vpop.eup %1473 }
 0x50d   :  { %v1315_v57 = vadd.f32 %v1314_v55, %v1313_v53 }
 0x50f   :  { %1475 = vtanh.f32 %v1315_v57 }
 0x51c   :  { %v1476_v9 = vpop.eup %1475 }
 0x51d   :  { %v1317_v62 = vmul.f32 %v1476_v9, %v1474_v12 }
 0x51f   :  { %v1321_v10 = vsel %vm1319_vm8, %v1317_v62, 0.0  ;;  %v1320_v6 = vsel %vm1319_vm8, %v1317_v62, %v1087_v18 }
 0x520   :  { %1325 = vrot.lane.b32.xlu0 %v1321_v10, %s1560_s1  ;;  %1385 = vst.msk [vmem:[%s2443_s5 + $0x6] sm:$0x3] %vm622_vm5, %v1321_v10  ;;  %1329 = vst [vmem:[#allocation8] sm:$0x3] %v1320_v6 }
 0x521   :  { %1528 = shalt.err (!%p1525_p1)
}
 0x522   :  { %1343 = dma.vmem_to_hbm [thread:$0]  %s1341_s10, 32, %s2445_s7, [#allocation5]  }
 0x592   :  { %v1326_v1 = vpop.permute.xlu0 %1325 }
 0x593   :  { %1328 = vst.msk [vmem:[%s2444_s6] sm:$0x3] %vm622_vm5, %v1326_v1 }
 0x594   :  { %1545 = dma.done.wait [#allocation5], 32  }
 0x595   :  { %1546 = vsyncadd [#allocation5], 4294967264 }
 0x596   :  { %1351 = vsyncpa [#allocation4], 1 }
 0x597   :  { %1352 = vsyncpa [#allocation7], 1 }
 0x598   :  { %1353 = vsyncpa [#allocation5], 1 }

// kernel: tl_deep_forward.6
= control target key start
LH: loop header
LB: loop body
LE: loop exit
PB: predicated region body
PF: predicated region fallthrough
CT: control target
= control target key end

     0   :  { %12 = vsyncpa [#allocation4], 0  ;;  %s2533_s0 = inlined_call_operand.vmem [shape: f32[4,2,64], index: 0, kind: input, shape index: {}]   ;;  %s2534_s1 = inlined_call_operand.vmem [shape: f32[4,2,64], index: 1, kind: input, shape index: {}]   ;;  %s2535_s2 = inlined_call_operand.vmem [shape: s32[2,1], index: 2, kind: input, shape index: {}]   ;;  %s2536_s3 = inlined_call_operand.vmem [shape: f32[64,512], index: 3, kind: input, shape index: {}]   ;;  %s2537_s4 = inlined_call_operand.hbm [shape: f32[64,512], index: 4, kind: input, shape index: {}]   ;;  %s2538_s5 = inlined_call_operand.hbm [shape: f32[128,512], index: 5, kind: input, shape index: {}]   ;;  %s2539_s6 = inlined_call_operand.hbm [shape: f32[1,512], index: 6, kind: input, shape index: {}]   ;;  %s2540_s7 = inlined_call_operand.vmem [shape: f32[2,128], index: 7, kind: output, shape index: {}]  }
   0x1   :  { %13 = vsyncpa [#allocation6], 0  ;;  %s1572_s24 = smov [#allocation5]   ;;  %s1573_s26 = smov [#allocation3]  }
   0x2   :  { %s39_s25 = sshll.u32 %s1572_s24, 4  ;;  %s27_s27 = sshll.u32 %s1573_s26, 4  ;;  %s40_s25 = int_to_ptr.vmem [resolvable:$true] %s39_s25  ;;  %s28_s27 = int_to_ptr.vmem [resolvable:$true] %s27_s27 }
   0x3   :  { %s1508_s28 = scalar_lea.vmem %s40_s25, 8192  ;;  %p1513_p1 = scmp.lt.s32.totalorder %s40_s25, %s40_s25 }
   0x4   :  { %p1509_p0 = scmp.ne.s32.totalorder %s40_s25, %s1508_s28  ;;  %p1514_p2 = scmp.lt.s32.totalorder %s1508_s28, %s1508_s28 }
   0x6   :  { %p1515_p3 = por %p1514_p2, %p1513_p1 }
   0x8   :  { %p1516_p4 = pnand %p1515_p3, %p1509_p0 }
   0xa   :  { %1519 = shalt.err (!%p1516_p4)
}
   0xb   :  { %s1574_s29 = smov 512   ;;  %s1575_s30 = smov 32  }
   0xc   :  { %45 = dma.hbm_to_vmem [thread:$0]  %s2538_s5, 8192, %s40_s25, [#allocation6], %s1574_s29, %s1574_s29, %s1575_s30  }
   0xd   :  { %s1528_s10 = scalar_lea.vmem %s28_s27, 4096  ;;  %p1533_p6 = scmp.lt.s32.totalorder %s28_s27, %s28_s27 }
   0xe   :  { %p1529_p5 = scmp.ne.s32.totalorder %s28_s27, %s1528_s10  ;;  %p1534_p7 = scmp.lt.s32.totalorder %s1528_s10, %s1528_s10 }
  0x10   :  { %p1535_p8 = por %p1534_p7, %p1533_p6 }
  0x12   :  { %p1536_p9 = pnand %p1535_p8, %p1529_p5 }
  0x14   :  { %1539 = shalt.err (!%p1536_p9)
}
  0x15   :  { %33 = dma.hbm_to_vmem [thread:$0]  %s2537_s4, 4096, %s28_s27, [#allocation4], %s1574_s29, %s1574_s29, %s1575_s30  }
  0x16   :  { %s1576_s13 = smov [#allocation7]  }
  0x17   :  { %s52_s14 = sshll.u32 %s1576_s13, 4  ;;  %s53_s14 = int_to_ptr.vmem [resolvable:$true] %s52_s14 }
  0x18   :  { %s1548_s15 = scalar_lea.vmem %s53_s14, 64  ;;  %p1553_p11 = scmp.lt.s32.totalorder %s53_s14, %s53_s14 }
  0x19   :  { %p1549_p10 = scmp.ne.s32.totalorder %s53_s14, %s1548_s15  ;;  %p1554_p12 = scmp.lt.s32.totalorder %s1548_s15, %s1548_s15 }
  0x1b   :  { %p1555_p13 = por %p1554_p12, %p1553_p11 }
  0x1d   :  { %p1556_p0 = pnand %p1555_p13, %p1549_p10 }
  0x1f   :  { %1559 = shalt.err (!%p1556_p0)
}
  0x20   :  { %55 = dma.hbm_to_vmem [thread:$0]  %s2539_s6, 64, %s53_s14, [#allocation6]  }
  0x21   :  { %1564 = dma.done.wait [#allocation4], 4096  }
  0x22   :  { %1565 = vsyncadd [#allocation4], 4294963200 }
  0x23   :  { %1566 = dma.done.wait [#allocation6], 8256  }
  0x24   :  { %1567 = vsyncadd [#allocation6], 4294959040  ;;  %v1636_v0 = vld [vmem:[%s2536_s3] sm:$0xff]  ;;  %v1641_v1 = vld [vmem:[%s2536_s3 + $0x8] sm:$0xff] }
  0x25   :  { %2614 = vst [vmem:[#allocation10_spill] sm:$0xff] %v1636_v0  ;;  %2615 = vst [vmem:[#allocation11_spill] sm:$0xff] %v1641_v1  ;;  %v1646_v2 = vld [vmem:[%s2536_s3 + $0x10] sm:$0xff]  ;;  %v1651_v3 = vld [vmem:[%s2536_s3 + $0x18] sm:$0xff] }
  0x26   :  { %2616 = vst [vmem:[#allocation12_spill] sm:$0xff] %v1646_v2  ;;  %2617 = vst [vmem:[#allocation13_spill] sm:$0xff] %v1651_v3  ;;  %v1656_v4 = vld [vmem:[%s2536_s3 + $0x20] sm:$0xff]  ;;  %v1661_v5 = vld [vmem:[%s2536_s3 + $0x28] sm:$0xff] }
  0x27   :  { %2618 = vst [vmem:[#allocation14_spill] sm:$0xff] %v1656_v4  ;;  %2619 = vst [vmem:[#allocation15_spill] sm:$0xff] %v1661_v5  ;;  %v1666_v6 = vld [vmem:[%s2536_s3 + $0x30] sm:$0xff]  ;;  %v1671_v7 = vld [vmem:[%s2536_s3 + $0x38] sm:$0xff] }
  0x28   :  { %2620 = vst [vmem:[#allocation16_spill] sm:$0xff] %v1666_v6  ;;  %2621 = vst [vmem:[#allocation17_spill] sm:$0xff] %v1671_v7  ;;  %v1676_v8 = vld [vmem:[%s2536_s3 + $0x40] sm:$0xff]  ;;  %v1681_v9 = vld [vmem:[%s2536_s3 + $0x48] sm:$0xff] }
  0x29   :  { %2622 = vst [vmem:[#allocation18_spill] sm:$0xff] %v1676_v8  ;;  %2623 = vst [vmem:[#allocation19_spill] sm:$0xff] %v1681_v9  ;;  %v1686_v10 = vld [vmem:[%s2536_s3 + $0x50] sm:$0xff]  ;;  %v1691_v11 = vld [vmem:[%s2536_s3 + $0x58] sm:$0xff] }
  0x2a   :  { %2624 = vst [vmem:[#allocation20_spill] sm:$0xff] %v1686_v10  ;;  %2625 = vst [vmem:[#allocation21_spill] sm:$0xff] %v1691_v11  ;;  %v1696_v12 = vld [vmem:[%s2536_s3 + $0x60] sm:$0xff]  ;;  %v1701_v13 = vld [vmem:[%s2536_s3 + $0x68] sm:$0xff] }
  0x2b   :  { %2626 = vst [vmem:[#allocation22_spill] sm:$0xff] %v1696_v12  ;;  %2627 = vst [vmem:[#allocation23_spill] sm:$0xff] %v1701_v13  ;;  %v1706_v14 = vld [vmem:[%s2536_s3 + $0x70] sm:$0xff]  ;;  %v1711_v15 = vld [vmem:[%s2536_s3 + $0x78] sm:$0xff] }
  0x2c   :  { %2628 = vst [vmem:[#allocation24_spill] sm:$0xff] %v1706_v14  ;;  %2629 = vst [vmem:[#allocation25_spill] sm:$0xff] %v1711_v15  ;;  %v1716_v16 = vld [vmem:[%s2536_s3 + $0x80] sm:$0xff]  ;;  %v1721_v17 = vld [vmem:[%s2536_s3 + $0x88] sm:$0xff] }
  0x2d   :  { %2630 = vst [vmem:[#allocation26_spill] sm:$0xff] %v1716_v16  ;;  %2631 = vst [vmem:[#allocation27_spill] sm:$0xff] %v1721_v17  ;;  %v1726_v18 = vld [vmem:[%s2536_s3 + $0x90] sm:$0xff]  ;;  %v1731_v19 = vld [vmem:[%s2536_s3 + $0x98] sm:$0xff] }
  0x2e   :  { %2632 = vst [vmem:[#allocation28_spill] sm:$0xff] %v1726_v18  ;;  %2633 = vst [vmem:[#allocation29_spill] sm:$0xff] %v1731_v19  ;;  %v1736_v20 = vld [vmem:[%s2536_s3 + $0xa0] sm:$0xff]  ;;  %v1741_v21 = vld [vmem:[%s2536_s3 + $0xa8] sm:$0xff] }
  0x2f   :  { %2634 = vst [vmem:[#allocation30_spill] sm:$0xff] %v1736_v20  ;;  %2635 = vst [vmem:[#allocation31_spill] sm:$0xff] %v1741_v21  ;;  %v1746_v22 = vld [vmem:[%s2536_s3 + $0xb0] sm:$0xff]  ;;  %v1751_v23 = vld [vmem:[%s2536_s3 + $0xb8] sm:$0xff] }
  0x30   :  { %2636 = vst [vmem:[#allocation32_spill] sm:$0xff] %v1746_v22  ;;  %2637 = vst [vmem:[#allocation33_spill] sm:$0xff] %v1751_v23  ;;  %v1756_v24 = vld [vmem:[%s2536_s3 + $0xc0] sm:$0xff]  ;;  %v1761_v25 = vld [vmem:[%s2536_s3 + $0xc8] sm:$0xff] }
  0x31   :  { %2638 = vst [vmem:[#allocation34_spill] sm:$0xff] %v1756_v24  ;;  %2639 = vst [vmem:[#allocation35_spill] sm:$0xff] %v1761_v25  ;;  %v1766_v26 = vld [vmem:[%s2536_s3 + $0xd0] sm:$0xff]  ;;  %v1771_v27 = vld [vmem:[%s2536_s3 + $0xd8] sm:$0xff] }
  0x32   :  { %2640 = vst [vmem:[#allocation36_spill] sm:$0xff] %v1766_v26  ;;  %v1776_v28 = vld [vmem:[%s2536_s3 + $0xe0] sm:$0xff]  ;;  %v1781_v29 = vld [vmem:[%s2536_s3 + $0xe8] sm:$0xff]  ;;  %v1786_v30 = vld [vmem:[%s2536_s3 + $0xf0] sm:$0xff] }
  0x33   :  { %v1791_v31 = vld [vmem:[%s2536_s3 + $0xf8] sm:$0xff]  ;;  %v1793_v32 = vld [vmem:[#allocation3] sm:$0xff]  ;;  %v1795_v33 = vld [vmem:[#allocation3 + $0x8] sm:$0xff]  ;;  %s1859_s3 = smov 0  }
  0x34   :  { %v1797_v34 = vld [vmem:[#allocation3 + $0x10] sm:$0xff]  ;;  %v1799_v35 = vld [vmem:[#allocation3 + $0x18] sm:$0xff]  ;;  %v1801_v36 = vld [vmem:[#allocation3 + $0x20] sm:$0xff] }
  0x35   :  { %v1803_v37 = vld [vmem:[#allocation3 + $0x28] sm:$0xff]  ;;  %v1805_v38 = vld [vmem:[#allocation3 + $0x30] sm:$0xff]  ;;  %v1807_v39 = vld [vmem:[#allocation3 + $0x38] sm:$0xff] }
  0x36   :  { %v1809_v40 = vld [vmem:[#allocation3 + $0x40] sm:$0xff]  ;;  %v1811_v41 = vld [vmem:[#allocation3 + $0x48] sm:$0xff]  ;;  %v1813_v42 = vld [vmem:[#allocation3 + $0x50] sm:$0xff] }
  0x37   :  { %2641 = vst [vmem:[#allocation37_spill] sm:$0xff] %v1809_v40  ;;  %2642 = vst [vmem:[#allocation38_spill] sm:$0xff] %v1811_v41  ;;  %v1815_v43 = vld [vmem:[#allocation3 + $0x58] sm:$0xff]  ;;  %v1817_v44 = vld [vmem:[#allocation3 + $0x60] sm:$0xff] }
  0x38   :  { %v1819_v45 = vld [vmem:[#allocation3 + $0x68] sm:$0xff]  ;;  %v1821_v46 = vld [vmem:[#allocation3 + $0x70] sm:$0xff]  ;;  %v1823_v47 = vld [vmem:[#allocation3 + $0x78] sm:$0xff] }
  0x39   :  { %v1825_v48 = vld [vmem:[#allocation3 + $0x80] sm:$0xff]  ;;  %v1827_v49 = vld [vmem:[#allocation3 + $0x88] sm:$0xff]  ;;  %v1829_v50 = vld [vmem:[#allocation3 + $0x90] sm:$0xff] }
  0x3a   :  { %v1831_v51 = vld [vmem:[#allocation3 + $0x98] sm:$0xff]  ;;  %v1833_v52 = vld [vmem:[#allocation3 + $0xa0] sm:$0xff]  ;;  %v1835_v53 = vld [vmem:[#allocation3 + $0xa8] sm:$0xff] }
  0x3b   :  { %v1837_v54 = vld [vmem:[#allocation3 + $0xb0] sm:$0xff]  ;;  %v1839_v55 = vld [vmem:[#allocation3 + $0xb8] sm:$0xff]  ;;  %v1841_v56 = vld [vmem:[#allocation3 + $0xc0] sm:$0xff] }
  0x3c   :  { %v1843_v57 = vld [vmem:[#allocation3 + $0xc8] sm:$0xff]  ;;  %v1845_v58 = vld [vmem:[#allocation3 + $0xd0] sm:$0xff]  ;;  %v1847_v59 = vld [vmem:[#allocation3 + $0xd8] sm:$0xff] }
  0x3d   :  { %v1849_v60 = vld [vmem:[#allocation3 + $0xe0] sm:$0xff]  ;;  %v1851_v61 = vld [vmem:[#allocation3 + $0xe8] sm:$0xff]  ;;  %v1853_v62 = vld [vmem:[#allocation3 + $0xf0] sm:$0xff] }
  0x3e   :  { %v1855_v63 = vld [vmem:[#allocation3 + $0xf8] sm:$0xff]  ;;  %v1857_v2 = vld [vmem:[#allocation7] sm:$0xf] }
  0x3f LB: > { %161 = vmatprep.subr.mxu0 %v1851_v61  ;;  %232 = vmatprep.subr.mxu1 %v1855_v63  ;;  %s1389_s27 = sshll.u32 %s1570_s3, 1  ;;  %v2643_v41 = vld [vmem:[#allocation38_spill] sm:$0xff]  ;;  %v2644_v40 = vld [vmem:[#allocation37_spill] sm:$0xff]  ;;  %vm141_vm0 = vcmask 523264   ;;  %v2645_v25 = vld [vmem:[#allocation35_spill] sm:$0xff]  ;;  %s1410_s11 = sshll.u32 %s1570_s3, 3  ;;  %s1570_s3 = sphi %s1859_s3, %s135_s3  }
  0x40   : > { %162 = vmatpush1.msra.mxu0 %v1849_v60  ;;  %233 = vmatpush1.msra.mxu1 %v1853_v62  ;;  %s139_s30 = scalar_lea.vmem %s2534_s1, %s1389_s27  ;;  %v2646_v24 = vld [vmem:[#allocation34_spill] sm:$0xff]  ;;  %v2647_v26 = vld [vmem:[#allocation36_spill] sm:$0xff]  ;;  %v2648_v21 = vld [vmem:[#allocation31_spill] sm:$0xff]  ;;  %s137_s10 = scalar_lea.vmem %s2533_s0, %s1389_s27 }
  0x41   : > { %163 = vmatprep.subr.mxu0 %v1843_v57  ;;  %234 = vmatprep.subr.mxu1 %v1847_v59  ;;  %v2649_v23 = vld [vmem:[#allocation33_spill] sm:$0xff]  ;;  %v2650_v20 = vld [vmem:[#allocation30_spill] sm:$0xff]  ;;  %v2651_v22 = vld [vmem:[#allocation32_spill] sm:$0xff]  ;;  %s481_s12 = scalar_lea.vmem [#allocation2], %s1410_s11  ;;  %s135_s3 = sadd.s32 1, %s1570_s3  }
  0x42   : > { %164 = vmatpush1.msra.mxu0 %v1841_v56  ;;  %235 = vmatpush1.msra.mxu1 %v1845_v58  ;;  %v2652_v17 = vld [vmem:[#allocation27_spill] sm:$0xff]  ;;  %v2653_v19 = vld [vmem:[#allocation29_spill] sm:$0xff]  ;;  %v2654_v16 = vld [vmem:[#allocation26_spill] sm:$0xff]  ;;  %p132_p1 = scmp.ge.s32.totalorder %s135_s3, 4  }
  0x43   : > { %165 = vmatprep.subr.mxu0 %v1835_v53  ;;  %236 = vmatprep.subr.mxu1 %v1839_v55  ;;  %v2655_v18 = vld [vmem:[#allocation28_spill] sm:$0xff]  ;;  %v2656_v13 = vld [vmem:[#allocation23_spill] sm:$0xff]  ;;  %v2657_v15 = vld [vmem:[#allocation25_spill] sm:$0xff] }
  0x44   : > { %166 = vmatpush1.msra.mxu0 %v1833_v52  ;;  %237 = vmatpush1.msra.mxu1 %v1837_v54  ;;  %v2658_v12 = vld [vmem:[#allocation22_spill] sm:$0xff]  ;;  %v2659_v14 = vld [vmem:[#allocation24_spill] sm:$0xff]  ;;  %v2660_v9 = vld [vmem:[#allocation19_spill] sm:$0xff] }
  0x45   : > { %167 = vmatprep.subr.mxu0 %v1827_v49  ;;  %238 = vmatprep.subr.mxu1 %v1831_v51  ;;  %v2661_v11 = vld [vmem:[#allocation21_spill] sm:$0xff]  ;;  %v2662_v8 = vld [vmem:[#allocation18_spill] sm:$0xff]  ;;  %v2663_v10 = vld [vmem:[#allocation20_spill] sm:$0xff] }
  0x46   : > { %168 = vmatpush1.msra.mxu0 %v1825_v48  ;;  %239 = vmatpush1.msra.mxu1 %v1829_v50  ;;  %v2664_v5 = vld [vmem:[#allocation15_spill] sm:$0xff]  ;;  %v2665_v7 = vld [vmem:[#allocation17_spill] sm:$0xff]  ;;  %v2666_v4 = vld [vmem:[#allocation14_spill] sm:$0xff] }
  0x47   : > { %169 = vmatprep.subr.mxu0 %v1819_v45  ;;  %240 = vmatprep.subr.mxu1 %v1823_v47  ;;  %v2667_v6 = vld [vmem:[#allocation16_spill] sm:$0xff]  ;;  %v2668_v1 = vld [vmem:[#allocation11_spill] sm:$0xff]  ;;  %v2669_v3 = vld [vmem:[#allocation13_spill] sm:$0xff] }
  0x48   : > { %170 = vmatpush1.msra.mxu0 %v1817_v44  ;;  %241 = vmatpush1.msra.mxu1 %v1821_v46  ;;  %v2670_v0 = vld [vmem:[#allocation10_spill] sm:$0xff]  ;;  %v2050_v44 = vld [vmem:[#allocation5 + $0x130] sm:$0xff] (%p132_p1)  ;;  %v2056_v46 = vld [vmem:[#allocation5 + $0x118] sm:$0xff] (%p132_p1) }
  0x49   : > { %171 = vmatprep.subr.mxu0 %v2643_v41  ;;  %242 = vmatprep.subr.mxu1 %v1815_v43  ;;  %v1577_v41 = vmov 0.0   ;;  %v2047_v43 = vld [vmem:[#allocation5 + $0xc8] sm:$0xff] (%p132_p1)  ;;  %v2053_v45 = vld [vmem:[#allocation5 + $0xc0] sm:$0xff] (%p132_p1)  ;;  %v2062_v48 = vld [vmem:[#allocation5 + $0x110] sm:$0xff] (%p132_p1) }
  0x4a   : > { %172 = vmatpush1.msra.mxu0 %v2644_v40  ;;  %243 = vmatpush1.msra.mxu1 %v1813_v42  ;;  %v140_v40 = vld [vmem:[%s139_s30] sm:$0x3]  ;;  %v2044_v42 = vld [vmem:[#allocation5 + $0x138] sm:$0xff] (%p132_p1)  ;;  %v2059_v47 = vld [vmem:[#allocation5 + $0xa8] sm:$0xff] (%p132_p1) }
  0x4b   : > { %173 = vmatprep.subr.mxu0 %v1803_v37  ;;  %244 = vmatprep.subr.mxu1 %v1807_v39  ;;  %v2035_v37 = vld [vmem:[#allocation5 + $0xe8] sm:$0xff] (%p132_p1)  ;;  %v2041_v39 = vld [vmem:[#allocation5 + $0xe0] sm:$0xff] (%p132_p1)  ;;  %v2068_v50 = vld [vmem:[#allocation5 + $0xf8] sm:$0xff] (%p132_p1) }
  0x4c   : > { %174 = vmatpush1.msra.mxu0 %v1801_v36  ;;  %245 = vmatpush1.msra.mxu1 %v1805_v38  ;;  %v2032_v36 = vld [vmem:[#allocation5 + $0x158] sm:$0xff] (%p132_p1)  ;;  %v2038_v38 = vld [vmem:[#allocation5 + $0x150] sm:$0xff] (%p132_p1)  ;;  %v2065_v49 = vld [vmem:[#allocation5 + $0xa0] sm:$0xff] (%p132_p1) }
  0x4d   : > { %175 = vmatprep.subr.mxu0 %v1795_v33  ;;  %246 = vmatprep.subr.mxu1 %v1799_v35  ;;  %v2023_v33 = vld [vmem:[#allocation5 + $0x108] sm:$0xff] (%p132_p1)  ;;  %v2029_v35 = vld [vmem:[#allocation5 + $0x100] sm:$0xff] (%p132_p1)  ;;  %v2074_v52 = vld [vmem:[#allocation5 + $0xf0] sm:$0xff] (%p132_p1) }
  0x4e   : > { %176 = vmatpush1.msra.mxu0 %v1793_v32  ;;  %209 = vmatprep.mubr.f32.mxu0 %v1577_v41  ;;  %v2020_v32 = vld [vmem:[#allocation5 + $0x178] sm:$0xff] (%p132_p1)  ;;  %v2071_v51 = vld [vmem:[#allocation5 + $0x88] sm:$0xff] (%p132_p1)  ;;  %v2077_v53 = vld [vmem:[#allocation5 + $0x80] sm:$0xff] (%p132_p1) }
  0x4f   : > { %247 = vmatpush1.msra.mxu1 %v1797_v34  ;;  %280 = vmatprep.mubr.f32.mxu1 %v1577_v41  ;;  %v2026_v34 = vld [vmem:[#allocation5 + $0x170] sm:$0xff] (%p132_p1)  ;;  %2676 = vst [vmem:[#allocation13_spill] sm:$0xff] (%p132_p1), %v2071_v51  ;;  %2677 = vst [vmem:[#allocation14_spill] sm:$0xff] (%p132_p1), %v2077_v53  ;;  %v2080_v54 = vld [vmem:[#allocation5 + $0xd8] sm:$0xff] (%p132_p1) }
  0x50   : > { %1390 = vmatmul.mubr.msk.f32.vlgmr.msra.gmra.mxu0 %vm141_vm0, %v140_v40  ;;  %1391 = vmatmul.mubr.msk.f32.vlgmr.msra.gmra.mxu1 %vm141_vm0, %v140_v40  ;;  %v138_v40 = vld [vmem:[%s137_s10] sm:$0x3]  ;;  %v2083_v55 = vld [vmem:[#allocation5 + $0x68] sm:$0xff] (%p132_p1)  ;;  %v2086_v56 = vld [vmem:[#allocation5 + $0xd0] sm:$0xff] (%p132_p1) }
  0x51   : > { %306 = vmatprep.subr.mxu0 %v1781_v29  ;;  %377 = vmatprep.subr.mxu1 %v1791_v31  ;;  %v2011_v29 = vld [vmem:[#allocation5 + $0x128] sm:$0xff] (%p132_p1)  ;;  %v2017_v31 = vld [vmem:[#allocation5 + $0x120] sm:$0xff] (%p132_p1)  ;;  %2678 = vst [vmem:[#allocation15_spill] sm:$0xff] (%p132_p1), %v2083_v55  ;;  %v2092_v58 = vld [vmem:[#allocation5 + $0xb8] sm:$0xff] (%p132_p1) }
  0x52   : > { %307 = vmatpush1.msra.mxu0 %v1776_v28  ;;  %378 = vmatpush1.msra.mxu1 %v1786_v30  ;;  %v2008_v28 = vld [vmem:[#allocation5 + $0x198] sm:$0xff] (%p132_p1)  ;;  %v2014_v30 = vld [vmem:[#allocation5 + $0x190] sm:$0xff] (%p132_p1)  ;;  %v2089_v57 = vld [vmem:[#allocation5 + $0x60] sm:$0xff] (%p132_p1)  ;;  %2680 = vst [vmem:[#allocation17_spill] sm:$0xff] (%p132_p1), %v2092_v58 }
  0x53   : > { %308 = vmatprep.subr.mxu0 %v2645_v25  ;;  %379 = vmatprep.subr.mxu1 %v1771_v27  ;;  %v2006_v27 = vld [vmem:[#allocation5 + $0x1b0] sm:$0xff] (%p132_p1)  ;;  %2679 = vst [vmem:[#allocation16_spill] sm:$0xff] (%p132_p1), %v2089_v57  ;;  %v2095_v59 = vld [vmem:[#allocation5 + $0x48] sm:$0xff] (%p132_p1)  ;;  %v2101_v61 = vld [vmem:[#allocation5 + $0x40] sm:$0xff] (%p132_p1) }
  0x54   : > { %309 = vmatpush1.msra.mxu0 %v2646_v24  ;;  %380 = vmatpush1.msra.mxu1 %v2647_v26  ;;  %2681 = vst [vmem:[#allocation18_spill] sm:$0xff] (%p132_p1), %v2095_v59  ;;  %v2098_v60 = vld [vmem:[#allocation5 + $0xb0] sm:$0xff] (%p132_p1)  ;;  %2683 = vst [vmem:[#allocation20_spill] sm:$0xff] (%p132_p1), %v2101_v61  ;;  %v2104_v62 = vld [vmem:[#allocation5 + $0x98] sm:$0xff] (%p132_p1) }
  0x55   : > { %310 = vmatprep.subr.mxu0 %v2648_v21  ;;  %381 = vmatprep.subr.mxu1 %v2649_v23  ;;  %2682 = vst [vmem:[#allocation19_spill] sm:$0xff] (%p132_p1), %v2098_v60  ;;  %2684 = vst [vmem:[#allocation21_spill] sm:$0xff] (%p132_p1), %v2104_v62  ;;  %v2107_v63 = vld [vmem:[#allocation5 + $0x28] sm:$0xff] (%p132_p1) }
  0x56   : > { %311 = vmatpush1.msra.mxu0 %v2650_v20  ;;  %382 = vmatpush1.msra.mxu1 %v2651_v22  ;;  %2685 = vst [vmem:[#allocation22_spill] sm:$0xff] (%p132_p1), %v2107_v63 }
  0x57   : > { %312 = vmatprep.subr.mxu0 %v2652_v17  ;;  %383 = vmatprep.subr.mxu1 %v2653_v19 }
  0x58   : > { %313 = vmatpush1.msra.mxu0 %v2654_v16  ;;  %384 = vmatpush1.msra.mxu1 %v2655_v18 }
  0x59   : > { %314 = vmatprep.subr.mxu0 %v2656_v13  ;;  %385 = vmatprep.subr.mxu1 %v2657_v15 }
  0x5a   : > { %315 = vmatpush1.msra.mxu0 %v2658_v12  ;;  %386 = vmatpush1.msra.mxu1 %v2659_v14 }
  0x5b   : > { %316 = vmatprep.subr.mxu0 %v2660_v9  ;;  %387 = vmatprep.subr.mxu1 %v2661_v11  ;;  %v2671_v9 = vld [vmem:[#allocation12_spill] sm:$0xff] }
  0x5c   : > { %317 = vmatpush1.msra.mxu0 %v2662_v8  ;;  %388 = vmatpush1.msra.mxu1 %v2663_v10  ;;  %v1578_v10 = vmov 1983009808   ;;  %2675 = vst [vmem:[#allocation12_spill] sm:$0xff] (%p132_p1), %v2065_v49 }
  0x5d   : > { %318 = vmatprep.subr.mxu0 %v2664_v5  ;;  %389 = vmatprep.subr.mxu1 %v2665_v7  ;;  %v2541_v5 = vlaneseq }
  0x5e   : > { %319 = vmatpush1.msra.mxu0 %v2666_v4  ;;  %390 = vmatpush1.msra.mxu1 %v2667_v6 }
  0x5f   : > { %320 = vmatprep.subr.mxu0 %v2668_v1  ;;  %391 = vmatprep.subr.mxu1 %v2669_v3  ;;  %v434_v4 = vshrl.u32 %v2541_v5, 7  ;;  %v464_v3 = vunpack.c.l.s4 %v1578_v10 }
  0x60   : > { %321 = vmatpush1.msra.mxu0 %v2670_v0  ;;  %354 = vmatprep.mubr.f32.mxu0 %v1577_v41 }
  0x61   : > { %392 = vmatpush1.msra.mxu1 %v2671_v9  ;;  %425 = vmatprep.mubr.f32.mxu1 %v1577_v41  ;;  %v435_v8 = vsub.s32 0, %v434_v4  ;;  %v443_v1 = vsub.s32 2, %v434_v4  ;;  %v439_v11 = vsub.s32 1, %v434_v4  ;;  %v447_v12 = vsub.s32 3, %v434_v4 }
  0x62   : > { %1392 = vmatmul.mubr.msk.f32.vlgmr.msra.gmra.mxu0 %vm141_vm0, %v138_v40  ;;  %1393 = vmatmul.mubr.msk.f32.vlgmr.msra.gmra.mxu1 %vm141_vm0, %v138_v40  ;;  %v465_v15 = vunpack.c.0.s8 %v464_v3 }
  0x63   : > { %v436_v9 = vrot.slane %v1857_v2, %v435_v8  ;;  %v444_v40 = vrot.slane %v1857_v2, %v443_v1  ;;  %v440_v17 = vrot.slane %v1857_v2, %v439_v11  ;;  %v448_v18 = vrot.slane %v1857_v2, %v447_v12  ;;  %v1963_v11 = vld [vmem:[#allocation5 + $0x1c0] sm:$0xff] (%p132_p1) }
  0x64   : > { %v1948_v22 = vsub.s32 %v465_v15, %v434_v4  ;;  %v1958_v4 = vld [vmem:[#allocation5 + $0x1e0] sm:$0xff] (%p132_p1)  ;;  %v2543_v12 = vmov (%p132_p1), 0.0   ;;  %v1975_v15 = vld [vmem:[#allocation5 + $0x188] sm:$0xff] (%p132_p1) }
  0x65   :  { %677 = vmatprep.mubr.f32.mxu0 (%p132_p1), %v2543_v12  ;;  %748 = vmatprep.mubr.f32.mxu1 (%p132_p1), %v2543_v12  ;;  %v1971_v2 = vld [vmem:[#allocation5 + $0x1a0] sm:$0xff] (%p132_p1)  ;;  %v2143_v12 = vld [vmem:[#allocation5 + $0x30] sm:$0xff] (%p132_p1) }
  0x66   : > { %2672 = vst [vmem:[#allocation39_spill] sm:$0xff] %v1948_v22  ;;  %2695 = vst [vmem:[#allocation32_spill] sm:$0xff] (%p132_p1), %v2143_v12 }
 0x110   : > { %v211_v7 = vpop.f32.mrf.mxu0  ;;  %v282_v6 = vpop.f32.mrf.mxu1 }
 0x112   : > { %v213_v0 = vpop.f32.mrf.mxu0  ;;  %v284_v13 = vpop.f32.mrf.mxu1 }
 0x122   : > { %v356_v14 = vpop.f32.mrf.mxu0  ;;  %v427_v41 = vpop.f32.mrf.mxu1 }
 0x123   : > { %v357_v16 = vadd.f32 %v356_v14, %v211_v7  ;;  %v428_v5 = vadd.f32 %v427_v41, %v282_v6  ;;  %v2542_v14 = vmov (%p132_p1), 0   ;;  %v2113_v41 = vld [vmem:[#allocation5 + $0x20] sm:$0xff] (%p132_p1) }
 0x124   : > { %v358_v19 = vpop.f32.mrf.mxu0  ;;  %v429_v10 = vpop.f32.mrf.mxu1  ;;  %1431 = vset.pattern.permute.xlu0 (%p132_p1), %v2542_v14  ;;  %2687 = vst [vmem:[#allocation24_spill] sm:$0xff] (%p132_p1), %v2113_v41  ;;  %v483_v14 = vld [vmem:[%s2535_s2] sm:$0x3] (%p132_p1) }
 0x125   : > { %v359_v20 = vadd.f32 %v358_v19, %v213_v0  ;;  %v430_v21 = vadd.f32 %v429_v10, %v284_v13  ;;  %v453_v23 = vadd.f32 %v436_v9, %v357_v16  ;;  %v455_v24 = vadd.f32 %v444_v40, %v428_v5  ;;  %v1956_v0 = vld [vmem:[#allocation5 + $0x1e8] sm:$0xff] (%p132_p1)  ;;  %v1978_v16 = vld [vmem:[#allocation5 + $0x180] sm:$0xff] (%p132_p1)  ;;  %v1986_v19 = vld [vmem:[#allocation5 + $0x1f0] sm:$0xff] (%p132_p1)  ;;  %785 = vperm.xlu0 (%p132_p1), %1431, %v483_v14  }
 0x126   :  { %2673 = vst [vmem:[#allocation10_spill] sm:$0xff] (%p132_p1), %v1956_v0  ;;  %v1960_v5 = vld [vmem:[#allocation5 + $0x1c8] sm:$0xff] (%p132_p1)  ;;  %613 = vmatprep.subr.mxu0 (%p132_p1), %v1956_v0  ;;  %v2110_v9 = vld [vmem:[#allocation5 + $0x90] sm:$0xff] (%p132_p1)  ;;  %v2116_v40 = vld [vmem:[#allocation5 + $0x78] sm:$0xff] (%p132_p1) }
 0x127   : > { %v454_v8 = vadd.f32 %v440_v17, %v359_v20  ;;  %v456_v25 = vadd.f32 %v448_v18, %v430_v21  ;;  %614 = vmatpush1.msra.mxu0 (%p132_p1), %v1958_v4  ;;  %v1967_v13 = vld [vmem:[#allocation5 + $0x1a8] sm:$0xff] (%p132_p1)  ;;  %v1980_v17 = vld [vmem:[#allocation5 + $0x1f8] sm:$0xff] (%p132_p1)  ;;  %v1989_v20 = vld [vmem:[#allocation5 + $0x160] sm:$0xff] (%p132_p1)  ;;  %2686 = vst [vmem:[#allocation23_spill] sm:$0xff] (%p132_p1), %v2110_v9 }
 0x128   :  { %615 = vmatprep.subr.mxu0 (%p132_p1), %v1960_v5  ;;  %2674 = vst [vmem:[#allocation11_spill] sm:$0xff] (%p132_p1), %v1980_v17  ;;  %v1983_v18 = vld [vmem:[#allocation5 + $0x168] sm:$0xff] (%p132_p1)  ;;  %684 = vmatprep.subr.mxu1 (%p132_p1), %v1980_v17  ;;  %v1992_v21 = vld [vmem:[#allocation5 + $0x1d8] sm:$0xff] (%p132_p1)  ;;  %2688 = vst [vmem:[#allocation25_spill] sm:$0xff] (%p132_p1), %v2116_v40 }
 0x129   : > { %v461_v26 = vcombine.low %v453_v23, %v454_v8  ;;  %v462_v1 = vcombine.low %v455_v24, %v456_v25  ;;  %616 = vmatpush1.msra.mxu0 (%p132_p1), %v1963_v11  ;;  %685 = vmatpush1.msra.mxu1 (%p132_p1), %v1986_v19  ;;  %v1994_v23 = vld [vmem:[#allocation5 + $0x1d0] sm:$0xff] (%p132_p1)  ;;  %v1997_v24 = vld [vmem:[#allocation5 + $0x148] sm:$0xff] (%p132_p1)  ;;  %v2000_v25 = vld [vmem:[#allocation5 + $0x1b8] sm:$0xff] (%p132_p1) }
 0x12a   :  { %617 = vmatprep.subr.mxu0 (%p132_p1), %v1967_v13  ;;  %686 = vmatprep.subr.mxu1 (%p132_p1), %v1992_v21  ;;  %v2119_v10 = vld [vmem:[#allocation5 + $0x8] sm:$0xff] (%p132_p1)  ;;  %v2122_v8 = vld [vmem:[#allocation5 + $0x70] sm:$0xff] (%p132_p1) }
 0x12b   : > { %v469_v3 = vrot.slane %v461_v26, %v1948_v22  ;;  %v476_v6 = vrot.slane %v462_v1, %v1948_v22  ;;  %134 = sbr.rel (!%p132_p1) target bundleno = 63 (0x3f), region = 73  ;;  %618 = vmatpush1.msra.mxu0 (%p132_p1), %v1971_v2  ;;  %v2003_v26 = vld [vmem:[#allocation5 + $0x140] sm:$0xff] (%p132_p1)  ;;  %687 = vmatpush1.msra.mxu1 (%p132_p1), %v1994_v23  ;;  %2689 = vst [vmem:[#allocation26_spill] sm:$0xff] (%p132_p1), %v2119_v10  ;;  %2690 = vst [vmem:[#allocation27_spill] sm:$0xff] (%p132_p1), %v2122_v8  ;;  %v2696_v22 = vmov (%p132_p1), 0.0   ;;  %v2699_v14 = vld [vmem:[#allocation24_spill] sm:$0xff] (%p132_p1) }
 0x12c   :  { %619 = vmatprep.subr.mxu0 (%p132_p1), %v1975_v15  ;;  %688 = vmatprep.subr.mxu1 (%p132_p1), %v2000_v25  ;;  %v2125_v1 = vld [vmem:[#allocation5] sm:$0xff] (%p132_p1) }
 0x12d   : > { %v477_v7 = vcombine.low %v469_v3, %v476_v6  ;;  %620 = vmatpush1.msra.mxu0 (%p132_p1), %v1978_v16  ;;  %689 = vmatpush1.msra.mxu1 (%p132_p1), %v2006_v27  ;;  %2691 = vst [vmem:[#allocation28_spill] sm:$0xff] (%p132_p1), %v2125_v1  ;;  %v2128_v3 = vld [vmem:[#allocation5 + $0x58] sm:$0xff] (%p132_p1)  ;;  %v2132_v6 = vld [vmem:[#allocation5 + $0x50] sm:$0xff] (%p132_p1) }
 0x12e   :  { %621 = vmatprep.subr.mxu0 (%p132_p1), %v1983_v18  ;;  %690 = vmatprep.subr.mxu1 (%p132_p1), %v2008_v28  ;;  %2692 = vst [vmem:[#allocation29_spill] sm:$0xff] (%p132_p1), %v2128_v3  ;;  %2693 = vst [vmem:[#allocation30_spill] sm:$0xff] (%p132_p1), %v2132_v6 }
 0x12f   : > { %482 = vst [vmem:[%s481_s12] sm:$0xff] %v477_v7  ;;  %622 = vmatpush1.msra.mxu0 (%p132_p1), %v1989_v20  ;;  %691 = vmatpush1.msra.mxu1 (%p132_p1), %v2014_v30  ;;  %v2136_v7 = vld [vmem:[#allocation5 + $0x38] sm:$0xff] (%p132_p1) }
 0x130   :  { %623 = vmatprep.subr.mxu0 %v1997_v24  ;;  %692 = vmatprep.subr.mxu1 %v2020_v32  ;;  %2694 = vst [vmem:[#allocation31_spill] sm:$0xff] %v2136_v7 }
 0x131   :  { %624 = vmatpush1.msra.mxu0 %v2003_v26  ;;  %693 = vmatpush1.msra.mxu1 %v2026_v34 }
 0x132   :  { %625 = vmatprep.subr.mxu0 %v2011_v29  ;;  %694 = vmatprep.subr.mxu1 %v2032_v36 }
 0x133   :  { %626 = vmatpush1.msra.mxu0 %v2017_v31  ;;  %695 = vmatpush1.msra.mxu1 %v2038_v38 }
 0x134   :  { %627 = vmatprep.subr.mxu0 %v2023_v33  ;;  %696 = vmatprep.subr.mxu1 %v2044_v42 }
 0x135   :  { %628 = vmatpush1.msra.mxu0 %v2029_v35  ;;  %697 = vmatpush1.msra.mxu1 %v2050_v44 }
 0x136   :  { %629 = vmatprep.subr.mxu0 %v2035_v37  ;;  %698 = vmatprep.subr.mxu1 %v2056_v46 }
 0x137   :  { %630 = vmatpush1.msra.mxu0 %v2041_v39  ;;  %699 = vmatpush1.msra.mxu1 %v2062_v48 }
 0x138   :  { %631 = vmatprep.subr.mxu0 %v2047_v43  ;;  %700 = vmatprep.subr.mxu1 %v2068_v50 }
 0x139   :  { %632 = vmatpush1.msra.mxu0 %v2053_v45  ;;  %701 = vmatpush1.msra.mxu1 %v2074_v52 }
 0x13a   :  { %633 = vmatprep.subr.mxu0 %v2059_v47  ;;  %702 = vmatprep.subr.mxu1 %v2080_v54 }
 0x13b   :  { %634 = vmatpush1.msra.mxu0 %v2065_v49  ;;  %703 = vmatpush1.msra.mxu1 %v2086_v56 }
 0x13c   :  { %635 = vmatprep.subr.mxu0 %v2071_v51  ;;  %704 = vmatprep.subr.mxu1 %v2092_v58 }
 0x13d   :  { %636 = vmatpush1.msra.mxu0 %v2077_v53  ;;  %705 = vmatpush1.msra.mxu1 %v2098_v60 }
 0x13e   :  { %637 = vmatprep.subr.mxu0 %v2083_v55  ;;  %706 = vmatprep.subr.mxu1 %v2104_v62 }
 0x13f   :  { %638 = vmatpush1.msra.mxu0 %v2089_v57  ;;  %707 = vmatpush1.msra.mxu1 %v2110_v9 }
 0x140   :  { %639 = vmatprep.subr.mxu0 %v2095_v59  ;;  %708 = vmatprep.subr.mxu1 %v2116_v40 }
 0x141   :  { %640 = vmatpush1.msra.mxu0 %v2101_v61  ;;  %709 = vmatpush1.msra.mxu1 %v2122_v8 }
 0x142   :  { %641 = vmatprep.subr.mxu0 %v2107_v63  ;;  %710 = vmatprep.subr.mxu1 %v2128_v3 }
 0x143   :  { %642 = vmatpush1.msra.mxu0 %v2113_v41  ;;  %711 = vmatpush1.msra.mxu1 %v2132_v6  ;;  %v2147_v41 = vld [vmem:[#allocation5 + $0x18] sm:$0xff] }
 0x144   :  { %643 = vmatprep.subr.mxu0 %v2119_v10  ;;  %2697 = vst [vmem:[#allocation33_spill] sm:$0xff] %v2147_v41  ;;  %712 = vmatprep.subr.mxu1 %v2136_v7  ;;  %v2150_v10 = vld [vmem:[#allocation5 + $0x10] sm:$0xff] }
 0x145   :  { %644 = vmatpush1.msra.mxu0 %v2125_v1  ;;  %2698 = vst [vmem:[#allocation34_spill] sm:$0xff] %v2150_v10  ;;  %713 = vmatpush1.msra.mxu1 %v2143_v12 }
 0x146   :  { %678 = vmatmul.mubr.f32.vlgmr.msra.gmra.mxu0 %v2696_v22  ;;  %842 = vmatprep.subr.mxu0 %v1956_v0 }
 0x147   :  { %714 = vmatprep.subr.mxu1 %v2147_v41  ;;  %843 = vmatpush1.msra.mxu0 %v1958_v4 }
 0x148   :  { %715 = vmatpush1.msra.mxu1 %v2150_v10  ;;  %844 = vmatprep.subr.mxu0 %v1960_v5 }
 0x149   :  { %749 = vmatmul.mubr.f32.vlgmr.msra.gmra.mxu1 %v2696_v22  ;;  %913 = vmatprep.subr.mxu1 %v1980_v17 }
 0x14a   :  { %914 = vmatpush1.msra.mxu1 %v1986_v19  ;;  %845 = vmatpush1.msra.mxu0 %v1963_v11 }
 0x14b   :  { %915 = vmatprep.subr.mxu1 %v1992_v21  ;;  %846 = vmatprep.subr.mxu0 %v1967_v13 }
 0x14c   :  { %916 = vmatpush1.msra.mxu1 %v1994_v23  ;;  %847 = vmatpush1.msra.mxu0 %v1971_v2 }
 0x14d   :  { %917 = vmatprep.subr.mxu1 %v2000_v25  ;;  %848 = vmatprep.subr.mxu0 %v1975_v15 }
 0x14e   :  { %918 = vmatpush1.msra.mxu1 %v2006_v27  ;;  %849 = vmatpush1.msra.mxu0 %v1978_v16 }
 0x14f   :  { %919 = vmatprep.subr.mxu1 %v2008_v28  ;;  %850 = vmatprep.subr.mxu0 %v1983_v18 }
 0x150   :  { %920 = vmatpush1.msra.mxu1 %v2014_v30  ;;  %851 = vmatpush1.msra.mxu0 %v1989_v20 }
 0x151   :  { %921 = vmatprep.subr.mxu1 %v2020_v32  ;;  %852 = vmatprep.subr.mxu0 %v1997_v24 }
 0x152   :  { %922 = vmatpush1.msra.mxu1 %v2026_v34  ;;  %853 = vmatpush1.msra.mxu0 %v2003_v26 }
 0x153   :  { %923 = vmatprep.subr.mxu1 %v2032_v36  ;;  %854 = vmatprep.subr.mxu0 %v2011_v29 }
 0x154   :  { %924 = vmatpush1.msra.mxu1 %v2038_v38  ;;  %855 = vmatpush1.msra.mxu0 %v2017_v31 }
 0x155   :  { %925 = vmatprep.subr.mxu1 %v2044_v42  ;;  %856 = vmatprep.subr.mxu0 %v2023_v33 }
 0x156   :  { %926 = vmatpush1.msra.mxu1 %v2050_v44  ;;  %857 = vmatpush1.msra.mxu0 %v2029_v35 }
 0x157   :  { %927 = vmatprep.subr.mxu1 %v2056_v46  ;;  %858 = vmatprep.subr.mxu0 %v2035_v37 }
 0x158   :  { %928 = vmatpush1.msra.mxu1 %v2062_v48  ;;  %859 = vmatpush1.msra.mxu0 %v2041_v39 }
 0x159   :  { %929 = vmatprep.subr.mxu1 %v2068_v50  ;;  %860 = vmatprep.subr.mxu0 %v2047_v43 }
 0x15a   :  { %930 = vmatpush1.msra.mxu1 %v2074_v52  ;;  %861 = vmatpush1.msra.mxu0 %v2053_v45 }
 0x15b   :  { %931 = vmatprep.subr.mxu1 %v2080_v54  ;;  %862 = vmatprep.subr.mxu0 %v2059_v47 }
 0x15c   :  { %932 = vmatpush1.msra.mxu1 %v2086_v56  ;;  %863 = vmatpush1.msra.mxu0 %v2065_v49 }
 0x15d   :  { %933 = vmatprep.subr.mxu1 %v2092_v58  ;;  %864 = vmatprep.subr.mxu0 %v2071_v51 }
 0x15e   :  { %934 = vmatpush1.msra.mxu1 %v2098_v60  ;;  %865 = vmatpush1.msra.mxu0 %v2077_v53 }
 0x15f   :  { %935 = vmatprep.subr.mxu1 %v2104_v62  ;;  %866 = vmatprep.subr.mxu0 %v2083_v55  ;;  %v2700_v55 = vld [vmem:[#allocation26_spill] sm:$0xff] }
 0x160   :  { %936 = vmatpush1.msra.mxu1 %v2110_v9  ;;  %867 = vmatpush1.msra.mxu0 %v2089_v57 }
 0x161   :  { %937 = vmatprep.subr.mxu1 %v2116_v40  ;;  %868 = vmatprep.subr.mxu0 %v2095_v59 }
 0x162   :  { %938 = vmatpush1.msra.mxu1 %v2122_v8  ;;  %869 = vmatpush1.msra.mxu0 %v2101_v61 }
 0x163   :  { %939 = vmatprep.subr.mxu1 %v2128_v3  ;;  %870 = vmatprep.subr.mxu0 %v2107_v63 }
 0x164   :  { %940 = vmatpush1.msra.mxu1 %v2132_v6  ;;  %871 = vmatpush1.msra.mxu0 %v2699_v14  ;;  %v2701_v14 = vlaneseq }
 0x165   :  { %941 = vmatprep.subr.mxu1 %v2136_v7  ;;  %872 = vmatprep.subr.mxu0 %v2700_v55  ;;  %v2702_v55 = vmov 0  }
 0x166   :  { %942 = vmatpush1.msra.mxu1 %v2143_v12  ;;  %873 = vmatpush1.msra.mxu0 %v2125_v1  ;;  %v2225_v7 = vand.u32 127, %v2701_v14 }
 0x167   :  { %943 = vmatprep.subr.mxu1 %v2147_v41  ;;  %906 = vmatprep.mubr.f32.mxu0 %v2696_v22 }
 0x168   :  { %944 = vmatpush1.msra.mxu1 %v2150_v10  ;;  %977 = vmatprep.mubr.f32.mxu1 %v2696_v22  ;;  %vm550_vm1 = vcmp.lt.s32.totalorder %v2225_v7, 64  ;;  %v562_v10 = vld [vmem:[#allocation2] sm:$0xff]  ;;  %v564_v22 = vld [vmem:[#allocation2 + $0x18] sm:$0xff]  ;;  %v552_v61 = vadd.s32 256, %v2225_v7  ;;  %v553_v53 = vadd.s32 384, %v2225_v7 }
 0x169   :  { %1020 = vmatprep.subr.mxu0 %v1956_v0  ;;  %1091 = vmatprep.subr.mxu1 %v1980_v17  ;;  %v2231_v1 = vsel %vm550_vm1, 3, %v2702_v55  ;;  %v551_v0 = vadd.s32 128, %v2225_v7  ;;  %v2704_v17 = vld [vmem:[#allocation39_spill] sm:$0xff]  ;;  %v566_v8 = vcombine.high %v562_v10, %v562_v10 }
 0x16a   :  { %2703 = vst [vmem:[#allocation35_spill] sm:$0xff] %v2231_v1  ;;  %v2239_v12 = vrot.slane %v562_v10, %v2704_v17  ;;  %v2242_v14 = vrot.slane %v564_v22, %v2704_v17  ;;  %v556_v40 = vand.u32 127, %v552_v61  ;;  %v557_v10 = vand.u32 127, %v553_v53 }
 0x16b   :  { %v555_v63 = vand.u32 127, %v551_v0  ;;  %v2267_v60 = vrot.slane %v566_v8, %v2704_v17  ;;  %v2719_v61 = vmov 0 }
 0x16c   :  { %2705 = vst [vmem:[#allocation36_spill] sm:$0xff] %v2239_v12  ;;  %2706 = vst [vmem:[#allocation37_spill] sm:$0xff] %v2242_v14  ;;  %v2246_v55 = vcombine.high %v2239_v12, %v2239_v12  ;;  %v2250_v6 = vcombine.high %v2242_v14, %v2242_v14  ;;  %v609_v3 = vsel %vm550_vm1, %v2239_v12, %v2242_v14  ;;  %vm2269_vm4 = vcmp.lt.s32.totalorder %v556_v40, 64 }
 0x16d   :  { %vm2252_vm3 = vcmp.lt.s32.totalorder %v555_v63, 64  ;;  %v588_v63 = vcombine.high %v564_v22, %v564_v22  ;;  %2712 = vst [vmem:[#allocation41_spill] sm:$0xff] %v2267_v60  ;;  %v2713_v12 = vmov 0  ;;  %vm2288_vm5 = vcmp.lt.s32.totalorder %v557_v10, 64 }
 0x16e   :  { %2707 = vst [vmem:[#allocation38_spill] sm:$0xff] %v2246_v55  ;;  %2708 = vst [vmem:[#allocation39_spill] sm:$0xff] %v2250_v6  ;;  %v610_v59 = vsel %vm2252_vm3, %v2246_v55, %v2250_v6  ;;  %v2714_v12 = vsel %vm2269_vm4, 4294967295, %v2713_v12  ;;  %v2720_v61 = vsel %vm2288_vm5, 4294967295, %v2719_v61 }
 0x16f   :  { %2715 = vst [vmem:[#allocation42_spill] sm:$0xff] %v2714_v12  ;;  %v2274_v6 = vrot.slane %v588_v63, %v2704_v17  ;;  %2721 = vst [vmem:[#allocation46_spill] sm:$0xff] %v2720_v61 }
 0x171   :  { %2716 = vst [vmem:[#allocation43_spill] sm:$0xff] %v2274_v6  ;;  %v611_v22 = vsel %vm2269_vm4, %v2267_v60, %v2274_v6 }
 0x1a0   :  { %v2233_v41 = vpop.permute.xlu0 %785 }
 0x1a1   :  { %vm1369_vm2 = vcmp.lt.s32.totalorder %v2231_v1, %v2233_v41  ;;  %v2709_v1 = vmov 0 }
 0x1a2   :  { %v2710_v1 = vsel %vm2252_vm3, 4294967295, %v2709_v1 }
 0x1a3   :  { %2711 = vst [vmem:[#allocation40_spill] sm:$0xff] %v2710_v1 }
 0x206   :  { %v679_v0 = vpop.f32.mrf.mxu0 }
 0x207   :  { %v755_v57 = vadd.f32 %v679_v0, %v609_v3 }
 0x208   :  { %v681_v9 = vpop.f32.mrf.mxu0 }
 0x209   :  { %v1396_v62 = vmul.f32 -1.442695, %v755_v57  ;;  %v756_v51 = vadd.f32 %v681_v9, %v610_v59  ;;  %v750_v57 = vpop.f32.mrf.mxu1  ;;  %v2282_v59 = vcombine.high %v2267_v60, %v2267_v60 }
 0x20a   :  { %v757_v53 = vadd.f32 %v750_v57, %v611_v22  ;;  %v1581_v22 = vmov 3  }
 0x20b   :  { %1436 = vpow2.f32 %v1396_v62  ;;  %v1397_v14 = vmul.f32 -1.442695, %v756_v51  ;;  %2717 = vst [vmem:[#allocation44_spill] sm:$0xff] %v2282_v59  ;;  %v2286_v51 = vcombine.high %v2274_v6, %v2274_v6  ;;  %v752_v9 = vpop.f32.mrf.mxu1  ;;  %v783_v57 = vsel %vm550_vm1, 0, %v1581_v22  ;;  %v2730_v22 = vld [vmem:[#allocation27_spill] sm:$0xff] }
 0x20c   :  { %v1398_v40 = vmul.f32 -1.442695, %v757_v53  ;;  %vm787_vm6 = vcmp.lt.s32.totalorder %v783_v57, %v2233_v41  ;;  %v2731_v57 = vld [vmem:[#allocation18_spill] sm:$0xff] }
 0x20d   :  { %1438 = vpow2.f32 %v1397_v14  ;;  %2718 = vst [vmem:[#allocation45_spill] sm:$0xff] %v2286_v51  ;;  %v612_v62 = vsel %vm2288_vm5, %v2282_v59, %v2286_v51 }
 0x20e   :  { %v758_v8 = vadd.f32 %v752_v9, %v612_v62  ;;  %1440 = vpow2.f32 %v1398_v40 }
 0x210   :  { %1442 = vtanh.f32 %v758_v8 }
 0x218   :  { %v1437_v3 = vpop.eup %1436 }
 0x219   :  { %v768_v14 = vadd.f32 1.0, %v1437_v3 }
 0x21a   :  { %v1439_v0 = vpop.eup %1438 }
 0x21b   :  { %1444 = vrcp.f32 %v768_v14  ;;  %v769_v63 = vadd.f32 1.0, %v1439_v0  ;;  %v1441_v10 = vpop.eup %1440  ;;  %v2727_v0 = vld [vmem:[#allocation15_spill] sm:$0xff] }
 0x21c   :  { %v770_v51 = vadd.f32 1.0, %v1441_v10  ;;  %v2729_v10 = vld [vmem:[#allocation16_spill] sm:$0xff] }
 0x21d   :  { %1446 = vrcp.f32 %v769_v63  ;;  %v1443_v6 = vpop.eup %1442  ;;  %v2728_v63 = vld [vmem:[#allocation25_spill] sm:$0xff] }
 0x21e   :  { %1448 = vrcp.f32 %v770_v51  ;;  %v2726_v51 = vld [vmem:[#allocation23_spill] sm:$0xff] }
 0x228   :  { %v1445_v60 = vpop.eup %1444 }
 0x229   :  { %v779_v53 = vmul.f32 %v1445_v60, %v1443_v6  ;;  %v2722_v60 = vld [vmem:[#allocation19_spill] sm:$0xff]  ;;  %v2723_v6 = vld [vmem:[#allocation13_spill] sm:$0xff] }
 0x22a   :  { %v1447_v55 = vpop.eup %1446 }
 0x22b   :  { %v778_v59 = vmul.f32 0.0, %v1447_v55  ;;  %v1449_v40 = vpop.eup %1448  ;;  %v2724_v55 = vld [vmem:[#allocation21_spill] sm:$0xff] }
 0x22d   :  { %v780_v62 = vadd.f32 %v779_v53, %v778_v59  ;;  %v2725_v59 = vld [vmem:[#allocation14_spill] sm:$0xff]  ;;  %v2732_v53 = vld [vmem:[#allocation29_spill] sm:$0xff] }
 0x22f   :  { %1450 = vtanh.f32 %v780_v62  ;;  %v2299_v9 = vsel %vm787_vm6, %v780_v62, 0.0  ;;  %v2733_v62 = vld [vmem:[#allocation20_spill] sm:$0xff] }
 0x23c   :  { %v1451_v8 = vpop.eup %1450 }
 0x23d   :  { %v782_v3 = vmul.f32 %v1451_v8, %v1449_v40  ;;  %v2734_v40 = vld [vmem:[#allocation30_spill] sm:$0xff] }
 0x23e   :  { %v2735_v8 = vld [vmem:[#allocation22_spill] sm:$0xff] }
 0x23f   :  { %1399 = vmatmul.mubr.msk.f32.vlgmr.msra.gmra.mxu0 %vm787_vm6, %v782_v3  ;;  %1400 = vmatmul.mubr.msk.f32.vlgmr.msra.gmra.mxu1 %vm787_vm6, %v782_v3  ;;  %v2301_v14 = vsel %vm787_vm6, %v782_v3, 0.0  ;;  %v2736_v3 = vld [vmem:[#allocation31_spill] sm:$0xff] }
 0x240   :  { %1021 = vmatpush1.msra.mxu0 %v1958_v4  ;;  %1092 = vmatpush1.msra.mxu1 %v1986_v19 }
 0x241   :  { %1022 = vmatprep.subr.mxu0 %v1960_v5  ;;  %1093 = vmatprep.subr.mxu1 %v1992_v21 }
 0x242   :  { %1023 = vmatpush1.msra.mxu0 %v1963_v11  ;;  %1094 = vmatpush1.msra.mxu1 %v1994_v23 }
 0x243   :  { %1024 = vmatprep.subr.mxu0 %v1967_v13  ;;  %1095 = vmatprep.subr.mxu1 %v2000_v25 }
 0x244   :  { %1025 = vmatpush1.msra.mxu0 %v1971_v2  ;;  %1096 = vmatpush1.msra.mxu1 %v2006_v27 }
 0x245   :  { %1026 = vmatprep.subr.mxu0 %v1975_v15  ;;  %1097 = vmatprep.subr.mxu1 %v2008_v28 }
 0x246   :  { %1027 = vmatpush1.msra.mxu0 %v1978_v16  ;;  %1098 = vmatpush1.msra.mxu1 %v2014_v30 }
 0x247   :  { %1028 = vmatprep.subr.mxu0 %v1983_v18  ;;  %1099 = vmatprep.subr.mxu1 %v2020_v32 }
 0x248   :  { %1029 = vmatpush1.msra.mxu0 %v1989_v20  ;;  %1100 = vmatpush1.msra.mxu1 %v2026_v34 }
 0x249   :  { %1030 = vmatprep.subr.mxu0 %v1997_v24  ;;  %1101 = vmatprep.subr.mxu1 %v2032_v36 }
 0x24a   :  { %1031 = vmatpush1.msra.mxu0 %v2003_v26  ;;  %1102 = vmatpush1.msra.mxu1 %v2038_v38 }
 0x24b   :  { %1032 = vmatprep.subr.mxu0 %v2011_v29  ;;  %1103 = vmatprep.subr.mxu1 %v2044_v42 }
 0x24c   :  { %1033 = vmatpush1.msra.mxu0 %v2017_v31  ;;  %1104 = vmatpush1.msra.mxu1 %v2050_v44 }
 0x24d   :  { %1034 = vmatprep.subr.mxu0 %v2023_v33  ;;  %1105 = vmatprep.subr.mxu1 %v2056_v46 }
 0x24e   :  { %1035 = vmatpush1.msra.mxu0 %v2029_v35  ;;  %1106 = vmatpush1.msra.mxu1 %v2062_v48 }
 0x24f   :  { %1036 = vmatprep.subr.mxu0 %v2035_v37  ;;  %1107 = vmatprep.subr.mxu1 %v2068_v50 }
 0x250   :  { %1037 = vmatpush1.msra.mxu0 %v2041_v39  ;;  %1108 = vmatpush1.msra.mxu1 %v2074_v52 }
 0x251   :  { %1038 = vmatprep.subr.mxu0 %v2047_v43  ;;  %1109 = vmatprep.subr.mxu1 %v2080_v54 }
 0x252   :  { %1039 = vmatpush1.msra.mxu0 %v2053_v45  ;;  %1110 = vmatpush1.msra.mxu1 %v2086_v56 }
 0x253   :  { %1040 = vmatprep.subr.mxu0 %v2059_v47  ;;  %1111 = vmatprep.subr.mxu1 %v2092_v58 }
 0x254   :  { %1041 = vmatpush1.msra.mxu0 %v2065_v49  ;;  %1112 = vmatpush1.msra.mxu1 %v2722_v60 }
 0x255   :  { %1042 = vmatprep.subr.mxu0 %v2723_v6  ;;  %1113 = vmatprep.subr.mxu1 %v2724_v55 }
 0x256   :  { %1043 = vmatpush1.msra.mxu0 %v2725_v59  ;;  %1114 = vmatpush1.msra.mxu1 %v2726_v51  ;;  %v2737_v51 = vld [vmem:[#allocation24_spill] sm:$0xff] }
 0x257   :  { %1044 = vmatprep.subr.mxu0 %v2727_v0  ;;  %1115 = vmatprep.subr.mxu1 %v2728_v63  ;;  %v2738_v0 = vld [vmem:[#allocation32_spill] sm:$0xff]  ;;  %v2739_v63 = vld [vmem:[#allocation26_spill] sm:$0xff] }
 0x258   :  { %1045 = vmatpush1.msra.mxu0 %v2729_v10  ;;  %1116 = vmatpush1.msra.mxu1 %v2730_v22  ;;  %v2740_v10 = vld [vmem:[#allocation33_spill] sm:$0xff]  ;;  %v2741_v22 = vld [vmem:[#allocation28_spill] sm:$0xff] }
 0x259   :  { %1046 = vmatprep.subr.mxu0 %v2731_v57  ;;  %1117 = vmatprep.subr.mxu1 %v2732_v53  ;;  %v2742_v57 = vmov 0.0   ;;  %v2743_v53 = vld [vmem:[#allocation34_spill] sm:$0xff] }
 0x25a   :  { %1047 = vmatpush1.msra.mxu0 %v2733_v62  ;;  %1118 = vmatpush1.msra.mxu1 %v2734_v40  ;;  %v2744_v40 = vld [vmem:[#allocation10_spill] sm:$0xff] }
 0x25b   :  { %1048 = vmatprep.subr.mxu0 %v2735_v8  ;;  %1119 = vmatprep.subr.mxu1 %v2736_v3  ;;  %v2745_v8 = vld [vmem:[#allocation11_spill] sm:$0xff] }
 0x25c   :  { %1049 = vmatpush1.msra.mxu0 %v2737_v51  ;;  %1120 = vmatpush1.msra.mxu1 %v2738_v0  ;;  %v791_v3 = vld [vmem:[#allocation2 + $0x8] sm:$0xff]  ;;  %v793_v51 = vld [vmem:[#allocation2 + $0x10] sm:$0xff] }
 0x25d   :  { %1050 = vmatprep.subr.mxu0 %v2739_v63  ;;  %1121 = vmatprep.subr.mxu1 %v2740_v10  ;;  %v2370_v0 = vrot.slane %v791_v3, %v2704_v17  ;;  %v2373_v63 = vrot.slane %v793_v51, %v2704_v17  ;;  %v795_v62 = vcombine.high %v791_v3, %v791_v3 }
 0x25e   :  { %1051 = vmatpush1.msra.mxu0 %v2741_v22  ;;  %1084 = vmatprep.mubr.f32.mxu0 %v2742_v57  ;;  %v817_v59 = vcombine.high %v793_v51, %v793_v51 }
 0x25f   :  { %1122 = vmatpush1.msra.mxu1 %v2743_v53  ;;  %1155 = vmatprep.mubr.f32.mxu1 %v2742_v57  ;;  %2746 = vst [vmem:[#allocation10_spill] sm:$0xff] %v2373_v63  ;;  %v2377_v22 = vcombine.high %v2370_v0, %v2370_v0  ;;  %v2381_v53 = vcombine.high %v2373_v63, %v2373_v63 }
 0x260   :  { %1198 = vmatprep.subr.mxu0 %v2744_v40  ;;  %1269 = vmatprep.subr.mxu1 %v2745_v8  ;;  %v838_v40 = vsel %vm550_vm1, %v2370_v0, %v2373_v63  ;;  %v2392_v49 = vrot.slane %v795_v62, %v2704_v17  ;;  %v2395_v58 = vrot.slane %v817_v59, %v2704_v17 }
 0x261   :  { %v839_v57 = vsel %vm2252_vm3, %v2377_v22, %v2381_v53 }
 0x262   :  { %2747 = vst [vmem:[#allocation11_spill] sm:$0xff] %v2392_v49  ;;  %2748 = vst [vmem:[#allocation47_spill] sm:$0xff] %v2395_v58  ;;  %v840_v1 = vsel %vm2269_vm4, %v2392_v49, %v2395_v58  ;;  %v2403_v51 = vcombine.high %v2392_v49, %v2392_v49  ;;  %v1582_v49 = vmov 2  }
 0x263   :  { %v1012_v61 = vsel %vm550_vm1, 1, %v1582_v49 }
 0x264   :  { %vm1013_vm7 = vcmp.lt.s32.totalorder %v1012_v61, %v2233_v41 }
 0x2ff   :  { %v908_v8 = vpop.f32.mrf.mxu0 }
 0x300   :  { %v984_v10 = vadd.f32 %v908_v8, %v838_v40  ;;  %v979_v40 = vpop.f32.mrf.mxu1 }
 0x301   :  { %v910_v55 = vpop.f32.mrf.mxu0 }
 0x302   :  { %v1401_v6 = vmul.f32 -1.442695, %v984_v10  ;;  %v985_v60 = vadd.f32 %v910_v55, %v839_v57  ;;  %v986_v55 = vadd.f32 %v979_v40, %v840_v1 }
 0x304   :  { %1452 = vpow2.f32 %v1401_v6  ;;  %v1402_v63 = vmul.f32 -1.442695, %v985_v60  ;;  %v2407_v6 = vcombine.high %v2395_v58, %v2395_v58  ;;  %v981_v60 = vpop.f32.mrf.mxu1  ;;  %v1403_v59 = vmul.f32 -1.442695, %v986_v55 }
 0x306   :  { %1454 = vpow2.f32 %v1402_v63  ;;  %2749 = vst [vmem:[#allocation48_spill] sm:$0xff] %v2407_v6  ;;  %v841_v17 = vsel %vm2288_vm5, %v2403_v51, %v2407_v6 }
 0x307   :  { %v987_v10 = vadd.f32 %v981_v60, %v841_v17  ;;  %1456 = vpow2.f32 %v1403_v59 }
 0x311   :  { %v1453_v63 = vpop.eup %1452 }
 0x312   :  { %v997_v57 = vadd.f32 1.0, %v1453_v63 }
 0x313   :  { %v1455_v62 = vpop.eup %1454 }
 0x314   :  { %1458 = vrcp.f32 %v997_v57  ;;  %v998_v3 = vadd.f32 1.0, %v1455_v62  ;;  %v1457_v8 = vpop.eup %1456 }
 0x315   :  { %1460 = vtanh.f32 %v987_v10  ;;  %v999_v40 = vadd.f32 1.0, %v1457_v8 }
 0x316   :  { %1462 = vrcp.f32 %v998_v3 }
 0x317   :  { %1464 = vrcp.f32 %v999_v40 }
 0x321   :  { %v1459_v12 = vpop.eup %1458 }
 0x322   :  { %v1461_v58 = vpop.eup %1460 }
 0x323   :  { %v1463_v1 = vpop.eup %1462  ;;  %v1008_v6 = vmul.f32 %v1461_v58, %v1459_v12  ;;  %v2753_v12 = vld [vmem:[#allocation13_spill] sm:$0xff] }
 0x324   :  { %v1007_v55 = vmul.f32 %v1463_v1, %v2299_v9  ;;  %v1465_v59 = vpop.eup %1464 }
 0x326   :  { %v1009_v17 = vadd.f32 %v1008_v6, %v1007_v55 }
 0x328   :  { %1466 = vtanh.f32 %v1009_v17  ;;  %v2418_v60 = vsel %vm1013_vm7, %v1009_v17, %v2299_v9  ;;  %v1583_v17 = vmov 1  }
 0x335   :  { %v1467_v63 = vpop.eup %1466 }
 0x336   :  { %v1011_v10 = vmul.f32 %v1467_v63, %v1465_v59 }
 0x338   :  { %v2421_v57 = vsel %vm1013_vm7, %v1011_v10, %v2301_v14 }
 0x339   :  { %1085 = vmatmul.mubr.f32.vlgmr.msra.gmra.mxu0 %v2421_v57  ;;  %1156 = vmatmul.mubr.f32.vlgmr.msra.gmra.mxu1 %v2421_v57 }
 0x33a   :  { %1199 = vmatpush1.msra.mxu0 %v1958_v4  ;;  %1270 = vmatpush1.msra.mxu1 %v1986_v19  ;;  %v2750_v4 = vld [vmem:[#allocation17_spill] sm:$0xff]  ;;  %v2759_v19 = vld [vmem:[#allocation16_spill] sm:$0xff] }
 0x33b   :  { %1200 = vmatprep.subr.mxu0 %v1960_v5  ;;  %1271 = vmatprep.subr.mxu1 %v1992_v21  ;;  %v2751_v5 = vld [vmem:[#allocation12_spill] sm:$0xff]  ;;  %v2761_v21 = vld [vmem:[#allocation18_spill] sm:$0xff] }
 0x33c   :  { %1201 = vmatpush1.msra.mxu0 %v1963_v11  ;;  %1272 = vmatpush1.msra.mxu1 %v1994_v23  ;;  %v2752_v11 = vld [vmem:[#allocation19_spill] sm:$0xff]  ;;  %v2762_v23 = vld [vmem:[#allocation29_spill] sm:$0xff] }
 0x33d   :  { %1202 = vmatprep.subr.mxu0 %v1967_v13  ;;  %1273 = vmatprep.subr.mxu1 %v2000_v25  ;;  %v2754_v13 = vld [vmem:[#allocation21_spill] sm:$0xff]  ;;  %v2764_v25 = vld [vmem:[#allocation30_spill] sm:$0xff] }
 0x33e   :  { %1203 = vmatpush1.msra.mxu0 %v1971_v2  ;;  %1274 = vmatpush1.msra.mxu1 %v2006_v27  ;;  %v2755_v2 = vld [vmem:[#allocation14_spill] sm:$0xff]  ;;  %v2766_v27 = vld [vmem:[#allocation31_spill] sm:$0xff] }
 0x33f   :  { %1204 = vmatprep.subr.mxu0 %v1975_v15  ;;  %1275 = vmatprep.subr.mxu1 %v2008_v28  ;;  %v2756_v15 = vld [vmem:[#allocation23_spill] sm:$0xff]  ;;  %v2767_v28 = vld [vmem:[#allocation24_spill] sm:$0xff] }
 0x340   :  { %1205 = vmatpush1.msra.mxu0 %v1978_v16  ;;  %1276 = vmatpush1.msra.mxu1 %v2014_v30  ;;  %v2757_v16 = vld [vmem:[#allocation15_spill] sm:$0xff]  ;;  %v2769_v30 = vld [vmem:[#allocation26_spill] sm:$0xff] }
 0x341   :  { %1206 = vmatprep.subr.mxu0 %v1983_v18  ;;  %1277 = vmatprep.subr.mxu1 %v2020_v32  ;;  %v2758_v18 = vld [vmem:[#allocation25_spill] sm:$0xff]  ;;  %v2771_v32 = vld [vmem:[#allocation28_spill] sm:$0xff] }
 0x342   :  { %1207 = vmatpush1.msra.mxu0 %v1989_v20  ;;  %1278 = vmatpush1.msra.mxu1 %v2026_v34  ;;  %v2760_v20 = vld [vmem:[#allocation27_spill] sm:$0xff]  ;;  %v2773_v34 = vld [vmem:[#allocation34_spill] sm:$0xff] }
 0x343   :  { %1208 = vmatprep.subr.mxu0 %v1997_v24  ;;  %1279 = vmatprep.subr.mxu1 %v2032_v36  ;;  %v2763_v24 = vld [vmem:[#allocation20_spill] sm:$0xff] }
 0x344   :  { %1209 = vmatpush1.msra.mxu0 %v2003_v26  ;;  %1280 = vmatpush1.msra.mxu1 %v2038_v38  ;;  %v2765_v26 = vld [vmem:[#allocation22_spill] sm:$0xff] }
 0x345   :  { %1210 = vmatprep.subr.mxu0 %v2011_v29  ;;  %1281 = vmatprep.subr.mxu1 %v2044_v42  ;;  %v2768_v29 = vld [vmem:[#allocation32_spill] sm:$0xff] }
 0x346   :  { %1211 = vmatpush1.msra.mxu0 %v2017_v31  ;;  %1282 = vmatpush1.msra.mxu1 %v2050_v44  ;;  %v2770_v31 = vld [vmem:[#allocation33_spill] sm:$0xff] }
 0x347   :  { %1212 = vmatprep.subr.mxu0 %v2023_v33  ;;  %1283 = vmatprep.subr.mxu1 %v2056_v46  ;;  %v2772_v33 = vmov 0.0  }
 0x348   :  { %1213 = vmatpush1.msra.mxu0 %v2029_v35  ;;  %1284 = vmatpush1.msra.mxu1 %v2062_v48  ;;  %v2774_v35 = vld [vmem:[#allocation10_spill] sm:$0xff]  ;;  %v2777_v48 = vld [vmem:[#allocation47_spill] sm:$0xff] }
 0x349   :  { %1214 = vmatprep.subr.mxu0 %v2035_v37  ;;  %1285 = vmatprep.subr.mxu1 %v2068_v50  ;;  %v1016_v36 = vsel %vm550_vm1, %v2774_v35, %v2370_v0 }
 0x34a   :  { %1215 = vmatpush1.msra.mxu0 %v2041_v39  ;;  %1286 = vmatpush1.msra.mxu1 %v2074_v52  ;;  %v1017_v39 = vsel %vm2252_vm3, %v2381_v53, %v2377_v22 }
 0x34b   :  { %1216 = vmatprep.subr.mxu0 %v2047_v43  ;;  %1287 = vmatprep.subr.mxu1 %v2080_v54 }
 0x34c   :  { %1217 = vmatpush1.msra.mxu0 %v2053_v45  ;;  %1288 = vmatpush1.msra.mxu1 %v2086_v56  ;;  %v2779_v56 = vld [vmem:[#allocation48_spill] sm:$0xff] }
 0x34d   :  { %1218 = vmatprep.subr.mxu0 %v2059_v47  ;;  %1289 = vmatprep.subr.mxu1 %v2750_v4  ;;  %v2776_v47 = vld [vmem:[#allocation11_spill] sm:$0xff]  ;;  %v1019_v61 = vsel %vm2288_vm5, %v2779_v56, %v2403_v51  ;;  %v1190_v51 = vsel %vm550_vm1, 2, %v1583_v17 }
 0x34e   :  { %1219 = vmatpush1.msra.mxu0 %v2751_v5  ;;  %1290 = vmatpush1.msra.mxu1 %v2752_v11  ;;  %v1018_v50 = vsel %vm2269_vm4, %v2777_v48, %v2776_v47  ;;  %vm1191_vm8 = vcmp.lt.s32.totalorder %v1190_v51, %v2233_v41 }
 0x34f   :  { %1220 = vmatprep.subr.mxu0 %v2753_v12  ;;  %1291 = vmatprep.subr.mxu1 %v2754_v13 }
 0x350   :  { %1221 = vmatpush1.msra.mxu0 %v2755_v2  ;;  %1292 = vmatpush1.msra.mxu1 %v2756_v15  ;;  %v2781_v2 = vld [vmem:[#allocation36_spill] sm:$0xff]  ;;  %v2782_v15 = vld [vmem:[#allocation37_spill] sm:$0xff] }
 0x351   :  { %1222 = vmatprep.subr.mxu0 %v2757_v16  ;;  %1293 = vmatprep.subr.mxu1 %v2758_v18  ;;  %v1194_v16 = vsel %vm550_vm1, %v2782_v15, %v2781_v2 }
 0x352   :  { %1223 = vmatpush1.msra.mxu0 %v2759_v19  ;;  %1294 = vmatpush1.msra.mxu1 %v2760_v20  ;;  %v2783_v19 = vld [vmem:[#allocation38_spill] sm:$0xff]  ;;  %v2784_v20 = vld [vmem:[#allocation39_spill] sm:$0xff] }
 0x353   :  { %1224 = vmatprep.subr.mxu0 %v2761_v21  ;;  %1295 = vmatprep.subr.mxu1 %v2762_v23  ;;  %v1195_v21 = vsel %vm2252_vm3, %v2784_v20, %v2783_v19 }
 0x354   :  { %1225 = vmatpush1.msra.mxu0 %v2763_v24  ;;  %1296 = vmatpush1.msra.mxu1 %v2764_v25 }
 0x355   :  { %1226 = vmatprep.subr.mxu0 %v2765_v26  ;;  %1297 = vmatprep.subr.mxu1 %v2766_v27  ;;  %v2786_v27 = vld [vmem:[#allocation43_spill] sm:$0xff] }
 0x356   :  { %1227 = vmatpush1.msra.mxu0 %v2767_v28  ;;  %1298 = vmatpush1.msra.mxu1 %v2768_v29 }
 0x357   :  { %1228 = vmatprep.subr.mxu0 %v2769_v30  ;;  %1299 = vmatprep.subr.mxu1 %v2770_v31  ;;  %v2787_v30 = vld [vmem:[#allocation44_spill] sm:$0xff]  ;;  %v2788_v31 = vld [vmem:[#allocation45_spill] sm:$0xff] }
 0x358   :  { %1229 = vmatpush1.msra.mxu0 %v2771_v32  ;;  %1262 = vmatprep.mubr.f32.mxu0 %v2772_v33  ;;  %v1197_v32 = vsel %vm2288_vm5, %v2788_v31, %v2787_v30 }
 0x359   :  { %1300 = vmatpush1.msra.mxu1 %v2773_v34  ;;  %1333 = vmatprep.mubr.f32.mxu1 %v2772_v33 }
 0x3f9   :  { %v1086_v37 = vpop.f32.mrf.mxu0  ;;  %v1157_v52 = vpop.f32.mrf.mxu1 }
 0x3fa   :  { %v1162_v42 = vadd.f32 %v1086_v37, %v1016_v36  ;;  %v1164_v54 = vadd.f32 %v1157_v52, %v1018_v50 }
 0x3fb   :  { %v1088_v43 = vpop.f32.mrf.mxu0  ;;  %v1159_v9 = vpop.f32.mrf.mxu1 }
 0x3fc   :  { %v1404_v44 = vmul.f32 -1.442695, %v1162_v42  ;;  %v1163_v45 = vadd.f32 %v1088_v43, %v1017_v39  ;;  %v1406_v14 = vmul.f32 -1.442695, %v1164_v54  ;;  %v1165_v22 = vadd.f32 %v1159_v9, %v1019_v61 }
 0x3fe   :  { %1468 = vpow2.f32 %v1404_v44  ;;  %v1405_v46 = vmul.f32 -1.442695, %v1163_v45 }
 0x400   :  { %1470 = vpow2.f32 %v1405_v46 }
 0x401   :  { %1472 = vpow2.f32 %v1406_v14 }
 0x40b   :  { %v1469_v0 = vpop.eup %1468 }
 0x40c   :  { %v1175_v53 = vadd.f32 1.0, %v1469_v0 }
 0x40d   :  { %v1471_v6 = vpop.eup %1470 }
 0x40e   :  { %1474 = vrcp.f32 %v1175_v53  ;;  %v1176_v62 = vadd.f32 1.0, %v1471_v6  ;;  %v1473_v3 = vpop.eup %1472 }
 0x40f   :  { %1476 = vtanh.f32 %v1165_v22  ;;  %v1177_v55 = vadd.f32 1.0, %v1473_v3 }
 0x410   :  { %1478 = vrcp.f32 %v1176_v62 }
 0x411   :  { %1480 = vrcp.f32 %v1177_v55 }
 0x41b   :  { %v1475_v8 = vpop.eup %1474 }
 0x41c   :  { %v1477_v1 = vpop.eup %1476 }
 0x41d   :  { %v1479_v40 = vpop.eup %1478  ;;  %v1186_v63 = vmul.f32 %v1477_v1, %v1475_v8 }
 0x41e   :  { %v1185_v59 = vmul.f32 %v1479_v40, %v2418_v60  ;;  %v1481_v5 = vpop.eup %1480 }
 0x420   :  { %v1187_v10 = vadd.f32 %v1186_v63, %v1185_v59 }
 0x422   :  { %1482 = vtanh.f32 %v1187_v10  ;;  %v1193_v4 = vsel %vm1191_vm8, %v1187_v10, %v2418_v60 }
 0x42f   :  { %v1483_v11 = vpop.eup %1482 }
 0x430   :  { %v1189_v12 = vmul.f32 %v1483_v11, %v1481_v5 }
 0x432   :  { %v1192_v13 = vsel %vm1191_vm8, %v1189_v12, %v2421_v57  ;;  %v2785_v57 = vld [vmem:[#allocation41_spill] sm:$0xff] }
 0x433   :  { %1263 = vmatmul.mubr.f32.vlgmr.msra.gmra.mxu0 %v1192_v13  ;;  %1334 = vmatmul.mubr.f32.vlgmr.msra.gmra.mxu1 %v1192_v13  ;;  %v1196_v28 = vsel %vm2269_vm4, %v2786_v27, %v2785_v57 }
 0x4f3   :  { %v1264_v18 = vpop.f32.mrf.mxu0  ;;  %v1335_v7 = vpop.f32.mrf.mxu1 }
 0x4f4   :  { %v1340_v23 = vadd.f32 %v1264_v18, %v1194_v16  ;;  %v1342_v29 = vadd.f32 %v1335_v7, %v1196_v28 }
 0x4f5   :  { %v1266_v60 = vpop.f32.mrf.mxu0  ;;  %v1337_v33 = vpop.f32.mrf.mxu1 }
 0x4f6   :  { %v1407_v24 = vmul.f32 -1.442695, %v1340_v23  ;;  %v1341_v25 = vadd.f32 %v1266_v60, %v1195_v21  ;;  %v1409_v34 = vmul.f32 -1.442695, %v1342_v29  ;;  %v1343_v36 = vadd.f32 %v1337_v33, %v1197_v32 }
 0x4f8   :  { %1484 = vpow2.f32 %v1407_v24  ;;  %v1408_v26 = vmul.f32 -1.442695, %v1341_v25 }
 0x4fa   :  { %1486 = vpow2.f32 %v1408_v26 }
 0x4fb   :  { %1488 = vpow2.f32 %v1409_v34 }
 0x505   :  { %v1485_v35 = vpop.eup %1484 }
 0x506   :  { %v1353_v37 = vadd.f32 1.0, %v1485_v35 }
 0x507   :  { %v1487_v38 = vpop.eup %1486 }
 0x508   :  { %1490 = vrcp.f32 %v1353_v37  ;;  %v1354_v39 = vadd.f32 1.0, %v1487_v38  ;;  %v1489_v42 = vpop.eup %1488 }
 0x509   :  { %1492 = vtanh.f32 %v1343_v36  ;;  %v1355_v46 = vadd.f32 1.0, %v1489_v42 }
 0x50a   :  { %1494 = vrcp.f32 %v1354_v39 }
 0x50b   :  { %1496 = vrcp.f32 %v1355_v46 }
 0x515   :  { %v1491_v43 = vpop.eup %1490 }
 0x516   :  { %v1493_v44 = vpop.eup %1492 }
 0x517   :  { %v1495_v45 = vpop.eup %1494  ;;  %v1364_v48 = vmul.f32 %v1493_v44, %v1491_v43 }
 0x518   :  { %v1363_v47 = vmul.f32 %v1495_v45, %v1193_v4  ;;  %v1497_v50 = vpop.eup %1496 }
 0x51a   :  { %v1365_v49 = vadd.f32 %v1364_v48, %v1363_v47 }
 0x51c   :  { %1498 = vtanh.f32 %v1365_v49 }
 0x529   :  { %v1499_v52 = vpop.eup %1498 }
 0x52a   :  { %v1367_v54 = vmul.f32 %v1499_v52, %v1497_v50 }
 0x52c   :  { %v1370_v58 = vsel %vm1369_vm2, %v1367_v54, %v1192_v13 }
 0x52d   :  { %1371 = vst [vmem:[%s2540_s7] sm:$0x3] %v1370_v58 }
 0x52e   :  { %1376 = vsyncpa [#allocation4], 1 }
 0x52f   :  { %1377 = vsyncpa [#allocation6], 1 }

// kernel: tl_deep_forward.7
= control target key start
LH: loop header
LB: loop body
LE: loop exit
PB: predicated region body
PF: predicated region fallthrough
CT: control target
= control target key end

     0   :  { %15 = vsyncpa [#allocation4], 0  ;;  %s2985_s0 = inlined_call_operand.vmem [shape: f32[2,64,1024], index: 0, kind: input, shape index: {}]   ;;  %s2986_s1 = inlined_call_operand.vmem [shape: f32[2,1], index: 1, kind: input, shape index: {}]   ;;  %s2987_s2 = inlined_call_operand.vmem [shape: f32[2,128], index: 2, kind: input, shape index: {}]   ;;  %s2988_s3 = inlined_call_operand.hbm [shape: f32[128,256], index: 3, kind: input, shape index: {}]   ;;  %s2989_s4 = inlined_call_operand.vmem [shape: f32[1024,256], index: 4, kind: input, shape index: {}]   ;;  %s2990_s5 = inlined_call_operand.vmem [shape: f32[1,256], index: 5, kind: input, shape index: {}]   ;;  %s2991_s6 = inlined_call_operand.vmem [shape: f32[256,64], index: 6, kind: input, shape index: {}]   ;;  %s2992_s7 = inlined_call_operand.vmem [shape: f32[1,64], index: 7, kind: input, shape index: {}]   ;;  %s2993_s8 = inlined_call_operand.vmem [shape: f32[64,2], index: 8, kind: input, shape index: {}]   ;;  %s2994_s9 = inlined_call_operand.vmem [shape: f32[1,2], index: 9, kind: input, shape index: {}]   ;;  %s2995_s10 = inlined_call_operand.hbm [shape: f32[2,2], index: 10, kind: output, shape index: {}]  }
   0x1   :  { %16 = vsyncpa [#allocation5], 0  ;;  %s1564_s13 = smov [#allocation3]  }
   0x2   :  { %s28_s14 = sshll.u32 %s1564_s13, 4  ;;  %s29_s14 = int_to_ptr.vmem [resolvable:$true] %s28_s14 }
   0x3   :  { %s1528_s15 = scalar_lea.vmem %s29_s14, 4096  ;;  %p1533_p1 = scmp.lt.s32.totalorder %s29_s14, %s29_s14 }
   0x4   :  { %p1529_p0 = scmp.ne.s32.totalorder %s29_s14, %s1528_s15  ;;  %p1534_p2 = scmp.lt.s32.totalorder %s1528_s15, %s1528_s15 }
   0x6   :  { %p1535_p3 = por %p1534_p2, %p1533_p1 }
   0x8   :  { %p1536_p4 = pnand %p1535_p3, %p1529_p0 }
   0xa   :  { %1539 = shalt.err (!%p1536_p4)
}
   0xb   :  { %s1565_s16 = smov 256   ;;  %s1566_s17 = smov 16  }
   0xc   :  { %34 = dma.hbm_to_vmem [thread:$0]  %s2988_s3, 4096, %s29_s14, [#allocation4], %s1565_s16, %s1565_s16, %s1566_s17  }
   0xd   :  { %1560 = dma.done.wait [#allocation4], 4096  }
   0xe   :  { %1561 = vsyncadd [#allocation4], 4294963200  ;;  %v1567_v0 = vmov 0   ;;  %v509_v1 = vld [vmem:[%s2986_s1] sm:$0x3]  ;;  %v589_v2 = vld [vmem:[%s2989_s4 + $0xf8] sm:$0xff] }
   0xf   :  { %1517 = vset.pattern.permute.xlu0 %v1567_v0  ;;  %v588_v3 = vld [vmem:[%s2989_s4 + $0xf0] sm:$0xff]  ;;  %858 = vmatprep.subr.mxu0 %v589_v2  ;;  %v587_v4 = vld [vmem:[%s2989_s4 + $0xe8] sm:$0xff]  ;;  %v653_v5 = vld [vmem:[%s2989_s4 + $0x2f8] sm:$0xff]  ;;  %vm483_vm0 = vcmask 1041409   ;;  %vm485_vm1 = vcmask 1043459   ;;  %vm487_vm2 = vcmask 1045509  }
  0x10   :  { %512 = vperm.xlu0 %1517, %v509_v1   ;;  %v586_v6 = vld [vmem:[%s2989_s4 + $0xe0] sm:$0xff]  ;;  %859 = vmatpush1.msra.mxu0 %v588_v3  ;;  %v652_v7 = vld [vmem:[%s2989_s4 + $0x2f0] sm:$0xff]  ;;  %v585_v8 = vld [vmem:[%s2989_s4 + $0xd8] sm:$0xff]  ;;  %vm489_vm3 = vcmask 1047559   ;;  %vm1571_vm4 = vmmov 0   ;;  %vm1351_vm5 = vcmask 523264  }
  0x11   :  { %929 = vmatprep.subr.mxu1 %v653_v5  ;;  %v651_v9 = vld [vmem:[%s2989_s4 + $0x2e8] sm:$0xff]  ;;  %860 = vmatprep.subr.mxu0 %v587_v4  ;;  %v584_v10 = vld [vmem:[%s2989_s4 + $0xd0] sm:$0xff]  ;;  %v650_v11 = vld [vmem:[%s2989_s4 + $0x2e0] sm:$0xff]  ;;  %s1572_s17 = smov [#allocation6]   ;;  %vm1425_vm6 = vcmask 9216  }
  0x12   :  { %930 = vmatpush1.msra.mxu1 %v652_v7  ;;  %861 = vmatpush1.msra.mxu0 %v586_v6  ;;  %v583_v12 = vld [vmem:[%s2989_s4 + $0xc8] sm:$0xff]  ;;  %v649_v13 = vld [vmem:[%s2989_s4 + $0x2d8] sm:$0xff]  ;;  %v648_v14 = vld [vmem:[%s2989_s4 + $0x2d0] sm:$0xff] }
  0x13   :  { %931 = vmatprep.subr.mxu1 %v651_v9  ;;  %862 = vmatprep.subr.mxu0 %v585_v8  ;;  %v582_v15 = vld [vmem:[%s2989_s4 + $0xc0] sm:$0xff]  ;;  %v647_v16 = vld [vmem:[%s2989_s4 + $0x2c8] sm:$0xff]  ;;  %v581_v17 = vld [vmem:[%s2989_s4 + $0xb8] sm:$0xff] }
  0x14   :  { %932 = vmatpush1.msra.mxu1 %v650_v11  ;;  %863 = vmatpush1.msra.mxu0 %v584_v10  ;;  %v646_v18 = vld [vmem:[%s2989_s4 + $0x2c0] sm:$0xff]  ;;  %v580_v19 = vld [vmem:[%s2989_s4 + $0xb0] sm:$0xff]  ;;  %v645_v20 = vld [vmem:[%s2989_s4 + $0x2b8] sm:$0xff] }
  0x15   :  { %933 = vmatprep.subr.mxu1 %v649_v13  ;;  %864 = vmatprep.subr.mxu0 %v583_v12  ;;  %v579_v21 = vld [vmem:[%s2989_s4 + $0xa8] sm:$0xff]  ;;  %v644_v22 = vld [vmem:[%s2989_s4 + $0x2b0] sm:$0xff]  ;;  %v578_v23 = vld [vmem:[%s2989_s4 + $0xa0] sm:$0xff] }
  0x16   :  { %934 = vmatpush1.msra.mxu1 %v648_v14  ;;  %865 = vmatpush1.msra.mxu0 %v582_v15  ;;  %v643_v24 = vld [vmem:[%s2989_s4 + $0x2a8] sm:$0xff]  ;;  %v577_v25 = vld [vmem:[%s2989_s4 + $0x98] sm:$0xff]  ;;  %v642_v26 = vld [vmem:[%s2989_s4 + $0x2a0] sm:$0xff] }
  0x17   :  { %935 = vmatprep.subr.mxu1 %v647_v16  ;;  %866 = vmatprep.subr.mxu0 %v581_v17  ;;  %v576_v27 = vld [vmem:[%s2989_s4 + $0x90] sm:$0xff]  ;;  %v641_v28 = vld [vmem:[%s2989_s4 + $0x298] sm:$0xff]  ;;  %v575_v29 = vld [vmem:[%s2989_s4 + $0x88] sm:$0xff] }
  0x18   :  { %936 = vmatpush1.msra.mxu1 %v646_v18  ;;  %867 = vmatpush1.msra.mxu0 %v580_v19  ;;  %v640_v30 = vld [vmem:[%s2989_s4 + $0x290] sm:$0xff]  ;;  %v574_v31 = vld [vmem:[%s2989_s4 + $0x80] sm:$0xff]  ;;  %v639_v32 = vld [vmem:[%s2989_s4 + $0x288] sm:$0xff] }
  0x19   :  { %937 = vmatprep.subr.mxu1 %v645_v20  ;;  %868 = vmatprep.subr.mxu0 %v579_v21  ;;  %v573_v33 = vld [vmem:[%s2989_s4 + $0x78] sm:$0xff]  ;;  %v638_v34 = vld [vmem:[%s2989_s4 + $0x280] sm:$0xff]  ;;  %v572_v35 = vld [vmem:[%s2989_s4 + $0x70] sm:$0xff] }
  0x1a   :  { %938 = vmatpush1.msra.mxu1 %v644_v22  ;;  %869 = vmatpush1.msra.mxu0 %v578_v23  ;;  %v637_v36 = vld [vmem:[%s2989_s4 + $0x278] sm:$0xff]  ;;  %v571_v37 = vld [vmem:[%s2989_s4 + $0x68] sm:$0xff]  ;;  %v636_v38 = vld [vmem:[%s2989_s4 + $0x270] sm:$0xff] }
  0x1b   :  { %939 = vmatprep.subr.mxu1 %v643_v24  ;;  %870 = vmatprep.subr.mxu0 %v577_v25  ;;  %v570_v39 = vld [vmem:[%s2989_s4 + $0x60] sm:$0xff]  ;;  %v635_v40 = vld [vmem:[%s2989_s4 + $0x268] sm:$0xff]  ;;  %v569_v41 = vld [vmem:[%s2989_s4 + $0x58] sm:$0xff] }
  0x1c   :  { %940 = vmatpush1.msra.mxu1 %v642_v26  ;;  %871 = vmatpush1.msra.mxu0 %v576_v27  ;;  %v634_v42 = vld [vmem:[%s2989_s4 + $0x260] sm:$0xff]  ;;  %v568_v43 = vld [vmem:[%s2989_s4 + $0x50] sm:$0xff]  ;;  %v633_v44 = vld [vmem:[%s2989_s4 + $0x258] sm:$0xff] }
  0x1d   :  { %941 = vmatprep.subr.mxu1 %v641_v28  ;;  %872 = vmatprep.subr.mxu0 %v575_v29  ;;  %v567_v45 = vld [vmem:[%s2989_s4 + $0x48] sm:$0xff]  ;;  %v632_v46 = vld [vmem:[%s2989_s4 + $0x250] sm:$0xff]  ;;  %v566_v47 = vld [vmem:[%s2989_s4 + $0x40] sm:$0xff] }
  0x1e   :  { %942 = vmatpush1.msra.mxu1 %v640_v30  ;;  %873 = vmatpush1.msra.mxu0 %v574_v31  ;;  %v631_v48 = vld [vmem:[%s2989_s4 + $0x248] sm:$0xff]  ;;  %v565_v49 = vld [vmem:[%s2989_s4 + $0x38] sm:$0xff]  ;;  %v630_v50 = vld [vmem:[%s2989_s4 + $0x240] sm:$0xff] }
  0x1f   :  { %943 = vmatprep.subr.mxu1 %v639_v32  ;;  %874 = vmatprep.subr.mxu0 %v573_v33  ;;  %v564_v51 = vld [vmem:[%s2989_s4 + $0x30] sm:$0xff]  ;;  %v629_v52 = vld [vmem:[%s2989_s4 + $0x238] sm:$0xff]  ;;  %v563_v53 = vld [vmem:[%s2989_s4 + $0x28] sm:$0xff] }
  0x20   :  { %944 = vmatpush1.msra.mxu1 %v638_v34  ;;  %875 = vmatpush1.msra.mxu0 %v572_v35  ;;  %v628_v54 = vld [vmem:[%s2989_s4 + $0x230] sm:$0xff]  ;;  %v562_v55 = vld [vmem:[%s2989_s4 + $0x20] sm:$0xff]  ;;  %v627_v56 = vld [vmem:[%s2989_s4 + $0x228] sm:$0xff] }
  0x21   :  { %945 = vmatprep.subr.mxu1 %v637_v36  ;;  %876 = vmatprep.subr.mxu0 %v571_v37  ;;  %v561_v57 = vld [vmem:[%s2989_s4 + $0x18] sm:$0xff]  ;;  %v626_v58 = vld [vmem:[%s2989_s4 + $0x220] sm:$0xff]  ;;  %v560_v59 = vld [vmem:[%s2989_s4 + $0x10] sm:$0xff] }
  0x22   :  { %946 = vmatpush1.msra.mxu1 %v636_v38  ;;  %877 = vmatpush1.msra.mxu0 %v570_v39  ;;  %v625_v60 = vld [vmem:[%s2989_s4 + $0x218] sm:$0xff]  ;;  %v559_v61 = vld [vmem:[%s2989_s4 + $0x8] sm:$0xff]  ;;  %v624_v62 = vld [vmem:[%s2989_s4 + $0x210] sm:$0xff] }
  0x23   :  { %947 = vmatprep.subr.mxu1 %v635_v40  ;;  %878 = vmatprep.subr.mxu0 %v569_v41  ;;  %v558_v63 = vld [vmem:[%s2989_s4] sm:$0xff]  ;;  %v623_v0 = vld [vmem:[%s2989_s4 + $0x208] sm:$0xff]  ;;  %v621_v1 = vld [vmem:[%s2989_s4 + $0x1f8] sm:$0xff] }
  0x24   :  { %948 = vmatpush1.msra.mxu1 %v634_v42  ;;  %879 = vmatpush1.msra.mxu0 %v568_v43  ;;  %v622_v2 = vld [vmem:[%s2989_s4 + $0x200] sm:$0xff]  ;;  %v620_v3 = vld [vmem:[%s2989_s4 + $0x1f0] sm:$0xff]  ;;  %v685_v4 = vld [vmem:[%s2989_s4 + $0x3f8] sm:$0xff] }
  0x25   :  { %949 = vmatprep.subr.mxu1 %v633_v44  ;;  %880 = vmatprep.subr.mxu0 %v567_v45  ;;  %v619_v5 = vld [vmem:[%s2989_s4 + $0x1e8] sm:$0xff]  ;;  %v684_v6 = vld [vmem:[%s2989_s4 + $0x3f0] sm:$0xff]  ;;  %v618_v7 = vld [vmem:[%s2989_s4 + $0x1e0] sm:$0xff] }
  0x26   :  { %950 = vmatpush1.msra.mxu1 %v632_v46  ;;  %881 = vmatpush1.msra.mxu0 %v566_v47  ;;  %v683_v8 = vld [vmem:[%s2989_s4 + $0x3e8] sm:$0xff]  ;;  %v617_v9 = vld [vmem:[%s2989_s4 + $0x1d8] sm:$0xff]  ;;  %v682_v10 = vld [vmem:[%s2989_s4 + $0x3e0] sm:$0xff] }
  0x27   :  { %951 = vmatprep.subr.mxu1 %v631_v48  ;;  %882 = vmatprep.subr.mxu0 %v565_v49  ;;  %v616_v11 = vld [vmem:[%s2989_s4 + $0x1d0] sm:$0xff]  ;;  %v681_v12 = vld [vmem:[%s2989_s4 + $0x3d8] sm:$0xff]  ;;  %v615_v13 = vld [vmem:[%s2989_s4 + $0x1c8] sm:$0xff] }
  0x28   :  { %952 = vmatpush1.msra.mxu1 %v630_v50  ;;  %883 = vmatpush1.msra.mxu0 %v564_v51  ;;  %v680_v14 = vld [vmem:[%s2989_s4 + $0x3d0] sm:$0xff]  ;;  %v614_v15 = vld [vmem:[%s2989_s4 + $0x1c0] sm:$0xff]  ;;  %v679_v16 = vld [vmem:[%s2989_s4 + $0x3c8] sm:$0xff] }
  0x29   :  { %953 = vmatprep.subr.mxu1 %v629_v52  ;;  %884 = vmatprep.subr.mxu0 %v563_v53  ;;  %v613_v17 = vld [vmem:[%s2989_s4 + $0x1b8] sm:$0xff]  ;;  %v678_v18 = vld [vmem:[%s2989_s4 + $0x3c0] sm:$0xff]  ;;  %v612_v19 = vld [vmem:[%s2989_s4 + $0x1b0] sm:$0xff] }
  0x2a   :  { %954 = vmatpush1.msra.mxu1 %v628_v54  ;;  %885 = vmatpush1.msra.mxu0 %v562_v55  ;;  %v677_v20 = vld [vmem:[%s2989_s4 + $0x3b8] sm:$0xff]  ;;  %v611_v21 = vld [vmem:[%s2989_s4 + $0x1a8] sm:$0xff]  ;;  %v676_v22 = vld [vmem:[%s2989_s4 + $0x3b0] sm:$0xff] }
  0x2b   :  { %955 = vmatprep.subr.mxu1 %v627_v56  ;;  %886 = vmatprep.subr.mxu0 %v561_v57  ;;  %v610_v23 = vld [vmem:[%s2989_s4 + $0x1a0] sm:$0xff]  ;;  %v675_v24 = vld [vmem:[%s2989_s4 + $0x3a8] sm:$0xff]  ;;  %v609_v25 = vld [vmem:[%s2989_s4 + $0x198] sm:$0xff] }
  0x2c   :  { %956 = vmatpush1.msra.mxu1 %v626_v58  ;;  %887 = vmatpush1.msra.mxu0 %v560_v59  ;;  %v674_v26 = vld [vmem:[%s2989_s4 + $0x3a0] sm:$0xff]  ;;  %v608_v27 = vld [vmem:[%s2989_s4 + $0x190] sm:$0xff]  ;;  %v673_v28 = vld [vmem:[%s2989_s4 + $0x398] sm:$0xff] }
  0x2d   :  { %957 = vmatprep.subr.mxu1 %v625_v60  ;;  %888 = vmatprep.subr.mxu0 %v559_v61  ;;  %v607_v29 = vld [vmem:[%s2989_s4 + $0x188] sm:$0xff]  ;;  %v606_v30 = vld [vmem:[%s2989_s4 + $0x180] sm:$0xff]  ;;  %v672_v31 = vld [vmem:[%s2989_s4 + $0x390] sm:$0xff] }
  0x2e   :  { %958 = vmatpush1.msra.mxu1 %v624_v62  ;;  %889 = vmatpush1.msra.mxu0 %v558_v63  ;;  %v605_v32 = vld [vmem:[%s2989_s4 + $0x178] sm:$0xff]  ;;  %v671_v33 = vld [vmem:[%s2989_s4 + $0x388] sm:$0xff]  ;;  %v604_v34 = vld [vmem:[%s2989_s4 + $0x170] sm:$0xff] }
  0x2f   :  { %959 = vmatprep.subr.mxu1 %v623_v0  ;;  %890 = vmatprep.subr.mxu0 %v621_v1  ;;  %v670_v35 = vld [vmem:[%s2989_s4 + $0x380] sm:$0xff]  ;;  %v603_v36 = vld [vmem:[%s2989_s4 + $0x168] sm:$0xff]  ;;  %v669_v37 = vld [vmem:[%s2989_s4 + $0x378] sm:$0xff] }
  0x30   :  { %960 = vmatpush1.msra.mxu1 %v622_v2  ;;  %891 = vmatpush2.msra.mxu0 %v620_v3  ;;  %v602_v38 = vld [vmem:[%s2989_s4 + $0x160] sm:$0xff]  ;;  %v668_v41 = vld [vmem:[%s2989_s4 + $0x370] sm:$0xff]  ;;  %v601_v42 = vld [vmem:[%s2989_s4 + $0x158] sm:$0xff] }
  0x31   :  { %961 = vmatprep.subr.mxu1 %v685_v4  ;;  %892 = vmatprep.subr.mxu0 %v619_v5  ;;  %v58_v39 = vld [vmem:[%s2985_s0] sm:$0xff]  ;;  %v667_v43 = vld [vmem:[%s2989_s4 + $0x368] sm:$0xff]  ;;  %v600_v44 = vld [vmem:[%s2989_s4 + $0x150] sm:$0xff] }
  0x32   :  { %962 = vmatpush2.msra.mxu1 %v684_v6  ;;  %893 = vmatpush2.msra.mxu0 %v618_v7  ;;  %v66_v40 = vld [vmem:[%s2985_s0 + $0x40] sm:$0xff]  ;;  %v59_v46 = vld [vmem:[%s2985_s0 + $0x8] sm:$0xff]  ;;  %v665_v49 = vld [vmem:[%s2989_s4 + $0x358] sm:$0xff] }
  0x33   :  { %963 = vmatprep.subr.mxu1 %v683_v8  ;;  %894 = vmatprep.subr.mxu0 %v617_v9  ;;  %v666_v45 = vld [vmem:[%s2989_s4 + $0x360] sm:$0xff]  ;;  %v67_v47 = vld [vmem:[%s2985_s0 + $0x48] sm:$0xff]  ;;  %v60_v50 = vld [vmem:[%s2985_s0 + $0x10] sm:$0xff]  ;;  %v186_v52 = vadd.f32 %v66_v40, %v58_v39 }
  0x34   :  { %964 = vmatpush2.msra.mxu1 %v682_v10  ;;  %895 = vmatpush2.msra.mxu0 %v616_v11  ;;  %v599_v48 = vld [vmem:[%s2989_s4 + $0x148] sm:$0xff]  ;;  %v61_v51 = vld [vmem:[%s2985_s0 + $0x18] sm:$0xff]  ;;  %v598_v53 = vld [vmem:[%s2989_s4 + $0x140] sm:$0xff]  ;;  %v199_v60 = vadd.f32 %v67_v47, %v59_v46 }
  0x35   :  { %965 = vmatprep.subr.mxu1 %v681_v12  ;;  %896 = vmatprep.subr.mxu0 %v615_v13  ;;  %v68_v54 = vld [vmem:[%s2985_s0 + $0x50] sm:$0xff]  ;;  %v69_v55 = vld [vmem:[%s2985_s0 + $0x58] sm:$0xff]  ;;  %v74_v56 = vld [vmem:[%s2985_s0 + $0x80] sm:$0xff] }
  0x36   :  { %966 = vmatpush2.msra.mxu1 %v680_v14  ;;  %897 = vmatpush2.msra.mxu0 %v614_v15  ;;  %v664_v57 = vld [vmem:[%s2989_s4 + $0x350] sm:$0xff]  ;;  %v597_v58 = vld [vmem:[%s2989_s4 + $0x138] sm:$0xff]  ;;  %v663_v59 = vld [vmem:[%s2989_s4 + $0x348] sm:$0xff]  ;;  %v187_v6 = vadd.f32 %v186_v52, %v74_v56  ;;  %v212_v7 = vadd.f32 %v68_v54, %v60_v50  ;;  %v225_v8 = vadd.f32 %v69_v55, %v61_v51 }
  0x37   :  { %967 = vmatprep.subr.mxu1 %v679_v16  ;;  %898 = vmatprep.subr.mxu0 %v613_v17  ;;  %v596_v61 = vld [vmem:[%s2989_s4 + $0x130] sm:$0xff]  ;;  %v662_v62 = vld [vmem:[%s2989_s4 + $0x340] sm:$0xff]  ;;  %v661_v63 = vld [vmem:[%s2989_s4 + $0x338] sm:$0xff] }
  0x38   :  { %968 = vmatpush2.msra.mxu1 %v678_v18  ;;  %899 = vmatpush2.msra.mxu0 %v612_v19  ;;  %v75_v0 = vld [vmem:[%s2985_s0 + $0x88] sm:$0xff]  ;;  %v660_v2 = vld [vmem:[%s2989_s4 + $0x330] sm:$0xff]  ;;  %v77_v4 = vld [vmem:[%s2985_s0 + $0x98] sm:$0xff] }
  0x39   :  { %969 = vmatprep.subr.mxu1 %v677_v20  ;;  %900 = vmatprep.subr.mxu0 %v611_v21  ;;  %v595_v1 = vld [vmem:[%s2989_s4 + $0x128] sm:$0xff]  ;;  %v76_v3 = vld [vmem:[%s2985_s0 + $0x90] sm:$0xff]  ;;  %v82_v5 = vld [vmem:[%s2985_s0 + $0xc0] sm:$0xff]  ;;  %v200_v18 = vadd.f32 %v199_v60, %v75_v0 }
  0x3a   :  { %970 = vmatpush2.msra.mxu1 %v676_v22  ;;  %901 = vmatpush2.msra.mxu0 %v610_v23  ;;  %v594_v9 = vld [vmem:[%s2989_s4 + $0x120] sm:$0xff]  ;;  %v659_v10 = vld [vmem:[%s2989_s4 + $0x328] sm:$0xff]  ;;  %v593_v14 = vld [vmem:[%s2989_s4 + $0x118] sm:$0xff] }
  0x3b   :  { %971 = vmatprep.subr.mxu1 %v675_v24  ;;  %902 = vmatprep.subr.mxu0 %v609_v25  ;;  %v83_v11 = vld [vmem:[%s2985_s0 + $0xc8] sm:$0xff]  ;;  %v122_v12 = vld [vmem:[%s2985_s0 + $0x200] sm:$0xff]  ;;  %v124_v15 = vld [vmem:[%s2985_s0 + $0x210] sm:$0xff] }
  0x3c   :  { %972 = vmatpush2.msra.mxu1 %v674_v26  ;;  %903 = vmatpush2.msra.mxu0 %v608_v27  ;;  %v123_v13 = vld [vmem:[%s2985_s0 + $0x208] sm:$0xff]  ;;  %v130_v16 = vld [vmem:[%s2985_s0 + $0x240] sm:$0xff]  ;;  %v592_v19 = vld [vmem:[%s2989_s4 + $0x110] sm:$0xff]  ;;  %v188_v26 = vadd.f32 %v187_v6, %v82_v5  ;;  %v213_v27 = vadd.f32 %v212_v7, %v76_v3 }
  0x3d   :  { %973 = vmatprep.subr.mxu1 %v673_v28  ;;  %904 = vmatprep.subr.mxu0 %v607_v29  ;;  %v131_v17 = vld [vmem:[%s2985_s0 + $0x248] sm:$0xff]  ;;  %v125_v20 = vld [vmem:[%s2985_s0 + $0x218] sm:$0xff]  ;;  %v132_v21 = vld [vmem:[%s2985_s0 + $0x250] sm:$0xff]  ;;  %v226_v28 = vadd.f32 %v225_v8, %v77_v4 }
  0x3e   :  { %974 = vmatpush2.msra.mxu1 %v672_v31  ;;  %905 = vmatpush2.msra.mxu0 %v606_v30  ;;  %v133_v22 = vld [vmem:[%s2985_s0 + $0x258] sm:$0xff]  ;;  %v658_v23 = vld [vmem:[%s2989_s4 + $0x320] sm:$0xff]  ;;  %v591_v24 = vld [vmem:[%s2989_s4 + $0x108] sm:$0xff]  ;;  %v316_v39 = vadd.f32 %v132_v21, %v124_v15 }
  0x3f   :  { %975 = vmatprep.subr.mxu1 %v671_v33  ;;  %906 = vmatprep.subr.mxu0 %v605_v32  ;;  %v657_v25 = vld [vmem:[%s2989_s4 + $0x318] sm:$0xff]  ;;  %v590_v29 = vld [vmem:[%s2989_s4 + $0x100] sm:$0xff]  ;;  %v84_v30 = vld [vmem:[%s2985_s0 + $0xd0] sm:$0xff]  ;;  %v290_v33 = vadd.f32 %v130_v16, %v122_v12  ;;  %v329_v40 = vadd.f32 %v133_v22, %v125_v20 }
  0x40   :  { %976 = vmatpush2.msra.mxu1 %v670_v35  ;;  %907 = vmatpush2.msra.mxu0 %v604_v34  ;;  %v85_v31 = vld [vmem:[%s2985_s0 + $0xd8] sm:$0xff]  ;;  %v90_v32 = vld [vmem:[%s2985_s0 + $0x100] sm:$0xff]  ;;  %v303_v34 = vadd.f32 %v131_v17, %v123_v13  ;;  %v656_v35 = vld [vmem:[%s2989_s4 + $0x310] sm:$0xff]  ;;  %v214_v47 = vadd.f32 %v213_v27, %v84_v30 }
  0x41   :  { %977 = vmatprep.subr.mxu1 %v669_v37  ;;  %908 = vmatprep.subr.mxu0 %v603_v36  ;;  %v138_v36 = vld [vmem:[%s2985_s0 + $0x280] sm:$0xff]  ;;  %v139_v37 = vld [vmem:[%s2985_s0 + $0x288] sm:$0xff]  ;;  %v189_v46 = vadd.f32 %v188_v26, %v90_v32  ;;  %v101_v0 = vld [vmem:[%s2985_s0 + $0x158] sm:$0xff] }
  0x42   :  { %978 = vmatpush2.msra.mxu1 %v668_v41  ;;  %909 = vmatpush2.msra.mxu0 %v602_v38  ;;  %v201_v38 = vadd.f32 %v200_v18, %v83_v11  ;;  %v91_v41 = vld [vmem:[%s2985_s0 + $0x108] sm:$0xff]  ;;  %v146_v50 = vld [vmem:[%s2985_s0 + $0x2c0] sm:$0xff]  ;;  %v291_v51 = vadd.f32 %v290_v33, %v138_v36  ;;  %v304_v52 = vadd.f32 %v303_v34, %v139_v37  ;;  %v108_v17 = vld [vmem:[%s2985_s0 + $0x190] sm:$0xff] }
  0x43   :  { %979 = vmatprep.subr.mxu1 %v667_v43  ;;  %910 = vmatprep.subr.mxu0 %v601_v42  ;;  %v140_v42 = vld [vmem:[%s2985_s0 + $0x290] sm:$0xff]  ;;  %v141_v43 = vld [vmem:[%s2985_s0 + $0x298] sm:$0xff]  ;;  %v147_v54 = vld [vmem:[%s2985_s0 + $0x2c8] sm:$0xff] }
  0x44   :  { %980 = vmatpush2.msra.mxu1 %v666_v45  ;;  %911 = vmatpush2.msra.mxu0 %v600_v44  ;;  %v92_v44 = vld [vmem:[%s2985_s0 + $0x110] sm:$0xff]  ;;  %v93_v45 = vld [vmem:[%s2985_s0 + $0x118] sm:$0xff]  ;;  %v202_v55 = vadd.f32 %v201_v38, %v91_v41  ;;  %v317_v56 = vadd.f32 %v316_v39, %v140_v42  ;;  %v99_v60 = vld [vmem:[%s2985_s0 + $0x148] sm:$0xff]  ;;  %v292_v7 = vadd.f32 %v291_v51, %v146_v50 }
  0x45   :  { %981 = vmatprep.subr.mxu1 %v665_v49  ;;  %912 = vmatprep.subr.mxu0 %v599_v48  ;;  %v227_v48 = vadd.f32 %v226_v28, %v85_v31  ;;  %v98_v49 = vld [vmem:[%s2985_s0 + $0x140] sm:$0xff]  ;;  %v215_v3 = vadd.f32 %v214_v47, %v92_v44  ;;  %v107_v5 = vld [vmem:[%s2985_s0 + $0x188] sm:$0xff]  ;;  %v305_v8 = vadd.f32 %v304_v52, %v147_v54  ;;  %v109_v18 = vld [vmem:[%s2985_s0 + $0x198] sm:$0xff]  ;;  %v1568_v44 = vmov 1983009808  }
  0x46   :  { %982 = vmatpush2.msra.mxu1 %v664_v57  ;;  %913 = vmatpush2.msra.mxu0 %v598_v53  ;;  %v655_v53 = vld [vmem:[%s2989_s4 + $0x308] sm:$0xff]  ;;  %v330_v57 = vadd.f32 %v329_v40, %v141_v43  ;;  %v154_v6 = vld [vmem:[%s2985_s0 + $0x300] sm:$0xff]  ;;  %v203_v12 = vadd.f32 %v202_v55, %v99_v60  ;;  %v157_v20 = vld [vmem:[%s2985_s0 + $0x318] sm:$0xff] }
  0x47   :  { %983 = vmatprep.subr.mxu1 %v663_v59  ;;  %914 = vmatprep.subr.mxu0 %v597_v58  ;;  %v717_v58 = vld [vmem:[%s2989_s4 + $0x4f8] sm:$0xff]  ;;  %v654_v59 = vld [vmem:[%s2989_s4 + $0x300] sm:$0xff]  ;;  %v228_v4 = vadd.f32 %v227_v48, %v93_v45  ;;  %v155_v11 = vld [vmem:[%s2985_s0 + $0x308] sm:$0xff]  ;;  %v293_v33 = vadd.f32 %v292_v7, %v154_v6  ;;  %v2210_v45 = vunpack.c.l.s4 %v1568_v44 }
  0x48   :  { %984 = vmatpush2.msra.mxu1 %v662_v62  ;;  %915 = vmatpush2.msra.mxu0 %v596_v61  ;;  %v148_v61 = vld [vmem:[%s2985_s0 + $0x2d0] sm:$0xff]  ;;  %v149_v62 = vld [vmem:[%s2985_s0 + $0x2d8] sm:$0xff]  ;;  %v63_v15 = vld [vmem:[%s2985_s0 + $0x28] sm:$0xff]  ;;  %v306_v34 = vadd.f32 %v305_v8, %v155_v11  ;;  %v204_v37 = vadd.f32 %v203_v12, %v107_v5 }
  0x49   :  { %985 = vmatprep.subr.mxu1 %v661_v63  ;;  %916 = vmatprep.subr.mxu0 %v595_v1  ;;  %v100_v63 = vld [vmem:[%s2985_s0 + $0x150] sm:$0xff]  ;;  %v106_v1 = vld [vmem:[%s2985_s0 + $0x180] sm:$0xff]  ;;  %v318_v13 = vadd.f32 %v317_v56, %v148_v61  ;;  %v71_v16 = vld [vmem:[%s2985_s0 + $0x68] sm:$0xff]  ;;  %v229_v26 = vadd.f32 %v228_v4, %v101_v0 }
  0x4a   :  { %986 = vmatpush2.msra.mxu1 %v660_v2  ;;  %917 = vmatpush2.msra.mxu0 %v594_v9  ;;  %v190_v2 = vadd.f32 %v189_v46, %v98_v49  ;;  %v62_v9 = vld [vmem:[%s2985_s0 + $0x20] sm:$0xff]  ;;  %v79_v27 = vld [vmem:[%s2985_s0 + $0xa8] sm:$0xff]  ;;  %v164_v32 = vld [vmem:[%s2985_s0 + $0x350] sm:$0xff]  ;;  %v251_v36 = vadd.f32 %v71_v16, %v63_v15 }
  0x4b   :  { %987 = vmatprep.subr.mxu1 %v659_v10  ;;  %918 = vmatprep.subr.mxu0 %v593_v14  ;;  %v70_v10 = vld [vmem:[%s2985_s0 + $0x60] sm:$0xff]  ;;  %v331_v14 = vadd.f32 %v330_v57, %v149_v62  ;;  %v115_v30 = vld [vmem:[%s2985_s0 + $0x1c8] sm:$0xff]  ;;  %v64_v40 = vld [vmem:[%s2985_s0 + $0x30] sm:$0xff]  ;;  %v230_v52 = vadd.f32 %v229_v26, %v109_v18 }
  0x4c   :  { %988 = vmatpush2.msra.mxu1 %v658_v23  ;;  %919 = vmatpush2.msra.mxu0 %v592_v19  ;;  %v156_v19 = vld [vmem:[%s2985_s0 + $0x310] sm:$0xff]  ;;  %v78_v21 = vld [vmem:[%s2985_s0 + $0xa0] sm:$0xff]  ;;  %v238_v28 = vadd.f32 %v70_v10, %v62_v9  ;;  %v163_v31 = vld [vmem:[%s2985_s0 + $0x348] sm:$0xff]  ;;  %v252_v49 = vadd.f32 %v251_v36, %v79_v27 }
  0x4d   :  { %989 = vmatprep.subr.mxu1 %v657_v25  ;;  %920 = vmatprep.subr.mxu0 %v591_v24  ;;  %v114_v22 = vld [vmem:[%s2985_s0 + $0x1c0] sm:$0xff]  ;;  %v191_v24 = vadd.f32 %v190_v2, %v106_v1  ;;  %v216_v25 = vadd.f32 %v215_v3, %v100_v63  ;;  %v319_v38 = vadd.f32 %v318_v13, %v156_v19  ;;  %v72_v41 = vld [vmem:[%s2985_s0 + $0x70] sm:$0xff]  ;;  %v87_v42 = vld [vmem:[%s2985_s0 + $0xe8] sm:$0xff] }
  0x4e   :  { %990 = vmatpush2.msra.mxu1 %v656_v35  ;;  %921 = vmatpush2.msra.mxu0 %v590_v29  ;;  %v162_v23 = vld [vmem:[%s2985_s0 + $0x340] sm:$0xff]  ;;  %v415_v29 = vlaneseq  ;;  %v332_v39 = vadd.f32 %v331_v14, %v157_v20  ;;  %v239_v43 = vadd.f32 %v238_v28, %v78_v21  ;;  %v165_v46 = vld [vmem:[%s2985_s0 + $0x358] sm:$0xff]  ;;  %v95_v55 = vld [vmem:[%s2985_s0 + $0x128] sm:$0xff]  ;;  %v307_v61 = vadd.f32 %v306_v34, %v163_v31 }
  0x4f   :  { %991 = vmatprep.subr.mxu1 %v655_v53  ;;  %1000 = vmatprep.subr.mxu0 %v717_v58  ;;  %v86_v35 = vld [vmem:[%s2985_s0 + $0xe0] sm:$0xff]  ;;  %v65_v47 = vld [vmem:[%s2985_s0 + $0x38] sm:$0xff]  ;;  %v192_v50 = vadd.f32 %v191_v24, %v114_v22  ;;  %v217_v51 = vadd.f32 %v216_v25, %v108_v17  ;;  %v80_v53 = vld [vmem:[%s2985_s0 + $0xb0] sm:$0xff]  ;;  %v294_v60 = vadd.f32 %v293_v33, %v162_v23  ;;  %v1569_v14 = vmov 269488144  }
  0x50   :  { %992 = vmatpush2.msra.mxu1 %v654_v59  ;;  %v73_v48 = vld [vmem:[%s2985_s0 + $0x78] sm:$0xff]  ;;  %v94_v54 = vld [vmem:[%s2985_s0 + $0x120] sm:$0xff]  ;;  %v240_v56 = vadd.f32 %v239_v43, %v86_v35  ;;  %v116_v57 = vld [vmem:[%s2985_s0 + $0x1d0] sm:$0xff]  ;;  %v253_v62 = vadd.f32 %v252_v49, %v87_v42  ;;  %v264_v63 = vadd.f32 %v72_v41, %v64_v40  ;;  %v2239_v0 = vshrl.u32 %v415_v29, 7 }
  0x51   :  { %v117_v58 = vld [vmem:[%s2985_s0 + $0x1d8] sm:$0xff]  ;;  %v170_v59 = vld [vmem:[%s2985_s0 + $0x380] sm:$0xff]  ;;  %v171_v1 = vld [vmem:[%s2985_s0 + $0x388] sm:$0xff]  ;;  %v205_v2 = vadd.f32 %v204_v37, %v115_v30  ;;  %v320_v3 = vadd.f32 %v319_v38, %v164_v32  ;;  %v333_v4 = vadd.f32 %v332_v39, %v165_v46  ;;  %v277_v13 = vadd.f32 %v73_v48, %v65_v47 }
  0x52   :  { %v81_v5 = vld [vmem:[%s2985_s0 + $0xb8] sm:$0xff]  ;;  %v88_v6 = vld [vmem:[%s2985_s0 + $0xf0] sm:$0xff]  ;;  %v241_v10 = vadd.f32 %v240_v56, %v94_v54  ;;  %v254_v11 = vadd.f32 %v253_v62, %v95_v55  ;;  %v265_v12 = vadd.f32 %v264_v63, %v80_v53  ;;  %v2259_v15 = vunpack.c.l.s4 %v1569_v14  ;;  %v178_v16 = vld [vmem:[%s2985_s0 + $0x3c0] sm:$0xff] }
  0x53   :  { %v172_v7 = vld [vmem:[%s2985_s0 + $0x390] sm:$0xff]  ;;  %v173_v8 = vld [vmem:[%s2985_s0 + $0x398] sm:$0xff]  ;;  %v179_v17 = vld [vmem:[%s2985_s0 + $0x3c8] sm:$0xff]  ;;  %v193_v18 = vrot.slane %v192_v50, 4  ;;  %v218_v19 = vadd.f32 %v217_v51, %v116_v57  ;;  %v231_v20 = vadd.f32 %v230_v52, %v117_v58  ;;  %v295_v26 = vadd.f32 %v294_v60, %v170_v59 }
  0x54   :  { %v89_v9 = vld [vmem:[%s2985_s0 + $0xf8] sm:$0xff]  ;;  %v96_v21 = vld [vmem:[%s2985_s0 + $0x130] sm:$0xff]  ;;  %v102_v22 = vld [vmem:[%s2985_s0 + $0x160] sm:$0xff]  ;;  %v308_v27 = vadd.f32 %v307_v61, %v171_v1  ;;  %v266_v30 = vadd.f32 %v265_v12, %v88_v6  ;;  %v278_v31 = vadd.f32 %v277_v13, %v81_v5  ;;  %v414_v32 = vunpack.c.0.s8 %v2210_v45 }
  0x55   :  { %v103_v23 = vld [vmem:[%s2985_s0 + $0x168] sm:$0xff]  ;;  %v180_v24 = vld [vmem:[%s2985_s0 + $0x3d0] sm:$0xff]  ;;  %v181_v25 = vld [vmem:[%s2985_s0 + $0x3d8] sm:$0xff]  ;;  %v206_v33 = vrot.slane %v205_v2, 4  ;;  %v321_v34 = vadd.f32 %v320_v3, %v172_v7  ;;  %v334_v35 = vadd.f32 %v333_v4, %v173_v8  ;;  %v242_v42 = vadd.f32 %v241_v10, %v102_v22 }
  0x56   :  { %v126_v28 = vld [vmem:[%s2985_s0 + $0x220] sm:$0xff]  ;;  %v97_v36 = vld [vmem:[%s2985_s0 + $0x138] sm:$0xff]  ;;  %v104_v37 = vld [vmem:[%s2985_s0 + $0x170] sm:$0xff]  ;;  %v255_v43 = vadd.f32 %v254_v11, %v103_v23  ;;  %v267_v44 = vadd.f32 %v266_v30, %v96_v21  ;;  %v279_v46 = vadd.f32 %v278_v31, %v89_v9  ;;  %v2307_v47 = vadd.f32 %v193_v18, %v192_v50 }
  0x57   :  { %v134_v29 = vld [vmem:[%s2985_s0 + $0x260] sm:$0xff]  ;;  %v105_v38 = vld [vmem:[%s2985_s0 + $0x178] sm:$0xff]  ;;  %v111_v40 = vld [vmem:[%s2985_s0 + $0x1a8] sm:$0xff]  ;;  %v219_v48 = vrot.slane %v218_v19, 4  ;;  %v232_v49 = vrot.slane %v231_v20, 4  ;;  %v296_v55 = vadd.f32 %v295_v26, %v178_v16  ;;  %v309_v56 = vadd.f32 %v308_v27, %v179_v17 }
  0x58   :  { %v110_v39 = vld [vmem:[%s2985_s0 + $0x1a0] sm:$0xff]  ;;  %v112_v51 = vld [vmem:[%s2985_s0 + $0x1b0] sm:$0xff]  ;;  %v127_v52 = vld [vmem:[%s2985_s0 + $0x228] sm:$0xff]  ;;  %v342_v54 = vadd.f32 %v134_v29, %v126_v28  ;;  %v268_v59 = vadd.f32 %v267_v44, %v104_v37  ;;  %v280_v60 = vadd.f32 %v279_v46, %v97_v36  ;;  %v2327_v61 = vadd.f32 %v206_v33, %v205_v2 }
  0x59   :  { %v142_v41 = vld [vmem:[%s2985_s0 + $0x2a0] sm:$0xff]  ;;  %v128_v53 = vld [vmem:[%s2985_s0 + $0x230] sm:$0xff]  ;;  %v135_v50 = vld [vmem:[%s2985_s0 + $0x268] sm:$0xff]  ;;  %v322_v62 = vadd.f32 %v321_v34, %v180_v24  ;;  %v335_v63 = vadd.f32 %v334_v35, %v181_v25  ;;  %v243_v8 = vadd.f32 %v242_v42, %v110_v39  ;;  %v256_v9 = vadd.f32 %v255_v43, %v111_v40 }
  0x5a   :  { %v136_v57 = vld [vmem:[%s2985_s0 + $0x270] sm:$0xff]  ;;  %v150_v58 = vld [vmem:[%s2985_s0 + $0x2e0] sm:$0xff]  ;;  %v113_v1 = vld [vmem:[%s2985_s0 + $0x1b8] sm:$0xff]  ;;  %v343_v5 = vadd.f32 %v342_v54, %v142_v41  ;;  %v269_v10 = vadd.f32 %v268_v59, %v112_v51  ;;  %v281_v11 = vadd.f32 %v280_v60, %v105_v38  ;;  %v2347_v12 = vadd.f32 %v219_v48, %v218_v19 }
  0x5b   :  { %v118_v3 = vld [vmem:[%s2985_s0 + $0x1e0] sm:$0xff]  ;;  %v119_v4 = vld [vmem:[%s2985_s0 + $0x1e8] sm:$0xff]  ;;  %v144_v6 = vld [vmem:[%s2985_s0 + $0x2b0] sm:$0xff]  ;;  %v355_v17 = vadd.f32 %v135_v50, %v127_v52  ;;  %v368_v18 = vadd.f32 %v136_v57, %v128_v53  ;;  %v2358_v22 = vadd.f32 %v232_v49, %v231_v20  ;;  %v297_v23 = vrot.slane %v296_v55, 4 }
  0x5c   :  { %v143_v2 = vld [vmem:[%s2985_s0 + $0x2a8] sm:$0xff]  ;;  %v158_v7 = vld [vmem:[%s2985_s0 + $0x320] sm:$0xff]  ;;  %v120_v13 = vld [vmem:[%s2985_s0 + $0x1f0] sm:$0xff]  ;;  %v344_v16 = vadd.f32 %v343_v5, %v150_v58  ;;  %v310_v19 = vrot.slane %v309_v56, 4  ;;  %v282_v27 = vadd.f32 %v281_v11, %v113_v1  ;;  %v323_v28 = vrot.slane %v322_v62, 4 }
  0x5d   :  { %v121_v14 = vld [vmem:[%s2985_s0 + $0x1f8] sm:$0xff]  ;;  %v151_v24 = vld [vmem:[%s2985_s0 + $0x2e8] sm:$0xff]  ;;  %v152_v25 = vld [vmem:[%s2985_s0 + $0x2f0] sm:$0xff]  ;;  %v356_v20 = vadd.f32 %v355_v17, %v143_v2  ;;  %v369_v30 = vadd.f32 %v368_v18, %v144_v6  ;;  %v336_v31 = vrot.slane %v335_v63, 4  ;;  %v244_v36 = vadd.f32 %v243_v8, %v118_v3 }
  0x5e   :  { %v781_v21 = vld [vmem:[%s2989_s4 + $0x6f8] sm:$0xff]  ;;  %v166_v26 = vld [vmem:[%s2985_s0 + $0x360] sm:$0xff]  ;;  %v345_v29 = vadd.f32 %v344_v16, %v158_v7  ;;  %v159_v33 = vld [vmem:[%s2985_s0 + $0x328] sm:$0xff]  ;;  %v257_v37 = vadd.f32 %v256_v9, %v119_v4  ;;  %v270_v38 = vadd.f32 %v269_v10, %v120_v13  ;;  %v283_v39 = vadd.f32 %v282_v27, %v121_v14 }
  0x5f   :  { %1071 = vmatprep.subr.mxu1 %v781_v21  ;;  %v160_v34 = vld [vmem:[%s2985_s0 + $0x330] sm:$0xff]  ;;  %v174_v35 = vld [vmem:[%s2985_s0 + $0x3a0] sm:$0xff]  ;;  %v357_v41 = vadd.f32 %v356_v20, %v151_v24  ;;  %v370_v42 = vadd.f32 %v369_v30, %v152_v25  ;;  %v195_v43 = vrot.slane %v2307_v47, 2  ;;  %v208_v44 = vrot.slane %v2327_v61, 2  ;;  %v167_v49 = vld [vmem:[%s2985_s0 + $0x368] sm:$0xff] }
  0x60   :  { %v346_v40 = vadd.f32 %v345_v29, %v166_v26  ;;  %v298_v46 = vadd.f32 %v297_v23, %v296_v55  ;;  %v311_v48 = vadd.f32 %v310_v19, %v309_v56  ;;  %v168_v51 = vld [vmem:[%s2985_s0 + $0x370] sm:$0xff]  ;;  %v182_v52 = vld [vmem:[%s2985_s0 + $0x3e0] sm:$0xff]  ;;  %v324_v53 = vadd.f32 %v323_v28, %v322_v62  ;;  %v175_v55 = vld [vmem:[%s2985_s0 + $0x3a8] sm:$0xff] }
  0x61   :  { %v358_v50 = vadd.f32 %v357_v41, %v159_v33  ;;  %v371_v57 = vadd.f32 %v370_v42, %v160_v34  ;;  %v337_v58 = vadd.f32 %v336_v31, %v335_v63  ;;  %v176_v56 = vld [vmem:[%s2985_s0 + $0x3b0] sm:$0xff]  ;;  %v245_v59 = vrot.slane %v244_v36, 4  ;;  %v129_v3 = vld [vmem:[%s2985_s0 + $0x238] sm:$0xff]  ;;  %v183_v10 = vld [vmem:[%s2985_s0 + $0x3e8] sm:$0xff] }
  0x62   :  { %v347_v54 = vadd.f32 %v346_v40, %v174_v35  ;;  %v258_v60 = vrot.slane %v257_v37, 4  ;;  %v271_v1 = vrot.slane %v270_v38, 4  ;;  %v137_v62 = vld [vmem:[%s2985_s0 + $0x278] sm:$0xff]  ;;  %v284_v63 = vrot.slane %v283_v39, 4  ;;  %v184_v11 = vld [vmem:[%s2985_s0 + $0x3f0] sm:$0xff] }
  0x63   :  { %v359_v5 = vadd.f32 %v358_v50, %v167_v49  ;;  %v372_v2 = vadd.f32 %v371_v57, %v168_v51  ;;  %v221_v6 = vrot.slane %v2347_v12, 2  ;;  %v234_v7 = vrot.slane %v2358_v22, 2  ;;  %v145_v14 = vld [vmem:[%s2985_s0 + $0x2b8] sm:$0xff] }
  0x64   :  { %v348_v4 = vadd.f32 %v347_v54, %v182_v52  ;;  %v299_v8 = vrot.slane %v298_v46, 2  ;;  %v312_v9 = vrot.slane %v311_v48, 2  ;;  %v325_v13 = vrot.slane %v324_v53, 2  ;;  %v153_v25 = vld [vmem:[%s2985_s0 + $0x2f8] sm:$0xff] }
  0x65   :  { %v360_v17 = vadd.f32 %v359_v5, %v175_v55  ;;  %v373_v18 = vadd.f32 %v372_v2, %v176_v56  ;;  %v338_v21 = vrot.slane %v337_v58, 2  ;;  %v246_v23 = vadd.f32 %v245_v59, %v244_v36  ;;  %v161_v36 = vld [vmem:[%s2985_s0 + $0x338] sm:$0xff] }
  0x66   :  { %v349_v16 = vrot.slane %v348_v4, 4  ;;  %v259_v19 = vadd.f32 %v258_v60, %v257_v37  ;;  %v381_v24 = vadd.f32 %v137_v62, %v129_v3  ;;  %v272_v26 = vadd.f32 %v271_v1, %v270_v38  ;;  %v177_v57 = vld [vmem:[%s2985_s0 + $0x3b8] sm:$0xff] }
  0x67   :  { %v285_v27 = vadd.f32 %v284_v63, %v283_v39  ;;  %v361_v28 = vadd.f32 %v360_v17, %v183_v10  ;;  %v374_v29 = vadd.f32 %v373_v18, %v184_v11  ;;  %v196_v20 = vadd.f32 %v195_v43, %v2307_v47  ;;  %v169_v47 = vld [vmem:[%s2985_s0 + $0x378] sm:$0xff] }
  0x68   :  { %v209_v30 = vadd.f32 %v208_v44, %v2327_v61  ;;  %v350_v31 = vadd.f32 %v349_v16, %v348_v4  ;;  %v382_v33 = vadd.f32 %v381_v24, %v145_v14  ;;  %v300_v34 = vadd.f32 %v299_v8, %v298_v46 }
  0x69   :  { %v313_v35 = vadd.f32 %v312_v9, %v311_v48  ;;  %v362_v37 = vrot.slane %v361_v28, 4  ;;  %v375_v40 = vrot.slane %v374_v29, 4  ;;  %v326_v41 = vadd.f32 %v325_v13, %v324_v53 }
  0x6a   :  { %v339_v42 = vadd.f32 %v338_v21, %v337_v58  ;;  %v247_v38 = vrot.slane %v246_v23, 2  ;;  %v383_v39 = vadd.f32 %v382_v33, %v153_v25  ;;  %v260_v43 = vrot.slane %v259_v19, 2 }
  0x6b   :  { %v273_v61 = vrot.slane %v272_v26, 2  ;;  %v286_v44 = vrot.slane %v285_v27, 2  ;;  %v363_v49 = vadd.f32 %v362_v37, %v361_v28  ;;  %v222_v46 = vadd.f32 %v221_v6, %v2347_v12  ;;  %v185_v12 = vld [vmem:[%s2985_s0 + $0x3f8] sm:$0xff] }
  0x6c   :  { %v351_v48 = vrot.slane %v350_v31, 2  ;;  %v376_v51 = vadd.f32 %v375_v40, %v374_v29  ;;  %v384_v52 = vadd.f32 %v383_v39, %v161_v36  ;;  %v197_v54 = vrot.slane %v196_v20, 1 }
  0x6d   :  { %v235_v50 = vadd.f32 %v234_v7, %v2358_v22  ;;  %v301_v53 = vrot.slane %v300_v34, 1  ;;  %v364_v58 = vrot.slane %v363_v49, 2  ;;  %v314_v55 = vrot.slane %v313_v35, 1 }
  0x6e   :  { %v327_v56 = vrot.slane %v326_v41, 1  ;;  %v340_v59 = vrot.slane %v339_v42, 1  ;;  %v385_v60 = vadd.f32 %v384_v52, %v169_v47  ;;  %v248_v1 = vadd.f32 %v247_v38, %v246_v23 }
  0x6f   :  { %v261_v3 = vadd.f32 %v260_v43, %v259_v19  ;;  %v274_v62 = vadd.f32 %v273_v61, %v272_v26  ;;  %v287_v63 = vadd.f32 %v286_v44, %v285_v27  ;;  %v352_v4 = vadd.f32 %v351_v48, %v350_v31 }
  0x70   :  { %v365_v22 = vadd.f32 %v364_v58, %v363_v49  ;;  %v377_v5 = vrot.slane %v376_v51, 2  ;;  %v386_v2 = vadd.f32 %v385_v60, %v177_v57  ;;  %v210_v6 = vrot.slane %v209_v30, 1 }
  0x71   :  { %v223_v7 = vrot.slane %v222_v46, 1  ;;  %v236_v8 = vrot.slane %v235_v50, 1  ;;  %v302_v9 = vadd.f32 %v301_v53, %v300_v34  ;;  %v315_v10 = vadd.f32 %v314_v55, %v313_v35 }
  0x72   :  { %v328_v11 = vadd.f32 %v327_v56, %v326_v41  ;;  %v341_v13 = vadd.f32 %v340_v59, %v339_v42  ;;  %v387_v14 = vadd.f32 %v386_v2, %v185_v12  ;;  %v249_v16 = vrot.slane %v248_v1, 1 }
  0x73   :  { %v262_v17 = vrot.slane %v261_v3, 1  ;;  %v275_v18 = vrot.slane %v274_v62, 1  ;;  %v288_v21 = vrot.slane %v287_v63, 1  ;;  %v353_v23 = vrot.slane %v352_v4, 1 }
  0x74   :  { %v366_v19 = vrot.slane %v365_v22, 1  ;;  %v378_v24 = vadd.f32 %v377_v5, %v376_v51  ;;  %v388_v25 = vrot.slane %v387_v14, 4  ;;  %v2434_v26 = vsub.s32 %v414_v32, %v2239_v0 }
  0x75   :  { %v198_v27 = vadd.f32 %v197_v54, %v196_v20  ;;  %v211_v28 = vadd.f32 %v210_v6, %v209_v30  ;;  %v224_v29 = vadd.f32 %v223_v7, %v222_v46  ;;  %v237_v31 = vadd.f32 %v236_v8, %v235_v50 }
  0x76   :  { %v444_v33 = vcombine.low %v302_v9, %v315_v10  ;;  %v445_v34 = vcombine.low %v328_v11, %v341_v13  ;;  %v389_v35 = vadd.f32 %v388_v25, %v387_v14  ;;  %v250_v36 = vadd.f32 %v249_v16, %v248_v1 }
  0x77   :  { %v263_v37 = vadd.f32 %v262_v17, %v261_v3  ;;  %v276_v40 = vadd.f32 %v275_v18, %v274_v62  ;;  %v289_v41 = vadd.f32 %v288_v21, %v287_v63  ;;  %v354_v42 = vadd.f32 %v353_v23, %v352_v4 }
  0x78   :  { %v367_v38 = vadd.f32 %v366_v19, %v365_v22  ;;  %v379_v39 = vrot.slane %v378_v24, 1  ;;  %v390_v47 = vrot.slane %v389_v35, 2  ;;  %v516_v43 = vunpack.c.0.s8 %v2259_v15 }
  0x79   :  { %v410_v45 = vcombine.low %v198_v27, %v211_v28  ;;  %v411_v32 = vcombine.low %v224_v29, %v237_v31  ;;  %v452_v20 = vrot.slane %v444_v33, %v2434_v26  ;;  %v459_v30 = vrot.slane %v445_v34, %v2434_v26  ;;  %v715_v27 = vld [vmem:[%s2989_s4 + $0x4e8] sm:$0xff]  ;;  %v714_v31 = vld [vmem:[%s2989_s4 + $0x4e0] sm:$0xff]  ;;  %v780_v33 = vld [vmem:[%s2989_s4 + $0x6f0] sm:$0xff] }
  0x7a   :  { %v391_v61 = vadd.f32 %v390_v47, %v389_v35  ;;  %v427_v44 = vcombine.low %v250_v36, %v263_v37  ;;  %v380_v49 = vadd.f32 %v379_v39, %v378_v24  ;;  %v428_v48 = vcombine.low %v276_v40, %v289_v41  ;;  %v716_v24 = vld [vmem:[%s2989_s4 + $0x4f0] sm:$0xff]  ;;  %v713_v34 = vld [vmem:[%s2989_s4 + $0x4d8] sm:$0xff]  ;;  %v778_v37 = vld [vmem:[%s2989_s4 + $0x6e0] sm:$0xff] }
  0x7b   :  { %v461_v51 = vcombine.low %v354_v42, %v367_v38  ;;  %v519_v52 = vsub.s32 %v516_v43, %v2239_v0  ;;  %v418_v54 = vrot.slane %v410_v45, %v2434_v26  ;;  %v425_v50 = vrot.slane %v411_v32, %v2434_v26  ;;  %v712_v36 = vld [vmem:[%s2989_s4 + $0x4d0] sm:$0xff]  ;;  %v711_v40 = vld [vmem:[%s2989_s4 + $0x4c8] sm:$0xff]  ;;  %v777_v41 = vld [vmem:[%s2989_s4 + $0x6d8] sm:$0xff] }
  0x7c   :  { %v392_v46 = vrot.slane %v391_v61, 1  ;;  %v460_v53 = vcombine.low %v452_v20, %v459_v30  ;;  %v435_v57 = vrot.slane %v427_v44, %v2434_v26  ;;  %v442_v58 = vrot.slane %v428_v48, %v2434_v26  ;;  %v710_v42 = vld [vmem:[%s2989_s4 + $0x4c0] sm:$0xff]  ;;  %v776_v38 = vld [vmem:[%s2989_s4 + $0x6d0] sm:$0xff]  ;;  %v709_v39 = vld [vmem:[%s2989_s4 + $0x4b8] sm:$0xff] }
  0x7d   :  { %v469_v56 = vrot.slane %v461_v51, %v2434_v26  ;;  %v426_v12 = vcombine.low %v418_v54, %v425_v50  ;;  %v775_v47 = vld [vmem:[%s2989_s4 + $0x6c8] sm:$0xff]  ;;  %v708_v43 = vld [vmem:[%s2989_s4 + $0x4b0] sm:$0xff]  ;;  %v774_v45 = vld [vmem:[%s2989_s4 + $0x6c0] sm:$0xff] }
  0x7e   :  { %v393_v15 = vadd.f32 %v392_v46, %v391_v61  ;;  %v482_v1 = vrot.slane %v460_v53, 7  ;;  %v443_v62 = vcombine.low %v435_v57, %v442_v58  ;;  %v707_v32 = vld [vmem:[%s2989_s4 + $0x4a8] sm:$0xff]  ;;  %v773_v20 = vld [vmem:[%s2989_s4 + $0x6b8] sm:$0xff]  ;;  %v706_v30 = vld [vmem:[%s2989_s4 + $0x4a0] sm:$0xff] }
  0x7f   :  { %v772_v61 = vld [vmem:[%s2989_s4 + $0x6b0] sm:$0xff]  ;;  %v705_v44 = vld [vmem:[%s2989_s4 + $0x498] sm:$0xff]  ;;  %v770_v48 = vld [vmem:[%s2989_s4 + $0x6a0] sm:$0xff] }
  0x80   :  { %v462_v55 = vcombine.low %v380_v49, %v393_v15  ;;  %v484_v4 = vsel %vm483_vm0, %v482_v1, %v426_v12  ;;  %v771_v49 = vld [vmem:[%s2989_s4 + $0x6a8] sm:$0xff]  ;;  %v704_v46 = vld [vmem:[%s2989_s4 + $0x490] sm:$0xff]  ;;  %v702_v54 = vld [vmem:[%s2989_s4 + $0x480] sm:$0xff] }
  0x81   :  { %v486_v2 = vsel %vm485_vm1, %v482_v1, %v484_v4  ;;  %v703_v51 = vld [vmem:[%s2989_s4 + $0x488] sm:$0xff]  ;;  %v768_v50 = vld [vmem:[%s2989_s4 + $0x690] sm:$0xff]  ;;  %v701_v53 = vld [vmem:[%s2989_s4 + $0x478] sm:$0xff] }
  0x82   :  { %v476_v3 = vrot.slane %v462_v55, %v2434_v26  ;;  %v488_v7 = vsel %vm487_vm2, %v482_v1, %v486_v2  ;;  %v767_v15 = vld [vmem:[%s2989_s4 + $0x688] sm:$0xff]  ;;  %v700_v57 = vld [vmem:[%s2989_s4 + $0x470] sm:$0xff]  ;;  %v766_v58 = vld [vmem:[%s2989_s4 + $0x680] sm:$0xff] }
  0x83   :  { %v490_v9 = vsel %vm489_vm3, %v482_v1, %v488_v7  ;;  %v699_v55 = vld [vmem:[%s2989_s4 + $0x468] sm:$0xff]  ;;  %v697_v12 = vld [vmem:[%s2989_s4 + $0x458] sm:$0xff]  ;;  %v692_v7 = vld [vmem:[%s2989_s4 + $0x430] sm:$0xff] }
  0x84   :  { %v477_v63 = vcombine.low %v469_v56, %v476_v3  ;;  %v765_v56 = vld [vmem:[%s2989_s4 + $0x678] sm:$0xff]  ;;  %v763_v1 = vld [vmem:[%s2989_s4 + $0x668] sm:$0xff]  ;;  %v696_v3 = vld [vmem:[%s2989_s4 + $0x450] sm:$0xff] }
  0x85   :  { %v761_v4 = vld [vmem:[%s2989_s4 + $0x658] sm:$0xff] }
  0x86   :  { %v493_v22 = vrot.slane %v477_v63, 7  ;;  %v695_v63 = vld [vmem:[%s2989_s4 + $0x448] sm:$0xff]  ;;  %v693_v2 = vld [vmem:[%s2989_s4 + $0x438] sm:$0xff] }
  0x88   :  { %v494_v5 = vsel %vm483_vm0, %v493_v22, %v443_v62  ;;  %v762_v62 = vld [vmem:[%s2989_s4 + $0x660] sm:$0xff] }
  0x89   :  { %v495_v6 = vsel %vm485_vm1, %v493_v22, %v494_v5  ;;  %v760_v5 = vld [vmem:[%s2989_s4 + $0x650] sm:$0xff] }
  0x8a   :  { %v496_v8 = vsel %vm487_vm2, %v493_v22, %v495_v6  ;;  %v759_v6 = vld [vmem:[%s2989_s4 + $0x648] sm:$0xff] }
  0x8b   :  { %v513_v59 = vpop.permute.xlu0 %512  ;;  %v497_v10 = vsel %vm489_vm3, %v493_v22, %v496_v8  ;;  %v694_v22 = vld [vmem:[%s2989_s4 + $0x440] sm:$0xff] }
  0x8c   :  { %v520_v60 = vrot.slane %v513_v59, %v519_v52  ;;  %v769_v52 = vld [vmem:[%s2989_s4 + $0x698] sm:$0xff]  ;;  %v698_v59 = vld [vmem:[%s2989_s4 + $0x460] sm:$0xff] }
  0x8d   :  { %v758_v8 = vld [vmem:[%s2989_s4 + $0x640] sm:$0xff] }
  0x8e   :  { %1518 = vrcp.f32 %v520_v60  ;;  %v764_v60 = vld [vmem:[%s2989_s4 + $0x670] sm:$0xff] }
  0x9b   :  { %v1519_v11 = vpop.eup %1518 }
  0x9c   :  { %v523_v13 = vmul.f32 %v1519_v11, %v490_v9  ;;  %v524_v14 = vmul.f32 %v1519_v11, %v497_v10  ;;  %v691_v9 = vld [vmem:[%s2989_s4 + $0x428] sm:$0xff]  ;;  %v757_v10 = vld [vmem:[%s2989_s4 + $0x638] sm:$0xff]  ;;  %v690_v11 = vld [vmem:[%s2989_s4 + $0x420] sm:$0xff] }
  0x9e   :  { %v823_v16 = vrot.slane %v523_v13, %v2434_v26  ;;  %v816_v17 = vcombine.high %v523_v13, %v523_v13  ;;  %v833_v18 = vcombine.high %v524_v14, %v524_v14  ;;  %v2448_v21 = vrot.slane %v524_v14, %v2434_v26  ;;  %v756_v13 = vld [vmem:[%s2989_s4 + $0x630] sm:$0xff]  ;;  %v689_v14 = vld [vmem:[%s2989_s4 + $0x418] sm:$0xff] }
  0xa0   :  { %v831_v23 = vcombine.high %v823_v16, %v823_v16  ;;  %v830_v19 = vrot.slane %v816_v17, %v2434_v26  ;;  %v2458_v28 = vrot.slane %v833_v18, %v2434_v26  ;;  %v848_v29 = vcombine.high %v2448_v21, %v2448_v21  ;;  %v779_v26 = vld [vmem:[%s2989_s4 + $0x6e8] sm:$0xff]  ;;  %v688_v17 = vld [vmem:[%s2989_s4 + $0x410] sm:$0xff]  ;;  %v754_v18 = vld [vmem:[%s2989_s4 + $0x620] sm:$0xff] }
  0xa2   :  { %922 = vmatprep.mubr.f32.mxu0 %v831_v23  ;;  %v832_v25 = vcombine.high %v830_v19, %v830_v19  ;;  %v849_v35 = vcombine.high %v2458_v28, %v2458_v28  ;;  %v687_v23 = vld [vmem:[%s2989_s4 + $0x408] sm:$0xff] }
  0xa3   :  { %923 = vmatmul.mubr.f32.vlgmr.msra.gmra.mxu0 %v823_v16  ;;  %v755_v16 = vld [vmem:[%s2989_s4 + $0x628] sm:$0xff] }
  0xa4   :  { %1001 = vmatpush1.msra.mxu0 %v716_v24  ;;  %993 = vmatprep.mubr.f32.mxu1 %v832_v25  ;;  %v686_v24 = vld [vmem:[%s2989_s4 + $0x400] sm:$0xff]  ;;  %v752_v25 = vld [vmem:[%s2989_s4 + $0x610] sm:$0xff] }
  0xa5   :  { %1002 = vmatprep.subr.mxu0 %v715_v27  ;;  %1064 = vmatprep.mubr.f32.mxu0 %v848_v29  ;;  %v749_v27 = vld [vmem:[%s2989_s4 + $0x5f8] sm:$0xff]  ;;  %v751_v29 = vld [vmem:[%s2989_s4 + $0x608] sm:$0xff] }
  0xa6   :  { %994 = vmatmul.mubr.f32.vlgmr.msra.gmra.mxu1 %v830_v19  ;;  %1003 = vmatpush1.msra.mxu0 %v714_v31  ;;  %v753_v19 = vld [vmem:[%s2989_s4 + $0x618] sm:$0xff]  ;;  %v748_v31 = vld [vmem:[%s2989_s4 + $0x5f0] sm:$0xff] }
  0xa7   :  { %1072 = vmatpush1.msra.mxu1 %v780_v33  ;;  %1004 = vmatprep.subr.mxu0 %v713_v34  ;;  %v750_v33 = vld [vmem:[%s2989_s4 + $0x600] sm:$0xff]  ;;  %v747_v34 = vld [vmem:[%s2989_s4 + $0x5e8] sm:$0xff] }
  0xa8   :  { %1073 = vmatprep.subr.mxu1 %v779_v26  ;;  %1135 = vmatprep.mubr.f32.mxu1 %v849_v35  ;;  %v813_v26 = vld [vmem:[%s2989_s4 + $0x7f8] sm:$0xff]  ;;  %v746_v35 = vld [vmem:[%s2989_s4 + $0x5e0] sm:$0xff] }
  0xa9   :  { %1005 = vmatpush1.msra.mxu0 %v712_v36  ;;  %1074 = vmatpush1.msra.mxu1 %v778_v37  ;;  %v812_v36 = vld [vmem:[%s2989_s4 + $0x7f0] sm:$0xff]  ;;  %v745_v37 = vld [vmem:[%s2989_s4 + $0x5d8] sm:$0xff] }
  0xaa   :  { %1006 = vmatprep.subr.mxu0 %v711_v40  ;;  %1075 = vmatprep.subr.mxu1 %v777_v41  ;;  %v811_v40 = vld [vmem:[%s2989_s4 + $0x7e8] sm:$0xff]  ;;  %v744_v41 = vld [vmem:[%s2989_s4 + $0x5d0] sm:$0xff] }
  0xab   :  { %1007 = vmatpush1.msra.mxu0 %v710_v42  ;;  %1076 = vmatpush1.msra.mxu1 %v776_v38  ;;  %v810_v42 = vld [vmem:[%s2989_s4 + $0x7e0] sm:$0xff]  ;;  %v743_v38 = vld [vmem:[%s2989_s4 + $0x5c8] sm:$0xff] }
  0xac   :  { %1008 = vmatprep.subr.mxu0 %v709_v39  ;;  %1077 = vmatprep.subr.mxu1 %v775_v47  ;;  %v809_v39 = vld [vmem:[%s2989_s4 + $0x7d8] sm:$0xff]  ;;  %v742_v47 = vld [vmem:[%s2989_s4 + $0x5c0] sm:$0xff] }
  0xad   :  { %1009 = vmatpush1.msra.mxu0 %v708_v43  ;;  %1078 = vmatpush1.msra.mxu1 %v774_v45  ;;  %v808_v43 = vld [vmem:[%s2989_s4 + $0x7d0] sm:$0xff]  ;;  %v741_v45 = vld [vmem:[%s2989_s4 + $0x5b8] sm:$0xff] }
  0xae   :  { %1010 = vmatprep.subr.mxu0 %v707_v32  ;;  %1079 = vmatprep.subr.mxu1 %v773_v20  ;;  %v807_v32 = vld [vmem:[%s2989_s4 + $0x7c8] sm:$0xff]  ;;  %v740_v20 = vld [vmem:[%s2989_s4 + $0x5b0] sm:$0xff] }
  0xaf   :  { %1011 = vmatpush1.msra.mxu0 %v706_v30  ;;  %1080 = vmatpush1.msra.mxu1 %v772_v61  ;;  %v806_v30 = vld [vmem:[%s2989_s4 + $0x7c0] sm:$0xff]  ;;  %v739_v61 = vld [vmem:[%s2989_s4 + $0x5a8] sm:$0xff] }
  0xb0   :  { %1012 = vmatprep.subr.mxu0 %v705_v44  ;;  %1081 = vmatprep.subr.mxu1 %v771_v49  ;;  %v805_v44 = vld [vmem:[%s2989_s4 + $0x7b8] sm:$0xff]  ;;  %v738_v49 = vld [vmem:[%s2989_s4 + $0x5a0] sm:$0xff] }
  0xb1   :  { %1013 = vmatpush1.msra.mxu0 %v704_v46  ;;  %1082 = vmatpush1.msra.mxu1 %v770_v48  ;;  %v804_v46 = vld [vmem:[%s2989_s4 + $0x7b0] sm:$0xff]  ;;  %v737_v48 = vld [vmem:[%s2989_s4 + $0x598] sm:$0xff] }
  0xb2   :  { %1014 = vmatprep.subr.mxu0 %v703_v51  ;;  %1083 = vmatprep.subr.mxu1 %v769_v52  ;;  %v803_v51 = vld [vmem:[%s2989_s4 + $0x7a8] sm:$0xff]  ;;  %v736_v52 = vld [vmem:[%s2989_s4 + $0x590] sm:$0xff] }
  0xb3   :  { %1015 = vmatpush1.msra.mxu0 %v702_v54  ;;  %1084 = vmatpush1.msra.mxu1 %v768_v50  ;;  %v802_v54 = vld [vmem:[%s2989_s4 + $0x7a0] sm:$0xff]  ;;  %v735_v50 = vld [vmem:[%s2989_s4 + $0x588] sm:$0xff] }
  0xb4   :  { %1016 = vmatprep.subr.mxu0 %v701_v53  ;;  %1085 = vmatprep.subr.mxu1 %v767_v15  ;;  %v801_v53 = vld [vmem:[%s2989_s4 + $0x798] sm:$0xff]  ;;  %v734_v15 = vld [vmem:[%s2989_s4 + $0x580] sm:$0xff] }
  0xb5   :  { %1017 = vmatpush1.msra.mxu0 %v700_v57  ;;  %1086 = vmatpush1.msra.mxu1 %v766_v58  ;;  %v800_v57 = vld [vmem:[%s2989_s4 + $0x790] sm:$0xff]  ;;  %v733_v58 = vld [vmem:[%s2989_s4 + $0x578] sm:$0xff] }
  0xb6   :  { %1018 = vmatprep.subr.mxu0 %v699_v55  ;;  %1087 = vmatprep.subr.mxu1 %v765_v56  ;;  %v799_v55 = vld [vmem:[%s2989_s4 + $0x788] sm:$0xff]  ;;  %v732_v56 = vld [vmem:[%s2989_s4 + $0x570] sm:$0xff] }
  0xb7   :  { %1019 = vmatpush1.msra.mxu0 %v698_v59  ;;  %1088 = vmatpush1.msra.mxu1 %v764_v60  ;;  %v798_v59 = vld [vmem:[%s2989_s4 + $0x780] sm:$0xff]  ;;  %v731_v60 = vld [vmem:[%s2989_s4 + $0x568] sm:$0xff] }
  0xb8   :  { %1020 = vmatprep.subr.mxu0 %v697_v12  ;;  %1089 = vmatprep.subr.mxu1 %v763_v1  ;;  %v797_v12 = vld [vmem:[%s2989_s4 + $0x778] sm:$0xff]  ;;  %v730_v1 = vld [vmem:[%s2989_s4 + $0x560] sm:$0xff] }
  0xb9   :  { %1021 = vmatpush1.msra.mxu0 %v696_v3  ;;  %1090 = vmatpush1.msra.mxu1 %v762_v62  ;;  %v796_v3 = vld [vmem:[%s2989_s4 + $0x770] sm:$0xff]  ;;  %v729_v62 = vld [vmem:[%s2989_s4 + $0x558] sm:$0xff] }
  0xba   :  { %1022 = vmatprep.subr.mxu0 %v695_v63  ;;  %1091 = vmatprep.subr.mxu1 %v761_v4  ;;  %v795_v63 = vld [vmem:[%s2989_s4 + $0x768] sm:$0xff]  ;;  %v728_v4 = vld [vmem:[%s2989_s4 + $0x550] sm:$0xff] }
  0xbb   :  { %1023 = vmatpush1.msra.mxu0 %v694_v22  ;;  %1092 = vmatpush1.msra.mxu1 %v760_v5  ;;  %v794_v22 = vld [vmem:[%s2989_s4 + $0x760] sm:$0xff]  ;;  %v727_v5 = vld [vmem:[%s2989_s4 + $0x548] sm:$0xff] }
  0xbc   :  { %1024 = vmatprep.subr.mxu0 %v693_v2  ;;  %1093 = vmatprep.subr.mxu1 %v759_v6  ;;  %v793_v2 = vld [vmem:[%s2989_s4 + $0x758] sm:$0xff]  ;;  %v726_v6 = vld [vmem:[%s2989_s4 + $0x540] sm:$0xff] }
  0xbd   :  { %1025 = vmatpush1.msra.mxu0 %v692_v7  ;;  %1094 = vmatpush1.msra.mxu1 %v758_v8  ;;  %v792_v7 = vld [vmem:[%s2989_s4 + $0x750] sm:$0xff]  ;;  %v725_v8 = vld [vmem:[%s2989_s4 + $0x538] sm:$0xff] }
  0xbe   :  { %1026 = vmatprep.subr.mxu0 %v691_v9  ;;  %1095 = vmatprep.subr.mxu1 %v757_v10  ;;  %v791_v9 = vld [vmem:[%s2989_s4 + $0x748] sm:$0xff]  ;;  %v724_v10 = vld [vmem:[%s2989_s4 + $0x530] sm:$0xff] }
  0xbf   :  { %1027 = vmatpush1.msra.mxu0 %v690_v11  ;;  %1096 = vmatpush1.msra.mxu1 %v756_v13  ;;  %v790_v11 = vld [vmem:[%s2989_s4 + $0x740] sm:$0xff]  ;;  %v723_v13 = vld [vmem:[%s2989_s4 + $0x528] sm:$0xff] }
  0xc0   :  { %1028 = vmatprep.subr.mxu0 %v689_v14  ;;  %1097 = vmatprep.subr.mxu1 %v755_v16  ;;  %v789_v14 = vld [vmem:[%s2989_s4 + $0x738] sm:$0xff]  ;;  %v722_v16 = vld [vmem:[%s2989_s4 + $0x520] sm:$0xff] }
  0xc1   :  { %1029 = vmatpush1.msra.mxu0 %v688_v17  ;;  %1098 = vmatpush1.msra.mxu1 %v754_v18  ;;  %v788_v17 = vld [vmem:[%s2989_s4 + $0x730] sm:$0xff]  ;;  %v721_v18 = vld [vmem:[%s2989_s4 + $0x518] sm:$0xff] }
  0xc2   :  { %1030 = vmatprep.subr.mxu0 %v687_v23  ;;  %1099 = vmatprep.subr.mxu1 %v753_v19  ;;  %v787_v23 = vld [vmem:[%s2989_s4 + $0x728] sm:$0xff]  ;;  %v720_v19 = vld [vmem:[%s2989_s4 + $0x510] sm:$0xff] }
  0xc3   :  { %1031 = vmatpush1.msra.mxu0 %v686_v24  ;;  %1100 = vmatpush1.msra.mxu1 %v752_v25  ;;  %v786_v24 = vld [vmem:[%s2989_s4 + $0x720] sm:$0xff]  ;;  %v719_v25 = vld [vmem:[%s2989_s4 + $0x508] sm:$0xff] }
  0xc4   :  { %1032 = vmatprep.subr.mxu0 %v749_v27  ;;  %1101 = vmatprep.subr.mxu1 %v751_v29  ;;  %v785_v27 = vld [vmem:[%s2989_s4 + $0x718] sm:$0xff]  ;;  %v718_v29 = vld [vmem:[%s2989_s4 + $0x500] sm:$0xff] }
  0xc5   :  { %1033 = vmatpush2.msra.mxu0 %v748_v31  ;;  %1102 = vmatpush1.msra.mxu1 %v750_v33  ;;  %v784_v31 = vld [vmem:[%s2989_s4 + $0x710] sm:$0xff]  ;;  %v783_v33 = vld [vmem:[%s2989_s4 + $0x708] sm:$0xff] }
  0xc6   :  { %1034 = vmatprep.subr.mxu0 %v747_v34  ;;  %1103 = vmatprep.subr.mxu1 %v813_v26  ;;  %v557_v34 = vld [vmem:[#allocation3 + $0xf8] sm:$0xff]  ;;  %v782_v26 = vld [vmem:[%s2989_s4 + $0x700] sm:$0xff] }
  0xc7   :  { %1035 = vmatpush2.msra.mxu0 %v746_v35  ;;  %1104 = vmatpush2.msra.mxu1 %v812_v36  ;;  %v556_v35 = vld [vmem:[#allocation3 + $0xf0] sm:$0xff]  ;;  %v555_v36 = vld [vmem:[#allocation3 + $0xe8] sm:$0xff] }
  0xc8   :  { %1036 = vmatprep.subr.mxu0 %v745_v37  ;;  %1105 = vmatprep.subr.mxu1 %v811_v40  ;;  %v554_v37 = vld [vmem:[#allocation3 + $0xe0] sm:$0xff]  ;;  %v553_v40 = vld [vmem:[#allocation3 + $0xd8] sm:$0xff] }
  0xc9   :  { %1037 = vmatpush2.msra.mxu0 %v744_v41  ;;  %1106 = vmatpush2.msra.mxu1 %v810_v42  ;;  %v552_v41 = vld [vmem:[#allocation3 + $0xd0] sm:$0xff]  ;;  %v1570_v42 = vmov 0.0  }
  0xca   :  { %1038 = vmatprep.subr.mxu0 %v743_v38  ;;  %1107 = vmatprep.subr.mxu1 %v809_v39  ;;  %v551_v38 = vld [vmem:[#allocation3 + $0xc8] sm:$0xff]  ;;  %v550_v39 = vld [vmem:[#allocation3 + $0xc0] sm:$0xff] }
  0xcb   :  { %1039 = vmatpush2.msra.mxu0 %v742_v47  ;;  %1108 = vmatpush2.msra.mxu1 %v808_v43  ;;  %v548_v47 = vld [vmem:[#allocation3 + $0xb0] sm:$0xff]  ;;  %v547_v43 = vld [vmem:[#allocation3 + $0xa8] sm:$0xff] }
  0xcc   :  { %1040 = vmatprep.subr.mxu0 %v741_v45  ;;  %1109 = vmatprep.subr.mxu1 %v807_v32  ;;  %v546_v45 = vld [vmem:[#allocation3 + $0xa0] sm:$0xff]  ;;  %v544_v32 = vld [vmem:[#allocation3 + $0x90] sm:$0xff] }
  0xcd   :  { %1041 = vmatpush2.msra.mxu0 %v740_v20  ;;  %1110 = vmatpush2.msra.mxu1 %v806_v30  ;;  %v543_v20 = vld [vmem:[#allocation3 + $0x88] sm:$0xff]  ;;  %v542_v30 = vld [vmem:[#allocation3 + $0x80] sm:$0xff] }
  0xce   :  { %1042 = vmatprep.subr.mxu0 %v739_v61  ;;  %1111 = vmatprep.subr.mxu1 %v805_v44  ;;  %v541_v61 = vld [vmem:[#allocation3 + $0x78] sm:$0xff]  ;;  %v540_v44 = vld [vmem:[#allocation3 + $0x70] sm:$0xff] }
  0xcf   :  { %1043 = vmatpush2.msra.mxu0 %v738_v49  ;;  %1112 = vmatpush2.msra.mxu1 %v804_v46  ;;  %v539_v49 = vld [vmem:[#allocation3 + $0x68] sm:$0xff]  ;;  %v538_v46 = vld [vmem:[#allocation3 + $0x60] sm:$0xff] }
  0xd0   :  { %1044 = vmatprep.subr.mxu0 %v737_v48  ;;  %1113 = vmatprep.subr.mxu1 %v803_v51  ;;  %v537_v48 = vld [vmem:[#allocation3 + $0x58] sm:$0xff]  ;;  %v536_v51 = vld [vmem:[#allocation3 + $0x50] sm:$0xff] }
  0xd1   :  { %1045 = vmatpush2.msra.mxu0 %v736_v52  ;;  %1114 = vmatpush2.msra.mxu1 %v802_v54  ;;  %v535_v52 = vld [vmem:[#allocation3 + $0x48] sm:$0xff]  ;;  %v534_v54 = vld [vmem:[#allocation3 + $0x40] sm:$0xff] }
  0xd2   :  { %1046 = vmatprep.subr.mxu0 %v735_v50  ;;  %1115 = vmatprep.subr.mxu1 %v801_v53  ;;  %v533_v50 = vld [vmem:[#allocation3 + $0x38] sm:$0xff]  ;;  %v532_v53 = vld [vmem:[#allocation3 + $0x30] sm:$0xff] }
  0xd3   :  { %1047 = vmatpush2.msra.mxu0 %v734_v15  ;;  %1116 = vmatpush2.msra.mxu1 %v800_v57  ;;  %v531_v15 = vld [vmem:[#allocation3 + $0x28] sm:$0xff]  ;;  %v530_v57 = vld [vmem:[#allocation3 + $0x20] sm:$0xff] }
  0xd4   :  { %1048 = vmatprep.subr.mxu0 %v733_v58  ;;  %1117 = vmatprep.subr.mxu1 %v799_v55  ;;  %v529_v58 = vld [vmem:[#allocation3 + $0x18] sm:$0xff]  ;;  %v528_v55 = vld [vmem:[#allocation3 + $0x10] sm:$0xff] }
  0xd5   :  { %1049 = vmatpush2.msra.mxu0 %v732_v56  ;;  %1118 = vmatpush2.msra.mxu1 %v798_v59  ;;  %v527_v56 = vld [vmem:[#allocation3 + $0x8] sm:$0xff]  ;;  %v526_v59 = vld [vmem:[#allocation3] sm:$0xff] }
  0xd6   :  { %1050 = vmatprep.subr.mxu0 %v731_v60  ;;  %1119 = vmatprep.subr.mxu1 %v797_v12  ;;  %v525_v60 = vld [vmem:[%s2987_s2] sm:$0x3]  ;;  %v1258_v12 = vld [vmem:[%s2991_s6 + $0xf8] sm:$0xff] }
  0xd7   :  { %1051 = vmatpush2.msra.mxu0 %v730_v1  ;;  %1120 = vmatpush2.msra.mxu1 %v796_v3  ;;  %v1242_v1 = vld [vmem:[%s2991_s6 + $0x78] sm:$0xff]  ;;  %v1257_v3 = vld [vmem:[%s2991_s6 + $0xf0] sm:$0xff] }
  0xd8   :  { %1052 = vmatprep.subr.mxu0 %v729_v62  ;;  %1121 = vmatprep.subr.mxu1 %v795_v63  ;;  %v1241_v62 = vld [vmem:[%s2991_s6 + $0x70] sm:$0xff]  ;;  %v1256_v63 = vld [vmem:[%s2991_s6 + $0xe8] sm:$0xff] }
  0xd9   :  { %1053 = vmatpush2.msra.mxu0 %v728_v4  ;;  %1122 = vmatpush2.msra.mxu1 %v794_v22  ;;  %v1240_v4 = vld [vmem:[%s2991_s6 + $0x68] sm:$0xff]  ;;  %v1255_v22 = vld [vmem:[%s2991_s6 + $0xe0] sm:$0xff] }
  0xda   :  { %1054 = vmatprep.subr.mxu0 %v727_v5  ;;  %1123 = vmatprep.subr.mxu1 %v793_v2  ;;  %v1239_v5 = vld [vmem:[%s2991_s6 + $0x60] sm:$0xff]  ;;  %v1254_v2 = vld [vmem:[%s2991_s6 + $0xd8] sm:$0xff] }
  0xdb   :  { %1055 = vmatpush2.msra.mxu0 %v726_v6  ;;  %1124 = vmatpush2.msra.mxu1 %v792_v7  ;;  %v1238_v6 = vld [vmem:[%s2991_s6 + $0x58] sm:$0xff]  ;;  %v1253_v7 = vld [vmem:[%s2991_s6 + $0xd0] sm:$0xff] }
  0xdc   :  { %1056 = vmatprep.subr.mxu0 %v725_v8  ;;  %1125 = vmatprep.subr.mxu1 %v791_v9  ;;  %v1237_v8 = vld [vmem:[%s2991_s6 + $0x50] sm:$0xff]  ;;  %v1252_v9 = vld [vmem:[%s2991_s6 + $0xc8] sm:$0xff] }
  0xdd   :  { %1057 = vmatpush2.msra.mxu0 %v724_v10  ;;  %1126 = vmatpush2.msra.mxu1 %v790_v11  ;;  %v1236_v10 = vld [vmem:[%s2991_s6 + $0x48] sm:$0xff]  ;;  %v1251_v11 = vld [vmem:[%s2991_s6 + $0xc0] sm:$0xff] }
  0xde   :  { %1058 = vmatprep.subr.mxu0 %v723_v13  ;;  %1127 = vmatprep.subr.mxu1 %v789_v14  ;;  %v1235_v13 = vld [vmem:[%s2991_s6 + $0x40] sm:$0xff]  ;;  %v1250_v14 = vld [vmem:[%s2991_s6 + $0xb8] sm:$0xff] }
  0xdf   :  { %1059 = vmatpush2.msra.mxu0 %v722_v16  ;;  %1128 = vmatpush2.msra.mxu1 %v788_v17  ;;  %v1234_v16 = vld [vmem:[%s2991_s6 + $0x38] sm:$0xff]  ;;  %v1249_v17 = vld [vmem:[%s2991_s6 + $0xb0] sm:$0xff] }
  0xe0   :  { %1060 = vmatprep.subr.mxu0 %v721_v18  ;;  %1129 = vmatprep.subr.mxu1 %v787_v23  ;;  %v1233_v18 = vld [vmem:[%s2991_s6 + $0x30] sm:$0xff]  ;;  %v1248_v23 = vld [vmem:[%s2991_s6 + $0xa8] sm:$0xff] }
  0xe1   :  { %1061 = vmatpush2.msra.mxu0 %v720_v19  ;;  %1130 = vmatpush2.msra.mxu1 %v786_v24  ;;  %v1232_v19 = vld [vmem:[%s2991_s6 + $0x28] sm:$0xff]  ;;  %v1247_v24 = vld [vmem:[%s2991_s6 + $0xa0] sm:$0xff] }
  0xe2   :  { %1062 = vmatprep.subr.mxu0 %v719_v25  ;;  %1131 = vmatprep.subr.mxu1 %v785_v27  ;;  %v1231_v25 = vld [vmem:[%s2991_s6 + $0x20] sm:$0xff]  ;;  %v1246_v27 = vld [vmem:[%s2991_s6 + $0x98] sm:$0xff] }
  0xe3   :  { %1063 = vmatpush2.msra.mxu0 %v718_v29  ;;  %1132 = vmatpush2.msra.mxu1 %v784_v31  ;;  %v1230_v29 = vld [vmem:[%s2991_s6 + $0x18] sm:$0xff]  ;;  %v1245_v31 = vld [vmem:[%s2991_s6 + $0x90] sm:$0xff] }
  0xe4   :  { %1065 = vmatmul.mubr.f32.vlgmr.msra.gmra.mxu0 %v2448_v21  ;;  %1133 = vmatprep.subr.mxu1 %v783_v33  ;;  %v549_v21 = vld [vmem:[#allocation3 + $0xb8] sm:$0xff]  ;;  %v1229_v33 = vld [vmem:[%s2991_s6 + $0x10] sm:$0xff] }
  0xe5   :  { %1142 = vmatprep.subr.mxu0 %v557_v34  ;;  %1134 = vmatpush2.msra.mxu1 %v782_v26  ;;  %v1244_v34 = vld [vmem:[%s2991_s6 + $0x88] sm:$0xff] }
  0xe6   :  { %1143 = vmatpush1.msra.mxu0 %v556_v35  ;;  %1136 = vmatmul.mubr.f32.vlgmr.msra.gmra.mxu1 %v2458_v28  ;;  %v545_v28 = vld [vmem:[#allocation3 + $0x98] sm:$0xff]  ;;  %v1228_v26 = vld [vmem:[%s2991_s6 + $0x8] sm:$0xff]  ;;  %v1243_v35 = vld [vmem:[%s2991_s6 + $0x80] sm:$0xff] }
  0xe7   :  { %1144 = vmatprep.subr.mxu0 %v555_v36  ;;  %1206 = vmatprep.mubr.f32.mxu0 %v1570_v42  ;;  %v1227_v36 = vld [vmem:[%s2991_s6] sm:$0xff] }
  0xe8   :  { %1145 = vmatpush1.msra.mxu0 %v554_v37  ;;  %1445 = vmatprep.subr.mxu1 %v1258_v12  ;;  %v1343_v37 = vld [vmem:[%s2993_s8 + $0x38] sm:$0xff]  ;;  %v1337_v12 = vld [vmem:[%s2993_s8 + $0x8] sm:$0xff] }
  0xe9   :  { %1146 = vmatprep.subr.mxu0 %v553_v40  ;;  %1446 = vmatpush3.msra.mxu1 %v1242_v1  ;;  %v1342_v40 = vld [vmem:[%s2993_s8 + $0x30] sm:$0xff]  ;;  %v1336_v1 = vld [vmem:[%s2993_s8] sm:$0xff] }
  0xea   :  { %1147 = vmatpush1.msra.mxu0 %v552_v41  ;;  %1447 = vmatprep.subr.mxu1 %v1257_v3  ;;  %v1341_v41 = vld [vmem:[%s2993_s8 + $0x28] sm:$0xff] }
  0xeb   :  { %1148 = vmatprep.subr.mxu0 %v551_v38  ;;  %1448 = vmatpush3.msra.mxu1 %v1241_v62  ;;  %v1340_v38 = vld [vmem:[%s2993_s8 + $0x20] sm:$0xff] }
  0xec   :  { %1149 = vmatpush1.msra.mxu0 %v550_v39  ;;  %1449 = vmatprep.subr.mxu1 %v1256_v63  ;;  %v1442_v62 = vld [vmem:[%s2992_s7] ss:$0 sm:$0xff] }
  0xed   :  { %1150 = vmatprep.subr.mxu0 %v549_v21  ;;  %1450 = vmatpush3.msra.mxu1 %v1240_v4 }
  0xee   :  { %1151 = vmatpush1.msra.mxu0 %v548_v47  ;;  %1451 = vmatprep.subr.mxu1 %v1255_v22 }
  0xef   :  { %1152 = vmatprep.subr.mxu0 %v547_v43  ;;  %1452 = vmatpush3.msra.mxu1 %v1239_v5  ;;  %v1443_v5 = vld [vmem:[%s2994_s9] ss:$0 sm:$0xff] }
  0xf0   :  { %1153 = vmatpush1.msra.mxu0 %v546_v45  ;;  %1453 = vmatprep.subr.mxu1 %v1254_v2 }
  0xf1   :  { %1154 = vmatprep.subr.mxu0 %v545_v28  ;;  %1454 = vmatpush3.msra.mxu1 %v1238_v6 }
  0xf2   :  { %1155 = vmatpush1.msra.mxu0 %v544_v32  ;;  %1455 = vmatprep.subr.mxu1 %v1253_v7 }
  0xf3   :  { %1156 = vmatprep.subr.mxu0 %v543_v20  ;;  %1456 = vmatpush3.msra.mxu1 %v1237_v8 }
  0xf4   :  { %1157 = vmatpush1.msra.mxu0 %v542_v30  ;;  %1457 = vmatprep.subr.mxu1 %v1252_v9 }
  0xf5   :  { %1158 = vmatprep.subr.mxu0 %v541_v61  ;;  %1458 = vmatpush3.msra.mxu1 %v1236_v10 }
  0xf6   :  { %1159 = vmatpush1.msra.mxu0 %v540_v44  ;;  %1459 = vmatprep.subr.mxu1 %v1251_v11 }
  0xf7   :  { %1160 = vmatprep.subr.mxu0 %v539_v49  ;;  %1460 = vmatpush3.msra.mxu1 %v1235_v13  ;;  %v1221_v49 = vsub.s32 1, %v2239_v0 }
  0xf8   :  { %1161 = vmatpush1.msra.mxu0 %v538_v46  ;;  %1461 = vmatprep.subr.mxu1 %v1250_v14 }
  0xf9   :  { %1162 = vmatprep.subr.mxu0 %v537_v48  ;;  %1462 = vmatpush3.msra.mxu1 %v1234_v16  ;;  %v1217_v48 = vsub.s32 0, %v2239_v0  ;;  %v1339_v0 = vld [vmem:[%s2993_s8 + $0x18] sm:$0xff] }
  0xfa   :  { %1163 = vmatpush1.msra.mxu0 %v536_v51  ;;  %1463 = vmatprep.subr.mxu1 %v1249_v17  ;;  %v1213_v51 = vld [vmem:[%s2990_s5] sm:$0x3] }
  0xfb   :  { %1164 = vmatprep.subr.mxu0 %v535_v52  ;;  %1464 = vmatpush3.msra.mxu1 %v1233_v18 }
  0xfc   :  { %1165 = vmatpush1.msra.mxu0 %v534_v54  ;;  %1465 = vmatprep.subr.mxu1 %v1248_v23 }
  0xfd   :  { %1166 = vmatprep.subr.mxu0 %v533_v50  ;;  %1466 = vmatpush3.msra.mxu1 %v1232_v19 }
  0xfe   :  { %1167 = vmatpush1.msra.mxu0 %v532_v53  ;;  %1467 = vmatprep.subr.mxu1 %v1247_v24  ;;  %v1222_v53 = vrot.slane %v1213_v51, %v1221_v49 }
  0xff   :  { %1168 = vmatprep.subr.mxu0 %v531_v15  ;;  %1468 = vmatpush3.msra.mxu1 %v1231_v25 }
 0x100   :  { %1169 = vmatpush1.msra.mxu0 %v530_v57  ;;  %1469 = vmatprep.subr.mxu1 %v1246_v27  ;;  %v1218_v57 = vrot.slane %v1213_v51, %v1217_v48 }
 0x101   :  { %1170 = vmatprep.subr.mxu0 %v529_v58  ;;  %1470 = vmatpush3.msra.mxu1 %v1230_v29 }
 0x102   :  { %1171 = vmatpush1.msra.mxu0 %v528_v55  ;;  %1471 = vmatprep.subr.mxu1 %v1245_v31 }
 0x103   :  { %1172 = vmatprep.subr.mxu0 %v527_v56  ;;  %1472 = vmatpush3.msra.mxu1 %v1229_v33 }
 0x104   :  { %1173 = vmatpush1.msra.mxu0 %v526_v59  ;;  %1473 = vmatprep.subr.mxu1 %v1244_v34 }
 0x105   :  { %1207 = vmatmul.mubr.f32.vlgmr.msra.gmra.mxu0 %v525_v60  ;;  %1489 = vmatprep.subr.mxu0 %v1570_v42  ;;  %v1338_v60 = vld [vmem:[%s2993_s8 + $0x10] sm:$0xff]  ;;  %s1433_s8 = sshll.u32 %s1572_s17, 4  ;;  %s1434_s8 = int_to_ptr.vmem [resolvable:$true] %s1433_s8 }
 0x106   :  { %1474 = vmatpush3.msra.mxu1 %v1228_v26  ;;  %1490 = vmatpush3.msra.mxu0 %v1343_v37  ;;  %s1540_s18 = scalar_lea.vmem %s1434_s8, 32  ;;  %p1545_p6 = scmp.lt.s32.totalorder %s1434_s8, %s1434_s8 }
 0x107   :  { %1475 = vmatprep.subr.mxu1 %v1243_v35  ;;  %1491 = vmatprep.subr.mxu0 %v1570_v42  ;;  %p1541_p5 = scmp.ne.s32.totalorder %s1434_s8, %s1540_s18  ;;  %p1546_p7 = scmp.lt.s32.totalorder %s1540_s18, %s1540_s18 }
 0x108   :  { %1476 = vmatpush3.msra.mxu1 %v1227_v36  ;;  %1492 = vmatpush3.msra.mxu0 %v1342_v40 }
 0x109   :  { %1493 = vmatprep.subr.mxu0 %v1570_v42  ;;  %1505 = vmatprep.mubr.msk.f32.mxu0 %vm1571_vm4, %v1570_v42  ;;  %p1547_p8 = por %p1546_p7, %p1545_p6 }
 0x10a   :  { %1494 = vmatpush3.msra.mxu0 %v1341_v41 }
 0x10b   :  { %1495 = vmatprep.subr.mxu0 %v1570_v42  ;;  %p1548_p9 = pnand %p1547_p8, %p1541_p5 }
 0x10c   :  { %1496 = vmatpush3.msra.mxu0 %v1340_v38 }
 0x10d   :  { %1497 = vmatprep.subr.mxu0 %v1570_v42 }
 0x10e   :  { %1498 = vmatpush3.msra.mxu0 %v1339_v0 }
 0x10f   :  { %1499 = vmatprep.subr.mxu0 %v1570_v42 }
 0x110   :  { %1500 = vmatpush3.msra.mxu0 %v1338_v60 }
 0x111   :  { %1501 = vmatprep.subr.mxu0 %v1570_v42 }
 0x112   :  { %1502 = vmatpush3.msra.mxu0 %v1337_v12 }
 0x113   :  { %1503 = vmatprep.subr.mxu0 %v1570_v42 }
 0x114   :  { %1504 = vmatpush3.msra.mxu0 %v1336_v1 }
 0x163   :  { %v924_v39 = vpop.f32.mrf.mxu0 }
 0x165   :  { %v926_v21 = vpop.f32.mrf.mxu0 }
 0x166   :  { %v995_v47 = vpop.f32.mrf.mxu1 }
 0x167   :  { %v996_v28 = vadd.f32 %v995_v47, %v924_v39 }
 0x168   :  { %v997_v45 = vpop.f32.mrf.mxu1 }
 0x169   :  { %v998_v30 = vadd.f32 %v997_v45, %v926_v21 }
 0x1a4   :  { %v1066_v43 = vpop.f32.mrf.mxu0 }
 0x1a5   :  { %v1067_v61 = vadd.f32 %v1066_v43, %v996_v28 }
 0x1a6   :  { %v1068_v32 = vpop.f32.mrf.mxu0  ;;  %v1137_v20 = vpop.f32.mrf.mxu1 }
 0x1a7   :  { %v1069_v44 = vadd.f32 %v1068_v32, %v998_v30  ;;  %v1138_v52 = vadd.f32 %v1137_v20, %v1067_v61 }
 0x1a8   :  { %v1139_v46 = vpop.f32.mrf.mxu1 }
 0x1a9   :  { %v1140_v50 = vadd.f32 %v1139_v46, %v1069_v44 }
 0x1c5   :  { %v1208_v54 = vpop.f32.mrf.mxu0 }
 0x1c6   :  { %v1209_v15 = vadd.f32 %v1208_v54, %v1138_v52 }
 0x1c7   :  { %v1210_v58 = vpop.f32.mrf.mxu0 }
 0x1c8   :  { %v1211_v55 = vadd.f32 %v1210_v58, %v1140_v50  ;;  %v1225_v59 = vadd.f32 %v1218_v57, %v1209_v15 }
 0x1ca   :  { %v1226_v56 = vadd.f32 %v1222_v53, %v1211_v55 }
 0x1cc   :  { %1330 = vmatprep.mubr.f32.mxu1 %v1226_v56 }
 0x1cd   :  { %1331 = vmatmul.mubr.f32.vlgmr.msra.gmra.mxu1 %v1225_v59 }
 0x28d   :  { %v1477_v3 = vpop.f32.mrf.mxu1 }
 0x28f   :  { %v1478_v63 = vpop.f32.mrf.mxu1 }
 0x290   :  { %v1479_v4 = vadd.f32 %v1478_v63, %v1477_v3 }
 0x292   :  { %v1333_v22 = vadd.f32 %v1479_v4, %v1442_v62 }
 0x294   :  { %1506 = vmatmul.mubr.msk.f32.vlgmr.msra.gmra.mxu0 %vm1351_vm5, %v1333_v22 }
 0x354   :  { %v1421_v2 = vpop.f32.mrf.mxu0 }
 0x355   :  { %v1422_v6 = vadd.f32 %v1443_v5, %v1421_v2 }
 0x356   :  { %v1507_v42 = vpop.f32.mrf.mxu0 }
 0x357   :  { %1426 = vst.msk [vmem:[#allocation6] sm:$0x3] %vm1425_vm6, %v1422_v6 }
 0x358   :  { %1551 = shalt.err (!%p1548_p9)
}
 0x359   :  { %1436 = dma.vmem_to_hbm [thread:$0]  %s1434_s8, 32, %s2995_s10, [#allocation5]  }
 0x35a   :  { %1562 = dma.done.wait [#allocation5], 32  }
 0x35b   :  { %1563 = vsyncadd [#allocation5], 4294967264 }
 0x35c   :  { %1440 = vsyncpa [#allocation4], 1 }
 0x35d   :  { %1441 = vsyncpa [#allocation5], 1 }

</bundles_post_ra>
